<compile_context>
chip_gen: v5e
topology: v5e:2x2
jax: 0.10.0
libtpu: 0.0.40
codegen_flags: <defaults>
</compile_context>

<pallas_src>
import math

import jax
import jax.numpy as jnp
from jax.experimental import pallas as pl
from jax.experimental.pallas import tpu as pltpu


# ------------------------------- helpers ------------------------------------

def _round_up(n, m):
    return ((n + m - 1) // m) * m


def _pool_matrix(oh, ow):
    """(oh*ow, (oh/2)*(ow/2)) avg-pool matrix with the 0.25 scale folded in."""
    ho, wo = oh // 2, ow // 2
    r = jnp.arange(oh * ow)
    dst = (r // ow // 2) * wo + (r % ow) // 2
    return (0.25 * jax.nn.one_hot(dst, ho * wo, dtype=jnp.float32)).astype(jnp.bfloat16)


# ----------------------------- Pallas kernel ---------------------------------

def _lenet_fused_kernel(cols1_ref, w1bd_ref, b1_ref, p1_ref, sel2_ref, w2bd_ref,
                        b2_ref, p2_ref, esel_ref, fw1_ref, fb1_ref, fw2_ref,
                        fb2_ref, fw3_ref, fb3_ref, out_ref):
    """Whole LeNet forward for one batch tile of TB images.

    cols1_ref: (TB*25, 784) bf16   conv1 im2col slab, rows = (image, tap)
    w1bd_ref:  (TB*6, TB*25) bf16  block-diagonal conv1 weights
    b1_ref:    (TB*6, 1)  f32      conv1 bias (tiled per image)
    p1_ref:    (784, 196) bf16     2x2 avg-pool matrix, 0.25 folded
    sel2_ref:  (196, 25*128) bf16  conv2 patch-selection (one-hot per tap/pixel)
    w2bd_ref:  (25, TB*16, TB*6)   per-tap block-diagonal conv2 weights (bf16)
    b2_ref:    (TB*16, 1) f32
    p2_ref:    (128, 25)  bf16     2x2 avg-pool matrix, 0.25 folded (row-padded)
    esel_ref:  (16, TB, TB*16)     channel row-selection matrices (bf16)
    fw1_ref:   (16, 25, 128) bf16  FC1 weight, split per input channel
    fw2_ref:   (128, 128) bf16 ; fw3_ref: (128, 128) bf16
    fb*_ref:   (1, 128) f32
    out_ref:   (TB, 128)  f32      logits (first 10 lanes valid)
    """
    bf = jnp.bfloat16
    f32 = jnp.float32

    # conv1 (+bias, sigmoid): one MXU matmul for the whole batch tile.
    a1 = jnp.dot(w1bd_ref[...], cols1_ref[...], preferred_element_type=f32)
    a1 = jax.nn.sigmoid(a1 + b1_ref[...])                       # (TB*6, 784) f32

    # avg-pool 2x2 as a matmul (scale pre-folded).
    a1p = jnp.dot(a1.astype(bf), p1_ref[...], preferred_element_type=f32)
    a1p = a1p.astype(bf)                                         # (TB*6, 196)

    # conv2: in-kernel patch extraction via a 0/1 selection matmul, then
    # per-tap channel mixing (block-diagonal over the batch tile), f32 accum.
    z = jnp.dot(a1p, sel2_ref[...], preferred_element_type=f32).astype(bf)  # (TB*6, 3200)
    rows2 = w2bd_ref.shape[1]                                    # TB*16
    a2 = jnp.zeros((rows2, 128), f32)
    for t in range(25):
        a2 = a2 + jnp.dot(w2bd_ref[t], z[:, t * 128:(t + 1) * 128],
                          preferred_element_type=f32)
    a2 = jax.nn.sigmoid(a2 + b2_ref[...])                        # (TB*16, 128)

    # avg-pool 2x2 (scale folded; padded lanes of a2 hit zero rows of p2).
    a2p = jnp.dot(a2.astype(bf), p2_ref[...], preferred_element_type=f32)
    a2p = a2p.astype(bf)                                         # (TB*16, 25)

    # FC1: realize nn.Flatten with one-hot row selections (no reshapes):
    # per channel c, pick rows (b, c) of a2p and contract against the matching
    # 25-row slab of the FC1 weight; accumulate over the 16 channels.
    tb = esel_ref.shape[1]
    h = jnp.zeros((tb, 128), f32)
    for c in range(16):
        xc = jnp.dot(esel_ref[c], a2p, preferred_element_type=f32).astype(bf)  # (TB, 25)
        h = h + jnp.dot(xc, fw1_ref[c], preferred_element_type=f32)
    h = jax.nn.sigmoid(h + fb1_ref[...]).astype(bf)              # (TB, 128)

    # FC2 + FC3 (widths pre-padded to 128 -> lane-dense output store).
    h = jax.nn.sigmoid(jnp.dot(h, fw2_ref[...], preferred_element_type=f32)
                       + fb2_ref[...]).astype(bf)
    out_ref[...] = (jnp.dot(h, fw3_ref[...], preferred_element_type=f32)
                    + fb3_ref[...])


def _lenet_pallas(cols1, kp, batch_padded, tb):
    """cols1: (Bp*25, 784) bf16 -> (Bp, 128) f32 logits slab, one launch."""
    nb = batch_padded // tb

    def _const_spec(a):
        nd = a.ndim
        return pl.BlockSpec(a.shape, lambda i, nd=nd: (0,) * nd)

    const_names = ("w1bd", "b1", "pool1", "sel2", "w2bd", "b2", "pool2",
                   "esel", "fw1", "fb1", "fw2", "fb2", "fw3", "fb3")
    in_specs = [pl.BlockSpec((tb * 25, 784), lambda i: (i, 0))]
    in_specs += [_const_spec(kp[name]) for name in const_names]

    return pl.pallas_call(
        _lenet_fused_kernel,
        out_shape=jax.ShapeDtypeStruct((batch_padded, 128), jnp.float32),
        grid=(nb,),
        in_specs=in_specs,
        out_specs=pl.BlockSpec((tb, 128), lambda i: (i, 0)),
        compiler_params=pltpu.CompilerParams(dimension_semantics=("parallel",)),
    )(cols1, *[kp[name] for name in const_names])


# --------------------------- in-jit XLA glue ---------------------------------

def _im2col_conv1(xpad):
    """xpad: (Bp, 32, 32) bf16 -> (Bp*25, 784), rows ordered (image, tap)."""
    bp = xpad.shape[0]
    cols = [xpad[:, di:di + 28, dj:dj + 28].reshape(bp, 1, 784)
            for di in range(5) for dj in range(5)]
    return jnp.concatenate(cols, axis=1).reshape(bp * 25, 784)


# ------------------------------ parameters -----------------------------------

def _xavier_uniform(key, shape, fan_in, fan_out):
    bound = math.sqrt(6.0 / (fan_in + fan_out))
    return jax.random.uniform(key, shape, jnp.float32, -bound, bound)


def init_lenet_params(seed=0):
    """Raw parameters in PyTorch layouts (weights (OC,IC,K,K) / (out,in))."""
    keys = jax.random.split(jax.random.PRNGKey(seed), 5)
    p = {}
    p["c1_w"] = _xavier_uniform(keys[0], (6, 1, 5, 5), 1 * 25, 6 * 25)
    p["c1_b"] = jnp.zeros((6,), jnp.float32)
    p["c2_w"] = _xavier_uniform(keys[1], (16, 6, 5, 5), 6 * 25, 16 * 25)
    p["c2_b"] = jnp.zeros((16,), jnp.float32)
    p["f1_w"] = _xavier_uniform(keys[2], (120, 400), 400, 120)
    p["f1_b"] = jnp.zeros((120,), jnp.float32)
    p["f2_w"] = _xavier_uniform(keys[3], (84, 120), 120, 84)
    p["f2_b"] = jnp.zeros((84,), jnp.float32)
    p["f3_w"] = _xavier_uniform(keys[4], (10, 84), 84, 10)
    p["f3_b"] = jnp.zeros((10,), jnp.float32)
    return p


def prepare_kernel_params(p, batch_tile=8):
    """One-time repack into kernel-ready layouts for a fixed batch tile TB."""
    tb = batch_tile
    bf = jnp.bfloat16
    eye = jnp.eye(tb, dtype=jnp.float32)
    kp = {}

    # conv1: (6,1,5,5) -> (6,25), block-diagonal over the batch tile.
    w1 = p["c1_w"].reshape(6, 25)
    kp["w1bd"] = jnp.kron(eye, w1).astype(bf)                        # (TB*6, TB*25)
    kp["b1"] = jnp.tile(p["c1_b"], tb).reshape(tb * 6, 1)            # f32

    # pool matrices (avg 2x2, stride 2) with 0.25 folded in.
    kp["pool1"] = _pool_matrix(28, 28)                               # (784, 196)
    kp["pool2"] = jnp.pad(_pool_matrix(10, 10), ((0, 28), (0, 0)))   # (128, 25)

    # conv2 patch-selection matrix: column t*128 + q holds the one-hot of the
    # pooled-conv1 pixel feeding tap t of conv2 output pixel q (lane-aligned).
    di = jnp.repeat(jnp.arange(5), 5)
    dj = jnp.tile(jnp.arange(5), 5)                                  # (25,)
    qy = jnp.repeat(jnp.arange(10), 10)
    qx = jnp.tile(jnp.arange(10), 10)                                # (100,)
    src = (qy[None, :] + di[:, None]) * 14 + (qx[None, :] + dj[:, None])  # (25,100)
    onehots = jax.nn.one_hot(src, 196, dtype=jnp.float32)            # (25,100,196)
    onehots = jnp.pad(onehots, ((0, 0), (0, 28), (0, 0)))            # (25,128,196)
    kp["sel2"] = onehots.reshape(25 * 128, 196).T.astype(bf)         # (196, 3200)

    # conv2 weights: per-tap channel mixing, block-diagonal over the batch tile.
    w2 = p["c2_w"].reshape(16, 6, 25)
    kp["w2bd"] = jnp.stack([jnp.kron(eye, w2[:, :, t]) for t in range(25)],
                           axis=0).astype(bf)                        # (25, TB*16, TB*6)
    kp["b2"] = jnp.tile(p["c2_b"], tb).reshape(tb * 16, 1)           # f32

    # Channel row-selection matrices (realize nn.Flatten without reshapes).
    kp["esel"] = jnp.stack(
        [jnp.kron(eye, jax.nn.one_hot(c, 16, dtype=jnp.float32)[None, :])
         for c in range(16)], axis=0).astype(bf)                     # (16, TB, TB*16)

    # FC stack, pre-transposed; hidden/output widths padded to 128 (lane-dense).
    # NOTE: the zero-padded weight rows are what nullify the sigmoid(0)=0.5
    # values of the padded hidden units -- keep the pads zero.
    kp["fw1"] = jnp.pad(p["f1_w"].T, ((0, 0), (0, 8))).reshape(16, 25, 128).astype(bf)
    kp["fb1"] = jnp.pad(p["f1_b"], (0, 8)).reshape(1, 128)
    kp["fw2"] = jnp.pad(p["f2_w"].T, ((0, 8), (0, 44))).astype(bf)   # (128, 128)
    kp["fb2"] = jnp.pad(p["f2_b"], (0, 44)).reshape(1, 128)
    kp["fw3"] = jnp.pad(p["f3_w"].T, ((0, 44), (0, 118))).astype(bf)  # (128, 128)
    kp["fb3"] = jnp.pad(p["f3_b"], (0, 118)).reshape(1, 128)
    return kp


# ------------------------------ forward pass ---------------------------------

@jax.jit
def lenet_forward(x, kp):
    """Matches: y = x.view(-1, 1, 28, 28); y = self.net(y)  ->  (B, 10) f32."""
    tb = kp["esel"].shape[1]                       # batch tile baked into params
    y = x.reshape(-1, 28, 28).astype(jnp.float32)
    b = y.shape[0]
    bp = _round_up(b, tb)
    # pad batch to a multiple of TB (garbage rows are sliced off at the end)
    # and pad spatially for conv1's padding=2.
    y = jnp.pad(y, ((0, bp - b), (2, 2), (2, 2))).astype(jnp.bfloat16)  # (Bp,32,32)
    cols1 = _im2col_conv1(y)                       # (Bp*25, 784) bf16
    out = _lenet_pallas(cols1, kp, bp, tb)         # (Bp, 128) f32
    return out[:b, :10]


if __name__ == "__main__":
    key = jax.random.PRNGKey(0)
    # LeNet requires 28x28 single-channel inputs (x.view(-1, 1, 28, 28)).
    x = jax.random.normal(key, (2, 1, 28, 28), dtype=jnp.float32)

    raw_params = init_lenet_params(seed=0)
    kparams = prepare_kernel_params(raw_params, batch_tile=8)  # repacked once

    logits = lenet_forward(x, kparams)
    logits = jax.block_until_ready(logits)

    assert logits.shape == (2, 10), logits.shape
    assert bool(jnp.all(jnp.isfinite(logits)))
    print("KERNEL_OK")
</pallas_src>

<mosaic_0001>
module attributes {stable_mosaic.version = 11 : i64} {
  func.func @_lenet_fused_kernel(%arg0: i32, %arg1: memref<200x784xbf16, #tpu.memory_space<vmem>>, %arg2: memref<48x200xbf16, #tpu.memory_space<vmem>>, %arg3: memref<48x1xf32, #tpu.memory_space<vmem>>, %arg4: memref<784x196xbf16, #tpu.memory_space<vmem>>, %arg5: memref<196x3200xbf16, #tpu.memory_space<vmem>>, %arg6: memref<25x128x48xbf16, #tpu.memory_space<vmem>>, %arg7: memref<128x1xf32, #tpu.memory_space<vmem>>, %arg8: memref<128x25xbf16, #tpu.memory_space<vmem>>, %arg9: memref<16x8x128xbf16, #tpu.memory_space<vmem>>, %arg10: memref<16x25x128xbf16, #tpu.memory_space<vmem>>, %arg11: memref<1x128xf32, #tpu.memory_space<vmem>>, %arg12: memref<128x128xbf16, #tpu.memory_space<vmem>>, %arg13: memref<1x128xf32, #tpu.memory_space<vmem>>, %arg14: memref<128x128xbf16, #tpu.memory_space<vmem>>, %arg15: memref<1x128xf32, #tpu.memory_space<vmem>>, %arg16: memref<8x128xf32, #tpu.memory_space<vmem>>) attributes {dimension_semantics = [#tpu.dimension_semantics<parallel>], iteration_bounds = array<i64: 1>, scalar_prefetch = 0 : i64, scratch_operands = 0 : i64, tpu.core_type = #tpu.core_type<tc>, window_params = [{transform_indices = @transform_0, window_bounds = array<i64: 200, 784>}, {pipeline_mode = #tpu.pipeline_mode<synchronous>, transform_indices = @transform_1, window_bounds = array<i64: 48, 200>}, {pipeline_mode = #tpu.pipeline_mode<synchronous>, transform_indices = @transform_2, window_bounds = array<i64: 48, 1>}, {pipeline_mode = #tpu.pipeline_mode<synchronous>, transform_indices = @transform_3, window_bounds = array<i64: 784, 196>}, {pipeline_mode = #tpu.pipeline_mode<synchronous>, transform_indices = @transform_4, window_bounds = array<i64: 196, 3200>}, {pipeline_mode = #tpu.pipeline_mode<synchronous>, transform_indices = @transform_5, window_bounds = array<i64: 25, 128, 48>}, {pipeline_mode = #tpu.pipeline_mode<synchronous>, transform_indices = @transform_6, window_bounds = array<i64: 128, 1>}, {pipeline_mode = #tpu.pipeline_mode<synchronous>, transform_indices = @transform_7, window_bounds = array<i64: 128, 25>}, {pipeline_mode = #tpu.pipeline_mode<synchronous>, transform_indices = @transform_8, window_bounds = array<i64: 16, 8, 128>}, {pipeline_mode = #tpu.pipeline_mode<synchronous>, transform_indices = @transform_9, window_bounds = array<i64: 16, 25, 128>}, {pipeline_mode = #tpu.pipeline_mode<synchronous>, transform_indices = @transform_10, window_bounds = array<i64: 1, 128>}, {pipeline_mode = #tpu.pipeline_mode<synchronous>, transform_indices = @transform_11, window_bounds = array<i64: 128, 128>}, {pipeline_mode = #tpu.pipeline_mode<synchronous>, transform_indices = @transform_12, window_bounds = array<i64: 1, 128>}, {pipeline_mode = #tpu.pipeline_mode<synchronous>, transform_indices = @transform_13, window_bounds = array<i64: 128, 128>}, {pipeline_mode = #tpu.pipeline_mode<synchronous>, transform_indices = @transform_14, window_bounds = array<i64: 1, 128>}, {transform_indices = @transform_15, window_bounds = array<i64: 8, 128>}]} {
    %c0 = arith.constant 0 : index
    %c0_0 = arith.constant 0 : index
    %0 = vector.load %arg2[%c0, %c0_0] : memref<48x200xbf16, #tpu.memory_space<vmem>>, vector<48x200xbf16>
    %c0_1 = arith.constant 0 : index
    %c0_2 = arith.constant 0 : index
    %1 = vector.load %arg1[%c0_1, %c0_2] : memref<200x784xbf16, #tpu.memory_space<vmem>>, vector<200x784xbf16>
    %cst = arith.constant dense<0.000000e+00> : vector<48x784xf32>
    %2 = tpu.matmul %0, %1, %cst {dimension_numbers = #tpu.dot_dimension_numbers<[1], [0], [0], [1], [0, 0, 1, 1], [], []>} : vector<48x200xbf16>, vector<200x784xbf16>, vector<48x784xf32> -> vector<48x784xf32>
    %c0_3 = arith.constant 0 : index
    %c0_4 = arith.constant 0 : index
    %3 = vector.load %arg3[%c0_3, %c0_4] : memref<48x1xf32, #tpu.memory_space<vmem>>, vector<48x1xf32>
    %4 = vector.broadcast %3 : vector<48x1xf32> to vector<48x784xf32>
    %5 = arith.addf %2, %4 : vector<48x784xf32>
    %6 = arith.negf %5 : vector<48x784xf32>
    %7 = math.exp %6 : vector<48x784xf32>
    %cst_5 = arith.constant 1.000000e+00 : f32
    %8 = vector.broadcast %cst_5 : f32 to vector<48x784xf32>
    %9 = arith.addf %8, %7 : vector<48x784xf32>
    %10 = arith.divf %8, %9 : vector<48x784xf32>
    %11 = arith.truncf %10 : vector<48x784xf32> to vector<48x784xbf16>
    %c0_6 = arith.constant 0 : index
    %c0_7 = arith.constant 0 : index
    %12 = vector.load %arg4[%c0_6, %c0_7] : memref<784x196xbf16, #tpu.memory_space<vmem>>, vector<784x196xbf16>
    %cst_8 = arith.constant dense<0.000000e+00> : vector<48x196xf32>
    %13 = tpu.matmul %11, %12, %cst_8 {dimension_numbers = #tpu.dot_dimension_numbers<[1], [0], [0], [1], [0, 0, 1, 1], [], []>} : vector<48x784xbf16>, vector<784x196xbf16>, vector<48x196xf32> -> vector<48x196xf32>
    %14 = arith.truncf %13 : vector<48x196xf32> to vector<48x196xbf16>
    %c0_9 = arith.constant 0 : index
    %c0_10 = arith.constant 0 : index
    %15 = vector.load %arg5[%c0_9, %c0_10] : memref<196x3200xbf16, #tpu.memory_space<vmem>>, vector<196x3200xbf16>
    %cst_11 = arith.constant dense<0.000000e+00> : vector<48x3200xf32>
    %16 = tpu.matmul %14, %15, %cst_11 {dimension_numbers = #tpu.dot_dimension_numbers<[1], [0], [0], [1], [0, 0, 1, 1], [], []>} : vector<48x196xbf16>, vector<196x3200xbf16>, vector<48x3200xf32> -> vector<48x3200xf32>
    %17 = arith.truncf %16 : vector<48x3200xf32> to vector<48x3200xbf16>
    %cst_12 = arith.constant 0.000000e+00 : f32
    %18 = vector.broadcast %cst_12 : f32 to vector<128x128xf32>
    %c0_13 = arith.constant 0 : index
    %c0_14 = arith.constant 0 : index
    %c0_15 = arith.constant 0 : index
    %19 = vector.load %arg6[%c0_13, %c0_14, %c0_15] : memref<25x128x48xbf16, #tpu.memory_space<vmem>>, vector<1x128x48xbf16>
    %20 = vector.shape_cast %19 : vector<1x128x48xbf16> to vector<128x48xbf16>
    %21 = vector.extract_strided_slice %17 {offsets = [0, 0], sizes = [48, 128], strides = [1, 1]} : vector<48x3200xbf16> to vector<48x128xbf16>
    %cst_16 = arith.constant dense<0.000000e+00> : vector<128x128xf32>
    %22 = tpu.matmul %20, %21, %cst_16 {dimension_numbers = #tpu.dot_dimension_numbers<[1], [0], [0], [1], [0, 0, 1, 1], [], []>} : vector<128x48xbf16>, vector<48x128xbf16>, vector<128x128xf32> -> vector<128x128xf32>
    %23 = arith.addf %18, %22 : vector<128x128xf32>
    %c1 = arith.constant 1 : index
    %c0_17 = arith.constant 0 : index
    %c0_18 = arith.constant 0 : index
    %24 = vector.load %arg6[%c1, %c0_17, %c0_18] : memref<25x128x48xbf16, #tpu.memory_space<vmem>>, vector<1x128x48xbf16>
    %25 = vector.shape_cast %24 : vector<1x128x48xbf16> to vector<128x48xbf16>
    %26 = vector.extract_strided_slice %17 {offsets = [0, 128], sizes = [48, 128], strides = [1, 1]} : vector<48x3200xbf16> to vector<48x128xbf16>
    %cst_19 = arith.constant dense<0.000000e+00> : vector<128x128xf32>
    %27 = tpu.matmul %25, %26, %cst_19 {dimension_numbers = #tpu.dot_dimension_numbers<[1], [0], [0], [1], [0, 0, 1, 1], [], []>} : vector<128x48xbf16>, vector<48x128xbf16>, vector<128x128xf32> -> vector<128x128xf32>
    %28 = arith.addf %23, %27 : vector<128x128xf32>
    %c2 = arith.constant 2 : index
    %c0_20 = arith.constant 0 : index
    %c0_21 = arith.constant 0 : index
    %29 = vector.load %arg6[%c2, %c0_20, %c0_21] : memref<25x128x48xbf16, #tpu.memory_space<vmem>>, vector<1x128x48xbf16>
    %30 = vector.shape_cast %29 : vector<1x128x48xbf16> to vector<128x48xbf16>
    %31 = vector.extract_strided_slice %17 {offsets = [0, 256], sizes = [48, 128], strides = [1, 1]} : vector<48x3200xbf16> to vector<48x128xbf16>
    %cst_22 = arith.constant dense<0.000000e+00> : vector<128x128xf32>
    %32 = tpu.matmul %30, %31, %cst_22 {dimension_numbers = #tpu.dot_dimension_numbers<[1], [0], [0], [1], [0, 0, 1, 1], [], []>} : vector<128x48xbf16>, vector<48x128xbf16>, vector<128x128xf32> -> vector<128x128xf32>
    %33 = arith.addf %28, %32 : vector<128x128xf32>
    %c3 = arith.constant 3 : index
    %c0_23 = arith.constant 0 : index
    %c0_24 = arith.constant 0 : index
    %34 = vector.load %arg6[%c3, %c0_23, %c0_24] : memref<25x128x48xbf16, #tpu.memory_space<vmem>>, vector<1x128x48xbf16>
    %35 = vector.shape_cast %34 : vector<1x128x48xbf16> to vector<128x48xbf16>
    %36 = vector.extract_strided_slice %17 {offsets = [0, 384], sizes = [48, 128], strides = [1, 1]} : vector<48x3200xbf16> to vector<48x128xbf16>
    %cst_25 = arith.constant dense<0.000000e+00> : vector<128x128xf32>
    %37 = tpu.matmul %35, %36, %cst_25 {dimension_numbers = #tpu.dot_dimension_numbers<[1], [0], [0], [1], [0, 0, 1, 1], [], []>} : vector<128x48xbf16>, vector<48x128xbf16>, vector<128x128xf32> -> vector<128x128xf32>
    %38 = arith.addf %33, %37 : vector<128x128xf32>
    %c4 = arith.constant 4 : index
    %c0_26 = arith.constant 0 : index
    %c0_27 = arith.constant 0 : index
    %39 = vector.load %arg6[%c4, %c0_26, %c0_27] : memref<25x128x48xbf16, #tpu.memory_space<vmem>>, vector<1x128x48xbf16>
    %40 = vector.shape_cast %39 : vector<1x128x48xbf16> to vector<128x48xbf16>
    %41 = vector.extract_strided_slice %17 {offsets = [0, 512], sizes = [48, 128], strides = [1, 1]} : vector<48x3200xbf16> to vector<48x128xbf16>
    %cst_28 = arith.constant dense<0.000000e+00> : vector<128x128xf32>
    %42 = tpu.matmul %40, %41, %cst_28 {dimension_numbers = #tpu.dot_dimension_numbers<[1], [0], [0], [1], [0, 0, 1, 1], [], []>} : vector<128x48xbf16>, vector<48x128xbf16>, vector<128x128xf32> -> vector<128x128xf32>
    %43 = arith.addf %38, %42 : vector<128x128xf32>
    %c5 = arith.constant 5 : index
    %c0_29 = arith.constant 0 : index
    %c0_30 = arith.constant 0 : index
    %44 = vector.load %arg6[%c5, %c0_29, %c0_30] : memref<25x128x48xbf16, #tpu.memory_space<vmem>>, vector<1x128x48xbf16>
    %45 = vector.shape_cast %44 : vector<1x128x48xbf16> to vector<128x48xbf16>
    %46 = vector.extract_strided_slice %17 {offsets = [0, 640], sizes = [48, 128], strides = [1, 1]} : vector<48x3200xbf16> to vector<48x128xbf16>
    %cst_31 = arith.constant dense<0.000000e+00> : vector<128x128xf32>
    %47 = tpu.matmul %45, %46, %cst_31 {dimension_numbers = #tpu.dot_dimension_numbers<[1], [0], [0], [1], [0, 0, 1, 1], [], []>} : vector<128x48xbf16>, vector<48x128xbf16>, vector<128x128xf32> -> vector<128x128xf32>
    %48 = arith.addf %43, %47 : vector<128x128xf32>
    %c6 = arith.constant 6 : index
    %c0_32 = arith.constant 0 : index
    %c0_33 = arith.constant 0 : index
    %49 = vector.load %arg6[%c6, %c0_32, %c0_33] : memref<25x128x48xbf16, #tpu.memory_space<vmem>>, vector<1x128x48xbf16>
    %50 = vector.shape_cast %49 : vector<1x128x48xbf16> to vector<128x48xbf16>
    %51 = vector.extract_strided_slice %17 {offsets = [0, 768], sizes = [48, 128], strides = [1, 1]} : vector<48x3200xbf16> to vector<48x128xbf16>
    %cst_34 = arith.constant dense<0.000000e+00> : vector<128x128xf32>
    %52 = tpu.matmul %50, %51, %cst_34 {dimension_numbers = #tpu.dot_dimension_numbers<[1], [0], [0], [1], [0, 0, 1, 1], [], []>} : vector<128x48xbf16>, vector<48x128xbf16>, vector<128x128xf32> -> vector<128x128xf32>
    %53 = arith.addf %48, %52 : vector<128x128xf32>
    %c7 = arith.constant 7 : index
    %c0_35 = arith.constant 0 : index
    %c0_36 = arith.constant 0 : index
    %54 = vector.load %arg6[%c7, %c0_35, %c0_36] : memref<25x128x48xbf16, #tpu.memory_space<vmem>>, vector<1x128x48xbf16>
    %55 = vector.shape_cast %54 : vector<1x128x48xbf16> to vector<128x48xbf16>
    %56 = vector.extract_strided_slice %17 {offsets = [0, 896], sizes = [48, 128], strides = [1, 1]} : vector<48x3200xbf16> to vector<48x128xbf16>
    %cst_37 = arith.constant dense<0.000000e+00> : vector<128x128xf32>
    %57 = tpu.matmul %55, %56, %cst_37 {dimension_numbers = #tpu.dot_dimension_numbers<[1], [0], [0], [1], [0, 0, 1, 1], [], []>} : vector<128x48xbf16>, vector<48x128xbf16>, vector<128x128xf32> -> vector<128x128xf32>
    %58 = arith.addf %53, %57 : vector<128x128xf32>
    %c8 = arith.constant 8 : index
    %c0_38 = arith.constant 0 : index
    %c0_39 = arith.constant 0 : index
    %59 = vector.load %arg6[%c8, %c0_38, %c0_39] : memref<25x128x48xbf16, #tpu.memory_space<vmem>>, vector<1x128x48xbf16>
    %60 = vector.shape_cast %59 : vector<1x128x48xbf16> to vector<128x48xbf16>
    %61 = vector.extract_strided_slice %17 {offsets = [0, 1024], sizes = [48, 128], strides = [1, 1]} : vector<48x3200xbf16> to vector<48x128xbf16>
    %cst_40 = arith.constant dense<0.000000e+00> : vector<128x128xf32>
    %62 = tpu.matmul %60, %61, %cst_40 {dimension_numbers = #tpu.dot_dimension_numbers<[1], [0], [0], [1], [0, 0, 1, 1], [], []>} : vector<128x48xbf16>, vector<48x128xbf16>, vector<128x128xf32> -> vector<128x128xf32>
    %63 = arith.addf %58, %62 : vector<128x128xf32>
    %c9 = arith.constant 9 : index
    %c0_41 = arith.constant 0 : index
    %c0_42 = arith.constant 0 : index
    %64 = vector.load %arg6[%c9, %c0_41, %c0_42] : memref<25x128x48xbf16, #tpu.memory_space<vmem>>, vector<1x128x48xbf16>
    %65 = vector.shape_cast %64 : vector<1x128x48xbf16> to vector<128x48xbf16>
    %66 = vector.extract_strided_slice %17 {offsets = [0, 1152], sizes = [48, 128], strides = [1, 1]} : vector<48x3200xbf16> to vector<48x128xbf16>
    %cst_43 = arith.constant dense<0.000000e+00> : vector<128x128xf32>
    %67 = tpu.matmul %65, %66, %cst_43 {dimension_numbers = #tpu.dot_dimension_numbers<[1], [0], [0], [1], [0, 0, 1, 1], [], []>} : vector<128x48xbf16>, vector<48x128xbf16>, vector<128x128xf32> -> vector<128x128xf32>
    %68 = arith.addf %63, %67 : vector<128x128xf32>
    %c10 = arith.constant 10 : index
    %c0_44 = arith.constant 0 : index
    %c0_45 = arith.constant 0 : index
    %69 = vector.load %arg6[%c10, %c0_44, %c0_45] : memref<25x128x48xbf16, #tpu.memory_space<vmem>>, vector<1x128x48xbf16>
    %70 = vector.shape_cast %69 : vector<1x128x48xbf16> to vector<128x48xbf16>
    %71 = vector.extract_strided_slice %17 {offsets = [0, 1280], sizes = [48, 128], strides = [1, 1]} : vector<48x3200xbf16> to vector<48x128xbf16>
    %cst_46 = arith.constant dense<0.000000e+00> : vector<128x128xf32>
    %72 = tpu.matmul %70, %71, %cst_46 {dimension_numbers = #tpu.dot_dimension_numbers<[1], [0], [0], [1], [0, 0, 1, 1], [], []>} : vector<128x48xbf16>, vector<48x128xbf16>, vector<128x128xf32> -> vector<128x128xf32>
    %73 = arith.addf %68, %72 : vector<128x128xf32>
    %c11 = arith.constant 11 : index
    %c0_47 = arith.constant 0 : index
    %c0_48 = arith.constant 0 : index
    %74 = vector.load %arg6[%c11, %c0_47, %c0_48] : memref<25x128x48xbf16, #tpu.memory_space<vmem>>, vector<1x128x48xbf16>
    %75 = vector.shape_cast %74 : vector<1x128x48xbf16> to vector<128x48xbf16>
    %76 = vector.extract_strided_slice %17 {offsets = [0, 1408], sizes = [48, 128], strides = [1, 1]} : vector<48x3200xbf16> to vector<48x128xbf16>
    %cst_49 = arith.constant dense<0.000000e+00> : vector<128x128xf32>
    %77 = tpu.matmul %75, %76, %cst_49 {dimension_numbers = #tpu.dot_dimension_numbers<[1], [0], [0], [1], [0, 0, 1, 1], [], []>} : vector<128x48xbf16>, vector<48x128xbf16>, vector<128x128xf32> -> vector<128x128xf32>
    %78 = arith.addf %73, %77 : vector<128x128xf32>
    %c12 = arith.constant 12 : index
    %c0_50 = arith.constant 0 : index
    %c0_51 = arith.constant 0 : index
    %79 = vector.load %arg6[%c12, %c0_50, %c0_51] : memref<25x128x48xbf16, #tpu.memory_space<vmem>>, vector<1x128x48xbf16>
    %80 = vector.shape_cast %79 : vector<1x128x48xbf16> to vector<128x48xbf16>
    %81 = vector.extract_strided_slice %17 {offsets = [0, 1536], sizes = [48, 128], strides = [1, 1]} : vector<48x3200xbf16> to vector<48x128xbf16>
    %cst_52 = arith.constant dense<0.000000e+00> : vector<128x128xf32>
    %82 = tpu.matmul %80, %81, %cst_52 {dimension_numbers = #tpu.dot_dimension_numbers<[1], [0], [0], [1], [0, 0, 1, 1], [], []>} : vector<128x48xbf16>, vector<48x128xbf16>, vector<128x128xf32> -> vector<128x128xf32>
    %83 = arith.addf %78, %82 : vector<128x128xf32>
    %c13 = arith.constant 13 : index
    %c0_53 = arith.constant 0 : index
    %c0_54 = arith.constant 0 : index
    %84 = vector.load %arg6[%c13, %c0_53, %c0_54] : memref<25x128x48xbf16, #tpu.memory_space<vmem>>, vector<1x128x48xbf16>
    %85 = vector.shape_cast %84 : vector<1x128x48xbf16> to vector<128x48xbf16>
    %86 = vector.extract_strided_slice %17 {offsets = [0, 1664], sizes = [48, 128], strides = [1, 1]} : vector<48x3200xbf16> to vector<48x128xbf16>
    %cst_55 = arith.constant dense<0.000000e+00> : vector<128x128xf32>
    %87 = tpu.matmul %85, %86, %cst_55 {dimension_numbers = #tpu.dot_dimension_numbers<[1], [0], [0], [1], [0, 0, 1, 1], [], []>} : vector<128x48xbf16>, vector<48x128xbf16>, vector<128x128xf32> -> vector<128x128xf32>
    %88 = arith.addf %83, %87 : vector<128x128xf32>
    %c14 = arith.constant 14 : index
    %c0_56 = arith.constant 0 : index
    %c0_57 = arith.constant 0 : index
    %89 = vector.load %arg6[%c14, %c0_56, %c0_57] : memref<25x128x48xbf16, #tpu.memory_space<vmem>>, vector<1x128x48xbf16>
    %90 = vector.shape_cast %89 : vector<1x128x48xbf16> to vector<128x48xbf16>
    %91 = vector.extract_strided_slice %17 {offsets = [0, 1792], sizes = [48, 128], strides = [1, 1]} : vector<48x3200xbf16> to vector<48x128xbf16>
    %cst_58 = arith.constant dense<0.000000e+00> : vector<128x128xf32>
    %92 = tpu.matmul %90, %91, %cst_58 {dimension_numbers = #tpu.dot_dimension_numbers<[1], [0], [0], [1], [0, 0, 1, 1], [], []>} : vector<128x48xbf16>, vector<48x128xbf16>, vector<128x128xf32> -> vector<128x128xf32>
    %93 = arith.addf %88, %92 : vector<128x128xf32>
    %c15 = arith.constant 15 : index
    %c0_59 = arith.constant 0 : index
    %c0_60 = arith.constant 0 : index
    %94 = vector.load %arg6[%c15, %c0_59, %c0_60] : memref<25x128x48xbf16, #tpu.memory_space<vmem>>, vector<1x128x48xbf16>
    %95 = vector.shape_cast %94 : vector<1x128x48xbf16> to vector<128x48xbf16>
    %96 = vector.extract_strided_slice %17 {offsets = [0, 1920], sizes = [48, 128], strides = [1, 1]} : vector<48x3200xbf16> to vector<48x128xbf16>
    %cst_61 = arith.constant dense<0.000000e+00> : vector<128x128xf32>
    %97 = tpu.matmul %95, %96, %cst_61 {dimension_numbers = #tpu.dot_dimension_numbers<[1], [0], [0], [1], [0, 0, 1, 1], [], []>} : vector<128x48xbf16>, vector<48x128xbf16>, vector<128x128xf32> -> vector<128x128xf32>
    %98 = arith.addf %93, %97 : vector<128x128xf32>
    %c16 = arith.constant 16 : index
    %c0_62 = arith.constant 0 : index
    %c0_63 = arith.constant 0 : index
    %99 = vector.load %arg6[%c16, %c0_62, %c0_63] : memref<25x128x48xbf16, #tpu.memory_space<vmem>>, vector<1x128x48xbf16>
    %100 = vector.shape_cast %99 : vector<1x128x48xbf16> to vector<128x48xbf16>
    %101 = vector.extract_strided_slice %17 {offsets = [0, 2048], sizes = [48, 128], strides = [1, 1]} : vector<48x3200xbf16> to vector<48x128xbf16>
    %cst_64 = arith.constant dense<0.000000e+00> : vector<128x128xf32>
    %102 = tpu.matmul %100, %101, %cst_64 {dimension_numbers = #tpu.dot_dimension_numbers<[1], [0], [0], [1], [0, 0, 1, 1], [], []>} : vector<128x48xbf16>, vector<48x128xbf16>, vector<128x128xf32> -> vector<128x128xf32>
    %103 = arith.addf %98, %102 : vector<128x128xf32>
    %c17 = arith.constant 17 : index
    %c0_65 = arith.constant 0 : index
    %c0_66 = arith.constant 0 : index
    %104 = vector.load %arg6[%c17, %c0_65, %c0_66] : memref<25x128x48xbf16, #tpu.memory_space<vmem>>, vector<1x128x48xbf16>
    %105 = vector.shape_cast %104 : vector<1x128x48xbf16> to vector<128x48xbf16>
    %106 = vector.extract_strided_slice %17 {offsets = [0, 2176], sizes = [48, 128], strides = [1, 1]} : vector<48x3200xbf16> to vector<48x128xbf16>
    %cst_67 = arith.constant dense<0.000000e+00> : vector<128x128xf32>
    %107 = tpu.matmul %105, %106, %cst_67 {dimension_numbers = #tpu.dot_dimension_numbers<[1], [0], [0], [1], [0, 0, 1, 1], [], []>} : vector<128x48xbf16>, vector<48x128xbf16>, vector<128x128xf32> -> vector<128x128xf32>
    %108 = arith.addf %103, %107 : vector<128x128xf32>
    %c18 = arith.constant 18 : index
    %c0_68 = arith.constant 0 : index
    %c0_69 = arith.constant 0 : index
    %109 = vector.load %arg6[%c18, %c0_68, %c0_69] : memref<25x128x48xbf16, #tpu.memory_space<vmem>>, vector<1x128x48xbf16>
    %110 = vector.shape_cast %109 : vector<1x128x48xbf16> to vector<128x48xbf16>
    %111 = vector.extract_strided_slice %17 {offsets = [0, 2304], sizes = [48, 128], strides = [1, 1]} : vector<48x3200xbf16> to vector<48x128xbf16>
    %cst_70 = arith.constant dense<0.000000e+00> : vector<128x128xf32>
    %112 = tpu.matmul %110, %111, %cst_70 {dimension_numbers = #tpu.dot_dimension_numbers<[1], [0], [0], [1], [0, 0, 1, 1], [], []>} : vector<128x48xbf16>, vector<48x128xbf16>, vector<128x128xf32> -> vector<128x128xf32>
    %113 = arith.addf %108, %112 : vector<128x128xf32>
    %c19 = arith.constant 19 : index
    %c0_71 = arith.constant 0 : index
    %c0_72 = arith.constant 0 : index
    %114 = vector.load %arg6[%c19, %c0_71, %c0_72] : memref<25x128x48xbf16, #tpu.memory_space<vmem>>, vector<1x128x48xbf16>
    %115 = vector.shape_cast %114 : vector<1x128x48xbf16> to vector<128x48xbf16>
    %116 = vector.extract_strided_slice %17 {offsets = [0, 2432], sizes = [48, 128], strides = [1, 1]} : vector<48x3200xbf16> to vector<48x128xbf16>
    %cst_73 = arith.constant dense<0.000000e+00> : vector<128x128xf32>
    %117 = tpu.matmul %115, %116, %cst_73 {dimension_numbers = #tpu.dot_dimension_numbers<[1], [0], [0], [1], [0, 0, 1, 1], [], []>} : vector<128x48xbf16>, vector<48x128xbf16>, vector<128x128xf32> -> vector<128x128xf32>
    %118 = arith.addf %113, %117 : vector<128x128xf32>
    %c20 = arith.constant 20 : index
    %c0_74 = arith.constant 0 : index
    %c0_75 = arith.constant 0 : index
    %119 = vector.load %arg6[%c20, %c0_74, %c0_75] : memref<25x128x48xbf16, #tpu.memory_space<vmem>>, vector<1x128x48xbf16>
    %120 = vector.shape_cast %119 : vector<1x128x48xbf16> to vector<128x48xbf16>
    %121 = vector.extract_strided_slice %17 {offsets = [0, 2560], sizes = [48, 128], strides = [1, 1]} : vector<48x3200xbf16> to vector<48x128xbf16>
    %cst_76 = arith.constant dense<0.000000e+00> : vector<128x128xf32>
    %122 = tpu.matmul %120, %121, %cst_76 {dimension_numbers = #tpu.dot_dimension_numbers<[1], [0], [0], [1], [0, 0, 1, 1], [], []>} : vector<128x48xbf16>, vector<48x128xbf16>, vector<128x128xf32> -> vector<128x128xf32>
    %123 = arith.addf %118, %122 : vector<128x128xf32>
    %c21 = arith.constant 21 : index
    %c0_77 = arith.constant 0 : index
    %c0_78 = arith.constant 0 : index
    %124 = vector.load %arg6[%c21, %c0_77, %c0_78] : memref<25x128x48xbf16, #tpu.memory_space<vmem>>, vector<1x128x48xbf16>
    %125 = vector.shape_cast %124 : vector<1x128x48xbf16> to vector<128x48xbf16>
    %126 = vector.extract_strided_slice %17 {offsets = [0, 2688], sizes = [48, 128], strides = [1, 1]} : vector<48x3200xbf16> to vector<48x128xbf16>
    %cst_79 = arith.constant dense<0.000000e+00> : vector<128x128xf32>
    %127 = tpu.matmul %125, %126, %cst_79 {dimension_numbers = #tpu.dot_dimension_numbers<[1], [0], [0], [1], [0, 0, 1, 1], [], []>} : vector<128x48xbf16>, vector<48x128xbf16>, vector<128x128xf32> -> vector<128x128xf32>
    %128 = arith.addf %123, %127 : vector<128x128xf32>
    %c22 = arith.constant 22 : index
    %c0_80 = arith.constant 0 : index
    %c0_81 = arith.constant 0 : index
    %129 = vector.load %arg6[%c22, %c0_80, %c0_81] : memref<25x128x48xbf16, #tpu.memory_space<vmem>>, vector<1x128x48xbf16>
    %130 = vector.shape_cast %129 : vector<1x128x48xbf16> to vector<128x48xbf16>
    %131 = vector.extract_strided_slice %17 {offsets = [0, 2816], sizes = [48, 128], strides = [1, 1]} : vector<48x3200xbf16> to vector<48x128xbf16>
    %cst_82 = arith.constant dense<0.000000e+00> : vector<128x128xf32>
    %132 = tpu.matmul %130, %131, %cst_82 {dimension_numbers = #tpu.dot_dimension_numbers<[1], [0], [0], [1], [0, 0, 1, 1], [], []>} : vector<128x48xbf16>, vector<48x128xbf16>, vector<128x128xf32> -> vector<128x128xf32>
    %133 = arith.addf %128, %132 : vector<128x128xf32>
    %c23 = arith.constant 23 : index
    %c0_83 = arith.constant 0 : index
    %c0_84 = arith.constant 0 : index
    %134 = vector.load %arg6[%c23, %c0_83, %c0_84] : memref<25x128x48xbf16, #tpu.memory_space<vmem>>, vector<1x128x48xbf16>
    %135 = vector.shape_cast %134 : vector<1x128x48xbf16> to vector<128x48xbf16>
    %136 = vector.extract_strided_slice %17 {offsets = [0, 2944], sizes = [48, 128], strides = [1, 1]} : vector<48x3200xbf16> to vector<48x128xbf16>
    %cst_85 = arith.constant dense<0.000000e+00> : vector<128x128xf32>
    %137 = tpu.matmul %135, %136, %cst_85 {dimension_numbers = #tpu.dot_dimension_numbers<[1], [0], [0], [1], [0, 0, 1, 1], [], []>} : vector<128x48xbf16>, vector<48x128xbf16>, vector<128x128xf32> -> vector<128x128xf32>
    %138 = arith.addf %133, %137 : vector<128x128xf32>
    %c24 = arith.constant 24 : index
    %c0_86 = arith.constant 0 : index
    %c0_87 = arith.constant 0 : index
    %139 = vector.load %arg6[%c24, %c0_86, %c0_87] : memref<25x128x48xbf16, #tpu.memory_space<vmem>>, vector<1x128x48xbf16>
    %140 = vector.shape_cast %139 : vector<1x128x48xbf16> to vector<128x48xbf16>
    %141 = vector.extract_strided_slice %17 {offsets = [0, 3072], sizes = [48, 128], strides = [1, 1]} : vector<48x3200xbf16> to vector<48x128xbf16>
    %cst_88 = arith.constant dense<0.000000e+00> : vector<128x128xf32>
    %142 = tpu.matmul %140, %141, %cst_88 {dimension_numbers = #tpu.dot_dimension_numbers<[1], [0], [0], [1], [0, 0, 1, 1], [], []>} : vector<128x48xbf16>, vector<48x128xbf16>, vector<128x128xf32> -> vector<128x128xf32>
    %143 = arith.addf %138, %142 : vector<128x128xf32>
    %c0_89 = arith.constant 0 : index
    %c0_90 = arith.constant 0 : index
    %144 = vector.load %arg7[%c0_89, %c0_90] : memref<128x1xf32, #tpu.memory_space<vmem>>, vector<128x1xf32>
    %145 = vector.broadcast %144 : vector<128x1xf32> to vector<128x128xf32>
    %146 = arith.addf %143, %145 : vector<128x128xf32>
    %147 = arith.negf %146 : vector<128x128xf32>
    %148 = math.exp %147 : vector<128x128xf32>
    %cst_91 = arith.constant 1.000000e+00 : f32
    %149 = vector.broadcast %cst_91 : f32 to vector<128x128xf32>
    %150 = arith.addf %149, %148 : vector<128x128xf32>
    %151 = arith.divf %149, %150 : vector<128x128xf32>
    %152 = arith.truncf %151 : vector<128x128xf32> to vector<128x128xbf16>
    %c0_92 = arith.constant 0 : index
    %c0_93 = arith.constant 0 : index
    %153 = vector.load %arg8[%c0_92, %c0_93] : memref<128x25xbf16, #tpu.memory_space<vmem>>, vector<128x25xbf16>
    %cst_94 = arith.constant dense<0.000000e+00> : vector<128x25xf32>
    %154 = tpu.matmul %152, %153, %cst_94 {dimension_numbers = #tpu.dot_dimension_numbers<[1], [0], [0], [1], [0, 0, 1, 1], [], []>} : vector<128x128xbf16>, vector<128x25xbf16>, vector<128x25xf32> -> vector<128x25xf32>
    %155 = arith.truncf %154 : vector<128x25xf32> to vector<128x25xbf16>
    %cst_95 = arith.constant 0.000000e+00 : f32
    %156 = vector.broadcast %cst_95 : f32 to vector<8x128xf32>
    %c0_96 = arith.constant 0 : index
    %c0_97 = arith.constant 0 : index
    %c0_98 = arith.constant 0 : index
    %157 = vector.load %arg9[%c0_96, %c0_97, %c0_98] : memref<16x8x128xbf16, #tpu.memory_space<vmem>>, vector<1x8x128xbf16>
    %158 = vector.shape_cast %157 : vector<1x8x128xbf16> to vector<8x128xbf16>
    %cst_99 = arith.constant dense<0.000000e+00> : vector<8x25xf32>
    %159 = tpu.matmul %158, %155, %cst_99 {dimension_numbers = #tpu.dot_dimension_numbers<[1], [0], [0], [1], [0, 0, 1, 1], [], []>} : vector<8x128xbf16>, vector<128x25xbf16>, vector<8x25xf32> -> vector<8x25xf32>
    %160 = arith.truncf %159 : vector<8x25xf32> to vector<8x25xbf16>
    %c0_100 = arith.constant 0 : index
    %c0_101 = arith.constant 0 : index
    %c0_102 = arith.constant 0 : index
    %161 = vector.load %arg10[%c0_100, %c0_101, %c0_102] : memref<16x25x128xbf16, #tpu.memory_space<vmem>>, vector<1x25x128xbf16>
    %162 = vector.shape_cast %161 : vector<1x25x128xbf16> to vector<25x128xbf16>
    %cst_103 = arith.constant dense<0.000000e+00> : vector<8x128xf32>
    %163 = tpu.matmul %160, %162, %cst_103 {dimension_numbers = #tpu.dot_dimension_numbers<[1], [0], [0], [1], [0, 0, 1, 1], [], []>} : vector<8x25xbf16>, vector<25x128xbf16>, vector<8x128xf32> -> vector<8x128xf32>
    %164 = arith.addf %156, %163 : vector<8x128xf32>
    %c1_104 = arith.constant 1 : index
    %c0_105 = arith.constant 0 : index
    %c0_106 = arith.constant 0 : index
    %165 = vector.load %arg9[%c1_104, %c0_105, %c0_106] : memref<16x8x128xbf16, #tpu.memory_space<vmem>>, vector<1x8x128xbf16>
    %166 = vector.shape_cast %165 : vector<1x8x128xbf16> to vector<8x128xbf16>
    %cst_107 = arith.constant dense<0.000000e+00> : vector<8x25xf32>
    %167 = tpu.matmul %166, %155, %cst_107 {dimension_numbers = #tpu.dot_dimension_numbers<[1], [0], [0], [1], [0, 0, 1, 1], [], []>} : vector<8x128xbf16>, vector<128x25xbf16>, vector<8x25xf32> -> vector<8x25xf32>
    %168 = arith.truncf %167 : vector<8x25xf32> to vector<8x25xbf16>
    %c1_108 = arith.constant 1 : index
    %c0_109 = arith.constant 0 : index
    %c0_110 = arith.constant 0 : index
    %169 = vector.load %arg10[%c1_108, %c0_109, %c0_110] : memref<16x25x128xbf16, #tpu.memory_space<vmem>>, vector<1x25x128xbf16>
    %170 = vector.shape_cast %169 : vector<1x25x128xbf16> to vector<25x128xbf16>
    %cst_111 = arith.constant dense<0.000000e+00> : vector<8x128xf32>
    %171 = tpu.matmul %168, %170, %cst_111 {dimension_numbers = #tpu.dot_dimension_numbers<[1], [0], [0], [1], [0, 0, 1, 1], [], []>} : vector<8x25xbf16>, vector<25x128xbf16>, vector<8x128xf32> -> vector<8x128xf32>
    %172 = arith.addf %164, %171 : vector<8x128xf32>
    %c2_112 = arith.constant 2 : index
    %c0_113 = arith.constant 0 : index
    %c0_114 = arith.constant 0 : index
    %173 = vector.load %arg9[%c2_112, %c0_113, %c0_114] : memref<16x8x128xbf16, #tpu.memory_space<vmem>>, vector<1x8x128xbf16>
    %174 = vector.shape_cast %173 : vector<1x8x128xbf16> to vector<8x128xbf16>
    %cst_115 = arith.constant dense<0.000000e+00> : vector<8x25xf32>
    %175 = tpu.matmul %174, %155, %cst_115 {dimension_numbers = #tpu.dot_dimension_numbers<[1], [0], [0], [1], [0, 0, 1, 1], [], []>} : vector<8x128xbf16>, vector<128x25xbf16>, vector<8x25xf32> -> vector<8x25xf32>
    %176 = arith.truncf %175 : vector<8x25xf32> to vector<8x25xbf16>
    %c2_116 = arith.constant 2 : index
    %c0_117 = arith.constant 0 : index
    %c0_118 = arith.constant 0 : index
    %177 = vector.load %arg10[%c2_116, %c0_117, %c0_118] : memref<16x25x128xbf16, #tpu.memory_space<vmem>>, vector<1x25x128xbf16>
    %178 = vector.shape_cast %177 : vector<1x25x128xbf16> to vector<25x128xbf16>
    %cst_119 = arith.constant dense<0.000000e+00> : vector<8x128xf32>
    %179 = tpu.matmul %176, %178, %cst_119 {dimension_numbers = #tpu.dot_dimension_numbers<[1], [0], [0], [1], [0, 0, 1, 1], [], []>} : vector<8x25xbf16>, vector<25x128xbf16>, vector<8x128xf32> -> vector<8x128xf32>
    %180 = arith.addf %172, %179 : vector<8x128xf32>
    %c3_120 = arith.constant 3 : index
    %c0_121 = arith.constant 0 : index
    %c0_122 = arith.constant 0 : index
    %181 = vector.load %arg9[%c3_120, %c0_121, %c0_122] : memref<16x8x128xbf16, #tpu.memory_space<vmem>>, vector<1x8x128xbf16>
    %182 = vector.shape_cast %181 : vector<1x8x128xbf16> to vector<8x128xbf16>
    %cst_123 = arith.constant dense<0.000000e+00> : vector<8x25xf32>
    %183 = tpu.matmul %182, %155, %cst_123 {dimension_numbers = #tpu.dot_dimension_numbers<[1], [0], [0], [1], [0, 0, 1, 1], [], []>} : vector<8x128xbf16>, vector<128x25xbf16>, vector<8x25xf32> -> vector<8x25xf32>
    %184 = arith.truncf %183 : vector<8x25xf32> to vector<8x25xbf16>
    %c3_124 = arith.constant 3 : index
    %c0_125 = arith.constant 0 : index
    %c0_126 = arith.constant 0 : index
    %185 = vector.load %arg10[%c3_124, %c0_125, %c0_126] : memref<16x25x128xbf16, #tpu.memory_space<vmem>>, vector<1x25x128xbf16>
    %186 = vector.shape_cast %185 : vector<1x25x128xbf16> to vector<25x128xbf16>
    %cst_127 = arith.constant dense<0.000000e+00> : vector<8x128xf32>
    %187 = tpu.matmul %184, %186, %cst_127 {dimension_numbers = #tpu.dot_dimension_numbers<[1], [0], [0], [1], [0, 0, 1, 1], [], []>} : vector<8x25xbf16>, vector<25x128xbf16>, vector<8x128xf32> -> vector<8x128xf32>
    %188 = arith.addf %180, %187 : vector<8x128xf32>
    %c4_128 = arith.constant 4 : index
    %c0_129 = arith.constant 0 : index
    %c0_130 = arith.constant 0 : index
    %189 = vector.load %arg9[%c4_128, %c0_129, %c0_130] : memref<16x8x128xbf16, #tpu.memory_space<vmem>>, vector<1x8x128xbf16>
    %190 = vector.shape_cast %189 : vector<1x8x128xbf16> to vector<8x128xbf16>
    %cst_131 = arith.constant dense<0.000000e+00> : vector<8x25xf32>
    %191 = tpu.matmul %190, %155, %cst_131 {dimension_numbers = #tpu.dot_dimension_numbers<[1], [0], [0], [1], [0, 0, 1, 1], [], []>} : vector<8x128xbf16>, vector<128x25xbf16>, vector<8x25xf32> -> vector<8x25xf32>
    %192 = arith.truncf %191 : vector<8x25xf32> to vector<8x25xbf16>
    %c4_132 = arith.constant 4 : index
    %c0_133 = arith.constant 0 : index
    %c0_134 = arith.constant 0 : index
    %193 = vector.load %arg10[%c4_132, %c0_133, %c0_134] : memref<16x25x128xbf16, #tpu.memory_space<vmem>>, vector<1x25x128xbf16>
    %194 = vector.shape_cast %193 : vector<1x25x128xbf16> to vector<25x128xbf16>
    %cst_135 = arith.constant dense<0.000000e+00> : vector<8x128xf32>
    %195 = tpu.matmul %192, %194, %cst_135 {dimension_numbers = #tpu.dot_dimension_numbers<[1], [0], [0], [1], [0, 0, 1, 1], [], []>} : vector<8x25xbf16>, vector<25x128xbf16>, vector<8x128xf32> -> vector<8x128xf32>
    %196 = arith.addf %188, %195 : vector<8x128xf32>
    %c5_136 = arith.constant 5 : index
    %c0_137 = arith.constant 0 : index
    %c0_138 = arith.constant 0 : index
    %197 = vector.load %arg9[%c5_136, %c0_137, %c0_138] : memref<16x8x128xbf16, #tpu.memory_space<vmem>>, vector<1x8x128xbf16>
    %198 = vector.shape_cast %197 : vector<1x8x128xbf16> to vector<8x128xbf16>
    %cst_139 = arith.constant dense<0.000000e+00> : vector<8x25xf32>
    %199 = tpu.matmul %198, %155, %cst_139 {dimension_numbers = #tpu.dot_dimension_numbers<[1], [0], [0], [1], [0, 0, 1, 1], [], []>} : vector<8x128xbf16>, vector<128x25xbf16>, vector<8x25xf32> -> vector<8x25xf32>
    %200 = arith.truncf %199 : vector<8x25xf32> to vector<8x25xbf16>
    %c5_140 = arith.constant 5 : index
    %c0_141 = arith.constant 0 : index
    %c0_142 = arith.constant 0 : index
    %201 = vector.load %arg10[%c5_140, %c0_141, %c0_142] : memref<16x25x128xbf16, #tpu.memory_space<vmem>>, vector<1x25x128xbf16>
    %202 = vector.shape_cast %201 : vector<1x25x128xbf16> to vector<25x128xbf16>
    %cst_143 = arith.constant dense<0.000000e+00> : vector<8x128xf32>
    %203 = tpu.matmul %200, %202, %cst_143 {dimension_numbers = #tpu.dot_dimension_numbers<[1], [0], [0], [1], [0, 0, 1, 1], [], []>} : vector<8x25xbf16>, vector<25x128xbf16>, vector<8x128xf32> -> vector<8x128xf32>
    %204 = arith.addf %196, %203 : vector<8x128xf32>
    %c6_144 = arith.constant 6 : index
    %c0_145 = arith.constant 0 : index
    %c0_146 = arith.constant 0 : index
    %205 = vector.load %arg9[%c6_144, %c0_145, %c0_146] : memref<16x8x128xbf16, #tpu.memory_space<vmem>>, vector<1x8x128xbf16>
    %206 = vector.shape_cast %205 : vector<1x8x128xbf16> to vector<8x128xbf16>
    %cst_147 = arith.constant dense<0.000000e+00> : vector<8x25xf32>
    %207 = tpu.matmul %206, %155, %cst_147 {dimension_numbers = #tpu.dot_dimension_numbers<[1], [0], [0], [1], [0, 0, 1, 1], [], []>} : vector<8x128xbf16>, vector<128x25xbf16>, vector<8x25xf32> -> vector<8x25xf32>
    %208 = arith.truncf %207 : vector<8x25xf32> to vector<8x25xbf16>
    %c6_148 = arith.constant 6 : index
    %c0_149 = arith.constant 0 : index
    %c0_150 = arith.constant 0 : index
    %209 = vector.load %arg10[%c6_148, %c0_149, %c0_150] : memref<16x25x128xbf16, #tpu.memory_space<vmem>>, vector<1x25x128xbf16>
    %210 = vector.shape_cast %209 : vector<1x25x128xbf16> to vector<25x128xbf16>
    %cst_151 = arith.constant dense<0.000000e+00> : vector<8x128xf32>
    %211 = tpu.matmul %208, %210, %cst_151 {dimension_numbers = #tpu.dot_dimension_numbers<[1], [0], [0], [1], [0, 0, 1, 1], [], []>} : vector<8x25xbf16>, vector<25x128xbf16>, vector<8x128xf32> -> vector<8x128xf32>
    %212 = arith.addf %204, %211 : vector<8x128xf32>
    %c7_152 = arith.constant 7 : index
    %c0_153 = arith.constant 0 : index
    %c0_154 = arith.constant 0 : index
    %213 = vector.load %arg9[%c7_152, %c0_153, %c0_154] : memref<16x8x128xbf16, #tpu.memory_space<vmem>>, vector<1x8x128xbf16>
    %214 = vector.shape_cast %213 : vector<1x8x128xbf16> to vector<8x128xbf16>
    %cst_155 = arith.constant dense<0.000000e+00> : vector<8x25xf32>
    %215 = tpu.matmul %214, %155, %cst_155 {dimension_numbers = #tpu.dot_dimension_numbers<[1], [0], [0], [1], [0, 0, 1, 1], [], []>} : vector<8x128xbf16>, vector<128x25xbf16>, vector<8x25xf32> -> vector<8x25xf32>
    %216 = arith.truncf %215 : vector<8x25xf32> to vector<8x25xbf16>
    %c7_156 = arith.constant 7 : index
    %c0_157 = arith.constant 0 : index
    %c0_158 = arith.constant 0 : index
    %217 = vector.load %arg10[%c7_156, %c0_157, %c0_158] : memref<16x25x128xbf16, #tpu.memory_space<vmem>>, vector<1x25x128xbf16>
    %218 = vector.shape_cast %217 : vector<1x25x128xbf16> to vector<25x128xbf16>
    %cst_159 = arith.constant dense<0.000000e+00> : vector<8x128xf32>
    %219 = tpu.matmul %216, %218, %cst_159 {dimension_numbers = #tpu.dot_dimension_numbers<[1], [0], [0], [1], [0, 0, 1, 1], [], []>} : vector<8x25xbf16>, vector<25x128xbf16>, vector<8x128xf32> -> vector<8x128xf32>
    %220 = arith.addf %212, %219 : vector<8x128xf32>
    %c8_160 = arith.constant 8 : index
    %c0_161 = arith.constant 0 : index
    %c0_162 = arith.constant 0 : index
    %221 = vector.load %arg9[%c8_160, %c0_161, %c0_162] : memref<16x8x128xbf16, #tpu.memory_space<vmem>>, vector<1x8x128xbf16>
    %222 = vector.shape_cast %221 : vector<1x8x128xbf16> to vector<8x128xbf16>
    %cst_163 = arith.constant dense<0.000000e+00> : vector<8x25xf32>
    %223 = tpu.matmul %222, %155, %cst_163 {dimension_numbers = #tpu.dot_dimension_numbers<[1], [0], [0], [1], [0, 0, 1, 1], [], []>} : vector<8x128xbf16>, vector<128x25xbf16>, vector<8x25xf32> -> vector<8x25xf32>
    %224 = arith.truncf %223 : vector<8x25xf32> to vector<8x25xbf16>
    %c8_164 = arith.constant 8 : index
    %c0_165 = arith.constant 0 : index
    %c0_166 = arith.constant 0 : index
    %225 = vector.load %arg10[%c8_164, %c0_165, %c0_166] : memref<16x25x128xbf16, #tpu.memory_space<vmem>>, vector<1x25x128xbf16>
    %226 = vector.shape_cast %225 : vector<1x25x128xbf16> to vector<25x128xbf16>
    %cst_167 = arith.constant dense<0.000000e+00> : vector<8x128xf32>
    %227 = tpu.matmul %224, %226, %cst_167 {dimension_numbers = #tpu.dot_dimension_numbers<[1], [0], [0], [1], [0, 0, 1, 1], [], []>} : vector<8x25xbf16>, vector<25x128xbf16>, vector<8x128xf32> -> vector<8x128xf32>
    %228 = arith.addf %220, %227 : vector<8x128xf32>
    %c9_168 = arith.constant 9 : index
    %c0_169 = arith.constant 0 : index
    %c0_170 = arith.constant 0 : index
    %229 = vector.load %arg9[%c9_168, %c0_169, %c0_170] : memref<16x8x128xbf16, #tpu.memory_space<vmem>>, vector<1x8x128xbf16>
    %230 = vector.shape_cast %229 : vector<1x8x128xbf16> to vector<8x128xbf16>
    %cst_171 = arith.constant dense<0.000000e+00> : vector<8x25xf32>
    %231 = tpu.matmul %230, %155, %cst_171 {dimension_numbers = #tpu.dot_dimension_numbers<[1], [0], [0], [1], [0, 0, 1, 1], [], []>} : vector<8x128xbf16>, vector<128x25xbf16>, vector<8x25xf32> -> vector<8x25xf32>
    %232 = arith.truncf %231 : vector<8x25xf32> to vector<8x25xbf16>
    %c9_172 = arith.constant 9 : index
    %c0_173 = arith.constant 0 : index
    %c0_174 = arith.constant 0 : index
    %233 = vector.load %arg10[%c9_172, %c0_173, %c0_174] : memref<16x25x128xbf16, #tpu.memory_space<vmem>>, vector<1x25x128xbf16>
    %234 = vector.shape_cast %233 : vector<1x25x128xbf16> to vector<25x128xbf16>
    %cst_175 = arith.constant dense<0.000000e+00> : vector<8x128xf32>
    %235 = tpu.matmul %232, %234, %cst_175 {dimension_numbers = #tpu.dot_dimension_numbers<[1], [0], [0], [1], [0, 0, 1, 1], [], []>} : vector<8x25xbf16>, vector<25x128xbf16>, vector<8x128xf32> -> vector<8x128xf32>
    %236 = arith.addf %228, %235 : vector<8x128xf32>
    %c10_176 = arith.constant 10 : index
    %c0_177 = arith.constant 0 : index
    %c0_178 = arith.constant 0 : index
    %237 = vector.load %arg9[%c10_176, %c0_177, %c0_178] : memref<16x8x128xbf16, #tpu.memory_space<vmem>>, vector<1x8x128xbf16>
    %238 = vector.shape_cast %237 : vector<1x8x128xbf16> to vector<8x128xbf16>
    %cst_179 = arith.constant dense<0.000000e+00> : vector<8x25xf32>
    %239 = tpu.matmul %238, %155, %cst_179 {dimension_numbers = #tpu.dot_dimension_numbers<[1], [0], [0], [1], [0, 0, 1, 1], [], []>} : vector<8x128xbf16>, vector<128x25xbf16>, vector<8x25xf32> -> vector<8x25xf32>
    %240 = arith.truncf %239 : vector<8x25xf32> to vector<8x25xbf16>
    %c10_180 = arith.constant 10 : index
    %c0_181 = arith.constant 0 : index
    %c0_182 = arith.constant 0 : index
    %241 = vector.load %arg10[%c10_180, %c0_181, %c0_182] : memref<16x25x128xbf16, #tpu.memory_space<vmem>>, vector<1x25x128xbf16>
    %242 = vector.shape_cast %241 : vector<1x25x128xbf16> to vector<25x128xbf16>
    %cst_183 = arith.constant dense<0.000000e+00> : vector<8x128xf32>
    %243 = tpu.matmul %240, %242, %cst_183 {dimension_numbers = #tpu.dot_dimension_numbers<[1], [0], [0], [1], [0, 0, 1, 1], [], []>} : vector<8x25xbf16>, vector<25x128xbf16>, vector<8x128xf32> -> vector<8x128xf32>
    %244 = arith.addf %236, %243 : vector<8x128xf32>
    %c11_184 = arith.constant 11 : index
    %c0_185 = arith.constant 0 : index
    %c0_186 = arith.constant 0 : index
    %245 = vector.load %arg9[%c11_184, %c0_185, %c0_186] : memref<16x8x128xbf16, #tpu.memory_space<vmem>>, vector<1x8x128xbf16>
    %246 = vector.shape_cast %245 : vector<1x8x128xbf16> to vector<8x128xbf16>
    %cst_187 = arith.constant dense<0.000000e+00> : vector<8x25xf32>
    %247 = tpu.matmul %246, %155, %cst_187 {dimension_numbers = #tpu.dot_dimension_numbers<[1], [0], [0], [1], [0, 0, 1, 1], [], []>} : vector<8x128xbf16>, vector<128x25xbf16>, vector<8x25xf32> -> vector<8x25xf32>
    %248 = arith.truncf %247 : vector<8x25xf32> to vector<8x25xbf16>
    %c11_188 = arith.constant 11 : index
    %c0_189 = arith.constant 0 : index
    %c0_190 = arith.constant 0 : index
    %249 = vector.load %arg10[%c11_188, %c0_189, %c0_190] : memref<16x25x128xbf16, #tpu.memory_space<vmem>>, vector<1x25x128xbf16>
    %250 = vector.shape_cast %249 : vector<1x25x128xbf16> to vector<25x128xbf16>
    %cst_191 = arith.constant dense<0.000000e+00> : vector<8x128xf32>
    %251 = tpu.matmul %248, %250, %cst_191 {dimension_numbers = #tpu.dot_dimension_numbers<[1], [0], [0], [1], [0, 0, 1, 1], [], []>} : vector<8x25xbf16>, vector<25x128xbf16>, vector<8x128xf32> -> vector<8x128xf32>
    %252 = arith.addf %244, %251 : vector<8x128xf32>
    %c12_192 = arith.constant 12 : index
    %c0_193 = arith.constant 0 : index
    %c0_194 = arith.constant 0 : index
    %253 = vector.load %arg9[%c12_192, %c0_193, %c0_194] : memref<16x8x128xbf16, #tpu.memory_space<vmem>>, vector<1x8x128xbf16>
    %254 = vector.shape_cast %253 : vector<1x8x128xbf16> to vector<8x128xbf16>
    %cst_195 = arith.constant dense<0.000000e+00> : vector<8x25xf32>
    %255 = tpu.matmul %254, %155, %cst_195 {dimension_numbers = #tpu.dot_dimension_numbers<[1], [0], [0], [1], [0, 0, 1, 1], [], []>} : vector<8x128xbf16>, vector<128x25xbf16>, vector<8x25xf32> -> vector<8x25xf32>
    %256 = arith.truncf %255 : vector<8x25xf32> to vector<8x25xbf16>
    %c12_196 = arith.constant 12 : index
    %c0_197 = arith.constant 0 : index
    %c0_198 = arith.constant 0 : index
    %257 = vector.load %arg10[%c12_196, %c0_197, %c0_198] : memref<16x25x128xbf16, #tpu.memory_space<vmem>>, vector<1x25x128xbf16>
    %258 = vector.shape_cast %257 : vector<1x25x128xbf16> to vector<25x128xbf16>
    %cst_199 = arith.constant dense<0.000000e+00> : vector<8x128xf32>
    %259 = tpu.matmul %256, %258, %cst_199 {dimension_numbers = #tpu.dot_dimension_numbers<[1], [0], [0], [1], [0, 0, 1, 1], [], []>} : vector<8x25xbf16>, vector<25x128xbf16>, vector<8x128xf32> -> vector<8x128xf32>
    %260 = arith.addf %252, %259 : vector<8x128xf32>
    %c13_200 = arith.constant 13 : index
    %c0_201 = arith.constant 0 : index
    %c0_202 = arith.constant 0 : index
    %261 = vector.load %arg9[%c13_200, %c0_201, %c0_202] : memref<16x8x128xbf16, #tpu.memory_space<vmem>>, vector<1x8x128xbf16>
    %262 = vector.shape_cast %261 : vector<1x8x128xbf16> to vector<8x128xbf16>
    %cst_203 = arith.constant dense<0.000000e+00> : vector<8x25xf32>
    %263 = tpu.matmul %262, %155, %cst_203 {dimension_numbers = #tpu.dot_dimension_numbers<[1], [0], [0], [1], [0, 0, 1, 1], [], []>} : vector<8x128xbf16>, vector<128x25xbf16>, vector<8x25xf32> -> vector<8x25xf32>
    %264 = arith.truncf %263 : vector<8x25xf32> to vector<8x25xbf16>
    %c13_204 = arith.constant 13 : index
    %c0_205 = arith.constant 0 : index
    %c0_206 = arith.constant 0 : index
    %265 = vector.load %arg10[%c13_204, %c0_205, %c0_206] : memref<16x25x128xbf16, #tpu.memory_space<vmem>>, vector<1x25x128xbf16>
    %266 = vector.shape_cast %265 : vector<1x25x128xbf16> to vector<25x128xbf16>
    %cst_207 = arith.constant dense<0.000000e+00> : vector<8x128xf32>
    %267 = tpu.matmul %264, %266, %cst_207 {dimension_numbers = #tpu.dot_dimension_numbers<[1], [0], [0], [1], [0, 0, 1, 1], [], []>} : vector<8x25xbf16>, vector<25x128xbf16>, vector<8x128xf32> -> vector<8x128xf32>
    %268 = arith.addf %260, %267 : vector<8x128xf32>
    %c14_208 = arith.constant 14 : index
    %c0_209 = arith.constant 0 : index
    %c0_210 = arith.constant 0 : index
    %269 = vector.load %arg9[%c14_208, %c0_209, %c0_210] : memref<16x8x128xbf16, #tpu.memory_space<vmem>>, vector<1x8x128xbf16>
    %270 = vector.shape_cast %269 : vector<1x8x128xbf16> to vector<8x128xbf16>
    %cst_211 = arith.constant dense<0.000000e+00> : vector<8x25xf32>
    %271 = tpu.matmul %270, %155, %cst_211 {dimension_numbers = #tpu.dot_dimension_numbers<[1], [0], [0], [1], [0, 0, 1, 1], [], []>} : vector<8x128xbf16>, vector<128x25xbf16>, vector<8x25xf32> -> vector<8x25xf32>
    %272 = arith.truncf %271 : vector<8x25xf32> to vector<8x25xbf16>
    %c14_212 = arith.constant 14 : index
    %c0_213 = arith.constant 0 : index
    %c0_214 = arith.constant 0 : index
    %273 = vector.load %arg10[%c14_212, %c0_213, %c0_214] : memref<16x25x128xbf16, #tpu.memory_space<vmem>>, vector<1x25x128xbf16>
    %274 = vector.shape_cast %273 : vector<1x25x128xbf16> to vector<25x128xbf16>
    %cst_215 = arith.constant dense<0.000000e+00> : vector<8x128xf32>
    %275 = tpu.matmul %272, %274, %cst_215 {dimension_numbers = #tpu.dot_dimension_numbers<[1], [0], [0], [1], [0, 0, 1, 1], [], []>} : vector<8x25xbf16>, vector<25x128xbf16>, vector<8x128xf32> -> vector<8x128xf32>
    %276 = arith.addf %268, %275 : vector<8x128xf32>
    %c15_216 = arith.constant 15 : index
    %c0_217 = arith.constant 0 : index
    %c0_218 = arith.constant 0 : index
    %277 = vector.load %arg9[%c15_216, %c0_217, %c0_218] : memref<16x8x128xbf16, #tpu.memory_space<vmem>>, vector<1x8x128xbf16>
    %278 = vector.shape_cast %277 : vector<1x8x128xbf16> to vector<8x128xbf16>
    %cst_219 = arith.constant dense<0.000000e+00> : vector<8x25xf32>
    %279 = tpu.matmul %278, %155, %cst_219 {dimension_numbers = #tpu.dot_dimension_numbers<[1], [0], [0], [1], [0, 0, 1, 1], [], []>} : vector<8x128xbf16>, vector<128x25xbf16>, vector<8x25xf32> -> vector<8x25xf32>
    %280 = arith.truncf %279 : vector<8x25xf32> to vector<8x25xbf16>
    %c15_220 = arith.constant 15 : index
    %c0_221 = arith.constant 0 : index
    %c0_222 = arith.constant 0 : index
    %281 = vector.load %arg10[%c15_220, %c0_221, %c0_222] : memref<16x25x128xbf16, #tpu.memory_space<vmem>>, vector<1x25x128xbf16>
    %282 = vector.shape_cast %281 : vector<1x25x128xbf16> to vector<25x128xbf16>
    %cst_223 = arith.constant dense<0.000000e+00> : vector<8x128xf32>
    %283 = tpu.matmul %280, %282, %cst_223 {dimension_numbers = #tpu.dot_dimension_numbers<[1], [0], [0], [1], [0, 0, 1, 1], [], []>} : vector<8x25xbf16>, vector<25x128xbf16>, vector<8x128xf32> -> vector<8x128xf32>
    %284 = arith.addf %276, %283 : vector<8x128xf32>
    %c0_224 = arith.constant 0 : index
    %c0_225 = arith.constant 0 : index
    %285 = vector.load %arg11[%c0_224, %c0_225] : memref<1x128xf32, #tpu.memory_space<vmem>>, vector<1x128xf32>
    %286 = vector.broadcast %285 : vector<1x128xf32> to vector<8x128xf32>
    %287 = arith.addf %284, %286 : vector<8x128xf32>
    %288 = arith.negf %287 : vector<8x128xf32>
    %289 = math.exp %288 : vector<8x128xf32>
    %cst_226 = arith.constant 1.000000e+00 : f32
    %290 = vector.broadcast %cst_226 : f32 to vector<8x128xf32>
    %291 = arith.addf %290, %289 : vector<8x128xf32>
    %292 = arith.divf %290, %291 : vector<8x128xf32>
    %293 = arith.truncf %292 : vector<8x128xf32> to vector<8x128xbf16>
    %c0_227 = arith.constant 0 : index
    %c0_228 = arith.constant 0 : index
    %294 = vector.load %arg12[%c0_227, %c0_228] : memref<128x128xbf16, #tpu.memory_space<vmem>>, vector<128x128xbf16>
    %cst_229 = arith.constant dense<0.000000e+00> : vector<8x128xf32>
    %295 = tpu.matmul %293, %294, %cst_229 {dimension_numbers = #tpu.dot_dimension_numbers<[1], [0], [0], [1], [0, 0, 1, 1], [], []>} : vector<8x128xbf16>, vector<128x128xbf16>, vector<8x128xf32> -> vector<8x128xf32>
    %c0_230 = arith.constant 0 : index
    %c0_231 = arith.constant 0 : index
    %296 = vector.load %arg13[%c0_230, %c0_231] : memref<1x128xf32, #tpu.memory_space<vmem>>, vector<1x128xf32>
    %297 = vector.broadcast %296 : vector<1x128xf32> to vector<8x128xf32>
    %298 = arith.addf %295, %297 : vector<8x128xf32>
    %299 = arith.negf %298 : vector<8x128xf32>
    %300 = math.exp %299 : vector<8x128xf32>
    %cst_232 = arith.constant 1.000000e+00 : f32
    %301 = vector.broadcast %cst_232 : f32 to vector<8x128xf32>
    %302 = arith.addf %301, %300 : vector<8x128xf32>
    %303 = arith.divf %301, %302 : vector<8x128xf32>
    %304 = arith.truncf %303 : vector<8x128xf32> to vector<8x128xbf16>
    %c0_233 = arith.constant 0 : index
    %c0_234 = arith.constant 0 : index
    %305 = vector.load %arg14[%c0_233, %c0_234] : memref<128x128xbf16, #tpu.memory_space<vmem>>, vector<128x128xbf16>
    %cst_235 = arith.constant dense<0.000000e+00> : vector<8x128xf32>
    %306 = tpu.matmul %304, %305, %cst_235 {dimension_numbers = #tpu.dot_dimension_numbers<[1], [0], [0], [1], [0, 0, 1, 1], [], []>} : vector<8x128xbf16>, vector<128x128xbf16>, vector<8x128xf32> -> vector<8x128xf32>
    %c0_236 = arith.constant 0 : index
    %c0_237 = arith.constant 0 : index
    %307 = vector.load %arg15[%c0_236, %c0_237] : memref<1x128xf32, #tpu.memory_space<vmem>>, vector<1x128xf32>
    %308 = vector.broadcast %307 : vector<1x128xf32> to vector<8x128xf32>
    %309 = arith.addf %306, %308 : vector<8x128xf32>
    %c0_238 = arith.constant 0 : index
    %c0_239 = arith.constant 0 : index
    %310 = vector.load %arg16[%c0_238, %c0_239] : memref<8x128xf32, #tpu.memory_space<vmem>>, vector<8x128xf32>
    tpu.vector_store %arg16[%c0_238, %c0_239], %309 {strides = array<i32>} : memref<8x128xf32, #tpu.memory_space<vmem>>, vector<8x128xf32>,
    return
  }
  func.func @transform_0(%arg0: i32) -> (i32, i32) {
    %c0_i32 = arith.constant 0 : i32
    %c0_i32_0 = arith.constant 0 : i32
    return %arg0, %c0_i32 : i32, i32
  }
  func.func @transform_1(%arg0: i32) -> (i32, i32) {
    %c0_i32 = arith.constant 0 : i32
    %c0_i32_0 = arith.constant 0 : i32
    %c0_i32_1 = arith.constant 0 : i32
    return %c0_i32, %c0_i32_0 : i32, i32
  }
  func.func @transform_2(%arg0: i32) -> (i32, i32) {
    %c0_i32 = arith.constant 0 : i32
    %c0_i32_0 = arith.constant 0 : i32
    %c0_i32_1 = arith.constant 0 : i32
    return %c0_i32, %c0_i32_0 : i32, i32
  }
  func.func @transform_3(%arg0: i32) -> (i32, i32) {
    %c0_i32 = arith.constant 0 : i32
    %c0_i32_0 = arith.constant 0 : i32
    %c0_i32_1 = arith.constant 0 : i32
    return %c0_i32, %c0_i32_0 : i32, i32
  }
  func.func @transform_4(%arg0: i32) -> (i32, i32) {
    %c0_i32 = arith.constant 0 : i32
    %c0_i32_0 = arith.constant 0 : i32
    %c0_i32_1 = arith.constant 0 : i32
    return %c0_i32, %c0_i32_0 : i32, i32
  }
  func.func @transform_5(%arg0: i32) -> (i32, i32, i32) {
    %c0_i32 = arith.constant 0 : i32
    %c0_i32_0 = arith.constant 0 : i32
    %c0_i32_1 = arith.constant 0 : i32
    %c0_i32_2 = arith.constant 0 : i32
    return %c0_i32, %c0_i32_0, %c0_i32_1 : i32, i32, i32
  }
  func.func @transform_6(%arg0: i32) -> (i32, i32) {
    %c0_i32 = arith.constant 0 : i32
    %c0_i32_0 = arith.constant 0 : i32
    %c0_i32_1 = arith.constant 0 : i32
    return %c0_i32, %c0_i32_0 : i32, i32
  }
  func.func @transform_7(%arg0: i32) -> (i32, i32) {
    %c0_i32 = arith.constant 0 : i32
    %c0_i32_0 = arith.constant 0 : i32
    %c0_i32_1 = arith.constant 0 : i32
    return %c0_i32, %c0_i32_0 : i32, i32
  }
  func.func @transform_8(%arg0: i32) -> (i32, i32, i32) {
    %c0_i32 = arith.constant 0 : i32
    %c0_i32_0 = arith.constant 0 : i32
    %c0_i32_1 = arith.constant 0 : i32
    %c0_i32_2 = arith.constant 0 : i32
    return %c0_i32, %c0_i32_0, %c0_i32_1 : i32, i32, i32
  }
  func.func @transform_9(%arg0: i32) -> (i32, i32, i32) {
    %c0_i32 = arith.constant 0 : i32
    %c0_i32_0 = arith.constant 0 : i32
    %c0_i32_1 = arith.constant 0 : i32
    %c0_i32_2 = arith.constant 0 : i32
    return %c0_i32, %c0_i32_0, %c0_i32_1 : i32, i32, i32
  }
  func.func @transform_10(%arg0: i32) -> (i32, i32) {
    %c0_i32 = arith.constant 0 : i32
    %c0_i32_0 = arith.constant 0 : i32
    %c0_i32_1 = arith.constant 0 : i32
    return %c0_i32, %c0_i32_0 : i32, i32
  }
  func.func @transform_11(%arg0: i32) -> (i32, i32) {
    %c0_i32 = arith.constant 0 : i32
    %c0_i32_0 = arith.constant 0 : i32
    %c0_i32_1 = arith.constant 0 : i32
    return %c0_i32, %c0_i32_0 : i32, i32
  }
  func.func @transform_12(%arg0: i32) -> (i32, i32) {
    %c0_i32 = arith.constant 0 : i32
    %c0_i32_0 = arith.constant 0 : i32
    %c0_i32_1 = arith.constant 0 : i32
    return %c0_i32, %c0_i32_0 : i32, i32
  }
  func.func @transform_13(%arg0: i32) -> (i32, i32) {
    %c0_i32 = arith.constant 0 : i32
    %c0_i32_0 = arith.constant 0 : i32
    %c0_i32_1 = arith.constant 0 : i32
    return %c0_i32, %c0_i32_0 : i32, i32
  }
  func.func @transform_14(%arg0: i32) -> (i32, i32) {
    %c0_i32 = arith.constant 0 : i32
    %c0_i32_0 = arith.constant 0 : i32
    %c0_i32_1 = arith.constant 0 : i32
    return %c0_i32, %c0_i32_0 : i32, i32
  }
  func.func @transform_15(%arg0: i32) -> (i32, i32) {
    %c0_i32 = arith.constant 0 : i32
    %c0_i32_0 = arith.constant 0 : i32
    return %arg0, %c0_i32 : i32, i32
  }
}

</mosaic_0001>

<bundles_post_ra>
// kernel: lenet_forward.1
= control target key start
LH: loop header
LB: loop body
LE: loop exit
PB: predicated region body
PF: predicated region fallthrough
CT: control target
= control target key end

     0   :  { %vm680_vm0 = vcmask 1043456   ;;  %vm670_vm1 = vcmask 588800   ;;  %s24072_s0 = inlined_call_operand.vmem [shape: bf16[200,784], index: 0, kind: input, shape index: {}]   ;;  %s24073_s1 = inlined_call_operand.vmem [shape: bf16[48,200], index: 1, kind: input, shape index: {}]   ;;  %s24074_s2 = inlined_call_operand.vmem [shape: f32[48,1], index: 2, kind: input, shape index: {}]   ;;  %s24075_s6 = inlined_call_operand.vmem [shape: f32[128,1], index: 6, kind: input, shape index: {}]   ;;  %s24076_s3 = inlined_call_operand.vmem [shape: bf16[784,196], index: 3, kind: input, shape index: {}]   ;;  %s24077_s4 = inlined_call_operand.vmem [shape: bf16[196,3200], index: 4, kind: input, shape index: {}]   ;;  %s24078_s5 = inlined_call_operand.vmem [shape: bf16[25,128,48], index: 5, kind: input, shape index: {}]   ;;  %s24079_s7 = inlined_call_operand.vmem [shape: bf16[128,25], index: 7, kind: input, shape index: {}]   ;;  %s24080_s9 = inlined_call_operand.vmem [shape: bf16[16,25,128], index: 9, kind: input, shape index: {}]   ;;  %s24081_s8 = inlined_call_operand.vmem [shape: bf16[16,8,128], index: 8, kind: input, shape index: {}]   ;;  %s24082_s10 = inlined_call_operand.vmem [shape: f32[1,128], index: 10, kind: input, shape index: {}]   ;;  %s24083_s12 = inlined_call_operand.vmem [shape: f32[1,128], index: 12, kind: input, shape index: {}]   ;;  %s24084_s11 = inlined_call_operand.vmem [shape: bf16[128,128], index: 11, kind: input, shape index: {}]   ;;  %s24085_s14 = inlined_call_operand.vmem [shape: f32[1,128], index: 14, kind: input, shape index: {}]   ;;  %s24086_s13 = inlined_call_operand.vmem [shape: bf16[128,128], index: 13, kind: input, shape index: {}]   ;;  %s24087_s15 = inlined_call_operand.vmem [shape: f32[8,128], index: 15, kind: output, shape index: {}]  }
   0x1   :  { %v11868_v0 = vld [vmem:[%s24072_s0 + $0x188] sm:$0xf]  ;;  %v15517_v1 = vld [vmem:[%s24072_s0 + $0x1a0] sm:$0xf0]  ;;  %v15514_v2 = vld [vmem:[%s24072_s0 + $0x18c] sm:$0xf] }
   0x2   :  { %v11869_v3 = vor.u32 %v15517_v1, %v11868_v0  ;;  %v11870_v4 = vld [vmem:[%s24072_s0 + $0x1a4] sm:$0xf0]  ;;  %v153_v5 = vld [vmem:[%s24072_s0 + $0x2a0] sm:$0xff]  ;;  %v11840_v6 = vld [vmem:[%s24072_s0 + $0x150] sm:$0xf] }
   0x3   :  { %v11873_v7 = vor.u32 %v15514_v2, %v11870_v4  ;;  %v488_v8 = vunpack.c.l.b16 %v153_v5  ;;  %v489_v9 = vunpack.c.h.b16 %v153_v5  ;;  %v15510_v10 = vld [vmem:[%s24072_s0 + $0x168] sm:$0xf0]  ;;  %v15507_v11 = vld [vmem:[%s24072_s0 + $0x154] sm:$0xf]  ;;  %v11842_v12 = vld [vmem:[%s24072_s0 + $0x16c] sm:$0xf0] }
   0x4   :  { %702 = vmatpush.bf16.msra.mxu0 %v11869_v3  ;;  %v11980_v13 = vld [vmem:[%s24072_s0 + $0x268] sm:$0xf]  ;;  %v15545_v14 = vld [vmem:[%s24072_s0 + $0x280] sm:$0xf0]  ;;  %v11841_v17 = vor.u32 %v15510_v10, %v11840_v6  ;;  %v11845_v18 = vor.u32 %v15507_v11, %v11842_v12  ;;  %v15542_v19 = vld [vmem:[%s24072_s0 + $0x26c] sm:$0xf] }
   0x5   :  { %750 = vmatpush.bf16.msra.mxu2 %v11873_v7  ;;  %v579_v15 = vpack.c.b16 %v488_v8, %v488_v8  ;;  %v580_v16 = vpack.c.b16 %v489_v9, %v489_v9  ;;  %v11982_v20 = vld [vmem:[%s24072_s0 + $0x284] sm:$0xf0]  ;;  %v11812_v21 = vld [vmem:[%s24072_s0 + $0x118] sm:$0xf]  ;;  %v15503_v22 = vld [vmem:[%s24072_s0 + $0x130] sm:$0xf0]  ;;  %v11981_v27 = vor.u32 %v15545_v14, %v11980_v13 }
   0x6   :  { %v15500_v23 = vld [vmem:[%s24072_s0 + $0x11c] sm:$0xf]  ;;  %v11814_v24 = vld [vmem:[%s24072_s0 + $0x134] sm:$0xf0]  ;;  %v11985_v28 = vor.u32 %v15542_v19, %v11982_v20  ;;  %v11952_v29 = vld [vmem:[%s24072_s0 + $0x230] sm:$0xf]  ;;  %v11813_v31 = vor.u32 %v15503_v22, %v11812_v21 }
   0x7   :  { %v682_v25 = vsel %vm680_vm0, %v579_v15, 0  ;;  %v685_v26 = vsel %vm680_vm0, %v580_v16, 0  ;;  %v15538_v30 = vld [vmem:[%s24072_s0 + $0x248] sm:$0xf0]  ;;  %v11817_v32 = vor.u32 %v15500_v23, %v11814_v24  ;;  %v15535_v33 = vld [vmem:[%s24072_s0 + $0x234] sm:$0xf] }
   0x8   :  { %729 = vmatpush.bf16.msra.mxu1 %v682_v25  ;;  %777 = vmatpush.bf16.msra.mxu3 %v685_v26  ;;  %v11954_v34 = vld [vmem:[%s24072_s0 + $0x24c] sm:$0xf0]  ;;  %v11784_v35 = vld [vmem:[%s24072_s0 + $0xe0] sm:$0xf]  ;;  %v15496_v36 = vld [vmem:[%s24072_s0 + $0xf8] sm:$0xf0]  ;;  %v11953_v39 = vor.u32 %v15538_v30, %v11952_v29 }
   0x9   :  { %703 = vmatpush.bf16.msra.mxu0 %v11841_v17  ;;  %751 = vmatpush.bf16.msra.mxu2 %v11845_v18  ;;  %v15493_v37 = vld [vmem:[%s24072_s0 + $0xe4] sm:$0xf]  ;;  %v11786_v38 = vld [vmem:[%s24072_s0 + $0xfc] sm:$0xf0]  ;;  %v11957_v40 = vor.u32 %v15535_v33, %v11954_v34  ;;  %v11924_v41 = vld [vmem:[%s24072_s0 + $0x1f8] sm:$0xf]  ;;  %v11785_v43 = vor.u32 %v15496_v36, %v11784_v35 }
   0xa   :  { %v15531_v42 = vld [vmem:[%s24072_s0 + $0x210] sm:$0xf0]  ;;  %v11789_v44 = vor.u32 %v15493_v37, %v11786_v38  ;;  %v15528_v45 = vld [vmem:[%s24072_s0 + $0x1fc] sm:$0xf]  ;;  %v11926_v46 = vld [vmem:[%s24072_s0 + $0x214] sm:$0xf0] }
   0xb   :  { %v11756_v47 = vld [vmem:[%s24072_s0 + $0xa8] sm:$0xf]  ;;  %v15489_v48 = vld [vmem:[%s24072_s0 + $0xc0] sm:$0xf0]  ;;  %v15486_v49 = vld [vmem:[%s24072_s0 + $0xac] sm:$0xf]  ;;  %v11925_v51 = vor.u32 %v15531_v42, %v11924_v41  ;;  %v11929_v52 = vor.u32 %v15528_v45, %v11926_v46 }
   0xc   :  { %730 = vmatpush.bf16.msra.mxu1 %v11981_v27  ;;  %778 = vmatpush.bf16.msra.mxu3 %v11985_v28  ;;  %v11758_v50 = vld [vmem:[%s24072_s0 + $0xc4] sm:$0xf0]  ;;  %v11896_v53 = vld [vmem:[%s24072_s0 + $0x1c0] sm:$0xf]  ;;  %v15524_v54 = vld [vmem:[%s24072_s0 + $0x1d8] sm:$0xf0]  ;;  %v11757_v55 = vor.u32 %v15489_v48, %v11756_v47 }
   0xd   :  { %704 = vmatpush.bf16.msra.mxu0 %v11813_v31  ;;  %752 = vmatpush.bf16.msra.mxu2 %v11817_v32  ;;  %v11761_v56 = vor.u32 %v15486_v49, %v11758_v50  ;;  %v15521_v57 = vld [vmem:[%s24072_s0 + $0x1c4] sm:$0xf]  ;;  %v11898_v58 = vld [vmem:[%s24072_s0 + $0x1dc] sm:$0xf0]  ;;  %v11728_v59 = vld [vmem:[%s24072_s0 + $0x70] sm:$0xf]  ;;  %v11897_v1 = vor.u32 %v15524_v54, %v11896_v53 }
   0xe   :  { %v15482_v60 = vld [vmem:[%s24072_s0 + $0x88] sm:$0xf0]  ;;  %v15479_v61 = vld [vmem:[%s24072_s0 + $0x74] sm:$0xf]  ;;  %v11730_v62 = vld [vmem:[%s24072_s0 + $0x8c] sm:$0xf0]  ;;  %v11901_v2 = vor.u32 %v15521_v57, %v11898_v58 }
   0xf   :  { %v15459_v63 = vld [vmem:[%s24073_s1 + $0x4] sm:$0xf]  ;;  %v11650_v0 = vld [vmem:[%s24073_s1 + $0x8] sm:$0xf0]  ;;  %v11876_v3 = vld [vmem:[%s24072_s0 + $0x190] sm:$0xf]  ;;  %v11729_v6 = vor.u32 %v15482_v60, %v11728_v59  ;;  %v11733_v7 = vor.u32 %v15479_v61, %v11730_v62 }
  0x10   :  { %731 = vmatpush.bf16.msra.mxu1 %v11953_v39  ;;  %779 = vmatpush.bf16.msra.mxu3 %v11957_v40  ;;  %v15518_v4 = vld [vmem:[%s24072_s0 + $0x1a8] sm:$0xf0]  ;;  %v157_v5 = vld [vmem:[%s24074_s2] sm:$0xff]  ;;  %v11700_v8 = vld [vmem:[%s24072_s0 + $0x38] sm:$0xf]  ;;  %v16459_v13 = vmov 0   ;;  %v16693_v14 = vor.u32 %v15459_v63, %v11650_v0 }
  0x11   :  { %705 = vmatpush.bf16.msra.mxu0 %v11785_v43  ;;  %753 = vmatpush.bf16.msra.mxu2 %v11789_v44  ;;  %v15475_v9 = vld [vmem:[%s24072_s0 + $0x50] sm:$0xf0]  ;;  %v15472_v10 = vld [vmem:[%s24072_s0 + $0x3c] sm:$0xf]  ;;  %v11702_v11 = vld [vmem:[%s24072_s0 + $0x54] sm:$0xf0]  ;;  %v11877_v12 = vor.u32 %v15518_v4, %v11876_v3 }
  0x12   :  { %16213 = vset.pattern.permute.xlu0 %v16459_v13  ;;  %16214 = vset.pattern.permute.xlu1 %v16459_v13  ;;  %v11848_v15 = vld [vmem:[%s24072_s0 + $0x158] sm:$0xf]  ;;  %v15511_v16 = vld [vmem:[%s24072_s0 + $0x170] sm:$0xf0]  ;;  %v154_v17 = vld [vmem:[%s24072_s0 + $0x2a8] sm:$0xff]  ;;  %v11701_v18 = vor.u32 %v15475_v9, %v11700_v8  ;;  %v11705_v19 = vor.u32 %v15472_v10, %v11702_v11 }
  0x13   :  { %165 = vperm.xlu0 %16213, %v157_v5   ;;  %16215 = vset.pattern.permute.xlu2 %v16459_v13  ;;  %v11672_v20 = vld [vmem:[%s24072_s0] sm:$0xf]  ;;  %v15468_v21 = vld [vmem:[%s24072_s0 + $0x18] sm:$0xf0]  ;;  %v15465_v22 = vld [vmem:[%s24072_s0 + $0x4] sm:$0xf]  ;;  %v490_v23 = vunpack.c.l.b16 %v154_v17  ;;  %v11849_v25 = vor.u32 %v15511_v16, %v11848_v15  ;;  %v491_v32 = vunpack.c.h.b16 %v154_v17 }
  0x14   :  { %732 = vmatpush.bf16.msra.mxu1 %v11925_v51  ;;  %780 = vmatpush.bf16.msra.mxu3 %v11929_v52  ;;  %v11674_v24 = vld [vmem:[%s24072_s0 + $0x1c] sm:$0xf0]  ;;  %v15504_v27 = vld [vmem:[%s24072_s0 + $0x138] sm:$0xf0]  ;;  %v15515_v28 = vld [vmem:[%s24072_s0 + $0x194] sm:$0xf]  ;;  %v11673_v36 = vor.u32 %v15468_v21, %v11672_v20 }
  0x15   :  { %706 = vmatpush.bf16.msra.mxu0 %v11757_v55  ;;  %754 = vmatpush.bf16.msra.mxu2 %v11761_v56  ;;  %v11820_v26 = vld [vmem:[%s24072_s0 + $0x120] sm:$0xf]  ;;  %v11878_v29 = vld [vmem:[%s24072_s0 + $0x1ac] sm:$0xf0]  ;;  %v158_v30 = vld [vmem:[%s24074_s2 + $0x8] sm:$0xff]  ;;  %v581_v31 = vpack.c.b16 %v490_v23, %v490_v23  ;;  %v11677_v37 = vor.u32 %v15465_v22, %v11674_v24  ;;  %v582_v41 = vpack.c.b16 %v491_v32, %v491_v32 }
  0x16   :  { %v11988_v33 = vld [vmem:[%s24072_s0 + $0x270] sm:$0xf]  ;;  %v15546_v34 = vld [vmem:[%s24072_s0 + $0x288] sm:$0xf0]  ;;  %v11648_v38 = vld [vmem:[%s24073_s1] sm:$0xf]  ;;  %v11821_v42 = vor.u32 %v15504_v27, %v11820_v26  ;;  %v11881_v43 = vor.u32 %v15515_v28, %v11878_v29 }
  0x17   :  { %v159_v35 = vld [vmem:[%s24074_s2 + $0x10] sm:$0xff]  ;;  %v15460_v39 = vld [vmem:[%s24073_s1 + $0x4] sm:$0xf0]  ;;  %v688_v40 = vsel %vm680_vm0, %v581_v31, 0  ;;  %v15497_v45 = vld [vmem:[%s24072_s0 + $0x100] sm:$0xf0]  ;;  %v11989_v48 = vor.u32 %v15546_v34, %v11988_v33 }
  0x18   :  { %733 = vmatpush.bf16.msra.mxu1 %v11897_v1  ;;  %781 = vmatpush.bf16.msra.mxu3 %v11901_v2  ;;  %v11792_v44 = vld [vmem:[%s24072_s0 + $0xe8] sm:$0xf]  ;;  %v15508_v46 = vld [vmem:[%s24072_s0 + $0x15c] sm:$0xf]  ;;  %v11850_v47 = vld [vmem:[%s24072_s0 + $0x174] sm:$0xf0]  ;;  %v16763_v49 = vor.u32 %v15460_v39, %v11648_v38 }
  0x19   :  { %707 = vmatpush.bf16.msra.mxu0 %v11729_v6  ;;  %755 = vmatpush.bf16.msra.mxu2 %v11733_v7  ;;  %v11960_v50 = vld [vmem:[%s24072_s0 + $0x238] sm:$0xf]  ;;  %v15539_v51 = vld [vmem:[%s24072_s0 + $0x250] sm:$0xf0]  ;;  %v691_v52 = vsel %vm680_vm0, %v582_v41, 0  ;;  %v11793_v53 = vor.u32 %v15497_v45, %v11792_v44  ;;  %v11853_v54 = vor.u32 %v15508_v46, %v11850_v47  ;;  %v10057_v4 = vld [vmem:[%s24075_s6] sm:$0xff] }
  0x1a   :  { %175 = vperm.xlu1 %16214, %v159_v35   ;;  %v11764_v55 = vld [vmem:[%s24072_s0 + $0xb0] sm:$0xf]  ;;  %v15490_v56 = vld [vmem:[%s24072_s0 + $0xc8] sm:$0xf0]  ;;  %v15501_v57 = vld [vmem:[%s24072_s0 + $0x124] sm:$0xf]  ;;  %v11961_v59 = vor.u32 %v15539_v51, %v11960_v50 }
  0x1b   :  { %12006 = vmatmul.msk.bf16.vlgmr.msra.gmra.mxu1 %vm670_vm1, %v16693_v14  ;;  %12009 = vmatmul.msk.bf16.vlgmr.msra.gmra.mxu3 %vm670_vm1, %v16693_v14  ;;  %v11822_v58 = vld [vmem:[%s24072_s0 + $0x13c] sm:$0xf0]  ;;  %v15543_v60 = vld [vmem:[%s24072_s0 + $0x274] sm:$0xf]  ;;  %v11990_v61 = vld [vmem:[%s24072_s0 + $0x28c] sm:$0xf0]  ;;  %v11765_v5 = vor.u32 %v15490_v56, %v11764_v55 }
  0x1c   :  { %798 = vmatpush.bf16.msrb.mxu1 %v11877_v12  ;;  %825 = vmatpush.bf16.msrb.mxu3 %v688_v40  ;;  %v15461_v62 = vld [vmem:[%s24073_s1 + $0x14] sm:$0xf]  ;;  %v11658_v63 = vld [vmem:[%s24073_s1 + $0x18] sm:$0xf0]  ;;  %v11932_v0 = vld [vmem:[%s24072_s0 + $0x200] sm:$0xf]  ;;  %v11993_v1 = vor.u32 %v15543_v60, %v11990_v61  ;;  %v11825_v6 = vor.u32 %v15501_v57, %v11822_v58 }
  0x1d   :  { %708 = vmatpush.bf16.msra.mxu0 %v11701_v18  ;;  %756 = vmatpush.bf16.msra.mxu2 %v11705_v19  ;;  %v15532_v2 = vld [vmem:[%s24072_s0 + $0x218] sm:$0xf0]  ;;  %v11736_v7 = vld [vmem:[%s24072_s0 + $0x78] sm:$0xf]  ;;  %v15483_v8 = vld [vmem:[%s24072_s0 + $0x90] sm:$0xf0]  ;;  %v16819_v10 = vor.u32 %v15461_v62, %v11658_v63 }
  0x1e   :  { %170 = vperm.xlu0 %16213, %v158_v30   ;;  %v160_v3 = vld [vmem:[%s24074_s2 + $0x18] sm:$0xff]  ;;  %v15494_v11 = vld [vmem:[%s24072_s0 + $0xec] sm:$0xf]  ;;  %v11794_v12 = vld [vmem:[%s24072_s0 + $0x104] sm:$0xf0]  ;;  %v11933_v15 = vor.u32 %v15532_v2, %v11932_v0  ;;  %v11737_v19 = vor.u32 %v15483_v8, %v11736_v7 }
  0x1f   :  { %v15536_v9 = vld [vmem:[%s24072_s0 + $0x23c] sm:$0xf]  ;;  %v11962_v13 = vld [vmem:[%s24072_s0 + $0x254] sm:$0xf0]  ;;  %v11904_v17 = vld [vmem:[%s24072_s0 + $0x1c8] sm:$0xf]  ;;  %v11797_v20 = vor.u32 %v15494_v11, %v11794_v12 }
  0x20   :  { %799 = vmatpush.bf16.msrb.mxu1 %v11849_v25  ;;  %826 = vmatpush.bf16.msrb.mxu3 %v11989_v48  ;;  %v11965_v16 = vor.u32 %v15536_v9, %v11962_v13  ;;  %v15525_v18 = vld [vmem:[%s24072_s0 + $0x1e0] sm:$0xf0]  ;;  %v11708_v21 = vld [vmem:[%s24072_s0 + $0x40] sm:$0xf]  ;;  %v15476_v22 = vld [vmem:[%s24072_s0 + $0x58] sm:$0xf0] }
  0x21   :  { %709 = vmatpush.bf16.msra.mxu0 %v11673_v36  ;;  %757 = vmatpush.bf16.msra.mxu2 %v11677_v37  ;;  %v15529_v23 = vld [vmem:[%s24072_s0 + $0x204] sm:$0xf]  ;;  %v15487_v24 = vld [vmem:[%s24072_s0 + $0xb4] sm:$0xf]  ;;  %v11766_v25 = vld [vmem:[%s24072_s0 + $0xcc] sm:$0xf0]  ;;  %v11905_v27 = vor.u32 %v15525_v18, %v11904_v17  ;;  %v11709_v32 = vor.u32 %v15476_v22, %v11708_v21 }
  0x22   :  { %180 = vperm.xlu1 %16214, %v160_v3   ;;  %v11934_v26 = vld [vmem:[%s24072_s0 + $0x21c] sm:$0xf0]  ;;  %v11656_v29 = vld [vmem:[%s24073_s1 + $0x10] sm:$0xf]  ;;  %v15462_v30 = vld [vmem:[%s24073_s1 + $0x14] sm:$0xf0]  ;;  %v11769_v33 = vor.u32 %v15487_v24, %v11766_v25 }
  0x23   :  { %v11937_v28 = vor.u32 %v15529_v23, %v11934_v26  ;;  %v11680_v31 = vld [vmem:[%s24072_s0 + $0x8] sm:$0xf]  ;;  %v10060_v34 = vld [vmem:[%s24075_s6 + $0x18] sm:$0xff]  ;;  %v15522_v35 = vld [vmem:[%s24072_s0 + $0x1cc] sm:$0xf]  ;;  %v16885_v40 = vor.u32 %v15462_v30, %v11656_v29 }
  0x24   :  { %800 = vmatpush.bf16.msrb.mxu1 %v11821_v42  ;;  %710 = vmatmul.bf16.vlgmr.msra.gmra.mxu0 %v16763_v49  ;;  %v11906_v36 = vld [vmem:[%s24072_s0 + $0x1e4] sm:$0xf0]  ;;  %v15469_v37 = vld [vmem:[%s24072_s0 + $0x20] sm:$0xf0]  ;;  %v15480_v38 = vld [vmem:[%s24072_s0 + $0x7c] sm:$0xf] }
  0x25   :  { %846 = vmatpush.bf16.msrb.mxu0 %v11881_v43  ;;  %873 = vmatpush.bf16.msrb.mxu2 %v691_v52  ;;  %v11738_v39 = vld [vmem:[%s24072_s0 + $0x94] sm:$0xf0]  ;;  %v11909_v41 = vor.u32 %v15522_v35, %v11906_v36  ;;  %v11681_v42 = vor.u32 %v15469_v37, %v11680_v31  ;;  %v15473_v44 = vld [vmem:[%s24072_s0 + $0x44] sm:$0xf]  ;;  %v11710_v45 = vld [vmem:[%s24072_s0 + $0x5c] sm:$0xf0] }
  0x26   :  { %758 = vmatmul.bf16.vlgmr.msra.gmra.mxu2 %v16763_v49  ;;  %827 = vmatpush.bf16.msrb.mxu3 %v11961_v59  ;;  %v11741_v43 = vor.u32 %v15480_v38, %v11738_v39  ;;  %v15463_v46 = vld [vmem:[%s24073_s1 + $0x24] sm:$0xf]  ;;  %v11666_v47 = vld [vmem:[%s24073_s1 + $0x28] sm:$0xf0]  ;;  %v11713_v48 = vor.u32 %v15473_v44, %v11710_v45  ;;  %v10063_v50 = vld [vmem:[%s24075_s6 + $0x30] sm:$0xff] }
  0x27   :  { %10075 = vperm.xlu0 %16213, %v10057_v4   ;;  %v16904_v51 = vor.u32 %v15463_v46, %v11666_v47  ;;  %v15466_v52 = vld [vmem:[%s24072_s0 + $0xc] sm:$0xf]  ;;  %v15519_v55 = vld [vmem:[%s24072_s0 + $0x1b0] sm:$0xf0]  ;;  %v11856_v59 = vld [vmem:[%s24072_s0 + $0x160] sm:$0xf] }
  0x28   :  { %801 = vmatpush.bf16.msrb.mxu1 %v11793_v53  ;;  %v11682_v53 = vld [vmem:[%s24072_s0 + $0x24] sm:$0xf0]  ;;  %v15512_v60 = vld [vmem:[%s24072_s0 + $0x178] sm:$0xf0]  ;;  %v11664_v61 = vld [vmem:[%s24073_s1 + $0x20] sm:$0xf] }
  0x29   :  { %847 = vmatpush.bf16.msrb.mxu0 %v11853_v54  ;;  %874 = vmatpush.bf16.msrb.mxu2 %v11993_v1  ;;  %v11884_v54 = vld [vmem:[%s24072_s0 + $0x198] sm:$0xf]  ;;  %v11685_v56 = vor.u32 %v15466_v52, %v11682_v53  ;;  %v10058_v58 = vld [vmem:[%s24075_s6 + $0x8] sm:$0xff]  ;;  %v11857_v63 = vor.u32 %v15512_v60, %v11856_v59  ;;  %v15505_v3 = vld [vmem:[%s24072_s0 + $0x140] sm:$0xf0] }
  0x2a   :  { %828 = vmatpush.bf16.msrb.mxu3 %v11933_v15  ;;  %v11885_v57 = vor.u32 %v15519_v55, %v11884_v54  ;;  %10080 = vperm.xlu1 %16214, %v10058_v58   ;;  %v15464_v62 = vld [vmem:[%s24073_s1 + $0x24] sm:$0xf0]  ;;  %v155_v7 = vld [vmem:[%s24072_s0 + $0x2b0] sm:$0xff]  ;;  %v161_v11 = vld [vmem:[%s24074_s2 + $0x20] sm:$0xff] }
  0x2b   :  { %12007 = vmatmul.msk.bf16.gmra.mxu1 %vm670_vm1, %v16819_v10  ;;  %12010 = vmatmul.msk.bf16.gmra.mxu3 %vm670_vm1, %v16819_v10  ;;  %v10066_v0 = vld [vmem:[%s24075_s6 + $0x48] sm:$0xff]  ;;  %v16940_v1 = vor.u32 %v15464_v62, %v11664_v61  ;;  %v492_v9 = vunpack.c.l.b16 %v155_v7  ;;  %v10061_v12 = vld [vmem:[%s24075_s6 + $0x20] sm:$0xff]  ;;  %v11800_v13 = vld [vmem:[%s24072_s0 + $0xf0] sm:$0xf] }
  0x2c   :  { %802 = vmatpush.bf16.msrb.mxu1 %v11765_v5  ;;  %v11828_v2 = vld [vmem:[%s24072_s0 + $0x128] sm:$0xf]  ;;  %v15516_v5 = vld [vmem:[%s24072_s0 + $0x19c] sm:$0xf]  ;;  %v15498_v15 = vld [vmem:[%s24072_s0 + $0x108] sm:$0xf0]  ;;  %185 = vperm.xlu2 %16215, %v161_v11  }
  0x2d   :  { %848 = vmatpush.bf16.msrb.mxu0 %v11825_v6  ;;  %875 = vmatpush.bf16.msrb.mxu2 %v11965_v16  ;;  %v11829_v4 = vor.u32 %v15505_v3, %v11828_v2  ;;  %v11886_v6 = vld [vmem:[%s24072_s0 + $0x1b4] sm:$0xf0]  ;;  %v583_v16 = vpack.c.b16 %v492_v9, %v492_v9  ;;  %v15509_v17 = vld [vmem:[%s24072_s0 + $0x164] sm:$0xf]  ;;  %v15491_v24 = vld [vmem:[%s24072_s0 + $0xd0] sm:$0xf0] }
  0x2e   :  { %829 = vmatpush.bf16.msrb.mxu3 %v11905_v27  ;;  %v11889_v8 = vor.u32 %v15516_v5, %v11886_v6  ;;  %v10069_v18 = vld [vmem:[%s24075_s6 + $0x60] sm:$0xff]  ;;  %v11772_v23 = vld [vmem:[%s24072_s0 + $0xb8] sm:$0xf]  ;;  %v15547_v27 = vld [vmem:[%s24072_s0 + $0x290] sm:$0xf0] }
  0x2f   :  { %10090 = vperm.xlu0 %16213, %v10060_v34   ;;  %v694_v21 = vsel %vm680_vm0, %v583_v16, 0  ;;  %v11996_v25 = vld [vmem:[%s24072_s0 + $0x278] sm:$0xf]  ;;  %v11773_v26 = vor.u32 %v15491_v24, %v11772_v23  ;;  %v11830_v29 = vld [vmem:[%s24072_s0 + $0x144] sm:$0xf0]  ;;  %v493_v34 = vunpack.c.h.b16 %v155_v7  ;;  %v10067_v62 = vld [vmem:[%s24075_s6 + $0x50] sm:$0xff] }
  0x30   :  { %803 = vmatpush.bf16.msrb.mxu1 %v11737_v19  ;;  %v11801_v19 = vor.u32 %v15498_v15, %v11800_v13  ;;  %v11997_v30 = vor.u32 %v15547_v27, %v11996_v25  ;;  %v11744_v35 = vld [vmem:[%s24072_s0 + $0x80] sm:$0xf]  ;;  %v15484_v36 = vld [vmem:[%s24072_s0 + $0x98] sm:$0xf0]  ;;  %v11940_v52 = vld [vmem:[%s24072_s0 + $0x208] sm:$0xf] }
  0x31   :  { %849 = vmatpush.bf16.msrb.mxu0 %v11797_v20  ;;  %876 = vmatpush.bf16.msrb.mxu2 %v11937_v28  ;;  %v11858_v20 = vld [vmem:[%s24072_s0 + $0x17c] sm:$0xf0]  ;;  %v15502_v28 = vld [vmem:[%s24072_s0 + $0x12c] sm:$0xf]  ;;  %v11745_v38 = vor.u32 %v15484_v36, %v11744_v35  ;;  %v15540_v39 = vld [vmem:[%s24072_s0 + $0x258] sm:$0xf0] }
  0x32   :  { %10095 = vperm.xlu1 %16214, %v10061_v12   ;;  %v11861_v22 = vor.u32 %v15509_v17, %v11858_v20  ;;  %921 = vmatpush.bf16.msra.mxu3 %v694_v21  ;;  %v11833_v31 = vor.u32 %v15502_v28, %v11830_v29  ;;  %v11968_v37 = vld [vmem:[%s24072_s0 + $0x240] sm:$0xf]  ;;  %v10072_v44 = vld [vmem:[%s24075_s6 + $0x78] sm:$0xff]  ;;  %v15533_v54 = vld [vmem:[%s24072_s0 + $0x220] sm:$0xf0] }
  0x33   :  { %v11969_v45 = vor.u32 %v15540_v39, %v11968_v37  ;;  %v15488_v55 = vld [vmem:[%s24072_s0 + $0xbc] sm:$0xf]  ;;  %v11998_v60 = vld [vmem:[%s24072_s0 + $0x294] sm:$0xf0]  ;;  %v11912_v3 = vld [vmem:[%s24072_s0 + $0x1d0] sm:$0xf] }
  0x34   :  { %804 = vmatpush.bf16.msrb.mxu1 %v11709_v32  ;;  %715 = vmatmul.bf16.gmra.mxu0 %v16885_v40  ;;  %v162_v32 = vld [vmem:[%s24074_s2 + $0x28] sm:$0xff]  ;;  %v15544_v59 = vld [vmem:[%s24072_s0 + $0x27c] sm:$0xf]  ;;  %v15481_v5 = vld [vmem:[%s24072_s0 + $0x84] sm:$0xf] }
  0x35   :  { %850 = vmatpush.bf16.msrb.mxu0 %v11769_v33  ;;  %877 = vmatpush.bf16.msrb.mxu2 %v11909_v41  ;;  %v10064_v33 = vld [vmem:[%s24075_s6 + $0x38] sm:$0xff]  ;;  %v15495_v41 = vld [vmem:[%s24072_s0 + $0xf4] sm:$0xf]  ;;  %v12001_v61 = vor.u32 %v15544_v59, %v11998_v60  ;;  %v11746_v7 = vld [vmem:[%s24072_s0 + $0x9c] sm:$0xf0] }
  0x36   :  { %763 = vmatmul.bf16.gmra.mxu2 %v16885_v40  ;;  %922 = vmatpush.bf16.msra.mxu3 %v11997_v30  ;;  %v11970_v9 = vld [vmem:[%s24072_s0 + $0x25c] sm:$0xf0]  ;;  %v11749_v11 = vor.u32 %v15481_v5, %v11746_v7  ;;  %v15474_v13 = vld [vmem:[%s24072_s0 + $0x4c] sm:$0xf]  ;;  %v11718_v15 = vld [vmem:[%s24072_s0 + $0x64] sm:$0xf0] }
  0x37   :  { %10105 = vperm.xlu0 %16213, %v10063_v50   ;;  %190 = vperm.xlu2 %16215, %v162_v32   ;;  %v15477_v50 = vld [vmem:[%s24072_s0 + $0x60] sm:$0xf0]  ;;  %v15530_v16 = vld [vmem:[%s24072_s0 + $0x20c] sm:$0xf]  ;;  %v11721_v17 = vor.u32 %v15474_v13, %v11718_v15  ;;  %v15523_v24 = vld [vmem:[%s24072_s0 + $0x1d4] sm:$0xf] }
  0x38   :  { %805 = vmatpush.bf16.msrb.mxu1 %v11681_v42  ;;  %v11802_v42 = vld [vmem:[%s24072_s0 + $0x10c] sm:$0xf0]  ;;  %v10070_v21 = vld [vmem:[%s24075_s6 + $0x68] sm:$0xff]  ;;  %v11892_v28 = vld [vmem:[%s24072_s0 + $0x1a0] sm:$0xf] }
  0x39   :  { %851 = vmatpush.bf16.msrb.mxu0 %v11741_v43  ;;  %v584_v43 = vpack.c.b16 %v493_v34, %v493_v34  ;;  %v11805_v46 = vor.u32 %v15495_v41, %v11802_v42  ;;  %v11914_v25 = vld [vmem:[%s24072_s0 + $0x1ec] sm:$0xf0]  ;;  %v15520_v29 = vld [vmem:[%s24072_s0 + $0x1b8] sm:$0xf0]  ;;  %v11864_v32 = vld [vmem:[%s24072_s0 + $0x168] sm:$0xf] }
  0x3a   :  { %10110 = vperm.xlu1 %16214, %v10064_v33   ;;  %923 = vmatpush.bf16.msra.mxu3 %v11969_v45  ;;  %v10059_v27 = vld [vmem:[%s24075_s6 + $0x10] sm:$0xff]  ;;  %v11893_v30 = vor.u32 %v15520_v29, %v11892_v28  ;;  %v15513_v33 = vld [vmem:[%s24072_s0 + $0x180] sm:$0xf0]  ;;  %v15506_v36 = vld [vmem:[%s24072_s0 + $0x148] sm:$0xf0] }
  0x3b   :  { %12008 = vmatmul.msk.bf16.gmra.mxu1 %vm670_vm1, %v16904_v51  ;;  %12011 = vmatmul.msk.bf16.gmra.mxu3 %vm670_vm1, %v16904_v51  ;;  %v697_v47 = vsel %vm680_vm0, %v584_v43, 0  ;;  %v11865_v34 = vor.u32 %v15513_v33, %v11864_v32  ;;  %v11836_v35 = vld [vmem:[%s24072_s0 + $0x130] sm:$0xf]  ;;  %v10065_v41 = vld [vmem:[%s24075_s6 + $0x40] sm:$0xff]  ;;  %v11808_v42 = vld [vmem:[%s24072_s0 + $0xf8] sm:$0xf] }
  0x3c   :  { %894 = vmatpush.bf16.msra.mxu1 %v11885_v57  ;;  %969 = vmatpush.bf16.msra.mxu2 %v697_v47  ;;  %v11941_v57 = vor.u32 %v15533_v54, %v11940_v52  ;;  %v11837_v37 = vor.u32 %v15506_v36, %v11836_v35  ;;  %v15499_v43 = vld [vmem:[%s24072_s0 + $0x110] sm:$0xf0]  ;;  %v11780_v47 = vld [vmem:[%s24072_s0 + $0xc0] sm:$0xf]  ;;  %v15541_v60 = vld [vmem:[%s24072_s0 + $0x260] sm:$0xf0] }
  0x3d   :  { %852 = vmatpush.bf16.msrb.mxu0 %v11713_v48  ;;  %v11716_v48 = vld [vmem:[%s24072_s0 + $0x48] sm:$0xf]  ;;  %v11809_v45 = vor.u32 %v15499_v43, %v11808_v42  ;;  %v11696_v5 = vld [vmem:[%s24072_s0 + $0x18] sm:$0xf]  ;;  %v12127_v13 = vld [vmem:[%s24076_s3 + $0x70] sm:$0xf] }
  0x3e   :  { %v11717_v53 = vor.u32 %v15477_v50, %v11716_v48  ;;  %924 = vmatpush.bf16.msra.mxu3 %v11941_v57  ;;  %v15492_v48 = vld [vmem:[%s24072_s0 + $0xd8] sm:$0xf0]  ;;  %v12004_v50 = vld [vmem:[%s24072_s0 + $0x280] sm:$0xf]  ;;  %v11976_v57 = vld [vmem:[%s24072_s0 + $0x248] sm:$0xf] }
  0x3f   :  { %10120 = vperm.xlu0 %16213, %v10066_v0   ;;  %v15470_v0 = vld [vmem:[%s24072_s0 + $0x28] sm:$0xf0]  ;;  %10085 = vperm.xlu2 %16215, %v10059_v27   ;;  %v11781_v52 = vor.u32 %v15492_v48, %v11780_v47  ;;  %v11920_v7 = vld [vmem:[%s24072_s0 + $0x1d8] sm:$0xf]  ;;  %v15578_v27 = vld [vmem:[%s24076_s3 + $0xe4] sm:$0xf0] }
  0x40   :  { %895 = vmatpush.bf16.msra.mxu1 %v11857_v63  ;;  %v11688_v63 = vld [vmem:[%s24072_s0 + $0x10] sm:$0xf]  ;;  %970 = vmatpush.bf16.msra.mxu2 %v12001_v61  ;;  %v11977_v61 = vor.u32 %v15541_v60, %v11976_v57  ;;  %v15564_v15 = vld [vmem:[%s24076_s3 + $0x74] sm:$0xf0]  ;;  %v12103_v29 = vld [vmem:[%s24076_s3 + $0x40] sm:$0xf] }
  0x41   :  { %853 = vmatpush.bf16.msrb.mxu0 %v11685_v56  ;;  %v11774_v56 = vld [vmem:[%s24072_s0 + $0xd4] sm:$0xf0]  ;;  %v11689_v2 = vor.u32 %v15470_v0, %v11688_v63  ;;  %v15478_v63 = vld [vmem:[%s24072_s0 + $0x68] sm:$0xf0]  ;;  %v11948_v0 = vld [vmem:[%s24072_s0 + $0x210] sm:$0xf] }
  0x42   :  { %v11777_v58 = vor.u32 %v15488_v55, %v11774_v56  ;;  %10125 = vperm.xlu1 %16214, %v10067_v62   ;;  %v11752_v55 = vld [vmem:[%s24072_s0 + $0x88] sm:$0xf]  ;;  %v15485_v56 = vld [vmem:[%s24072_s0 + $0xa0] sm:$0xf0]  ;;  %v11724_v62 = vld [vmem:[%s24072_s0 + $0x50] sm:$0xf] }
  0x43   :  { %v11753_v59 = vor.u32 %v15485_v56, %v11752_v55  ;;  %v12175_v33 = vld [vmem:[%s24076_s3 + $0xd0] sm:$0xf]  ;;  %v15552_v57 = vld [vmem:[%s24076_s3 + $0x14] sm:$0xf0]  ;;  %v12151_v60 = vld [vmem:[%s24076_s3 + $0xa0] sm:$0xf] }
  0x44   :  { %720 = vmatmul.bf16.gmra.mxu0 %v16940_v1  ;;  %896 = vmatpush.bf16.msra.mxu1 %v11829_v4  ;;  %v15526_v4 = vld [vmem:[%s24072_s0 + $0x1e8] sm:$0xf0]  ;;  %v12095_v36 = vld [vmem:[%s24076_s3 + $0x30] sm:$0xf] }
  0x45   :  { %942 = vmatpush.bf16.msra.mxu0 %v11889_v8  ;;  %v11913_v6 = vor.u32 %v15526_v4, %v11912_v3  ;;  %v15537_v8 = vld [vmem:[%s24072_s0 + $0x244] sm:$0xf]  ;;  %v15534_v3 = vld [vmem:[%s24072_s0 + $0x228] sm:$0xf0]  ;;  %v12079_v56 = vld [vmem:[%s24076_s3 + $0x10] sm:$0xf] }
  0x46   :  { %768 = vmatmul.bf16.gmra.mxu2 %v16940_v1  ;;  %v11973_v12 = vor.u32 %v15537_v8, %v11970_v9  ;;  %v11949_v4 = vor.u32 %v15534_v3, %v11948_v0  ;;  %v15527_v9 = vld [vmem:[%s24072_s0 + $0x1f0] sm:$0xf0]  ;;  %v15550_v3 = vld [vmem:[%s24076_s3 + $0x4] sm:$0xf0] }
  0x47   :  { %10135 = vperm.xlu0 %16213, %v10069_v18   ;;  %925 = vmatpush.bf16.msra.mxu3 %v11913_v6  ;;  %v11942_v18 = vld [vmem:[%s24072_s0 + $0x224] sm:$0xf0]  ;;  %v15471_v6 = vld [vmem:[%s24072_s0 + $0x30] sm:$0xf0] }
  0x48   :  { %897 = vmatpush.bf16.msra.mxu1 %v11801_v19  ;;  %v15467_v19 = vld [vmem:[%s24072_s0 + $0x14] sm:$0xf]  ;;  %971 = vmatpush.bf16.msra.mxu2 %v11973_v12  ;;  %v11945_v20 = vor.u32 %v15530_v16, %v11942_v18  ;;  %v11697_v8 = vor.u32 %v15471_v6, %v11696_v5  ;;  %v11921_v12 = vor.u32 %v15527_v9, %v11920_v7  ;;  %v15562_v18 = vld [vmem:[%s24076_s3 + $0x64] sm:$0xf0]  ;;  %v12143_v9 = vld [vmem:[%s24076_s3 + $0x90] sm:$0xf] }
  0x49   :  { %943 = vmatpush.bf16.msra.mxu0 %v11861_v22  ;;  %v11690_v22 = vld [vmem:[%s24072_s0 + $0x2c] sm:$0xf0]  ;;  %v12128_v16 = vor.u32 %v15564_v15, %v12127_v13 }
  0x4a   :  { %v11693_v23 = vor.u32 %v15467_v19, %v11690_v22  ;;  %10140 = vperm.xlu1 %16214, %v10070_v21   ;;  %v15580_v21 = vld [vmem:[%s24076_s3 + $0xf4] sm:$0xf0] }
  0x4b   :  { %806 = vmatmul.bf16.vlgmr.msrb.gmra.mxu1 %v16763_v49  ;;  %12012 = vmatmul.msk.bf16.vlgmr.msrb.gmra.mxu3 %vm670_vm1, %v16693_v14 }
  0x4c   :  { %898 = vmatpush.bf16.msra.mxu1 %v11773_v26  ;;  %972 = vmatpush.bf16.msra.mxu2 %v11945_v20  ;;  %v11917_v26 = vor.u32 %v15523_v24, %v11914_v25  ;;  %v12191_v20 = vld [vmem:[%s24076_s3 + $0xf0] sm:$0xf]  ;;  %v15560_v24 = vld [vmem:[%s24076_s3 + $0x54] sm:$0xf0] }
  0x4d   :  { %944 = vmatpush.bf16.msra.mxu0 %v11833_v31  ;;  %v10062_v31 = vld [vmem:[%s24075_s6 + $0x28] sm:$0xff]  ;;  %v12192_v22 = vor.u32 %v15580_v21, %v12191_v20  ;;  %v12135_v20 = vld [vmem:[%s24076_s3 + $0x80] sm:$0xf] }
  0x4e   :  { %10100 = vperm.xlu2 %16215, %v10062_v31   ;;  %v15566_v21 = vld [vmem:[%s24076_s3 + $0x84] sm:$0xf0] }
  0x4f   :  { %10150 = vperm.xlu0 %16213, %v10072_v44  }
  0x50   :  { %899 = vmatpush.bf16.msra.mxu1 %v11745_v38  ;;  %973 = vmatpush.bf16.msra.mxu2 %v11917_v26  ;;  %v156_v38 = vld [vmem:[%s24072_s0 + $0x2b8] sm:$0xf]  ;;  %v12183_v26 = vld [vmem:[%s24076_s3 + $0xe0] sm:$0xf] }
  0x51   :  { %945 = vmatpush.bf16.msra.mxu0 %v11805_v46  ;;  %v494_v39 = vunpack.c.l.b16 %v156_v38  ;;  %v12184_v28 = vor.u32 %v15578_v27, %v12183_v26 }
  0x53   :  { %v585_v44 = vpack.c.b16 %v494_v39, %v494_v39  ;;  %v12167_v39 = vld [vmem:[%s24076_s3 + $0xc0] sm:$0xf] }
  0x54   :  { %854 = vmatmul.bf16.vlgmr.msrb.gmra.mxu0 %v16763_v49  ;;  %900 = vmatpush.bf16.msra.mxu1 %v11717_v53  ;;  %v15548_v53 = vld [vmem:[%s24072_s0 + $0x298] sm:$0xf0] }
  0x55   :  { %946 = vmatpush.bf16.msra.mxu0 %v11777_v58  ;;  %v700_v46 = vsel %vm680_vm0, %v585_v44, 0  ;;  %v12005_v54 = vor.u32 %v15548_v53, %v12004_v50  ;;  %v10068_v58 = vld [vmem:[%s24075_s6 + $0x58] sm:$0xff]  ;;  %v12159_v50 = vld [vmem:[%s24076_s3 + $0xb0] sm:$0xf] }
  0x56   :  { %12015 = vmatmul.msk.bf16.vlgmr.msrb.gmra.mxu2 %vm670_vm1, %v16693_v14  ;;  %10115 = vperm.xlu2 %16215, %v10065_v41   ;;  %v15574_v41 = vld [vmem:[%s24076_s3 + $0xc4] sm:$0xf0] }
  0x57   :  { %1017 = vmatpush.bf16.msrb.mxu3 %v700_v46  ;;  %2479 = vmatpush.bf16.msrb.mxu2 %v12192_v22  ;;  %v12168_v43 = vor.u32 %v15574_v41, %v12167_v39  ;;  %v15554_v46 = vld [vmem:[%s24076_s3 + $0x24] sm:$0xf0] }
  0x58   :  { %901 = vmatpush.bf16.msra.mxu1 %v11689_v2  ;;  %v11725_v2 = vor.u32 %v15478_v63, %v11724_v62 }
  0x59   :  { %947 = vmatpush.bf16.msra.mxu0 %v11749_v11  ;;  %v10071_v11 = vld [vmem:[%s24075_s6 + $0x70] sm:$0xff] }
  0x5b   :  { %811 = vmatmul.bf16.gmra.mxu1 %v16885_v40  ;;  %12013 = vmatmul.msk.bf16.gmra.mxu3 %vm670_vm1, %v16819_v10 }
  0x5c   :  { %990 = vmatpush.bf16.msrb.mxu1 %v11893_v30  ;;  %1018 = vmatpush.bf16.msrb.mxu3 %v12005_v54  ;;  %v15558_v30 = vld [vmem:[%s24076_s3 + $0x44] sm:$0xf0] }
  0x5d   :  { %948 = vmatpush.bf16.msra.mxu0 %v11721_v17  ;;  %v12119_v17 = vld [vmem:[%s24076_s3 + $0x60] sm:$0xf]  ;;  %2480 = vmatpush.bf16.msrb.mxu2 %v12184_v28  ;;  %v12104_v31 = vor.u32 %v15558_v30, %v12103_v29 }
  0x5e   :  { %10130 = vperm.xlu2 %16215, %v10068_v58   ;;  %v12120_v19 = vor.u32 %v15562_v18, %v12119_v17  ;;  %v12080_v58 = vor.u32 %v15552_v57, %v12079_v56 }
  0x60   :  { %991 = vmatpush.bf16.msrb.mxu1 %v11865_v34  ;;  %1019 = vmatpush.bf16.msrb.mxu3 %v11977_v61  ;;  %v15576_v34 = vld [vmem:[%s24076_s3 + $0xd4] sm:$0xf0]  ;;  %v15570_v61 = vld [vmem:[%s24076_s3 + $0xa4] sm:$0xf0] }
  0x61   :  { %949 = vmatpush.bf16.msra.mxu0 %v11693_v23  ;;  %v12111_v23 = vld [vmem:[%s24076_s3 + $0x50] sm:$0xf]  ;;  %v12176_v35 = vor.u32 %v15576_v34, %v12175_v33  ;;  %v12152_v62 = vor.u32 %v15570_v61, %v12151_v60 }
  0x62   :  { %v12112_v25 = vor.u32 %v15560_v24, %v12111_v23  ;;  %v12136_v24 = vor.u32 %v15566_v21, %v12135_v20 }
  0x63   :  { %2481 = vmatpush.bf16.msrb.mxu2 %v12176_v35 }
  0x64   :  { %859 = vmatmul.bf16.gmra.mxu0 %v16885_v40  ;;  %992 = vmatpush.bf16.msrb.mxu1 %v11837_v37  ;;  %v15556_v37 = vld [vmem:[%s24076_s3 + $0x34] sm:$0xf0] }
  0x65   :  { %1020 = vmatpush.bf16.msrb.mxu3 %v11949_v4  ;;  %2455 = vmatpush.bf16.msrb.mxu0 %v12128_v16  ;;  %v12096_v38 = vor.u32 %v15556_v37, %v12095_v36 }
  0x66   :  { %12016 = vmatmul.msk.bf16.gmra.mxu2 %vm670_vm1, %v16819_v10  ;;  %10145 = vperm.xlu2 %16215, %v10071_v11   ;;  %v15568_v11 = vld [vmem:[%s24076_s3 + $0x94] sm:$0xf0] }
  0x67   :  { %2482 = vmatpush.bf16.msrb.mxu2 %v12168_v43  ;;  %v12144_v13 = vor.u32 %v15568_v11, %v12143_v9 }
  0x68   :  { %993 = vmatpush.bf16.msrb.mxu1 %v11809_v45  ;;  %v12087_v45 = vld [vmem:[%s24076_s3 + $0x20] sm:$0xf] }
  0x69   :  { %1021 = vmatpush.bf16.msrb.mxu3 %v11921_v12  ;;  %2456 = vmatpush.bf16.msrb.mxu0 %v12120_v19  ;;  %v12088_v47 = vor.u32 %v15554_v46, %v12087_v45 }
  0x6b   :  { %816 = vmatmul.bf16.gmra.mxu1 %v16940_v1  ;;  %12014 = vmatmul.msk.bf16.gmra.mxu3 %vm670_vm1, %v16904_v51 }
  0x6c   :  { %994 = vmatpush.bf16.msrb.mxu1 %v11781_v52  ;;  %v15572_v52 = vld [vmem:[%s24076_s3 + $0xb4] sm:$0xf0] }
  0x6d   :  { %2457 = vmatpush.bf16.msrb.mxu0 %v12112_v25  ;;  %v12160_v54 = vor.u32 %v15572_v52, %v12159_v50 }
  0x6f   :  { %2483 = vmatpush.bf16.msrb.mxu2 %v12160_v54 }
  0x70   :  { %995 = vmatpush.bf16.msrb.mxu1 %v11753_v59 }
  0x71   :  { %2458 = vmatpush.bf16.msrb.mxu0 %v12104_v31 }
  0x73   :  { %2484 = vmatpush.bf16.msrb.mxu2 %v12152_v62 }
  0x74   :  { %864 = vmatmul.bf16.gmra.mxu0 %v16940_v1  ;;  %996 = vmatpush.bf16.msrb.mxu1 %v11725_v2  ;;  %v12071_v2 = vld [vmem:[%s24076_s3] sm:$0xf] }
  0x75   :  { %2459 = vmatpush.bf16.msrb.mxu0 %v12096_v38  ;;  %v12072_v6 = vor.u32 %v15550_v3, %v12071_v2 }
  0x76   :  { %12017 = vmatmul.msk.bf16.gmra.mxu2 %vm670_vm1, %v16904_v51 }
  0x77   :  { %2485 = vmatpush.bf16.msrb.mxu2 %v12144_v13 }
  0x78   :  { %997 = vmatpush.bf16.msrb.mxu1 %v11697_v8 }
  0x79   :  { %2460 = vmatpush.bf16.msrb.mxu0 %v12088_v47 }
  0x7b   :  { %902 = vmatmul.bf16.vlgmr.msra.gmra.mxu1 %v16763_v49  ;;  %12018 = vmatmul.msk.bf16.vlgmr.msra.gmra.mxu3 %vm670_vm1, %v16693_v14 }
  0x7c   :  { %2486 = vmatpush.bf16.msrb.mxu2 %v12136_v24 }
  0x7d   :  { %2461 = vmatpush.bf16.msrb.mxu0 %v12080_v58 }
  0x81   :  { %2462 = vmatpush.bf16.msrb.mxu0 %v12072_v6 }
  0x84   :  { %950 = vmatmul.bf16.vlgmr.msra.gmra.mxu0 %v16763_v49 }
  0x85   :  { %v17283_v42 = vpop.permute.xlu0 %165 }
  0x86   :  { %12021 = vmatmul.msk.bf16.vlgmr.msra.gmra.mxu2 %vm670_vm1, %v16693_v14 }
  0x8b   :  { %907 = vmatmul.bf16.gmra.mxu1 %v16885_v40  ;;  %12019 = vmatmul.msk.bf16.gmra.mxu3 %vm670_vm1, %v16819_v10 }
  0x8c   :  { %v17332_v19 = vpop.permute.xlu1 %175 }
  0x90   :  { %v17319_v5 = vpop.permute.xlu0 %170 }
  0x94   :  { %955 = vmatmul.bf16.gmra.mxu0 %v16885_v40  ;;  %v17352_v43 = vpop.permute.xlu1 %180 }
  0x96   :  { %12022 = vmatmul.msk.bf16.gmra.mxu2 %vm670_vm1, %v16819_v10 }
  0x98   :  { %v735_v32 = vpop.f32.mrf.mxu1 }
  0x9b   :  { %912 = vmatmul.bf16.gmra.mxu1 %v16940_v1  ;;  %12020 = vmatmul.msk.bf16.gmra.mxu3 %vm670_vm1, %v16904_v51 }
  0x9e   :  { %v783_v44 = vpop.f32.mrf.mxu3 }
  0xa0   :  { %v737_v48 = vpop.f32.mrf.mxu1 }
  0xa1   :  { %v711_v53 = vpop.f32.mrf.mxu0 }
  0xa2   :  { %v712_v55 = vadd.f32 %v711_v53, %v17283_v42 }
  0xa4   :  { %v736_v59 = vadd.f32 %v735_v32, %v712_v55  ;;  %960 = vmatmul.bf16.gmra.mxu0 %v16940_v1  ;;  %v15596_v55 = vld [vmem:[%s24076_s3 + $0x174] sm:$0xf0] }
  0xa6   :  { %12023 = vmatmul.msk.bf16.gmra.mxu2 %vm670_vm1, %v16904_v51  ;;  %v12027_v63 = vmul.f32 -1.442695, %v736_v59  ;;  %v785_v0 = vpop.f32.mrf.mxu3 }
  0xa8   :  { %16219 = vpow2.f32 %v12027_v63  ;;  %v740_v8 = vpop.f32.mrf.mxu1  ;;  %v17374_v63 = vpop.permute.xlu2 %185 }
  0xa9   :  { %v759_v4 = vpop.f32.mrf.mxu2  ;;  %v713_v12 = vpop.f32.mrf.mxu0 }
  0xaa   :  { %v760_v7 = vadd.f32 %v759_v4, %v17283_v42  ;;  %v714_v16 = vadd.f32 %v713_v12, %v17319_v5 }
  0xab   :  { %998 = vmatmul.bf16.vlgmr.msrb.gmra.mxu1 %v16763_v49  ;;  %12024 = vmatmul.msk.bf16.vlgmr.msrb.gmra.mxu3 %vm670_vm1, %v16693_v14 }
  0xac   :  { %v784_v15 = vadd.f32 %v783_v44, %v760_v7  ;;  %v738_v18 = vadd.f32 %v737_v48, %v714_v16  ;;  %v12255_v48 = vld [vmem:[%s24076_s3 + $0x170] sm:$0xf] }
  0xad   :  { %v12256_v56 = vor.u32 %v15596_v55, %v12255_v48 }
  0xae   :  { %v12028_v17 = vmul.f32 -1.442695, %v784_v15  ;;  %v16220_v22 = vpop.eup %16219  ;;  %v12034_v23 = vmul.f32 -1.442695, %v738_v18  ;;  %v788_v49 = vpop.f32.mrf.mxu3 }
  0xaf   :  { %v17340_v25 = vadd.f32 1.0, %v16220_v22  ;;  %2503 = vmatpush.bf16.msra.mxu1 %v12256_v56 }
  0xb0   :  { %16221 = vpow2.f32 %v12028_v17  ;;  %v742_v27 = vpop.f32.mrf.mxu1 }
  0xb1   :  { %v761_v14 = vpop.f32.mrf.mxu2  ;;  %16223 = vpow2.f32 %v12034_v23  ;;  %v716_v28 = vpop.f32.mrf.mxu0  ;;  %v1215_v54 = vand.u32 2147483647, %v17340_v25  ;;  %vm1211_vm2 = vweird.f32 %v17340_v25 }
  0xb2   :  { %v762_v26 = vadd.f32 %v761_v14, %v17319_v5  ;;  %16225 = vrcp.f32 %v17340_v25  ;;  %v717_v30 = vadd.f32 %v716_v28, %v17332_v19 }
  0xb3   :  { %vm17383_vm4 = vcmp.eq.f32.partialorder %v1215_v54, 8.507059e+37 }
  0xb4   :  { %v786_v29 = vadd.f32 %v785_v0, %v762_v26  ;;  %v741_v33 = vadd.f32 %v740_v8, %v717_v30  ;;  %v1217_v0 = vand.u32 2147483648, %v17340_v25 }
  0xb6   :  { %v16222_v31 = vpop.eup %16221  ;;  %v12035_v32 = vmul.f32 -1.442695, %v786_v29  ;;  %v12041_v36 = vmul.f32 -1.442695, %v741_v33  ;;  %v790_v37 = vpop.f32.mrf.mxu3  ;;  %v1218_v18 = vor.u32 1.1754944e-38, %v1217_v0 }
  0xb7   :  { %v17345_v34 = vadd.f32 1.0, %v16222_v31  ;;  %v16224_v35 = vpop.eup %16223 }
  0xb8   :  { %16227 = vpow2.f32 %v12035_v32  ;;  %v17347_v38 = vpop.eup %16225  ;;  %v17350_v39 = vadd.f32 1.0, %v16224_v35  ;;  %v745_v46 = vpop.f32.mrf.mxu1 }
  0xb9   :  { %16229 = vrcp.f32 %v17345_v34  ;;  %v764_v41 = vpop.f32.mrf.mxu2  ;;  %v1207_v44 = vmul.f32 %v17347_v38, %v17340_v25  ;;  %v718_v47 = vpop.f32.mrf.mxu0  ;;  %vm1212_vm3 = vweird.f32 %v17347_v38  ;;  %v1232_v21 = vand.u32 2147483648, %v17345_v34 }
  0xba   :  { %16231 = vpow2.f32 %v12041_v36  ;;  %v765_v45 = vadd.f32 %v764_v41, %v17332_v19  ;;  %v719_v53 = vadd.f32 %v718_v47, %v17352_v43  ;;  %v1320_v11 = vand.u32 2147483647, %v17350_v39  ;;  %vm17404_vm5 = vmor %vm1211_vm2, %vm1212_vm3 }
  0xbb   :  { %16233 = vrcp.f32 %v17350_v39  ;;  %v1208_v50 = vsub.f32 1.0, %v1207_v44  ;;  %1003 = vmatmul.bf16.gmra.mxu1 %v16885_v40  ;;  %12025 = vmatmul.msk.bf16.gmra.mxu3 %vm670_vm1, %v16819_v10  ;;  %v1322_v20 = vand.u32 2147483648, %v17350_v39  ;;  %vm1226_vm6 = vweird.f32 %v17345_v34 }
  0xbc   :  { %v789_v52 = vadd.f32 %v788_v49, %v765_v45  ;;  %v743_v59 = vadd.f32 %v742_v27, %v719_v53  ;;  %v1230_v14 = vand.u32 2147483647, %v17345_v34  ;;  %vm1316_vm7 = vweird.f32 %v17350_v39 }
  0xbd   :  { %v1209_v60 = vmul.f32 %v17347_v38, %v1208_v50  ;;  %vm17414_vm9 = vcmp.eq.f32.partialorder %v1320_v11, 8.507059e+37  ;;  %v1323_v33 = vor.u32 1.1754944e-38, %v1322_v20  ;;  %v1233_v35 = vor.u32 1.1754944e-38, %v1232_v21 }
  0xbe   :  { %v16228_v57 = vpop.eup %16227  ;;  %v12042_v58 = vmul.f32 -1.442695, %v789_v52  ;;  %v12048_v2 = vmul.f32 -1.442695, %v743_v59  ;;  %v17380_v3 = vpop.f32.mrf.mxu3  ;;  %vm17427_vm12 = vcmp.eq.f32.partialorder %v1230_v14, 8.507059e+37 }
  0xbf   :  { %v17370_v61 = vpop.eup %16229  ;;  %v17372_v62 = vadd.f32 1.0, %v16228_v57  ;;  %v1210_v9 = vadd.f32 %v17347_v38, %v1209_v60  ;;  %v17437_v52 = vpop.permute.xlu2 %190 }
  0xc0   :  { %v16232_v40 = vpop.eup %16231  ;;  %v1222_v10 = vmul.f32 %v17370_v61, %v17345_v34  ;;  %16235 = vpow2.f32 %v12042_v58  ;;  %v17394_v16 = vpop.f32.mrf.mxu1  ;;  %vm1227_vm10 = vweird.f32 %v17370_v61 }
  0xc1   :  { %v16234_v6 = vpop.eup %16233  ;;  %16237 = vrcp.f32 %v17372_v62  ;;  %v17388_v7 = vadd.f32 1.0, %v16232_v40  ;;  %v766_v8 = vpop.f32.mrf.mxu2  ;;  %v1214_v26 = vsel %vm17404_vm5, %v17347_v38, %v1210_v9  ;;  %vm1331_vm11 = vweird.f32 %v17372_v62  ;;  %vm17466_vm14 = vmor %vm1226_vm6, %vm1227_vm10  ;;  %v12247_v9 = vld [vmem:[%s24076_s3 + $0x160] sm:$0xf] }
  0xc2   :  { %v1223_v12 = vsub.f32 1.0, %v1222_v10  ;;  %v1312_v13 = vmul.f32 %v16234_v6, %v17350_v39  ;;  %16239 = vpow2.f32 %v12048_v2  ;;  %v767_v15 = vadd.f32 %v766_v8, %v17352_v43  ;;  %v721_v17 = vpop.f32.mrf.mxu0 }
  0xc3   :  { %16241 = vrcp.f32 %v17388_v7  ;;  %v722_v23 = vadd.f32 %v721_v17, %v17374_v63  ;;  %vm1317_vm8 = vweird.f32 %v16234_v6  ;;  %v1219_v53 = vsel %vm17383_vm4, %v1218_v18, %v1214_v26 }
  0xc4   :  { %v791_v22 = vadd.f32 %v790_v37, %v767_v15  ;;  %v1313_v24 = vsub.f32 1.0, %v1312_v13  ;;  %v1224_v31 = vmul.f32 %v17370_v61, %v1223_v12  ;;  %vm1318_vm13 = vmor %vm1316_vm7, %vm1317_vm8  ;;  %v1335_v54 = vand.u32 2147483647, %v17372_v62 }
  0xc5   :  { %v746_v29 = vadd.f32 %v745_v46, %v722_v23  ;;  %v1337_v40 = vand.u32 2147483648, %v17372_v62  ;;  %vm1421_vm2 = vweird.f32 %v17388_v7 }
  0xc6   :  { %v16236_v25 = vpop.eup %16235  ;;  %v12049_v28 = vmul.f32 -1.442695, %v791_v22  ;;  %v1314_v30 = vmul.f32 %v16234_v6, %v1313_v24  ;;  %v17425_v41 = vpop.f32.mrf.mxu3  ;;  %v1225_v58 = vadd.f32 %v17370_v61, %v1224_v31 }
  0xc7   :  { %v17419_v32 = vpop.eup %16237  ;;  %v12055_v38 = vmul.f32 -1.442695, %v746_v29  ;;  %v17433_v47 = vadd.f32 1.0, %v16236_v25  ;;  %v1425_v25 = vand.u32 2147483647, %v17388_v7 }
  0xc8   :  { %v16240_v36 = vpop.eup %16239  ;;  %v1327_v37 = vmul.f32 %v17419_v32, %v17372_v62  ;;  %16243 = vpow2.f32 %v12049_v28  ;;  %v1315_v44 = vadd.f32 %v16234_v6, %v1314_v30  ;;  %v807_v56 = vpop.f32.mrf.mxu1  ;;  %vm1332_vm15 = vweird.f32 %v17419_v32 }
  0xc9   :  { %v17431_v46 = vpop.eup %16241  ;;  %v17435_v48 = vadd.f32 1.0, %v16240_v36  ;;  %v769_v50 = vpop.f32.mrf.mxu2  ;;  %16245 = vpow2.f32 %v12055_v38  ;;  %v1229_v12 = vsel %vm17466_vm14, %v17370_v61, %v1225_v58  ;;  %vm1333_vm3 = vmor %vm1331_vm11, %vm1332_vm15  ;;  %v1338_v61 = vor.u32 1.1754944e-38, %v1337_v40  ;;  %v12239_v36 = vld [vmem:[%s24076_s3 + $0x150] sm:$0xf] }
  0xca   :  { %v770_v55 = vadd.f32 %v769_v50, %v17374_v63  ;;  %v1319_v57 = vsel %vm1318_vm13, %v16234_v6, %v1315_v44  ;;  %v723_v59 = vpop.f32.mrf.mxu0  ;;  %v1328_v0 = vsub.f32 1.0, %v1327_v37  ;;  %v1417_v4 = vmul.f32 %v17431_v46, %v17388_v7  ;;  %v15592_v37 = vld [vmem:[%s24076_s3 + $0x154] sm:$0xf0]  ;;  %v12319_v50 = vld [vmem:[%s24076_s3 + $0x1f0] sm:$0xf] }
  0xcb   :  { %16247 = vrcp.f32 %v17435_v48  ;;  %v1324_v60 = vsel %vm17414_vm9, %v1323_v33, %v1319_v57  ;;  %v724_v10 = vadd.f32 %v723_v59, %v17437_v52  ;;  %v808_v6 = vadd.f32 %v807_v56, %v17283_v42  ;;  %1008 = vmatmul.bf16.gmra.mxu1 %v16940_v1  ;;  %12026 = vmatmul.msk.bf16.gmra.mxu3 %vm670_vm1, %v16904_v51  ;;  %v15594_v51 = vld [vmem:[%s24076_s3 + $0x164] sm:$0xf0] }
  0xcc   :  { %v794_v39 = vadd.f32 %v17380_v3, %v770_v55  ;;  %v17453_v2 = vpack.c.bf16 %v1324_v60, %v1219_v53  ;;  %16249 = vrcp.f32 %v17433_v47  ;;  %v1329_v8 = vmul.f32 %v17419_v32, %v1328_v0  ;;  %v15612_v53 = vld [vmem:[%s24076_s3 + $0x1f4] sm:$0xf0] }
  0xcd   :  { %v748_v34 = vadd.f32 %v17394_v16, %v724_v10  ;;  %v1418_v13 = vsub.f32 1.0, %v1417_v4  ;;  %vm17486_vm1 = vcmp.eq.f32.partialorder %v1335_v54, 8.507059e+37  ;;  %v12248_v23 = vor.u32 %v15594_v51, %v12247_v9 }
  0xce   :  { %v16244_v1 = vpop.eup %16243  ;;  %v12056_v11 = vmul.f32 -1.442695, %v794_v39  ;;  %2463 = vmatmul.bf16.vlgmr.msrb.gmra.mxu0 %v17453_v2  ;;  %v1330_v17 = vadd.f32 %v17419_v32, %v1329_v8  ;;  %v831_v16 = vpop.f32.mrf.mxu3  ;;  %v1234_v26 = vsel %vm17427_vm12, %v1233_v35, %v1229_v12  ;;  %vm1422_vm4 = vweird.f32 %v17431_v46 }
  0xcf   :  { %v17483_v15 = vadd.f32 1.0, %v16244_v1  ;;  %v16246_v20 = vpop.eup %16245  ;;  %v12062_v21 = vmul.f32 -1.442695, %v748_v34  ;;  %v1419_v22 = vmul.f32 %v17431_v46, %v1418_v13  ;;  %v832_v24 = vadd.f32 %v831_v16, %v808_v6  ;;  %2504 = vmatpush.bf16.msra.mxu1 %v12248_v23  ;;  %vm17539_vm5 = vmor %vm1421_vm2, %vm1422_vm4 }
  0xd0   :  { %v1334_v27 = vsel %vm1333_vm3, %v17419_v32, %v1330_v17  ;;  %16251 = vpow2.f32 %v12056_v11  ;;  %v809_v62 = vpop.f32.mrf.mxu1  ;;  %v1427_v44 = vand.u32 2147483648, %v17388_v7  ;;  %v17528_v54 = vadd.f32 1.0, %v16246_v20 }
  0xd1   :  { %v17496_v49 = vpop.eup %16247  ;;  %v771_v14 = vpop.f32.mrf.mxu2  ;;  %v1339_v29 = vsel %vm17486_vm1, %v1338_v61, %v1334_v27  ;;  %16253 = vrcp.f32 %v17483_v15  ;;  %v12029_v31 = vmul.f32 -1.442695, %v832_v24  ;;  %v1420_v32 = vadd.f32 %v17431_v46, %v1419_v22 }
  0xd2   :  { %v772_v28 = vadd.f32 %v771_v14, %v17437_v52  ;;  %v17506_v30 = vpop.eup %16249  ;;  %v855_v33 = vpop.f32.mrf.mxu0  ;;  %v17509_v35 = vpack.c.bf16 %v1339_v29, %v1234_v26  ;;  %16255 = vpow2.f32 %v12062_v21  ;;  %v1522_v45 = vmul.f32 %v17496_v49, %v17435_v48 }
  0xd3   :  { %16257 = vpow2.f32 %v12029_v31  ;;  %v1532_v55 = vand.u32 2147483648, %v17435_v48  ;;  %v810_v56 = vadd.f32 %v809_v62, %v17319_v5  ;;  %v856_v57 = vadd.f32 %v855_v33, %v17283_v42 }
  0xd4   :  { %v796_v38 = vadd.f32 %v17425_v41, %v772_v28  ;;  %2487 = vmatmul.bf16.vlgmr.msrb.gmra.mxu2 %v17509_v35  ;;  %v1530_v41 = vand.u32 2147483647, %v17435_v48  ;;  %v1523_v59 = vsub.f32 1.0, %v1522_v45  ;;  %v12240_v60 = vor.u32 %v15592_v37, %v12239_v36  ;;  %v12231_v28 = vld [vmem:[%s24076_s3 + $0x140] sm:$0xf] }
  0xd5   :  { %v1424_v40 = vsel %vm17539_vm5, %v17431_v46, %v1420_v32  ;;  %v12320_v39 = vor.u32 %v15612_v53, %v12319_v50  ;;  %v1432_v10 = vmul.f32 %v17506_v30, %v17433_v47  ;;  %vm1426_vm6 = vcmp.eq.f32.partialorder %v1425_v25, 8.507059e+37  ;;  %v12311_v32 = vld [vmem:[%s24076_s3 + $0x1e0] sm:$0xf]  ;;  %v15610_v36 = vld [vmem:[%s24076_s3 + $0x1e4] sm:$0xf0] }
  0xd6   :  { %v12063_v0 = vmul.f32 -1.442695, %v796_v38  ;;  %v16252_v4 = vpop.eup %16251  ;;  %v833_v6 = vpop.f32.mrf.mxu3  ;;  %v1428_v3 = vor.u32 1.1754944e-38, %v1427_v44  ;;  %v1524_v7 = vmul.f32 %v17496_v49, %v1523_v59  ;;  %vm1527_vm7 = vweird.f32 %v17496_v49  ;;  %2505 = vmatpush.bf16.msra.mxu1 %v12240_v60 }
  0xd7   :  { %v17550_v8 = vpop.eup %16253  ;;  %16259 = vrcp.f32 %v17528_v54  ;;  %v834_v9 = vadd.f32 %v833_v6, %v810_v56  ;;  %vm1526_vm8 = vweird.f32 %v17435_v48  ;;  %2527 = vmatpush.bf16.msra.mxu3 %v12320_v39  ;;  %v1433_v46 = vsub.f32 1.0, %v1432_v10 }
  0xd8   :  { %v16256_v1 = vpop.eup %16255  ;;  %v812_v34 = vpop.f32.mrf.mxu1  ;;  %v1429_v12 = vsel %vm1426_vm6, %v1428_v3, %v1424_v40  ;;  %v1525_v13 = vadd.f32 %v17496_v49, %v1524_v7  ;;  %vm1531_vm9 = vcmp.eq.f32.partialorder %v1530_v41, 8.507059e+37  ;;  %16261 = vpow2.f32 %v12063_v0  ;;  %vm1528_vm10 = vmor %vm1526_vm8, %vm1527_vm7  ;;  %v12223_v3 = vld [vmem:[%s24076_s3 + $0x130] sm:$0xf] }
  0xd9   :  { %v879_v51 = vpop.f32.mrf.mxu2  ;;  %v16258_v17 = vpop.eup %16257  ;;  %v12036_v18 = vmul.f32 -1.442695, %v834_v9  ;;  %v1533_v21 = vor.u32 1.1754944e-38, %v1532_v55  ;;  %v1440_v16 = vand.u32 2147483647, %v17433_v47  ;;  %v1434_v23 = vmul.f32 %v17506_v30, %v1433_v46 }
  0xda   :  { %v880_v11 = vadd.f32 %v879_v51, %v856_v57  ;;  %v857_v20 = vpop.f32.mrf.mxu0  ;;  %v17558_v48 = vadd.f32 1.0, %v16258_v17  ;;  %v1529_v22 = vsel %vm1528_vm10, %v17496_v49, %v1525_v13  ;;  %v17562_v24 = vadd.f32 1.0, %v16256_v1  ;;  %v15590_v49 = vld [vmem:[%s24076_s3 + $0x144] sm:$0xf0]  ;;  %v15588_v46 = vld [vmem:[%s24076_s3 + $0x134] sm:$0xf0] }
  0xdb   :  { %16263 = vpow2.f32 %v12036_v18  ;;  %v813_v14 = vadd.f32 %v812_v34, %v17332_v19  ;;  %v1534_v26 = vsel %vm1531_vm9, %v1533_v21, %v1529_v22  ;;  %v858_v27 = vadd.f32 %v857_v20, %v17319_v5  ;;  %v12303_v17 = vld [vmem:[%s24076_s3 + $0x1d0] sm:$0xf]  ;;  %v15608_v18 = vld [vmem:[%s24076_s3 + $0x1d4] sm:$0xf0] }
  0xdc   :  { %v12030_v61 = vmul.f32 -1.442695, %v880_v11  ;;  %16265 = vrcp.f32 %v17558_v48  ;;  %v17567_v25 = vpack.c.bf16 %v1534_v26, %v1429_v12  ;;  %v17577_v29 = vadd.f32 1.0, %v16252_v4 }
  0xdd   :  { %v17575_v62 = vpop.eup %16259  ;;  %v1442_v31 = vand.u32 2147483648, %v17433_v47  ;;  %v1537_v33 = vmul.f32 %v17550_v8, %v17483_v15  ;;  %v1435_v38 = vadd.f32 %v17506_v30, %v1434_v23  ;;  %vm1436_vm11 = vweird.f32 %v17433_v47 }
  0xde   :  { %16267 = vpow2.f32 %v12030_v61  ;;  %2468 = vmatmul.bf16.gmra.mxu0 %v17567_v25  ;;  %v836_v37 = vpop.f32.mrf.mxu3  ;;  %vm1437_vm12 = vweird.f32 %v17506_v30  ;;  %vm17592_vm13 = vcmp.eq.f32.partialorder %v1440_v16, 8.507059e+37  ;;  %v16262_v45 = vpop.eup %16261  ;;  %v1545_v55 = vand.u32 2147483647, %v17483_v15 }
  0xdf   :  { %16269 = vrcp.f32 %v17562_v24  ;;  %v837_v50 = vadd.f32 %v836_v37, %v813_v14  ;;  %v1538_v41 = vsub.f32 1.0, %v1537_v33  ;;  %v1547_v58 = vand.u32 2147483648, %v17483_v15  ;;  %vm17603_vm14 = vmor %vm1436_vm11, %vm1437_vm12 }
  0xe0   :  { %v814_v57 = vpop.f32.mrf.mxu1  ;;  %v12232_v59 = vor.u32 %v15590_v49, %v12231_v28  ;;  %v12312_v60 = vor.u32 %v15610_v36, %v12311_v32  ;;  %v1443_v4 = vor.u32 1.1754944e-38, %v1442_v31  ;;  %vm1542_vm15 = vweird.f32 %v17550_v8 }
  0xe1   :  { %v881_v53 = vpop.f32.mrf.mxu2  ;;  %v16264_v0 = vpop.eup %16263  ;;  %v12043_v40 = vmul.f32 -1.442695, %v837_v50  ;;  %v1539_v6 = vmul.f32 %v17550_v8, %v1538_v41  ;;  %v1439_v47 = vsel %vm17603_vm14, %v17506_v30, %v1435_v38  ;;  %vm1541_vm1 = vweird.f32 %v17483_v15 }
  0xe2   :  { %v882_v56 = vadd.f32 %v881_v53, %v858_v27  ;;  %v860_v39 = vpop.f32.mrf.mxu0  ;;  %v17612_v7 = vpop.eup %16265  ;;  %v17614_v9 = vadd.f32 1.0, %v16264_v0  ;;  %2506 = vmatpush.bf16.msra.mxu1 %v12232_v59  ;;  %2528 = vmatpush.bf16.msra.mxu3 %v12312_v60  ;;  %v815_v11 = vadd.f32 %v814_v57, %v17352_v43  ;;  %vm17625_vm2 = vcmp.eq.f32.partialorder %v1545_v55, 8.507059e+37  ;;  %vm1543_vm3 = vmor %vm1541_vm1, %vm1542_vm15 }
  0xe3   :  { %16271 = vpow2.f32 %v12043_v40  ;;  %v1540_v34 = vadd.f32 %v17550_v8, %v1539_v6  ;;  %v861_v15 = vadd.f32 %v860_v39, %v17332_v19  ;;  %v1548_v13 = vor.u32 1.1754944e-38, %v1547_v58 }
  0xe4   :  { %v12037_v51 = vmul.f32 -1.442695, %v882_v56  ;;  %v16268_v1 = vpop.eup %16267  ;;  %16273 = vrcp.f32 %v17614_v9  ;;  %v1237_v21 = vmul.f32 %v17612_v7, %v17558_v48  ;;  %v12224_v61 = vor.u32 %v15588_v46, %v12223_v3  ;;  %v12215_v46 = vld [vmem:[%s24076_s3 + $0x120] sm:$0xf] }
  0xe5   :  { %v17630_v30 = vadd.f32 1.0, %v16268_v1  ;;  %v17641_v20 = vpop.eup %16269  ;;  %v1544_v16 = vsel %vm1543_vm3, %v17550_v8, %v1540_v34  ;;  %v17646_v22 = vadd.f32 1.0, %v16262_v45  ;;  %v1444_v23 = vsel %vm17592_vm13, %v1443_v4, %v1439_v47  ;;  %v15586_v1 = vld [vmem:[%s24076_s3 + $0x124] sm:$0xf0] }
  0xe6   :  { %16275 = vpow2.f32 %v12037_v51  ;;  %v1549_v14 = vsel %vm17625_vm2, %v1548_v13, %v1544_v16  ;;  %v838_v26 = vpop.f32.mrf.mxu3  ;;  %v1247_v27 = vand.u32 2147483648, %v17558_v48  ;;  %2507 = vmatpush.bf16.msra.mxu1 %v12224_v61  ;;  %v12304_v8 = vor.u32 %v15608_v18, %v12303_v17  ;;  %v12295_v17 = vld [vmem:[%s24076_s3 + $0x1c0] sm:$0xf]  ;;  %v15606_v18 = vld [vmem:[%s24076_s3 + $0x1c4] sm:$0xf0] }
  0xe7   :  { %16277 = vrcp.f32 %v17630_v30  ;;  %v17654_v28 = vpack.c.bf16 %v1549_v14, %v1444_v23  ;;  %v839_v49 = vadd.f32 %v838_v26, %v815_v11  ;;  %v1627_v36 = vmul.f32 %v17575_v62, %v17528_v54 }
  0xe8   :  { %v817_v32 = vpop.f32.mrf.mxu1  ;;  %16279 = vrcp.f32 %v17577_v29  ;;  %v1238_v38 = vsub.f32 1.0, %v1237_v21  ;;  %v1262_v44 = vand.u32 2147483648, %v17630_v30  ;;  %2529 = vmatpush.bf16.msra.mxu3 %v12304_v8  ;;  %v17664_v56 = vor.u32 1.1754944e-38, %v1247_v27 }
  0xe9   :  { %24114 = vst [vmem:[#allocation2_spill] sm:$0xff] %v17654_v28  ;;  %v884_v31 = vpop.f32.mrf.mxu2  ;;  %v16272_v37 = vpop.eup %16271  ;;  %2492 = vmatmul.bf16.gmra.mxu2 %v17654_v28  ;;  %v12050_v45 = vmul.f32 -1.442695, %v839_v49  ;;  %16281 = vrcp.f32 %v17646_v22  ;;  %v1628_v41 = vsub.f32 1.0, %v1627_v36  ;;  %v1352_v57 = vand.u32 2147483648, %v17614_v9 }
  0xea   :  { %v885_v33 = vadd.f32 %v884_v31, %v861_v15  ;;  %v17661_v50 = vpop.eup %16273  ;;  %v862_v53 = vpop.f32.mrf.mxu0  ;;  %v1635_v58 = vand.u32 2147483647, %v17528_v54  ;;  %v1732_v39 = vmul.f32 %v17641_v20, %v17562_v24  ;;  %v17676_v10 = vmul.f32 %v17612_v7, %v1238_v38  ;;  %v15638_v28 = vld [vmem:[%s24076_s3 + $0x2c4] sm:$0xf0] }
  0xeb   :  { %16283 = vpow2.f32 %v12050_v45  ;;  %v1629_v40 = vmul.f32 %v17575_v62, %v1628_v41  ;;  %v17680_v4 = vmul.f32 %v17661_v50, %v17614_v9  ;;  %v17682_v6 = vor.u32 1.1754944e-38, %v1262_v44  ;;  %v12207_v44 = vld [vmem:[%s24076_s3 + $0x110] sm:$0xf]  ;;  %v15584_v45 = vld [vmem:[%s24076_s3 + $0x114] sm:$0xf0] }
  0xec   :  { %v16276_v55 = vpop.eup %16275  ;;  %v12044_v0 = vmul.f32 -1.442695, %v885_v33  ;;  %vm1631_vm4 = vweird.f32 %v17528_v54  ;;  %v818_v51 = vadd.f32 %v817_v32, %v17374_v63  ;;  %v1637_v47 = vand.u32 2147483648, %v17528_v54  ;;  %v15582_v33 = vld [vmem:[%s24076_s3 + $0x104] sm:$0xf0] }
  0xed   :  { %v17668_v59 = vpop.eup %16277  ;;  %v17670_v60 = vadd.f32 1.0, %v16276_v55  ;;  %v17700_v12 = vadd.f32 1.0, %v16272_v37  ;;  %v1630_v15 = vadd.f32 %v17575_v62, %v1629_v40  ;;  %vm1632_vm5 = vweird.f32 %v17575_v62  ;;  %v12287_v55 = vld [vmem:[%s24076_s3 + $0x1b0] sm:$0xf] }
  0xee   :  { %v17687_v3 = vmul.f32 %v17668_v59, %v17630_v30  ;;  %v841_v11 = vpop.f32.mrf.mxu3  ;;  %v17698_v34 = vpop.eup %16279  ;;  %v1733_v13 = vsub.f32 1.0, %v1732_v39  ;;  %v863_v61 = vadd.f32 %v862_v53, %v17352_v43  ;;  %vm17713_vm6 = vcmp.eq.f32.partialorder %v1635_v58, 8.507059e+37  ;;  %vm17727_vm8 = vmor %vm1631_vm4, %vm1632_vm5 }
  0xef   :  { %16285 = vrcp.f32 %v17670_v60  ;;  %v17710_v16 = vpop.eup %16281  ;;  %v1740_v14 = vand.u32 2147483647, %v17562_v24  ;;  %v1343_v27 = vsub.f32 1.0, %v17680_v4  ;;  %vm1737_vm7 = vweird.f32 %v17641_v20  ;;  %v15604_v4 = vld [vmem:[%s24076_s3 + $0x1b4] sm:$0xf0] }
  0xf0   :  { %16287 = vpow2.f32 %v12044_v0  ;;  %v1734_v49 = vmul.f32 %v17641_v20, %v1733_v13  ;;  %v1742_v31 = vand.u32 2147483648, %v17562_v24  ;;  %v1253_v8 = vsub.f32 1.0, %v17687_v3  ;;  %v819_v38 = vpop.f32.mrf.mxu1 }
  0xf1   :  { %v886_v21 = vpop.f32.mrf.mxu2  ;;  %v16284_v26 = vpop.eup %16283  ;;  %v1638_v32 = vor.u32 1.1754944e-38, %v1637_v47  ;;  %v12216_v36 = vor.u32 %v15586_v1, %v12215_v46  ;;  %v12296_v37 = vor.u32 %v15606_v18, %v12295_v17  ;;  %vm1242_vm9 = vweird.f32 %v17612_v7 }
  0xf2   :  { %v1634_v54 = vsel %vm17727_vm8, %v17575_v62, %v1630_v15  ;;  %v1735_v53 = vadd.f32 %v17641_v20, %v1734_v49  ;;  %vm1736_vm10 = vweird.f32 %v17562_v24  ;;  %v842_v41 = vadd.f32 %v841_v11, %v818_v51  ;;  %v865_v39 = vpop.f32.mrf.mxu0 }
  0xf3   :  { %v17748_v0 = vadd.f32 1.0, %v16284_v26  ;;  %vm17752_vm11 = vmor %vm1736_vm10, %vm1737_vm7  ;;  %vm1741_vm12 = vcmp.eq.f32.partialorder %v1740_v14, 8.507059e+37  ;;  %v1743_v62 = vor.u32 1.1754944e-38, %v1742_v31  ;;  %2508 = vmatpush.bf16.msra.mxu1 %v12216_v36  ;;  %2530 = vmatpush.bf16.msra.mxu3 %v12296_v37  ;;  %v887_v24 = vadd.f32 %v886_v21, %v863_v61  ;;  %v12199_v31 = vld [vmem:[%s24076_s3 + $0x100] sm:$0xf] }
  0xf4   :  { %vm1241_vm13 = vweird.f32 %v17558_v48  ;;  %v1739_v51 = vsel %vm17752_vm11, %v17641_v20, %v1735_v53  ;;  %v12057_v47 = vmul.f32 -1.442695, %v842_v41  ;;  %v12208_v46 = vor.u32 %v15584_v45, %v12207_v44  ;;  %v12279_v36 = vld [vmem:[%s24076_s3 + $0x1a0] sm:$0xf]  ;;  %v15602_v37 = vld [vmem:[%s24076_s3 + $0x1a4] sm:$0xf0] }
  0xf5   :  { %v17746_v58 = vpop.eup %16285  ;;  %16289 = vrcp.f32 %v17700_v12  ;;  %v1639_v11 = vsel %vm17713_vm6, %v1638_v32, %v1634_v54  ;;  %v1744_v15 = vsel %vm1741_vm12, %v1743_v62, %v1739_v51  ;;  %v12051_v13 = vmul.f32 -1.442695, %v887_v24  ;;  %vm17821_vm4 = vmor %vm1241_vm13, %vm1242_vm9 }
  0xf6   :  { %v1357_v3 = vmul.f32 %v17746_v58, %v17670_v60  ;;  %v16288_v1 = vpop.eup %16287  ;;  %v843_v17 = vpop.f32.mrf.mxu3  ;;  %v1367_v21 = vand.u32 2147483648, %v17670_v60  ;;  %v17769_v61 = vpack.c.bf16 %v1744_v15, %v1639_v11  ;;  %v12288_v14 = vor.u32 %v15604_v4, %v12287_v55 }
  0xf7   :  { %v17772_v20 = vmul.f32 %v17661_v50, %v1343_v27  ;;  %v17775_v49 = vmul.f32 %v17668_v59, %v1253_v8  ;;  %16291 = vrcp.f32 %v17748_v0  ;;  %2509 = vmatpush.bf16.msra.mxu1 %v12208_v46  ;;  %v1642_v23 = vmul.f32 %v17698_v34, %v17577_v29 }
  0xf8   :  { %v1358_v18 = vsub.f32 1.0, %v1357_v3  ;;  %v17786_v32 = vadd.f32 1.0, %v16288_v1  ;;  %2473 = vmatmul.bf16.gmra.mxu0 %v17769_v61  ;;  %16293 = vpow2.f32 %v12057_v47  ;;  %v820_v27 = vadd.f32 %v819_v38, %v17437_v52  ;;  %2531 = vmatpush.bf16.msra.mxu3 %v12288_v14  ;;  %v903_v4 = vpop.f32.mrf.mxu1 }
  0xf9   :  { %v889_v26 = vpop.f32.mrf.mxu2  ;;  %v1747_v8 = vmul.f32 %v17710_v16, %v17646_v22  ;;  %16295 = vpow2.f32 %v12051_v13  ;;  %v866_v44 = vadd.f32 %v865_v39, %v17374_v63  ;;  %v1643_v45 = vsub.f32 1.0, %v1642_v23 }
  0xfa   :  { %vm1647_vm14 = vweird.f32 %v17698_v34  ;;  %vm1346_vm15 = vweird.f32 %v17614_v9  ;;  %v17802_v38 = vmul.f32 %v17746_v58, %v1358_v18  ;;  %v1650_v54 = vand.u32 2147483647, %v17577_v29 }
  0xfb   :  { %v1652_v53 = vand.u32 2147483648, %v17577_v29  ;;  %v1748_v41 = vsub.f32 1.0, %v1747_v8  ;;  %v17806_v55 = vpop.eup %16289  ;;  %v1644_v40 = vmul.f32 %v17698_v34, %v1643_v45  ;;  %v1757_v62 = vand.u32 2147483648, %v17646_v22 }
  0xfc   :  { %v12200_v24 = vor.u32 %v15582_v33, %v12199_v31  ;;  %v12280_v39 = vor.u32 %v15602_v37, %v12279_v36  ;;  %vm1256_vm1 = vweird.f32 %v17630_v30  ;;  %vm1257_vm2 = vweird.f32 %v17668_v59 }
  0xfd   :  { %v1749_v3 = vmul.f32 %v17710_v16, %v1748_v41  ;;  %vm1752_vm3 = vweird.f32 %v17710_v16  ;;  %v1755_v51 = vand.u32 2147483647, %v17646_v22  ;;  %v844_v47 = vadd.f32 %v843_v17, %v820_v27  ;;  %v17815_v46 = vpop.eup %16291  ;;  %v867_v17 = vpop.f32.mrf.mxu0 }
  0xfe   :  { %v1645_v11 = vadd.f32 %v17698_v34, %v1644_v40  ;;  %vm1646_vm5 = vweird.f32 %v17577_v29  ;;  %2510 = vmatpush.bf16.msra.mxu1 %v12200_v24  ;;  %2532 = vmatpush.bf16.msra.mxu3 %v12280_v39  ;;  %v890_v15 = vadd.f32 %v889_v26, %v866_v44  ;;  %v1240_v13 = vadd.f32 %v17612_v7, %v17676_v10  ;;  %v927_v18 = vpop.f32.mrf.mxu3  ;;  %v16294_v14 = vpop.eup %16293  ;;  %v15598_v40 = vld [vmem:[%s24076_s3 + $0x184] sm:$0xf0] }
  0xff   :  { %vm17831_vm6 = vmor %vm1646_vm5, %vm1647_vm14  ;;  %v1750_v31 = vadd.f32 %v17710_v16, %v1749_v3  ;;  %vm1751_vm7 = vweird.f32 %v17646_v22  ;;  %v12064_v29 = vmul.f32 -1.442695, %v844_v47  ;;  %v1245_v33 = vand.u32 2147483647, %v17558_v48  ;;  %v16296_v26 = vpop.eup %16295  ;;  %v12271_v22 = vld [vmem:[%s24076_s3 + $0x190] sm:$0xf] }
 0x100   :  { %vm1361_vm8 = vweird.f32 %v17670_v60  ;;  %v1649_v10 = vsel %vm17831_vm6, %v17698_v34, %v1645_v11  ;;  %vm1651_vm9 = vcmp.eq.f32.partialorder %v1650_v54, 8.507059e+37  ;;  %v1653_v27 = vor.u32 1.1754944e-38, %v1652_v53  ;;  %vm1753_vm10 = vmor %vm1751_vm7, %vm1752_vm3  ;;  %v15600_v34 = vld [vmem:[%s24076_s3 + $0x194] sm:$0xf0] }
 0x101   :  { %v1758_v8 = vor.u32 1.1754944e-38, %v1757_v62  ;;  %v891_v36 = vpop.f32.mrf.mxu2  ;;  %v1754_v48 = vsel %vm1753_vm10, %v17710_v16, %v1750_v31  ;;  %vm1756_vm11 = vcmp.eq.f32.partialorder %v1755_v51, 8.507059e+37  ;;  %v12058_v37 = vmul.f32 -1.442695, %v890_v15  ;;  %v905_v15 = vpop.f32.mrf.mxu1 }
 0x102   :  { %v1244_v44 = vsel %vm17821_vm4, %v17612_v7, %v1240_v13  ;;  %v1654_v45 = vsel %vm1651_vm9, %v1653_v27, %v1649_v10  ;;  %vm1246_vm12 = vcmp.eq.f32.partialorder %v1245_v33, 8.507059e+37  ;;  %v1345_v53 = vadd.f32 %v17661_v50, %v17772_v20  ;;  %v12263_v7 = vld [vmem:[%s24076_s3 + $0x180] sm:$0xf] }
 0x103   :  { %v1759_v54 = vsel %vm1756_vm11, %v1758_v8, %v1754_v48  ;;  %16297 = vpow2.f32 %v12064_v29  ;;  %vm1347_vm13 = vweird.f32 %v17661_v50  ;;  %v1350_v16 = vand.u32 2147483647, %v17614_v9 }
 0x104   :  { %v17856_v41 = vpack.c.bf16 %v1759_v54, %v1654_v45  ;;  %vm1348_vm14 = vmor %vm1346_vm15, %vm1347_vm13  ;;  %v1353_v20 = vor.u32 1.1754944e-38, %v1352_v57  ;;  %v904_v62 = vadd.f32 %v903_v4, %v17283_v42  ;;  %v868_v24 = vadd.f32 %v867_v17, %v17437_v52 }
 0x105   :  { %v12272_v39 = vor.u32 %v15600_v34, %v12271_v22  ;;  %16299 = vpow2.f32 %v12058_v37  ;;  %v1249_v3 = vsel %vm1246_vm12, %v17664_v56, %v1244_v44  ;;  %v1349_v51 = vsel %vm1348_vm14, %v17661_v50, %v1345_v53  ;;  %vm17888_vm15 = vmor %vm1256_vm1, %vm1257_vm2  ;;  %v12383_v53 = vld [vmem:[%s24076_s3 + $0x270] sm:$0xf] }
 0x106   :  { %24125 = vst [vmem:[#allocation3_spill] sm:$0xff] %v17856_v41  ;;  %2497 = vmatmul.bf16.gmra.mxu2 %v17856_v41  ;;  %vm1351_vm3 = vcmp.eq.f32.partialorder %v1350_v16, 8.507059e+37  ;;  %v12264_v1 = vor.u32 %v15598_v40, %v12263_v7  ;;  %v928_v11 = vadd.f32 %v927_v18, %v904_v62  ;;  %v1255_v9 = vadd.f32 %v17668_v59, %v17775_v49  ;;  %v951_v18 = vpop.f32.mrf.mxu0  ;;  %v929_v23 = vpop.f32.mrf.mxu3  ;;  %v15628_v40 = vld [vmem:[%s24076_s3 + $0x274] sm:$0xf0] }
 0x107   :  { %v1354_v47 = vsel %vm1351_vm3, %v1353_v20, %v1349_v51  ;;  %2533 = vmatpush.bf16.msra.mxu3 %v12272_v39  ;;  %v1447_v57 = vmul.f32 %v17806_v55, %v17700_v12  ;;  %v1260_v13 = vand.u32 2147483647, %v17630_v30  ;;  %v1360_v56 = vadd.f32 %v17746_v58, %v17802_v38 }
 0x108   :  { %v17879_v4 = vpack.c.bf16 %v1354_v47, %v1249_v3  ;;  %16301 = vrcp.f32 %v17786_v32  ;;  %v12031_v49 = vmul.f32 -1.442695, %v928_v11  ;;  %v892_v17 = vadd.f32 %v891_v36, %v868_v24  ;;  %v12375_v11 = vld [vmem:[%s24076_s3 + $0x260] sm:$0xf] }
 0x109   :  { %vm1362_vm4 = vweird.f32 %v17746_v58  ;;  %v16298_v31 = vpop.eup %16297  ;;  %v17894_v29 = vadd.f32 1.0, %v16294_v14  ;;  %v906_v38 = vadd.f32 %v905_v15, %v17319_v5  ;;  %v1259_v30 = vsel %vm17888_vm15, %v17668_v59, %v1255_v9  ;;  %v975_v59 = vpop.f32.mrf.mxu2  ;;  %v15626_v15 = vld [vmem:[%s24076_s3 + $0x264] sm:$0xf0] }
 0x10a   :  { %2511 = vmatmul.bf16.vlgmr.msra.gmra.mxu1 %v17879_v4  ;;  %vm17903_vm1 = vmor %vm1361_vm8, %vm1362_vm4  ;;  %v1365_v10 = vand.u32 2147483647, %v17670_v60  ;;  %v17908_v27 = vadd.f32 1.0, %v16296_v26  ;;  %16303 = vpow2.f32 %v12031_v49  ;;  %v1368_v8 = vor.u32 1.1754944e-38, %v1367_v21  ;;  %v908_v3 = vpop.f32.mrf.mxu1 }
 0x10b   :  { %2534 = vmatpush.bf16.msra.mxu3 %v12264_v1  ;;  %v1364_v14 = vsel %vm17903_vm1, %v17746_v58, %v1360_v56  ;;  %v16300_v22 = vpop.eup %16299  ;;  %vm1261_vm2 = vcmp.eq.f32.partialorder %v1260_v13, 8.507059e+37  ;;  %v952_v36 = vadd.f32 %v951_v18, %v17283_v42  ;;  %v930_v48 = vadd.f32 %v929_v23, %v906_v38 }
 0x10c   :  { %vm1366_vm5 = vcmp.eq.f32.partialorder %v1365_v10, 8.507059e+37  ;;  %v12065_v37 = vmul.f32 -1.442695, %v892_v17  ;;  %v1264_v26 = vsel %vm1261_vm2, %v17682_v6, %v1259_v30  ;;  %v1448_v34 = vsub.f32 1.0, %v1447_v57 }
 0x10d   :  { %v1369_v44 = vsel %vm1366_vm5, %v1368_v8, %v1364_v14  ;;  %16305 = vrcp.f32 %v17894_v29  ;;  %v12038_v58 = vmul.f32 -1.442695, %v930_v48  ;;  %v976_v54 = vadd.f32 %v975_v59, %v952_v36 }
 0x10e   :  { %v17918_v45 = vpack.c.bf16 %v1369_v44, %v1264_v26  ;;  %v17920_v60 = vpop.eup %16301  ;;  %16307 = vrcp.f32 %v17908_v27  ;;  %v17923_v21 = vadd.f32 1.0, %v16298_v31  ;;  %v17928_v16 = vadd.f32 1.0, %v16300_v22  ;;  %v953_v1 = vpop.f32.mrf.mxu0 }
 0x10f   :  { %16309 = vpow2.f32 %v12038_v58  ;;  %v12032_v6 = vmul.f32 -1.442695, %v976_v54  ;;  %v1552_v7 = vmul.f32 %v17815_v46, %v17748_v0  ;;  %v1449_v62 = vmul.f32 %v17806_v55, %v1448_v34  ;;  %v932_v30 = vpop.f32.mrf.mxu3 }
 0x110   :  { %24130 = vst [vmem:[#allocation4_spill] sm:$0xff] %v17918_v45  ;;  %2535 = vmatmul.bf16.vlgmr.msra.gmra.mxu3 %v17918_v45  ;;  %v16304_v20 = vpop.eup %16303  ;;  %16311 = vpow2.f32 %v12065_v37  ;;  %v1462_v51 = vmul.f32 %v17920_v60, %v17786_v32  ;;  %v12384_v47 = vor.u32 %v15628_v40, %v12383_v53  ;;  %vm1451_vm6 = vweird.f32 %v17700_v12 }
 0x111   :  { %v17937_v24 = vadd.f32 1.0, %v16304_v20  ;;  %16313 = vpow2.f32 %v12032_v6  ;;  %v1553_v39 = vsub.f32 1.0, %v1552_v7  ;;  %vm1452_vm7 = vweird.f32 %v17806_v55  ;;  %v977_v17 = vpop.f32.mrf.mxu2 }
 0x112   :  { %16315 = vrcp.f32 %v17923_v21  ;;  %v1457_v57 = vand.u32 2147483648, %v17700_v12  ;;  %v1450_v56 = vadd.f32 %v17806_v55, %v1449_v62  ;;  %v1562_v49 = vand.u32 2147483648, %v17748_v0  ;;  %2551 = vmatpush.bf16.msra.mxu0 %v12384_v47  ;;  %vm17972_vm9 = vmor %vm1451_vm6, %vm1452_vm7 }
 0x113   :  { %v17948_v9 = vpop.eup %16305  ;;  %16317 = vrcp.f32 %v17928_v16  ;;  %v1554_v50 = vmul.f32 %v17815_v46, %v1553_v39  ;;  %v1455_v23 = vand.u32 2147483647, %v17700_v12  ;;  %vm1557_vm8 = vweird.f32 %v17815_v46 }
 0x114   :  { %v17954_v13 = vpop.eup %16307  ;;  %16319 = vrcp.f32 %v17937_v24  ;;  %v954_v31 = vadd.f32 %v953_v1, %v17319_v5  ;;  %v12376_v38 = vor.u32 %v15626_v15, %v12375_v11  ;;  %v1560_v8 = vand.u32 2147483647, %v17748_v0 }
 0x115   :  { %v16310_v18 = vpop.eup %16309  ;;  %v1555_v14 = vadd.f32 %v17815_v46, %v1554_v50  ;;  %v909_v59 = vadd.f32 %v908_v3, %v17332_v19  ;;  %v1458_v48 = vor.u32 1.1754944e-38, %v1457_v57  ;;  %vm1556_vm10 = vweird.f32 %v17748_v0  ;;  %v12367_v57 = vld [vmem:[%s24076_s3 + $0x250] sm:$0xf] }
 0x116   :  { %v16312_v33 = vpop.eup %16311  ;;  %v17963_v10 = vadd.f32 1.0, %v16310_v18  ;;  %v978_v37 = vadd.f32 %v977_v17, %v954_v31  ;;  %v1463_v26 = vsub.f32 1.0, %v1462_v51  ;;  %v1454_v58 = vsel %vm17972_vm9, %v17806_v55, %v1450_v56  ;;  %vm17986_vm11 = vmor %vm1556_vm10, %vm1557_vm8  ;;  %2552 = vmatpush.bf16.msra.mxu0 %v12376_v38  ;;  %v910_v51 = vpop.f32.mrf.mxu1  ;;  %v15624_v56 = vld [vmem:[%s24076_s3 + $0x254] sm:$0xf0]  ;;  %v12447_v18 = vld [vmem:[%s24076_s3 + $0x2f0] sm:$0xf] }
 0x117   :  { %v16314_v22 = vpop.eup %16313  ;;  %v1563_v54 = vor.u32 1.1754944e-38, %v1562_v49  ;;  %v933_v53 = vadd.f32 %v932_v30, %v909_v59  ;;  %v1559_v6 = vsel %vm17986_vm11, %v17815_v46, %v1555_v14  ;;  %v1277_v20 = vand.u32 2147483648, %v17937_v24  ;;  %v15644_v14 = vld [vmem:[%s24076_s3 + $0x2f4] sm:$0xf0] }
 0x118   :  { %v17977_v44 = vpop.eup %16315  ;;  %v17979_v34 = vadd.f32 1.0, %v16314_v22  ;;  %16321 = vrcp.f32 %v17963_v10  ;;  %v12039_v7 = vmul.f32 -1.442695, %v978_v37  ;;  %v1464_v55 = vmul.f32 %v17920_v60, %v1463_v26  ;;  %v15563_v37 = vld [vmem:[%s24076_s3 + $0x74] sm:$0xf] }
 0x119   :  { %v17990_v0 = vpop.eup %16317  ;;  %v18000_v62 = vadd.f32 1.0, %v16312_v33  ;;  %vm1456_vm12 = vcmp.eq.f32.partialorder %v1455_v23, 8.507059e+37  ;;  %vm1561_vm13 = vcmp.eq.f32.partialorder %v1560_v8, 8.507059e+37  ;;  %v12045_v1 = vmul.f32 -1.442695, %v933_v53  ;;  %v934_v8 = vpop.f32.mrf.mxu3 }
 0x11a   :  { %v17997_v40 = vpop.eup %16319  ;;  %16323 = vrcp.f32 %v17979_v34  ;;  %v1459_v39 = vsel %vm1456_vm12, %v1458_v48, %v1454_v58  ;;  %v1564_v3 = vsel %vm1561_vm13, %v1563_v54, %v1559_v6  ;;  %vm1466_vm14 = vweird.f32 %v17786_v32  ;;  %v12129_v26 = vld [vmem:[%s24076_s3 + $0x78] sm:$0xf0]  ;;  %v956_v53 = vpop.f32.mrf.mxu0  ;;  %v12359_v6 = vld [vmem:[%s24076_s3 + $0x240] sm:$0xf] }
 0x11b   :  { %v18003_v47 = vpack.c.bf16 %v1564_v3, %v1459_v39  ;;  %16325 = vpow2.f32 %v12039_v7  ;;  %v18008_v46 = vmul.f32 %v17997_v40, %v17937_v24  ;;  %v1465_v11 = vadd.f32 %v17920_v60, %v1464_v55  ;;  %v15622_v7 = vld [vmem:[%s24076_s3 + $0x244] sm:$0xf0]  ;;  %v12439_v3 = vld [vmem:[%s24076_s3 + $0x2e0] sm:$0xf] }
 0x11c   :  { %vm1467_vm3 = vweird.f32 %v17920_v60  ;;  %v1567_v15 = vmul.f32 %v17954_v13, %v17908_v27  ;;  %v18022_v50 = vmul.f32 %v17948_v9, %v17894_v29  ;;  %v18026_v49 = vmul.f32 %v17990_v0, %v17928_v16 }
 0x11d   :  { %24135 = vst [vmem:[#allocation5_spill] sm:$0xff] %v18003_v47  ;;  %v18028_v17 = vor.u32 1.1754944e-38, %v1277_v20  ;;  %16327 = vrcp.f32 %v18000_v62  ;;  %2516 = vmatmul.bf16.gmra.mxu1 %v18003_v47  ;;  %v911_v31 = vadd.f32 %v910_v51, %v17352_v43  ;;  %v1470_v38 = vand.u32 2147483647, %v17786_v32  ;;  %vm18049_vm15 = vmor %vm1466_vm14, %vm1467_vm3  ;;  %v12423_v47 = vld [vmem:[%s24076_s3 + $0x2c0] sm:$0xf] }
 0x11e   :  { %v18035_v23 = vpop.eup %16321  ;;  %v1472_v30 = vand.u32 2147483648, %v17786_v32  ;;  %v1568_v33 = vsub.f32 1.0, %v1567_v15  ;;  %v1292_v22 = vand.u32 2147483648, %v17979_v34  ;;  %16329 = vpow2.f32 %v12045_v1  ;;  %v15642_v15 = vld [vmem:[%s24076_s3 + $0x2e4] sm:$0xf0] }
 0x11f   :  { %v12368_v48 = vor.u32 %v15624_v56, %v12367_v57  ;;  %v1469_v32 = vsel %vm18049_vm15, %v17920_v60, %v1465_v11  ;;  %vm1571_vm4 = vweird.f32 %v17908_v27  ;;  %v1577_v54 = vand.u32 2147483648, %v17908_v27 }
 0x120   :  { %v18059_v58 = vpop.eup %16323  ;;  %v18075_v20 = vmul.f32 %v18035_v23, %v17963_v10  ;;  %v1569_v60 = vmul.f32 %v17954_v13, %v1568_v33  ;;  %vm1572_vm1 = vweird.f32 %v17954_v13  ;;  %v1575_v39 = vand.u32 2147483647, %v17908_v27 }
 0x121   :  { %v16326_v55 = vpop.eup %16325  ;;  %2553 = vmatpush.bf16.msra.mxu0 %v12368_v48  ;;  %vm1471_vm2 = vcmp.eq.f32.partialorder %v1470_v38, 8.507059e+37  ;;  %v1473_v1 = vor.u32 1.1754944e-38, %v1472_v30  ;;  %v12448_v11 = vor.u32 %v15644_v14, %v12447_v18  ;;  %v957_v33 = vadd.f32 %v956_v53, %v17332_v19  ;;  %v12121_v18 = vld [vmem:[%s24076_s3 + $0x68] sm:$0xf0]  ;;  %v980_v38 = vpop.f32.mrf.mxu2  ;;  %vm1573_vm5 = vmor %vm1571_vm4, %vm1572_vm1 }
 0x122   :  { %v18083_v51 = vadd.f32 1.0, %v16326_v55  ;;  %v1570_v56 = vadd.f32 %v17954_v13, %v1569_v60  ;;  %v12132_v36 = vor.u32 %v15563_v37, %v12129_v26  ;;  %v12360_v48 = vor.u32 %v15622_v7, %v12359_v6  ;;  %v15561_v55 = vld [vmem:[%s24076_s3 + $0x64] sm:$0xf]  ;;  %v913_v26 = vpop.f32.mrf.mxu1 }
 0x123   :  { %v18088_v57 = vpop.eup %16327  ;;  %v18100_v30 = vmul.f32 %v18059_v58, %v17979_v34  ;;  %v1474_v14 = vsel %vm1471_vm2, %v1473_v1, %v1469_v32  ;;  %v1578_v37 = vor.u32 1.1754944e-38, %v1577_v54  ;;  %2575 = vmatpush.bf16.msrb.mxu1 %v12448_v11  ;;  %16203 = vmatpush.bf16.msra.mxu2 %v12448_v11  ;;  %vm1576_vm6 = vcmp.eq.f32.partialorder %v1575_v39, 8.507059e+37 }
 0x124   :  { %16331 = vrcp.f32 %v18083_v51  ;;  %v16330_v53 = vpop.eup %16329  ;;  %v1574_v6 = vsel %vm1573_vm5, %v17954_v13, %v1570_v56  ;;  %2623 = vmatpush.bf16.msrb.mxu3 %v12132_v36  ;;  %v12440_v7 = vor.u32 %v15642_v15, %v12439_v3  ;;  %v1658_v60 = vsub.f32 1.0, %v18022_v50  ;;  %v12431_v15 = vld [vmem:[%s24076_s3 + $0x2d0] sm:$0xf]  ;;  %v15559_v36 = vld [vmem:[%s24076_s3 + $0x54] sm:$0xf] }
 0x125   :  { %2554 = vmatpush.bf16.msra.mxu0 %v12360_v48  ;;  %v1579_v59 = vsel %vm1576_vm6, %v1578_v37, %v1574_v6  ;;  %v12124_v32 = vor.u32 %v15561_v55, %v12121_v18  ;;  %v935_v1 = vadd.f32 %v934_v8, %v911_v31  ;;  %v981_v12 = vadd.f32 %v980_v38, %v957_v33  ;;  %v12351_v31 = vld [vmem:[%s24076_s3 + $0x230] sm:$0xf]  ;;  %v15620_v8 = vld [vmem:[%s24076_s3 + $0x234] sm:$0xf0]  ;;  %v12113_v38 = vld [vmem:[%s24076_s3 + $0x58] sm:$0xf0]  ;;  %v958_v6 = vpop.f32.mrf.mxu0 }
 0x126   :  { %v18109_v45 = vor.u32 1.1754944e-38, %v1292_v22  ;;  %v18111_v27 = vpack.c.bf16 %v1579_v59, %v1474_v14  ;;  %v1659_v54 = vmul.f32 %v17948_v9, %v1658_v60  ;;  %v1665_v11 = vand.u32 2147483647, %v17894_v29  ;;  %v937_v59 = vpop.f32.mrf.mxu3  ;;  %v15640_v33 = vld [vmem:[%s24076_s3 + $0x2d4] sm:$0xf0] }
 0x127   :  { %2576 = vmatpush.bf16.msrb.mxu1 %v12440_v7  ;;  %v12052_v13 = vmul.f32 -1.442695, %v935_v1  ;;  %v12046_v39 = vmul.f32 -1.442695, %v981_v12  ;;  %v1667_v56 = vand.u32 2147483648, %v17894_v29  ;;  %v1762_v50 = vmul.f32 %v17977_v44, %v17923_v21  ;;  %16204 = vmatpush.bf16.msra.mxu2 %v12440_v7 }
 0x128   :  { %24138 = vst [vmem:[#allocation6_spill] sm:$0xff] %v18111_v27  ;;  %v18125_v3 = vadd.f32 1.0, %v16330_v53  ;;  %2540 = vmatmul.bf16.gmra.mxu3 %v18111_v27  ;;  %v1660_v12 = vadd.f32 %v17948_v9, %v1659_v54  ;;  %vm1662_vm7 = vweird.f32 %v17948_v9  ;;  %vm1661_vm8 = vweird.f32 %v17894_v29  ;;  %v12343_v14 = vld [vmem:[%s24076_s3 + $0x220] sm:$0xf]  ;;  %v15618_v29 = vld [vmem:[%s24076_s3 + $0x224] sm:$0xf0] }
 0x129   :  { %2624 = vmatpush.bf16.msrb.mxu3 %v12124_v32  ;;  %16333 = vpow2.f32 %v12052_v13  ;;  %v1763_v18 = vsub.f32 1.0, %v1762_v50  ;;  %vm18149_vm9 = vcmp.eq.f32.partialorder %v1665_v11, 8.507059e+37  ;;  %vm1766_vm10 = vweird.f32 %v17923_v21  ;;  %vm18160_vm11 = vmor %vm1661_vm8, %vm1662_vm7  ;;  %v15557_v54 = vld [vmem:[%s24076_s3 + $0x44] sm:$0xf]  ;;  %v12105_v11 = vld [vmem:[%s24076_s3 + $0x48] sm:$0xf0] }
 0x12a   :  { %v18139_v48 = vpop.eup %16331  ;;  %16335 = vpow2.f32 %v12046_v39  ;;  %v1770_v53 = vand.u32 2147483647, %v17923_v21  ;;  %v1668_v60 = vor.u32 1.1754944e-38, %v1667_v56  ;;  %vm1767_vm12 = vweird.f32 %v17977_v44  ;;  %v915_v7 = vpop.f32.mrf.mxu1  ;;  %v12415_v37 = vld [vmem:[%s24076_s3 + $0x2b0] sm:$0xf] }
 0x12b   :  { %v1764_v32 = vmul.f32 %v17977_v44, %v1763_v18  ;;  %v1772_v1 = vand.u32 2147483648, %v17923_v21  ;;  %v18175_v13 = vmul.f32 %v18139_v48, %v18083_v51  ;;  %v1664_v39 = vsel %vm18160_vm11, %v17948_v9, %v1660_v12  ;;  %v982_v18 = vpop.f32.mrf.mxu2  ;;  %vm18193_vm13 = vmor %vm1766_vm10, %vm1767_vm12  ;;  %v15614_v9 = vld [vmem:[%s24076_s3 + $0x204] sm:$0xf0] }
 0x12c   :  { %v914_v56 = vadd.f32 %v913_v26, %v17374_v63  ;;  %v12352_v50 = vor.u32 %v15620_v8, %v12351_v31  ;;  %v959_v22 = vadd.f32 %v958_v6, %v17352_v43  ;;  %v12432_v27 = vor.u32 %v15640_v33, %v12431_v15 }
 0x12d   :  { %v1765_v55 = vadd.f32 %v17977_v44, %v1764_v32  ;;  %v12116_v41 = vor.u32 %v15559_v36, %v12113_v38  ;;  %vm1771_vm14 = vcmp.eq.f32.partialorder %v1770_v53, 8.507059e+37  ;;  %v1773_v26 = vor.u32 1.1754944e-38, %v1772_v1 }
 0x12e   :  { %2555 = vmatpush.bf16.msra.mxu0 %v12352_v50  ;;  %v12344_v31 = vor.u32 %v15618_v29, %v12343_v14  ;;  %v12108_v8 = vor.u32 %v15557_v54, %v12105_v11  ;;  %2577 = vmatpush.bf16.msrb.mxu1 %v12432_v27  ;;  %v938_v33 = vadd.f32 %v937_v59, %v914_v56  ;;  %v1673_v21 = vsub.f32 1.0, %v18026_v49  ;;  %v15555_v54 = vld [vmem:[%s24076_s3 + $0x34] sm:$0xf]  ;;  %v961_v50 = vpop.f32.mrf.mxu0 }
 0x12f   :  { %v16334_v12 = vpop.eup %16333  ;;  %v1769_v15 = vsel %vm18193_vm13, %v17977_v44, %v1765_v55  ;;  %2625 = vmatpush.bf16.msrb.mxu3 %v12116_v41  ;;  %v983_v36 = vadd.f32 %v982_v18, %v959_v22  ;;  %v1388_v6 = vsub.f32 1.0, %v18175_v13  ;;  %v1669_v53 = vsel %vm18149_vm9, %v1668_v60, %v1664_v39  ;;  %16205 = vmatpush.bf16.msra.mxu2 %v12432_v27  ;;  %v18208_v41 = vpop.f32.mrf.mxu3  ;;  %v15616_v27 = vld [vmem:[%s24076_s3 + $0x214] sm:$0xf0]  ;;  %v12097_v18 = vld [vmem:[%s24076_s3 + $0x38] sm:$0xf0] }
 0x130   :  { %v16336_v38 = vpop.eup %16335  ;;  %v1774_v32 = vsel %vm1771_vm14, %v1773_v26, %v1769_v15  ;;  %v12424_v14 = vor.u32 %v15638_v28, %v12423_v47  ;;  %v12059_v44 = vmul.f32 -1.442695, %v938_v33  ;;  %v24146_v59 = vsub.f32 1.0, %v18008_v46  ;;  %v12335_v47 = vld [vmem:[%s24076_s3 + $0x210] sm:$0xf] }
 0x131   :  { %v18204_v29 = vadd.f32 1.0, %v16336_v38  ;;  %v18206_v1 = vpack.c.bf16 %v1774_v32, %v1669_v53  ;;  %v12053_v55 = vmul.f32 -1.442695, %v983_v36  ;;  %16337 = vrcp.f32 %v18125_v3  ;;  %v15636_v60 = vld [vmem:[%s24076_s3 + $0x2b4] sm:$0xf0] }
 0x132   :  { %v18213_v49 = vmul.f32 %v17997_v40, %v24146_v59  ;;  %v18216_v22 = vadd.f32 1.0, %v16334_v12  ;;  %2556 = vmatpush.bf16.msra.mxu0 %v12344_v31  ;;  %v1674_v28 = vmul.f32 %v17990_v0, %v1673_v21  ;;  %vm1272_vm3 = vweird.f32 %v17997_v40  ;;  %2578 = vmatpush.bf16.msrb.mxu1 %v12424_v14  ;;  %v12407_v15 = vld [vmem:[%s24076_s3 + $0x2a0] sm:$0xf]  ;;  %v15634_v33 = vld [vmem:[%s24076_s3 + $0x2a4] sm:$0xf0]  ;;  %v18297_v59 = vpop.f32.mrf.mxu1 }
 0x133   :  { %24145 = vst [vmem:[#allocation7_spill] sm:$0xff] %v18206_v1  ;;  %16339 = vrcp.f32 %v18204_v29  ;;  %2521 = vmatmul.bf16.gmra.mxu1 %v18206_v1  ;;  %2626 = vmatpush.bf16.msrb.mxu3 %v12108_v8  ;;  %vm1676_vm15 = vweird.f32 %v17928_v16  ;;  %vm1677_vm4 = vweird.f32 %v17990_v0  ;;  %v1682_v46 = vand.u32 2147483648, %v17928_v16  ;;  %v985_v53 = vpop.f32.mrf.mxu2 }
 0x134   :  { %v24147_v11 = vsub.f32 1.0, %v18075_v20  ;;  %16341 = vpow2.f32 %v12059_v44  ;;  %v18246_v39 = vadd.f32 %v17990_v0, %v1674_v28  ;;  %v1777_v56 = vmul.f32 %v18088_v57, %v18000_v62  ;;  %v12327_v20 = vld [vmem:[%s24076_s3 + $0x200] sm:$0xf]  ;;  %16206 = vmatpush.bf16.msra.mxu2 %v12424_v14  ;;  %vm18283_vm2 = vmor %vm1676_vm15, %vm1677_vm4 }
 0x135   :  { %vm1271_vm1 = vweird.f32 %v17937_v24  ;;  %v24148_v26 = vsub.f32 1.0, %v18100_v30  ;;  %v18266_v8 = vmul.f32 %v18139_v48, %v1388_v6  ;;  %16343 = vpow2.f32 %v12053_v55  ;;  %v15553_v30 = vld [vmem:[%s24076_s3 + $0x24] sm:$0xf]  ;;  %v12089_v6 = vld [vmem:[%s24076_s3 + $0x28] sm:$0xf0] }
 0x136   :  { %v18243_v13 = vmul.f32 %v18035_v23, %v24147_v11  ;;  %v916_v12 = vadd.f32 %v915_v7, %v17437_v52  ;;  %16345 = vrcp.f32 %v18216_v22  ;;  %v1680_v36 = vand.u32 2147483647, %v17928_v16  ;;  %vm18337_vm13 = vmor %vm1271_vm1, %vm1272_vm3 }
 0x137   :  { %v18263_v31 = vmul.f32 %v18059_v58, %v24148_v26  ;;  %v1683_v21 = vor.u32 1.1754944e-38, %v1682_v46  ;;  %v1778_v38 = vsub.f32 1.0, %v1777_v56  ;;  %v1679_v32 = vsel %vm18283_vm2, %v17990_v0, %v18246_v39  ;;  %v18299_v16 = vpop.eup %16337 }
 0x138   :  { %v1785_v14 = vand.u32 2147483647, %v18000_v62  ;;  %v1787_v44 = vand.u32 2147483648, %v18000_v62  ;;  %v12336_v55 = vor.u32 %v15616_v27, %v12335_v47  ;;  %vm1376_vm5 = vweird.f32 %v17963_v10 }
 0x139   :  { %v1779_v28 = vmul.f32 %v18088_v57, %v1778_v38  ;;  %vm1782_vm6 = vweird.f32 %v18088_v57  ;;  %v12416_v46 = vor.u32 %v15636_v60, %v12415_v37  ;;  %v12100_v11 = vor.u32 %v15555_v54, %v12097_v18  ;;  %v18304_v56 = vpop.eup %16339 }
 0x13a   :  { %2557 = vmatpush.bf16.msra.mxu0 %v12336_v55  ;;  %v962_v0 = vadd.f32 %v961_v50, %v17374_v63  ;;  %v12328_v39 = vor.u32 %v15614_v9, %v12327_v20  ;;  %v12408_v26 = vor.u32 %v15634_v33, %v12407_v15  ;;  %v12092_v47 = vor.u32 %v15553_v30, %v12089_v6  ;;  %v16342_v27 = vpop.eup %16341  ;;  %v1001_v54 = vpop.f32.mrf.mxu1 }
 0x13b   :  { %v18309_v7 = vmul.f32 %v18304_v56, %v18204_v29  ;;  %v1780_v1 = vadd.f32 %v18088_v57, %v1779_v28  ;;  %vm1781_vm7 = vweird.f32 %v18000_v62  ;;  %2579 = vmatpush.bf16.msrb.mxu1 %v12416_v46  ;;  %2627 = vmatpush.bf16.msrb.mxu3 %v12100_v11  ;;  %v940_v37 = vadd.f32 %v18208_v41, %v916_v12  ;;  %v16344_v60 = vpop.eup %16343  ;;  %v1023_v62 = vpop.f32.mrf.mxu3  ;;  %v12081_v28 = vld [vmem:[%s24076_s3 + $0x18] sm:$0xf0] }
 0x13c   :  { %vm1287_vm8 = vweird.f32 %v18059_v58  ;;  %vm18317_vm9 = vmor %vm1781_vm7, %vm1782_vm6  ;;  %vm1786_vm10 = vcmp.eq.f32.partialorder %v1785_v14, 8.507059e+37  ;;  %v1788_v50 = vor.u32 1.1754944e-38, %v1787_v44  ;;  %v986_v18 = vadd.f32 %v985_v53, %v962_v0  ;;  %16207 = vmatpush.bf16.msra.mxu2 %v12416_v46  ;;  %v18323_v9 = vpop.eup %16345  ;;  %v963_v53 = vpop.f32.mrf.mxu0  ;;  %v15632_v14 = vld [vmem:[%s24076_s3 + $0x294] sm:$0xf0]  ;;  %v12391_v46 = vld [vmem:[%s24076_s3 + $0x280] sm:$0xf] }
 0x13d   :  { %v1270_v20 = vadd.f32 %v17997_v40, %v18213_v49  ;;  %v18325_v41 = vadd.f32 1.0, %v16344_v60  ;;  %v1784_v12 = vsel %vm18317_vm9, %v18088_v57, %v1780_v1  ;;  %v12066_v15 = vmul.f32 -1.442695, %v940_v37  ;;  %v987_v11 = vpop.f32.mrf.mxu2  ;;  %v15549_v37 = vld [vmem:[%s24076_s3 + $0x4] sm:$0xf] }
 0x13e   :  { %v1275_v33 = vand.u32 2147483647, %v17937_v24  ;;  %vm1286_vm11 = vweird.f32 %v17979_v34  ;;  %v1502_v30 = vand.u32 2147483648, %v18204_v29  ;;  %vm1681_vm12 = vcmp.eq.f32.partialorder %v1680_v36, 8.507059e+37  ;;  %2558 = vmatpush.bf16.msra.mxu0 %v12328_v39  ;;  %v12399_v24 = vld [vmem:[%s24076_s3 + $0x290] sm:$0xf] }
 0x13f   :  { %v1789_v38 = vsel %vm1786_vm10, %v1788_v50, %v1784_v12  ;;  %v12060_v49 = vmul.f32 -1.442695, %v986_v18  ;;  %vm1391_vm14 = vweird.f32 %v18083_v51  ;;  %v1493_v57 = vsub.f32 1.0, %v18309_v7  ;;  %2580 = vmatpush.bf16.msrb.mxu1 %v12408_v26  ;;  %2628 = vmatpush.bf16.msrb.mxu3 %v12092_v47  ;;  %v12073_v60 = vld [vmem:[%s24076_s3 + $0x8] sm:$0xf0]  ;;  %vm18405_vm2 = vmor %vm1286_vm11, %vm1287_vm8 }
 0x140   :  { %v18343_v1 = vadd.f32 1.0, %v16342_v27  ;;  %16347 = vrcp.f32 %v18325_v41  ;;  %v1684_v36 = vsel %vm1681_vm12, %v1683_v21, %v1679_v32  ;;  %v1274_v55 = vsel %vm18337_vm13, %v17997_v40, %v1270_v20  ;;  %v15551_v32 = vld [vmem:[%s24076_s3 + $0x14] sm:$0xf]  ;;  %16208 = vmatpush.bf16.msra.mxu2 %v12408_v26 }
 0x141   :  { %v18352_v44 = vpack.c.bf16 %v1789_v38, %v1684_v36  ;;  %16349 = vpow2.f32 %v12066_v15  ;;  %v1375_v21 = vadd.f32 %v18035_v23, %v18243_v13  ;;  %vm1276_vm3 = vcmp.eq.f32.partialorder %v1275_v33, 8.507059e+37  ;;  %v15630_v13 = vld [vmem:[%s24076_s3 + $0x284] sm:$0xf0] }
 0x142   :  { %16351 = vpow2.f32 %v12060_v49  ;;  %vm1377_vm15 = vweird.f32 %v18035_v23  ;;  %v1380_v40 = vand.u32 2147483647, %v17963_v10  ;;  %v24155_v0 = vand.u32 2147483648, %v17963_v10 }
 0x143   :  { %2545 = vmatmul.bf16.gmra.mxu3 %v18352_v44  ;;  %vm1378_vm4 = vmor %vm1376_vm5, %vm1377_vm15  ;;  %v1000_v26 = vadd.f32 %v18297_v59, %v17283_v42  ;;  %v964_v47 = vadd.f32 %v963_v53, %v17437_v52  ;;  %v12400_v27 = vor.u32 %v15632_v14, %v12399_v24  ;;  %v1279_v50 = vsel %vm1276_vm3, %v18028_v17, %v1274_v55  ;;  %v1025_v53 = vpop.f32.mrf.mxu3 }
 0x144   :  { %v1383_v39 = vor.u32 1.1754944e-38, %v24155_v0  ;;  %v1379_v10 = vsel %vm1378_vm4, %v18035_v23, %v1375_v21  ;;  %vm1381_vm1 = vcmp.eq.f32.partialorder %v1380_v40, 8.507059e+37  ;;  %v12084_v18 = vor.u32 %v15551_v32, %v12081_v28 }
 0x145   :  { %2581 = vmatpush.bf16.msrb.mxu1 %v12400_v27  ;;  %v12392_v42 = vor.u32 %v15630_v13, %v12391_v46  ;;  %v1024_v59 = vadd.f32 %v1023_v62, %v1000_v26  ;;  %v988_v12 = vadd.f32 %v987_v11, %v964_v47  ;;  %16353 = vrcp.f32 %v18343_v1  ;;  %16209 = vmatpush.bf16.msra.mxu2 %v12400_v27  ;;  %v1004_v47 = vpop.f32.mrf.mxu1 }
 0x146   :  { %v1384_v20 = vsel %vm1381_vm1, %v1383_v39, %v1379_v10  ;;  %v18389_v15 = vpop.eup %16347  ;;  %2629 = vmatpush.bf16.msrb.mxu3 %v12084_v18  ;;  %v12076_v38 = vor.u32 %v15549_v37, %v12073_v60  ;;  %v1285_v17 = vadd.f32 %v18059_v58, %v18263_v31  ;;  %v1477_v23 = vmul.f32 %v18299_v16, %v18125_v3 }
 0x147   :  { %v18392_v33 = vpack.c.bf16 %v1384_v20, %v1279_v50  ;;  %v16350_v49 = vpop.eup %16349  ;;  %v1397_v6 = vand.u32 2147483648, %v18083_v51  ;;  %v18399_v36 = vor.u32 1.1754944e-38, %v1502_v30  ;;  %v12033_v62 = vmul.f32 -1.442695, %v1024_v59 }
 0x148   :  { %v16352_v24 = vpop.eup %16351  ;;  %v12067_v31 = vmul.f32 -1.442695, %v988_v12  ;;  %v1290_v55 = vand.u32 2147483647, %v17979_v34  ;;  %v1390_v30 = vadd.f32 %v18139_v48, %v18266_v8  ;;  %vm1392_vm5 = vweird.f32 %v18139_v48 }
 0x149   :  { %2559 = vmatmul.bf16.vlgmr.msra.gmra.mxu0 %v18392_v33  ;;  %v1597_v21 = vmul.f32 %v18389_v15, %v18325_v41  ;;  %v18416_v32 = vadd.f32 1.0, %v16352_v24  ;;  %2582 = vmatpush.bf16.msrb.mxu1 %v12392_v42  ;;  %16355 = vpow2.f32 %v12033_v62  ;;  %v1002_v28 = vadd.f32 %v1001_v54, %v17319_v5  ;;  %vm18421_vm6 = vmor %vm1391_vm14, %vm1392_vm5  ;;  %v15579_v54 = vld [vmem:[%s24076_s3 + $0xf4] sm:$0xf]  ;;  %v12185_v24 = vld [vmem:[%s24076_s3 + $0xe8] sm:$0xf0] }
 0x14a   :  { %v18428_v34 = vmul.f32 %v18304_v56, %v1493_v57  ;;  %2630 = vmatpush.bf16.msrb.mxu3 %v12076_v38  ;;  %v1289_v8 = vsel %vm18405_vm2, %v18059_v58, %v1285_v17  ;;  %v1394_v5 = vsel %vm18421_vm6, %v18139_v48, %v1390_v30  ;;  %v1395_v40 = vand.u32 2147483647, %v18083_v51  ;;  %16210 = vmatpush.bf16.msra.mxu2 %v12392_v42 }
 0x14b   :  { %v18437_v13 = vadd.f32 1.0, %v16350_v49  ;;  %16357 = vrcp.f32 %v18416_v32  ;;  %v1398_v11 = vor.u32 1.1754944e-38, %v1397_v6  ;;  %v1026_v7 = vadd.f32 %v1025_v53, %v1002_v28  ;;  %v18440_v57 = vpop.eup %16353 }
 0x14c   :  { %16359 = vpow2.f32 %v12067_v31  ;;  %vm1291_vm7 = vcmp.eq.f32.partialorder %v1290_v55, 8.507059e+37  ;;  %vm1396_vm8 = vcmp.eq.f32.partialorder %v1395_v40, 8.507059e+37  ;;  %v1478_v0 = vsub.f32 1.0, %v1477_v23  ;;  %v1028_v23 = vpop.f32.mrf.mxu3 }
 0x14d   :  { %v1598_v58 = vsub.f32 1.0, %v1597_v21  ;;  %v1294_v39 = vsel %vm1291_vm7, %v18109_v45, %v1289_v8  ;;  %v1399_v26 = vsel %vm1396_vm8, %v1398_v11, %v1394_v5  ;;  %v12040_v48 = vmul.f32 -1.442695, %v1026_v7  ;;  %v12193_v45 = vld [vmem:[%s24076_s3 + $0xf8] sm:$0xf0] }
 0x14e   :  { %vm1497_vm9 = vweird.f32 %v18304_v56  ;;  %v18444_v51 = vpack.c.bf16 %v1399_v26, %v1294_v39  ;;  %v1479_v27 = vmul.f32 %v18299_v16, %v1478_v0  ;;  %v1485_v37 = vand.u32 2147483647, %v18125_v3 }
 0x14f   :  { %v1582_v60 = vmul.f32 %v18323_v9, %v18216_v22  ;;  %v16356_v50 = vpop.eup %16355  ;;  %v18458_v10 = vmul.f32 %v18440_v57, %v18343_v1  ;;  %v1607_v18 = vand.u32 2147483648, %v18325_v41  ;;  %16361 = vpow2.f32 %v12040_v48 }
 0x150   :  { %vm1482_vm10 = vweird.f32 %v18299_v16  ;;  %vm1496_vm11 = vweird.f32 %v18204_v29  ;;  %v18463_v20 = vadd.f32 1.0, %v16356_v50  ;;  %2583 = vmatmul.bf16.vlgmr.msrb.gmra.mxu1 %v18444_v51  ;;  %v1480_v42 = vadd.f32 %v18299_v16, %v1479_v27  ;;  %v15595_v50 = vld [vmem:[%s24076_s3 + $0x174] sm:$0xf] }
 0x151   :  { %v1487_v59 = vand.u32 2147483648, %v18125_v3  ;;  %v1583_v12 = vsub.f32 1.0, %v1582_v60  ;;  %v18468_v38 = vpop.eup %16357  ;;  %v1599_v17 = vmul.f32 %v18389_v15, %v1598_v58  ;;  %16363 = vrcp.f32 %v18437_v13  ;;  %v15575_v60 = vld [vmem:[%s24076_s3 + $0xd4] sm:$0xf]  ;;  %vm18560_vm6 = vmor %vm1496_vm11, %vm1497_vm9 }
 0x152   :  { %vm1481_vm12 = vweird.f32 %v18125_v3  ;;  %v12196_v49 = vor.u32 %v15579_v54, %v12193_v45  ;;  %v16360_v6 = vpop.eup %16359  ;;  %vm1601_vm13 = vweird.f32 %v18325_v41  ;;  %16365 = vrcp.f32 %v18463_v20  ;;  %v15577_v3 = vld [vmem:[%s24076_s3 + $0xe4] sm:$0xf] }
 0x153   :  { %vm18477_vm14 = vmor %vm1481_vm12, %vm1482_vm10  ;;  %vm18481_vm3 = vcmp.eq.f32.partialorder %v1485_v37, 8.507059e+37  ;;  %vm1586_vm15 = vweird.f32 %v18216_v22  ;;  %vm1587_vm4 = vweird.f32 %v18323_v9  ;;  %2631 = vmatmul.bf16.vlgmr.msrb.gmra.mxu3 %v17453_v2  ;;  %v1584_v31 = vmul.f32 %v18323_v9, %v1583_v12 }
 0x154   :  { %v1484_v14 = vsel %vm18477_vm14, %v18299_v16, %v1480_v42  ;;  %v1590_v55 = vand.u32 2147483647, %v18216_v22  ;;  %v1592_v30 = vand.u32 2147483648, %v18216_v22  ;;  %2647 = vmatpush.bf16.msrb.mxu0 %v12196_v49  ;;  %v18502_v21 = vmul.f32 %v18468_v38, %v18416_v32  ;;  %vm18518_vm1 = vmor %vm1586_vm15, %vm1587_vm4  ;;  %v1006_v22 = vpop.f32.mrf.mxu1  ;;  %v12257_v42 = vld [vmem:[%s24076_s3 + $0x178] sm:$0xf0] }
 0x155   :  { %v1307_v28 = vand.u32 2147483648, %v18463_v20  ;;  %v1488_v46 = vor.u32 1.1754944e-38, %v1487_v59  ;;  %v1005_v2 = vadd.f32 %v1004_v47, %v17332_v19  ;;  %v16362_v8 = vpop.eup %16361  ;;  %v1305_v5 = vand.u32 2147483647, %v18463_v20  ;;  %v15627_v59 = vld [vmem:[%s24076_s3 + $0x274] sm:$0xf] }
 0x156   :  { %v18507_v16 = vadd.f32 1.0, %v16360_v6  ;;  %v1585_v40 = vadd.f32 %v18323_v9, %v1584_v31  ;;  %v12188_v11 = vor.u32 %v15577_v3, %v12185_v24  ;;  %v18510_v7 = vadd.f32 1.0, %v16362_v8  ;;  %v12385_v6 = vld [vmem:[%s24076_s3 + $0x278] sm:$0xf0]  ;;  %v15593_v31 = vld [vmem:[%s24076_s3 + $0x164] sm:$0xf] }
 0x157   :  { %v1489_v0 = vsel %vm18481_vm3, %v1488_v46, %v1484_v14  ;;  %v1029_v19 = vadd.f32 %v1028_v23, %v1005_v2  ;;  %v1495_v39 = vadd.f32 %v18304_v56, %v18428_v34  ;;  %v18524_v26 = vpop.eup %16363  ;;  %vm18529_vm2 = vcmp.eq.f32.partialorder %v1590_v55, 8.507059e+37  ;;  %v12177_v34 = vld [vmem:[%s24076_s3 + $0xd8] sm:$0xf0]  ;;  %v12169_v14 = vld [vmem:[%s24076_s3 + $0xc8] sm:$0xf0] }
 0x158   :  { %v1589_v48 = vsel %vm18518_vm1, %v18323_v9, %v1585_v40  ;;  %v1593_v27 = vor.u32 1.1754944e-38, %v1592_v30  ;;  %2648 = vmatpush.bf16.msrb.mxu0 %v12188_v11  ;;  %v1500_v37 = vand.u32 2147483647, %v18204_v29  ;;  %v18540_v54 = vpop.eup %16365  ;;  %v18542_v9 = vor.u32 1.1754944e-38, %v1307_v28  ;;  %v15573_v29 = vld [vmem:[%s24076_s3 + $0xc4] sm:$0xf]  ;;  %v1030_v28 = vpop.f32.mrf.mxu3 }
 0x159   :  { %16367 = vrcp.f32 %v18510_v7  ;;  %v1600_v45 = vadd.f32 %v18389_v15, %v1599_v17  ;;  %vm1602_vm5 = vweird.f32 %v18389_v15  ;;  %v1297_v17 = vmul.f32 %v18540_v54, %v18463_v20  ;;  %v15625_v11 = vld [vmem:[%s24076_s3 + $0x264] sm:$0xf] }
 0x15a   :  { %16369 = vrcp.f32 %v18507_v16  ;;  %v1594_v49 = vsel %vm18529_vm2, %v1593_v27, %v1589_v48  ;;  %v12047_v23 = vmul.f32 -1.442695, %v1029_v19  ;;  %vm1301_vm7 = vweird.f32 %v18463_v20  ;;  %vm18594_vm9 = vmor %vm1601_vm13, %vm1602_vm5 }
 0x15b   :  { %v1410_v62 = vand.u32 2147483647, %v18510_v7  ;;  %v18577_v53 = vpack.c.bf16 %v1594_v49, %v1489_v0  ;;  %v1007_v3 = vadd.f32 %v1006_v22, %v17352_v43  ;;  %v1499_v24 = vsel %vm18560_vm6, %v18304_v56, %v1495_v39  ;;  %v12249_v56 = vld [vmem:[%s24076_s3 + $0x168] sm:$0xf0]  ;;  %v15623_v43 = vld [vmem:[%s24076_s3 + $0x254] sm:$0xf] }
 0x15c   :  { %v1298_v55 = vsub.f32 1.0, %v1297_v17  ;;  %v1412_v30 = vand.u32 2147483648, %v18510_v7  ;;  %16371 = vpow2.f32 %v12047_v23  ;;  %vm1501_vm8 = vcmp.eq.f32.partialorder %v1500_v37, 8.507059e+37  ;;  %v12377_v0 = vld [vmem:[%s24076_s3 + $0x268] sm:$0xf0]  ;;  %v1009_v49 = vpop.f32.mrf.mxu1 }
 0x15d   :  { %2564 = vmatmul.bf16.gmra.mxu0 %v18577_v53  ;;  %v1504_v46 = vsel %vm1501_vm8, %v18399_v36, %v1499_v24  ;;  %v1604_v2 = vsel %vm18594_vm9, %v18389_v15, %v1600_v45  ;;  %v1605_v8 = vand.u32 2147483647, %v18325_v41  ;;  %v12180_v40 = vor.u32 %v15575_v60, %v12177_v34  ;;  %v15571_v23 = vld [vmem:[%s24076_s3 + $0xb4] sm:$0xf] }
 0x15e   :  { %v1299_v58 = vmul.f32 %v18540_v54, %v1298_v55  ;;  %vm1406_vm10 = vweird.f32 %v18510_v7  ;;  %v1608_v36 = vor.u32 1.1754944e-38, %v1607_v18  ;;  %v12260_v19 = vor.u32 %v15595_v50, %v12257_v42  ;;  %v15591_v24 = vld [vmem:[%s24076_s3 + $0x154] sm:$0xf] }
 0x15f   :  { %v12388_v15 = vor.u32 %v15627_v59, %v12385_v6  ;;  %v18617_v39 = vpop.eup %16367  ;;  %vm1606_vm11 = vcmp.eq.f32.partialorder %v1605_v8, 8.507059e+37  ;;  %2649 = vmatpush.bf16.msrb.mxu0 %v12180_v40  ;;  %v12172_v48 = vor.u32 %v15573_v29, %v12169_v14  ;;  %v12252_v47 = vor.u32 %v15593_v31, %v12249_v56  ;;  %v12161_v6 = vld [vmem:[%s24076_s3 + $0xb8] sm:$0xf0]  ;;  %v15589_v8 = vld [vmem:[%s24076_s3 + $0x144] sm:$0xf] }
 0x160   :  { %v1031_v27 = vadd.f32 %v1030_v28, %v1007_v3  ;;  %v18619_v22 = vpop.eup %16369  ;;  %vm1302_vm12 = vweird.f32 %v18540_v54  ;;  %v1402_v37 = vmul.f32 %v18617_v39, %v18510_v7  ;;  %v1609_v60 = vsel %vm1606_vm11, %v1608_v36, %v1604_v2  ;;  %2671 = vmatpush.bf16.msrb.mxu2 %v12260_v19  ;;  %v12241_v14 = vld [vmem:[%s24076_s3 + $0x158] sm:$0xf0]  ;;  %v15569_v28 = vld [vmem:[%s24076_s3 + $0xa4] sm:$0xf]  ;;  %v12153_v2 = vld [vmem:[%s24076_s3 + $0xa8] sm:$0xf0] }
 0x161   :  { %2719 = vmatpush.bf16.msra.mxu3 %v12388_v15  ;;  %v12380_v41 = vor.u32 %v15625_v11, %v12377_v0  ;;  %v18625_v18 = vadd.f32 %v18540_v54, %v1299_v58  ;;  %v18627_v34 = vpack.c.bf16 %v1609_v60, %v1504_v46  ;;  %v1688_v50 = vsub.f32 1.0, %v18458_v10  ;;  %vm18655_vm14 = vmor %vm1301_vm7, %vm1302_vm12  ;;  %v12369_v56 = vld [vmem:[%s24076_s3 + $0x258] sm:$0xf0]  ;;  %v12233_v19 = vld [vmem:[%s24076_s3 + $0x148] sm:$0xf0]  ;;  %v1033_v60 = vpop.f32.mrf.mxu3 }
 0x162   :  { %v12054_v45 = vmul.f32 -1.442695, %v1031_v27  ;;  %v16372_v42 = vpop.eup %16371  ;;  %v1403_v59 = vsub.f32 1.0, %v1402_v37  ;;  %v18630_v12 = vor.u32 1.1754944e-38, %v1412_v30  ;;  %vm1692_vm13 = vweird.f32 %v18440_v57  ;;  %v15567_v46 = vld [vmem:[%s24076_s3 + $0x94] sm:$0xf] }
 0x163   :  { %v1695_v17 = vand.u32 2147483647, %v18343_v1  ;;  %v18640_v29 = vadd.f32 1.0, %v16372_v42  ;;  %2588 = vmatmul.bf16.vlgmr.msra.gmra.mxu2 %v18627_v34  ;;  %2650 = vmatpush.bf16.msrb.mxu0 %v12172_v48  ;;  %v1689_v10 = vmul.f32 %v18440_v57, %v1688_v50  ;;  %v1697_v3 = vand.u32 2147483648, %v18343_v1  ;;  %v12361_v42 = vld [vmem:[%s24076_s3 + $0x248] sm:$0xf0] }
 0x164   :  { %16373 = vpow2.f32 %v12054_v45  ;;  %v1404_v55 = vmul.f32 %v18617_v39, %v1403_v59  ;;  %vm1407_vm3 = vweird.f32 %v18617_v39  ;;  %2636 = vmatmul.bf16.gmra.mxu3 %v17567_v25  ;;  %2672 = vmatpush.bf16.msrb.mxu2 %v12252_v47  ;;  %vm1691_vm15 = vweird.f32 %v18343_v1  ;;  %v15613_v15 = vld [vmem:[%s24076_s3 + $0x204] sm:$0xf] }
 0x165   :  { %v1792_v30 = vmul.f32 %v18524_v26, %v18437_v13  ;;  %v1304_v25 = vsel %vm18655_vm14, %v18540_v54, %v18625_v18  ;;  %16375 = vrcp.f32 %v18640_v29  ;;  %2720 = vmatpush.bf16.msra.mxu3 %v12380_v41  ;;  %v1690_v1 = vadd.f32 %v18440_v57, %v1689_v10  ;;  %vm18695_vm1 = vmor %vm1691_vm15, %vm1692_vm13  ;;  %v12337_v54 = vld [vmem:[%s24076_s3 + $0x218] sm:$0xf0] }
 0x166   :  { %vm18680_vm4 = vcmp.eq.f32.partialorder %v1695_v17, 8.507059e+37  ;;  %v18691_v40 = vadd.f32 %v18617_v39, %v1404_v55  ;;  %v1698_v0 = vor.u32 1.1754944e-38, %v1697_v3  ;;  %v1800_v36 = vand.u32 2147483647, %v18437_v13  ;;  %vm18707_vm2 = vmor %vm1406_vm10, %vm1407_vm3 }
 0x167   :  { %v1793_v58 = vsub.f32 1.0, %v1792_v30  ;;  %v1694_v48 = vsel %vm18695_vm1, %v18440_v57, %v1690_v1  ;;  %v1802_v47 = vand.u32 2147483648, %v18437_v13  ;;  %v12164_v27 = vor.u32 %v15571_v23, %v12161_v6  ;;  %v15621_v57 = vld [vmem:[%s24076_s3 + $0x244] sm:$0xf]  ;;  %v1011_v1 = vpop.f32.mrf.mxu1 }
 0x168   :  { %v12244_v37 = vor.u32 %v15591_v24, %v12241_v14  ;;  %v1409_v41 = vsel %vm18707_vm2, %v18617_v39, %v18691_v40  ;;  %vm1797_vm5 = vweird.f32 %v18524_v26  ;;  %v1010_v50 = vadd.f32 %v1009_v49, %v17374_v63  ;;  %v12201_v40 = vld [vmem:[%s24076_s3 + $0x108] sm:$0xf0] }
 0x169   :  { %v1794_v45 = vmul.f32 %v18524_v26, %v1793_v58  ;;  %vm1796_vm6 = vweird.f32 %v18437_v13  ;;  %2651 = vmatpush.bf16.msrb.mxu0 %v12164_v27  ;;  %v12372_v17 = vor.u32 %v15623_v43, %v12369_v56  ;;  %v12156_v23 = vor.u32 %v15569_v28, %v12153_v2  ;;  %v12145_v2 = vld [vmem:[%s24076_s3 + $0x98] sm:$0xf0]  ;;  %v15646_v27 = vld [vmem:[%s24076_s3 + $0x304] sm:$0xf0] }
 0x16a   :  { %v16374_v59 = vpop.eup %16373  ;;  %2673 = vmatpush.bf16.msrb.mxu2 %v12244_v37  ;;  %v12236_v6 = vor.u32 %v15589_v8, %v12233_v19  ;;  %v1699_v63 = vsel %vm18680_vm4, %v1698_v0, %v1694_v48  ;;  %v1034_v3 = vadd.f32 %v1033_v60, %v1010_v50  ;;  %vm18738_vm7 = vmor %vm1796_vm6, %vm1797_vm5  ;;  %vm18742_vm8 = vcmp.eq.f32.partialorder %v1800_v36, 8.507059e+37  ;;  %v12353_v48 = vld [vmem:[%s24076_s3 + $0x238] sm:$0xf0]  ;;  %v15565_v50 = vld [vmem:[%s24076_s3 + $0x84] sm:$0xf] }
 0x16b   :  { %v18729_v10 = vadd.f32 1.0, %v16374_v59  ;;  %v1795_v49 = vadd.f32 %v18524_v26, %v1794_v45  ;;  %v18734_v24 = vpop.eup %16375  ;;  %v1803_v55 = vor.u32 1.1754944e-38, %v1802_v47  ;;  %2721 = vmatpush.bf16.msra.mxu3 %v12372_v17  ;;  %v12364_v30 = vor.u32 %v15621_v57, %v12361_v42  ;;  %v12455_v47 = vld [vmem:[%s24076_s3 + $0x300] sm:$0xf]  ;;  %v12137_v57 = vld [vmem:[%s24076_s3 + $0x88] sm:$0xf0] }
 0x16c   :  { %v1703_v43 = vsub.f32 1.0, %v18502_v21  ;;  %v12061_v28 = vmul.f32 -1.442695, %v1034_v3  ;;  %vm1707_vm9 = vweird.f32 %v18468_v38  ;;  %v15587_v21 = vld [vmem:[%s24076_s3 + $0x134] sm:$0xf]  ;;  %vm18766_vm10 = vcmp.eq.f32.partialorder %v1305_v5, 8.507059e+37 }
 0x16d   :  { %16377 = vrcp.f32 %v18729_v10  ;;  %v1799_v56 = vsel %vm18738_vm7, %v18524_v26, %v1795_v49  ;;  %v12225_v26 = vld [vmem:[%s24076_s3 + $0x138] sm:$0xf0]  ;;  %vm18772_vm11 = vcmp.eq.f32.partialorder %v1410_v62, 8.507059e+37  ;;  %2652 = vmatpush.bf16.msrb.mxu0 %v12156_v23  ;;  %v1710_v36 = vand.u32 2147483647, %v18416_v32 }
 0x16e   :  { %v1804_v0 = vsel %vm18742_vm8, %v1803_v55, %v1799_v56  ;;  %2674 = vmatpush.bf16.msrb.mxu2 %v12236_v6  ;;  %v1704_v58 = vmul.f32 %v18468_v38, %v1703_v43  ;;  %v1712_v20 = vand.u32 2147483648, %v18416_v32  ;;  %v15619_v5 = vld [vmem:[%s24076_s3 + $0x234] sm:$0xf]  ;;  %v18786_v7 = vmul.f32 %v18734_v24, %v18640_v29  ;;  %v15585_v49 = vld [vmem:[%s24076_s3 + $0x124] sm:$0xf]  ;;  %v1035_v56 = vpop.f32.mrf.mxu3 }
 0x16f   :  { %v18788_v62 = vpack.c.bf16 %v1804_v0, %v1699_v63  ;;  %16379 = vpow2.f32 %v12061_v28  ;;  %v1807_v19 = vmul.f32 %v18619_v22, %v18507_v16  ;;  %2722 = vmatpush.bf16.msra.mxu3 %v12364_v30  ;;  %v1012_v37 = vadd.f32 %v1011_v1, %v17437_v52  ;;  %v12217_v3 = vld [vmem:[%s24076_s3 + $0x128] sm:$0xf0]  ;;  %v15617_v30 = vld [vmem:[%s24076_s3 + $0x224] sm:$0xf]  ;;  %v15643_v45 = vld [vmem:[%s24076_s3 + $0x2f4] sm:$0xf] }
 0x170   :  { %v1705_v60 = vadd.f32 %v18468_v38, %v1704_v58  ;;  %vm1706_vm12 = vweird.f32 %v18416_v32  ;;  %vm18804_vm13 = vcmp.eq.f32.partialorder %v1710_v36, 8.507059e+37  ;;  %v1713_v52 = vor.u32 1.1754944e-38, %v1712_v20  ;;  %v12345_v43 = vld [vmem:[%s24076_s3 + $0x228] sm:$0xf0]  ;;  %v15583_v36 = vld [vmem:[%s24076_s3 + $0x114] sm:$0xf] }
 0x171   :  { %2569 = vmatmul.bf16.gmra.mxu0 %v18788_v62  ;;  %vm1708_vm3 = vmor %vm1706_vm12, %vm1707_vm9  ;;  %v1808_v42 = vsub.f32 1.0, %v1807_v19  ;;  %v1815_v32 = vand.u32 2147483647, %v18507_v16  ;;  %v1817_v59 = vand.u32 2147483648, %v18507_v16  ;;  %v12148_v23 = vor.u32 %v15567_v46, %v12145_v2 }
 0x172   :  { %v1709_v17 = vsel %vm1708_vm3, %v18468_v38, %v1705_v60  ;;  %v12228_v6 = vor.u32 %v15587_v21, %v12225_v26  ;;  %v12356_v63 = vor.u32 %v15619_v5, %v12353_v48  ;;  %v1508_v13 = vsub.f32 1.0, %v18786_v7  ;;  %v12321_v60 = vld [vmem:[%s24076_s3 + $0x1f8] sm:$0xf0] }
 0x173   :  { %v18826_v14 = vpop.eup %16377  ;;  %v1714_v55 = vsel %vm18804_vm13, %v1713_v52, %v1709_v17  ;;  %v1809_v38 = vmul.f32 %v18619_v22, %v1808_v42  ;;  %vm1812_vm15 = vweird.f32 %v18619_v22  ;;  %vm1811_vm4 = vweird.f32 %v18507_v16  ;;  %2653 = vmatpush.bf16.msrb.mxu0 %v12148_v23  ;;  %v12209_v16 = vld [vmem:[%s24076_s3 + $0x118] sm:$0xf0]  ;;  %v15609_v17 = vld [vmem:[%s24076_s3 + $0x1e4] sm:$0xf]  ;;  %v12313_v23 = vld [vmem:[%s24076_s3 + $0x1e8] sm:$0xf0] }
 0x174   :  { %v1612_v28 = vmul.f32 %v18826_v14, %v18729_v10  ;;  %2675 = vmatpush.bf16.msrb.mxu2 %v12228_v6  ;;  %v12456_v1 = vor.u32 %v15646_v27, %v12455_v47  ;;  %v12140_v46 = vor.u32 %v15565_v50, %v12137_v57  ;;  %vm18843_vm1 = vcmp.eq.f32.partialorder %v1815_v32, 8.507059e+37  ;;  %2641 = vmatmul.bf16.gmra.mxu3 %v17769_v61  ;;  %vm1813_vm5 = vmor %vm1811_vm4, %vm1812_vm15  ;;  %v15611_v27 = vld [vmem:[%s24076_s3 + $0x1f4] sm:$0xf]  ;;  %v12449_v50 = vld [vmem:[%s24076_s3 + $0x2f8] sm:$0xf0] }
 0x175   :  { %v16380_v2 = vpop.eup %16379  ;;  %v1810_v21 = vadd.f32 %v18619_v22, %v1809_v38  ;;  %v1818_v0 = vor.u32 1.1754944e-38, %v1817_v59  ;;  %v12220_v58 = vor.u32 %v15585_v49, %v12217_v3  ;;  %2723 = vmatpush.bf16.msra.mxu3 %v12356_v63  ;;  %v12348_v5 = vor.u32 %v15617_v30, %v12345_v43  ;;  %v15641_v38 = vld [vmem:[%s24076_s3 + $0x2e4] sm:$0xf]  ;;  %v12441_v30 = vld [vmem:[%s24076_s3 + $0x2e8] sm:$0xf0] }
 0x176   :  { %v18854_v20 = vadd.f32 1.0, %v16380_v2  ;;  %2606 = vmatpush.bf16.msra.mxu1 %v12456_v1  ;;  %v1036_v7 = vadd.f32 %v1035_v56, %v1012_v37  ;;  %vm2445_vm6 = vcmask 130048   ;;  %v1613_v61 = vsub.f32 1.0, %v1612_v28 }
 0x177   :  { %v1814_v19 = vsel %vm1813_vm5, %v18619_v22, %v1810_v21  ;;  %v1309_v48 = vsel %vm18766_vm10, %v18542_v9, %v1304_v25  ;;  %v1414_v47 = vsel %vm18772_vm11, %v18630_v12, %v1409_v41  ;;  %v15615_v22 = vld [vmem:[%s24076_s3 + $0x214] sm:$0xf]  ;;  %2654 = vmatpush.bf16.msrb.mxu0 %v12140_v46  ;;  %v12212_v39 = vor.u32 %v15583_v36, %v12209_v16  ;;  %v15581_v12 = vld [vmem:[%s24076_s3 + $0x104] sm:$0xf]  ;;  %v12329_v41 = vld [vmem:[%s24076_s3 + $0x208] sm:$0xf0] }
 0x178   :  { %v1819_v9 = vsel %vm18843_vm1, %v1818_v0, %v1814_v19  ;;  %2676 = vmatpush.bf16.msrb.mxu2 %v12220_v58  ;;  %v12068_v18 = vmul.f32 -1.442695, %v1036_v7  ;;  %v18883_v31 = vpack.c.bf16 %v1414_v47, %v1309_v48  ;;  %16381 = vrcp.f32 %v18854_v20  ;;  %v15639_v36 = vld [vmem:[%s24076_s3 + $0x2d4] sm:$0xf]  ;;  %v12433_v16 = vld [vmem:[%s24076_s3 + $0x2d8] sm:$0xf0]  ;;  %v2464_v48 = vpop.f32.mrf.mxu0 }
 0x179   :  { %v18889_v25 = vpack.c.bf16 %v1819_v9, %v1714_v55  ;;  %2724 = vmatpush.bf16.msra.mxu3 %v12348_v5  ;;  %v12340_v8 = vor.u32 %v15615_v22, %v12337_v54  ;;  %v1509_v11 = vmul.f32 %v18734_v24, %v1508_v13  ;;  %v1614_v37 = vmul.f32 %v18826_v14, %v1613_v61  ;;  %v2488_v5 = vpop.f32.mrf.mxu2  ;;  %v15605_v61 = vld [vmem:[%s24076_s3 + $0x1c4] sm:$0xf]  ;;  %v12297_v19 = vld [vmem:[%s24076_s3 + $0x1c8] sm:$0xf0] }
 0x17a   :  { %16383 = vpow2.f32 %v12068_v18  ;;  %12461 = vmatmul.msk.bf16.vlgmr.msra.gmra.mxu1 %vm2445_vm6, %v18883_v31  ;;  %v12204_v57 = vor.u32 %v15581_v12, %v12201_v40  ;;  %v12332_v52 = vor.u32 %v15613_v15, %v12329_v41  ;;  %vm1617_vm14 = vweird.f32 %v18826_v14  ;;  %v12425_v18 = vld [vmem:[%s24076_s3 + $0x2c8] sm:$0xf0]  ;;  %v15603_v41 = vld [vmem:[%s24076_s3 + $0x1b4] sm:$0xf]  ;;  %v15633_v55 = vld [vmem:[%s24076_s3 + $0x2a4] sm:$0xf] }
 0x17b   :  { %2593 = vmatmul.bf16.gmra.mxu2 %v18889_v25  ;;  %v1510_v42 = vadd.f32 %v18734_v24, %v1509_v11  ;;  %vm1512_vm2 = vweird.f32 %v18734_v24  ;;  %v1615_v32 = vadd.f32 %v18826_v14, %v1614_v37  ;;  %v1622_v59 = vand.u32 2147483648, %v18729_v10  ;;  %v24202_v46 = vld [vmem:[#allocation2_spill] sm:$0xff] }
 0x17c   :  { %2677 = vmatpush.bf16.msrb.mxu2 %v12212_v39  ;;  %vm1616_vm7 = vweird.f32 %v18729_v10  ;;  %v1620_v6 = vand.u32 2147483647, %v18729_v10  ;;  %v12324_v63 = vor.u32 %v15611_v27, %v12321_v60  ;;  %v12452_v49 = vor.u32 %v15643_v45, %v12449_v50  ;;  %v15635_v60 = vld [vmem:[%s24076_s3 + $0x2b4] sm:$0xf]  ;;  %v12417_v45 = vld [vmem:[%s24076_s3 + $0x2b8] sm:$0xf0] }
 0x17d   :  { %2725 = vmatpush.bf16.msra.mxu3 %v12340_v8  ;;  %v1517_v13 = vand.u32 2147483648, %v18640_v29  ;;  %vm18933_vm8 = vmor %vm1616_vm7, %vm1617_vm14  ;;  %vm1511_vm9 = vweird.f32 %v18640_v29  ;;  %v1515_v10 = vand.u32 2147483647, %v18640_v29  ;;  %v12316_v28 = vor.u32 %v15609_v17, %v12313_v23  ;;  %v15607_v29 = vld [vmem:[%s24076_s3 + $0x1d4] sm:$0xf] }
 0x17e   :  { %v18930_v3 = vpop.eup %16381  ;;  %v1619_v56 = vsel %vm18933_vm8, %v18826_v14, %v1615_v32  ;;  %2695 = vmatpush.bf16.msrb.mxu1 %v12324_v63  ;;  %vm18953_vm10 = vmor %vm1511_vm9, %vm1512_vm2  ;;  %v1623_v2 = vor.u32 1.1754944e-38, %v1622_v59  ;;  %v12305_v14 = vld [vmem:[%s24076_s3 + $0x1d8] sm:$0xf0]  ;;  %vm1621_vm11 = vcmp.eq.f32.partialorder %v1620_v6, 8.507059e+37  ;;  %2743 = vmatpush.bf16.msra.mxu0 %v12452_v49  ;;  %v12444_v26 = vor.u32 %v15641_v38, %v12441_v30  ;;  %v12281_v32 = vld [vmem:[%s24076_s3 + $0x1a8] sm:$0xf0] }
 0x17f   :  { %v1717_v21 = vmul.f32 %v18930_v3, %v18854_v20  ;;  %v1518_v0 = vor.u32 1.1754944e-38, %v1517_v13  ;;  %vm1516_vm12 = vcmp.eq.f32.partialorder %v1515_v10, 8.507059e+37  ;;  %v12308_v7 = vor.u32 %v15607_v29, %v12305_v14  ;;  %v12289_v8 = vld [vmem:[%s24076_s3 + $0x1b8] sm:$0xf0]  ;;  %v12409_v38 = vld [vmem:[%s24076_s3 + $0x2a8] sm:$0xf0] }
 0x180   :  { %v16384_v43 = vpop.eup %16383  ;;  %2678 = vmatpush.bf16.msrb.mxu2 %v12204_v57  ;;  %v1624_v58 = vsel %vm1621_vm11, %v1623_v2, %v1619_v56  ;;  %v12436_v54 = vor.u32 %v15639_v36, %v12433_v16  ;;  %v2489_v9 = vadd.f32 %v2488_v5, %v2464_v48  ;;  %v12300_v12 = vor.u32 %v15605_v61, %v12297_v19  ;;  %v12273_v2 = vld [vmem:[%s24076_s3 + $0x198] sm:$0xf0]  ;;  %v15645_v29 = vld [vmem:[%s24076_s3 + $0x304] sm:$0xf]  ;;  %v12457_v14 = vld [vmem:[%s24076_s3 + $0x308] sm:$0xf0] }
 0x181   :  { %v18948_v1 = vadd.f32 1.0, %v16384_v43  ;;  %2655 = vmatmul.bf16.vlgmr.msrb.gmra.mxu0 %v17509_v35  ;;  %2726 = vmatpush.bf16.msra.mxu3 %v12332_v52  ;;  %v1514_v35 = vsel %vm18953_vm10, %v18734_v24, %v1510_v42  ;;  %v1718_v47 = vsub.f32 1.0, %v1717_v21  ;;  %vm1722_vm13 = vweird.f32 %v18930_v3  ;;  %v19021_v63 = vpop.f32.mrf.mxu2  ;;  %v15631_v5 = vld [vmem:[%s24076_s3 + $0x294] sm:$0xf]  ;;  %v15597_v61 = vld [vmem:[%s24076_s3 + $0x184] sm:$0xf] }
 0x182   :  { %2696 = vmatpush.bf16.msrb.mxu1 %v12316_v28  ;;  %v1519_v24 = vsel %vm1516_vm12, %v1518_v0, %v1514_v35  ;;  %2744 = vmatpush.bf16.msra.mxu0 %v12444_v26  ;;  %v12292_v42 = vor.u32 %v15603_v41, %v12289_v8  ;;  %vm1721_vm3 = vweird.f32 %v18854_v20  ;;  %v1725_v17 = vand.u32 2147483647, %v18854_v20  ;;  %v15599_v28 = vld [vmem:[%s24076_s3 + $0x194] sm:$0xf]  ;;  %v12265_v19 = vld [vmem:[%s24076_s3 + $0x188] sm:$0xf0] }
 0x183   :  { %16385 = vrcp.f32 %v18948_v1  ;;  %v18982_v22 = vpack.c.bf16 %v1624_v58, %v1519_v24  ;;  %v1719_v37 = vmul.f32 %v18930_v3, %v1718_v47  ;;  %v1830_v57 = vand.u32 2147483647, %v18948_v1  ;;  %vm19025_vm4 = vmor %vm1721_vm3, %vm1722_vm13  ;;  %v15822_v49 = vld [vmem:[%s24077_s4 + $0x57c] sm:$0xf]  ;;  %v15809_v43 = vld [vmem:[%s24077_s4 + $0x510] sm:$0xf0] }
 0x184   :  { %2727 = vmatmul.bf16.vlgmr.msra.gmra.mxu3 %v18392_v33  ;;  %v15637_v33 = vld [vmem:[%s24076_s3 + $0x2c4] sm:$0xf]  ;;  %v1832_v52 = vand.u32 2147483648, %v18948_v1  ;;  %v12420_v6 = vor.u32 %v15635_v60, %v12417_v45  ;;  %v1727_v13 = vand.u32 2147483648, %v18854_v20  ;;  %vm1826_vm1 = vweird.f32 %v18948_v1  ;;  %v24205_v60 = vld [vmem:[#allocation4_spill] sm:$0xff] }
 0x185   :  { %v12428_v27 = vor.u32 %v15637_v33, %v12425_v18  ;;  %v1720_v59 = vadd.f32 %v18930_v3, %v1719_v37  ;;  %vm19042_vm14 = vcmp.eq.f32.partialorder %v1830_v57, 8.507059e+37  ;;  %v12412_v26 = vor.u32 %v15633_v55, %v12409_v38  ;;  %v15797_v10 = vld [vmem:[%s24077_s4 + $0x4b4] sm:$0xf] }
 0x186   :  { %2697 = vmatpush.bf16.msrb.mxu1 %v12308_v7  ;;  %2745 = vmatpush.bf16.msra.mxu0 %v12436_v54  ;;  %v1833_v20 = vor.u32 1.1754944e-38, %v1832_v52  ;;  %v12460_v0 = vor.u32 %v15645_v29, %v12457_v14  ;;  %v1728_v58 = vor.u32 1.1754944e-38, %v1727_v13  ;;  %vm1726_vm2 = vcmp.eq.f32.partialorder %v1725_v17, 8.507059e+37  ;;  %v15629_v54 = vld [vmem:[%s24076_s3 + $0x284] sm:$0xf] }
 0x187   :  { %v2512_v39 = vpop.f32.mrf.mxu1  ;;  %v1724_v21 = vsel %vm19025_vm4, %v18930_v3, %v1720_v59  ;;  %v12401_v3 = vld [vmem:[%s24076_s3 + $0x298] sm:$0xf0]  ;;  %v12276_v7 = vor.u32 %v15599_v28, %v12273_v2  ;;  %v15772_v2 = vld [vmem:[%s24077_s4 + $0x3ec] sm:$0xf]  ;;  %v12971_v29 = vld [vmem:[%s24077_s4 + $0x44c] sm:$0xf0] }
 0x188   :  { %v18990_v15 = vadd.f32 %v2512_v39, %v2489_v9  ;;  %2774 = vmatpush.bf16.msra.mxu2 %v12460_v0  ;;  %v1729_v24 = vsel %vm1726_vm2, %v1728_v58, %v1724_v21  ;;  %v12404_v47 = vor.u32 %v15631_v5, %v12401_v3  ;;  %v12268_v9 = vor.u32 %v15597_v61, %v12265_v19  ;;  %v15747_v0 = vld [vmem:[%s24077_s4 + $0x324] sm:$0xf]  ;;  %v12769_v5 = vld [vmem:[%s24077_s4 + $0x258] sm:$0xf]  ;;  %v15734_v3 = vld [vmem:[%s24077_s4 + $0x2b8] sm:$0xf0] }
 0x189   :  { %v16386_v40 = vpop.eup %16385  ;;  %v2493_v33 = vpop.f32.mrf.mxu2  ;;  %v12771_v61 = vld [vmem:[%s24077_s4 + $0x2bc] sm:$0xf0]  ;;  %v12770_v19 = vor.u32 %v15734_v3, %v12769_v5  ;;  %vm4697_vm7 = vcmask 556032   ;;  %vm6152_vm8 = vcmask 392192  }
 0x18a   :  { %v1822_v11 = vmul.f32 %v16386_v40, %v18948_v1  ;;  %12462 = vmatmul.msk.bf16.gmra.mxu1 %vm2445_vm6, %v18982_v22  ;;  %vm1827_vm15 = vweird.f32 %v16386_v40  ;;  %2746 = vmatpush.bf16.msra.mxu0 %v12428_v27  ;;  %v19049_v1 = vpop.f32.mrf.mxu0 }
 0x18b   :  { %2679 = vmatmul.bf16.vlgmr.msrb.gmra.mxu2 %v17879_v4  ;;  %2698 = vmatpush.bf16.msrb.mxu1 %v12300_v12  ;;  %v15601_v4 = vld [vmem:[%s24076_s3 + $0x1a4] sm:$0xf]  ;;  %vm19038_vm5 = vmor %vm1826_vm1, %vm1827_vm15  ;;  %v24203_v12 = vld [vmem:[#allocation5_spill] sm:$0xff] }
 0x18c   :  { %v1823_v50 = vsub.f32 1.0, %v1822_v11  ;;  %v12284_v56 = vor.u32 %v15601_v4, %v12281_v32  ;;  %v24204_v11 = vld [vmem:[#allocation3_spill] sm:$0xff] }
 0x18e   :  { %v1824_v23 = vmul.f32 %v16386_v40, %v1823_v50  ;;  %2747 = vmatpush.bf16.msra.mxu0 %v12420_v6  ;;  %v24206_v50 = vld [vmem:[#allocation7_spill] sm:$0xff]  ;;  %v15834_v6 = vld [vmem:[%s24077_s4 + $0x5d8] sm:$0xf0] }
 0x18f   :  { %2699 = vmatpush.bf16.msrb.mxu1 %v12292_v42  ;;  %v19068_v16 = vpop.f32.mrf.mxu1 }
 0x190   :  { %v1825_v30 = vadd.f32 %v16386_v40, %v1824_v23 }
 0x191   :  { %2660 = vmatmul.bf16.gmra.mxu0 %v24202_v46  ;;  %v19098_v27 = vpop.f32.mrf.mxu2 }
 0x192   :  { %v1829_v35 = vsel %vm19038_vm5, %v16386_v40, %v1825_v30  ;;  %2748 = vmatpush.bf16.msra.mxu0 %v12412_v26  ;;  %v2469_v39 = vpop.f32.mrf.mxu0  ;;  %v13069_v30 = vld [vmem:[%s24077_s4 + $0x4b0] sm:$0xf]  ;;  %v15759_v26 = vld [vmem:[%s24077_s4 + $0x380] sm:$0xf0] }
 0x193   :  { %v1834_v36 = vsel %vm19042_vm14, %v1833_v20, %v1829_v35  ;;  %2700 = vmatpush.bf16.msrb.mxu1 %v12284_v56  ;;  %v2494_v40 = vadd.f32 %v2493_v33, %v2469_v39  ;;  %v19107_v32 = vpop.f32.mrf.mxu3  ;;  %v13070_v20 = vor.u32 %v15809_v43, %v13069_v30  ;;  %v15784_v56 = vld [vmem:[%s24077_s4 + $0x448] sm:$0xf0]  ;;  %v12974_v35 = vor.u32 %v15772_v2, %v12971_v29  ;;  %v12669_v33 = vld [vmem:[%s24077_s4 + $0x190] sm:$0xf]  ;;  %v13177_v29 = vld [vmem:[%s24077_s4 + $0x580] sm:$0xf] }
 0x194   :  { %2732 = vmatmul.bf16.gmra.mxu3 %v18577_v53  ;;  %v19083_v48 = vpack.c.bf16 %v1834_v36, %v1729_v24  ;;  %v12393_v53 = vld [vmem:[%s24076_s3 + $0x288] sm:$0xf0]  ;;  %v12871_v36 = vld [vmem:[%s24077_s4 + $0x384] sm:$0xf0]  ;;  %v15722_v24 = vld [vmem:[%s24077_s4 + $0x25c] sm:$0xf] }
 0x195   :  { %v12396_v18 = vor.u32 %v15629_v54, %v12393_v53  ;;  %v12774_v54 = vor.u32 %v15722_v24, %v12771_v61 }
 0x196   :  { %2749 = vmatpush.bf16.msra.mxu0 %v12404_v47 }
 0x197   :  { %2701 = vmatpush.bf16.msrb.mxu1 %v12276_v7  ;;  %v12874_v7 = vor.u32 %v15747_v0, %v12871_v36  ;;  %v2537_v0 = vadd.f32 %v19107_v32, %v18990_v15  ;;  %v13077_v15 = vld [vmem:[%s24077_s4 + $0x4b8] sm:$0xf]  ;;  %v15810_v32 = vld [vmem:[%s24077_s4 + $0x518] sm:$0xf0] }
 0x199   :  { %v2498_v57 = vpop.f32.mrf.mxu2 }
 0x19a   :  { %12463 = vmatmul.msk.bf16.gmra.mxu1 %vm2445_vm6, %v19083_v48  ;;  %v2517_v41 = vpop.f32.mrf.mxu1  ;;  %2750 = vmatpush.bf16.msra.mxu0 %v12396_v18  ;;  %v19100_v37 = vpop.f32.mrf.mxu0  ;;  %v15709_v18 = vld [vmem:[%s24077_s4 + $0x1f0] sm:$0xf0] }
 0x19b   :  { %2684 = vmatmul.bf16.gmra.mxu2 %v24203_v12  ;;  %2702 = vmatpush.bf16.msrb.mxu1 %v12268_v9  ;;  %v19094_v8 = vadd.f32 %v2517_v41, %v2494_v40  ;;  %v19116_v23 = vpop.f32.mrf.mxu3  ;;  %v12670_v39 = vor.u32 %v15709_v18, %v12669_v33  ;;  %v12671_v12 = vld [vmem:[%s24077_s4 + $0x1f4] sm:$0xf0]  ;;  %v12569_v40 = vld [vmem:[%s24077_s4 + $0xc8] sm:$0xf]  ;;  %v15684_v41 = vld [vmem:[%s24077_s4 + $0x128] sm:$0xf0] }
 0x19c   :  { %v13079_v33 = vld [vmem:[%s24077_s4 + $0x51c] sm:$0xf0]  ;;  %v12977_v18 = vld [vmem:[%s24077_s4 + $0x3f0] sm:$0xf] }
 0x1a1   :  { %2665 = vmatmul.bf16.gmra.mxu0 %v24204_v11 }
 0x1a2   :  { %v19103_v45 = vpop.f32.mrf.mxu1  ;;  %v2474_v52 = vpop.f32.mrf.mxu0 }
 0x1a3   :  { %v2499_v42 = vadd.f32 %v2498_v57, %v2474_v52  ;;  %v19223_v57 = vpop.f32.mrf.mxu2  ;;  %v12570_v52 = vor.u32 %v15684_v41, %v12569_v40  ;;  %v12979_v40 = vld [vmem:[%s24077_s4 + $0x454] sm:$0xf0] }
 0x1a4   :  { %2737 = vmatmul.bf16.gmra.mxu3 %v18788_v62  ;;  %v24207_v62 = vld [vmem:[#allocation6_spill] sm:$0xff] }
 0x1aa   :  { %2703 = vmatmul.bf16.vlgmr.msrb.gmra.mxu1 %v24205_v60  ;;  %v19114_v17 = vpop.f32.mrf.mxu0  ;;  %v15672_v60 = vld [vmem:[%s24077_s4 + $0xcc] sm:$0xf] }
 0x1ab   :  { %2689 = vmatmul.bf16.gmra.mxu2 %v24206_v50  ;;  %v12571_v50 = vld [vmem:[%s24077_s4 + $0x12c] sm:$0xf0] }
 0x1b0   :  { %v2522_v4 = vpop.f32.mrf.mxu1 }
 0x1b1   :  { %2751 = vmatmul.bf16.vlgmr.msra.gmra.mxu0 %v18444_v51  ;;  %v19109_v59 = vadd.f32 %v2522_v4, %v2499_v42  ;;  %v13169_v51 = vld [vmem:[%s24077_s4 + $0x578] sm:$0xf]  ;;  %v12574_v42 = vor.u32 %v15672_v60, %v12571_v50 }
 0x1b2   :  { %v13170_v13 = vor.u32 %v15834_v6, %v13169_v51  ;;  %v12469_v6 = vld [vmem:[%s24077_s4] sm:$0xf] }
 0x1b4   :  { %4783 = vmatpush.bf16.msra.mxu1 %v13170_v13  ;;  %v15647_v13 = vld [vmem:[%s24077_s4 + $0x4] sm:$0xf] }
 0x1b8   :  { %4784 = vmatpush.bf16.msra.mxu1 %v13070_v20  ;;  %v19195_v53 = vpop.f32.mrf.mxu1 }
 0x1ba   :  { %2708 = vmatmul.bf16.gmra.mxu1 %v24207_v62 }
 0x1bb   :  { %12464 = vmatmul.msk.bf16.vlgmr.msra.gmra.mxu2 %vm2445_vm6, %v18883_v31  ;;  %v13171_v31 = vld [vmem:[%s24077_s4 + $0x5dc] sm:$0xf0] }
 0x1bc   :  { %v13174_v55 = vor.u32 %v15822_v49, %v13171_v31  ;;  %v15659_v49 = vld [vmem:[%s24077_s4 + $0x60] sm:$0xf0] }
 0x1bd   :  { %v12470_v31 = vor.u32 %v15659_v49, %v12469_v6  ;;  %v12877_v49 = vld [vmem:[%s24077_s4 + $0x328] sm:$0xf] }
 0x1be   :  { %4831 = vmatpush.bf16.msrb.mxu0 %v13174_v55  ;;  %v12471_v55 = vld [vmem:[%s24077_s4 + $0x64] sm:$0xf0] }
 0x1bf   :  { %v12474_v30 = vor.u32 %v15647_v13, %v12471_v55  ;;  %v15760_v13 = vld [vmem:[%s24077_s4 + $0x388] sm:$0xf0]  ;;  %v12879_v55 = vld [vmem:[%s24077_s4 + $0x38c] sm:$0xf0] }
 0x1c1   :  { %2756 = vmatmul.bf16.gmra.mxu0 %v18627_v34  ;;  %v19133_v34 = vpop.f32.mrf.mxu3 }
 0x1c6   :  { %v19131_v38 = vpop.f32.mrf.mxu0 }
 0x1c7   :  { %v2561_v5 = vadd.f32 %v19131_v38, %v2537_v0 }
 0x1c9   :  { %v19165_v21 = vpop.f32.mrf.mxu3 }
 0x1ca   :  { %2713 = vmatmul.bf16.gmra.mxu1 %v18352_v44  ;;  %v13071_v44 = vld [vmem:[%s24077_s4 + $0x514] sm:$0xf0] }
 0x1cb   :  { %12465 = vmatmul.msk.bf16.gmra.mxu2 %vm2445_vm6, %v18982_v22  ;;  %v12969_v22 = vld [vmem:[%s24077_s4 + $0x3e8] sm:$0xf]  ;;  %v13074_v46 = vor.u32 %v15797_v10, %v13071_v44 }
 0x1cc   :  { %v12970_v14 = vor.u32 %v15784_v56, %v12969_v22  ;;  %v2491_v56 = vadd.f32 %v19021_v63, %v19049_v1  ;;  %v13179_v63 = vld [vmem:[%s24077_s4 + $0x5e4] sm:$0xf0] }
 0x1cd   :  { %4832 = vmatpush.bf16.msrb.mxu0 %v13074_v46  ;;  %v2584_v62 = vpop.f32.mrf.mxu1 }
 0x1ce   :  { %v19157_v28 = vpop.f32.mrf.mxu0  ;;  %4785 = vmatpush.bf16.msra.mxu1 %v12970_v14  ;;  %v15835_v14 = vld [vmem:[%s24077_s4 + $0x5e0] sm:$0xf0] }
 0x1d1   :  { %2761 = vmatmul.bf16.gmra.mxu0 %v18889_v25  ;;  %v12869_v25 = vld [vmem:[%s24077_s4 + $0x320] sm:$0xf]  ;;  %v19197_v9 = vpop.f32.mrf.mxu3 }
 0x1d2   :  { %4833 = vmatpush.bf16.msrb.mxu0 %v12974_v35  ;;  %v12870_v58 = vor.u32 %v15759_v26, %v12869_v25  ;;  %v15823_v35 = vld [vmem:[%s24077_s4 + $0x584] sm:$0xf]  ;;  %v2515_v25 = vadd.f32 %v19068_v16, %v2491_v56  ;;  %v13178_v26 = vor.u32 %v15835_v14, %v13177_v29  ;;  %v2585_v16 = vadd.f32 %v2584_v62, %v2561_v5 }
 0x1d3   :  { %v13182_v1 = vor.u32 %v15823_v35, %v13179_v63  ;;  %v2542_v29 = vadd.f32 %v19133_v34, %v19094_v8  ;;  %v12677_v34 = vld [vmem:[%s24077_s4 + $0x198] sm:$0xf] }
 0x1d4   :  { %4786 = vmatpush.bf16.msra.mxu1 %v12870_v58  ;;  %v2539_v58 = vadd.f32 %v19116_v23, %v2515_v25  ;;  %v15798_v23 = vld [vmem:[%s24077_s4 + $0x4bc] sm:$0xf] }
 0x1d5   :  { %v2586_v20 = vpop.f32.mrf.mxu1 }
 0x1d6   :  { %4834 = vmatpush.bf16.msrb.mxu0 %v12874_v7  ;;  %v2563_v3 = vadd.f32 %v19157_v28, %v2539_v58 }
 0x1d8   :  { %4787 = vmatpush.bf16.msra.mxu1 %v12770_v19  ;;  %v2587_v7 = vadd.f32 %v2586_v20, %v2563_v3  ;;  %v15735_v20 = vld [vmem:[%s24077_s4 + $0x2c0] sm:$0xf0] }
 0x1d9   :  { %v19227_v51 = vpop.f32.mrf.mxu3 }
 0x1da   :  { %v19193_v47 = vpop.f32.mrf.mxu0  ;;  %4835 = vmatpush.bf16.msrb.mxu0 %v12774_v54  ;;  %v13078_v54 = vor.u32 %v15810_v32, %v13077_v15  ;;  %v15673_v32 = vld [vmem:[%s24077_s4 + $0xd4] sm:$0xf] }
 0x1db   :  { %12466 = vmatmul.msk.bf16.gmra.mxu2 %vm2445_vm6, %v19083_v48  ;;  %v15697_v48 = vld [vmem:[%s24077_s4 + $0x194] sm:$0xf]  ;;  %vm4707_vm6 = vcmask 1041408  }
 0x1dc   :  { %v12674_v11 = vor.u32 %v15697_v48, %v12671_v12  ;;  %4788 = vmatpush.bf16.msra.mxu1 %v12670_v39  ;;  %v15785_v48 = vld [vmem:[%s24077_s4 + $0x450] sm:$0xf0]  ;;  %v13082_v39 = vor.u32 %v15798_v23, %v13079_v33  ;;  %v12579_v23 = vld [vmem:[%s24077_s4 + $0x134] sm:$0xf0]  ;;  %v2501_v33 = vadd.f32 %v19223_v57, %v19114_v17  ;;  %v15660_v17 = vld [vmem:[%s24077_s4 + $0x68] sm:$0xf0] }
 0x1dd   :  { %v15773_v12 = vld [vmem:[%s24077_s4 + $0x3f4] sm:$0xf]  ;;  %v15648_v57 = vld [vmem:[%s24077_s4 + $0xc] sm:$0xf] }
 0x1de   :  { %4836 = vmatpush.bf16.msrb.mxu0 %v12674_v11  ;;  %v12978_v11 = vor.u32 %v15785_v48, %v12977_v18  ;;  %v12982_v60 = vor.u32 %v15773_v12, %v12979_v40  ;;  %v3109_v12 = vld [vmem:[%s24077_s4 + $0x960] sm:$0x33]  ;;  %v12477_v40 = vld [vmem:[%s24077_s4 + $0x8] sm:$0xf] }
 0x1e0   :  { %4789 = vmatpush.bf16.msra.mxu1 %v12570_v52  ;;  %v2496_v52 = vadd.f32 %v19098_v27, %v19100_v37  ;;  %v12878_v37 = vor.u32 %v15760_v13, %v12877_v49  ;;  %v12478_v49 = vor.u32 %v15660_v17, %v12477_v40  ;;  %v13271_v40 = vld [vmem:[%s24077_s4 + $0x6a4] sm:$0xf0]  ;;  %v15824_v17 = vld [vmem:[%s24077_s4 + $0x58c] sm:$0xf] }
 0x1e1   :  { %v19245_v44 = vpop.f32.mrf.mxu3 }
 0x1e2   :  { %v19225_v4 = vpop.f32.mrf.mxu0  ;;  %4837 = vmatpush.bf16.msrb.mxu0 %v12574_v42  ;;  %v2520_v27 = vadd.f32 %v19103_v45, %v2496_v52  ;;  %v12779_v45 = vld [vmem:[%s24077_s4 + $0x2c4] sm:$0xf0]  ;;  %v4048_v52 = vunpack.c.h.b16 %v3109_v12 }
 0x1e4   :  { %4790 = vmatpush.bf16.msra.mxu1 %v12470_v31  ;;  %v15748_v31 = vld [vmem:[%s24077_s4 + $0x32c] sm:$0xf]  ;;  %v2544_v14 = vadd.f32 %v19165_v21, %v2520_v27  ;;  %v15710_v21 = vld [vmem:[%s24077_s4 + $0x1f8] sm:$0xf0] }
 0x1e5   :  { %v12882_v56 = vor.u32 %v15748_v31, %v12879_v55  ;;  %v12678_v3 = vor.u32 %v15710_v21, %v12677_v34  ;;  %v2547_v31 = vadd.f32 %v19197_v9, %v19109_v59 }
 0x1e6   :  { %v19241_v43 = vpop.f32.mrf.mxu2  ;;  %4838 = vmatpush.bf16.msrb.mxu0 %v12474_v30  ;;  %v12777_v30 = vld [vmem:[%s24077_s4 + $0x260] sm:$0xf]  ;;  %v2568_v63 = vadd.f32 %v19225_v4, %v2544_v14 }
 0x1e7   :  { %v12778_v35 = vor.u32 %v15735_v20, %v12777_v30  ;;  %v4373_v30 = vpack.c.b16 %v4048_v52, %v4048_v52  ;;  %v15934_v20 = vld [vmem:[%s24077_s4 + $0x8f8] sm:$0xf0]  ;;  %v15836_v52 = vld [vmem:[%s24077_s4 + $0x5e8] sm:$0xf0] }
 0x1e8   :  { %4879 = vmatpush.bf16.msrb.mxu1 %v13178_v26  ;;  %v2566_v26 = vadd.f32 %v19193_v47, %v2542_v29  ;;  %v15698_v47 = vld [vmem:[%s24077_s4 + $0x19c] sm:$0xf] }
 0x1e9   :  { %v19269_v36 = vpop.f32.mrf.mxu3 }
 0x1ea   :  { %4927 = vmatpush.bf16.msra.mxu0 %v13182_v1  ;;  %v2590_v1 = vadd.f32 %v19241_v43, %v2566_v26 }
 0x1ec   :  { %4880 = vmatpush.bf16.msrb.mxu1 %v13078_v54  ;;  %v12582_v54 = vor.u32 %v15673_v32, %v12579_v23 }
 0x1ee   :  { %v19243_v10 = vpop.f32.mrf.mxu0  ;;  %v19247_v22 = vpop.f32.mrf.mxu2  ;;  %4928 = vmatpush.bf16.msra.mxu0 %v13082_v39 }
 0x1ef   :  { %v2592_v0 = vadd.f32 %v19247_v22, %v2568_v63  ;;  %v2571_v59 = vadd.f32 %v19243_v10, %v2547_v31  ;;  %v13469_v10 = vld [vmem:[%s24077_s4 + $0x7d0] sm:$0xf]  ;;  %v13085_v31 = vld [vmem:[%s24077_s4 + $0x4c0] sm:$0xf] }
 0x1f0   :  { %4881 = vmatpush.bf16.msrb.mxu1 %v12978_v11  ;;  %v2525_v11 = vadd.f32 %v19195_v53, %v2501_v33  ;;  %v13569_v53 = vld [vmem:[%s24077_s4 + $0x898] sm:$0xf]  ;;  %v15859_v33 = vld [vmem:[%s24077_s4 + $0x6a0] sm:$0xf0] }
 0x1f1   :  { %v19305_v50 = vpop.f32.mrf.mxu3  ;;  %v13570_v29 = vor.u32 %v15934_v20, %v13569_v53  ;;  %v13087_v20 = vld [vmem:[%s24077_s4 + $0x524] sm:$0xf0] }
 0x1f2   :  { %4929 = vmatpush.bf16.msra.mxu0 %v12982_v60  ;;  %v4047_v60 = vunpack.c.l.b16 %v3109_v12  ;;  %v2549_v27 = vadd.f32 %v19227_v51, %v2525_v11 }
 0x1f4   :  { %4882 = vmatpush.bf16.msrb.mxu1 %v12878_v37  ;;  %v4372_v55 = vpack.c.b16 %v4047_v60, %v4047_v60  ;;  %v13185_v60 = vld [vmem:[%s24077_s4 + $0x588] sm:$0xf] }
 0x1f6   :  { %v19251_v46 = vpop.f32.mrf.mxu0  ;;  %4930 = vmatpush.bf16.msra.mxu0 %v12882_v56  ;;  %v15922_v56 = vld [vmem:[%s24077_s4 + $0x89c] sm:$0xf]  ;;  %v4709_v51 = vsel %vm4707_vm6, %v4372_v55, 0  ;;  %v15799_v55 = vld [vmem:[%s24077_s4 + $0x4c4] sm:$0xf] }
 0x1f7   :  { %v2608_v2 = vpop.f32.mrf.mxu1  ;;  %v2573_v9 = vadd.f32 %v19251_v46, %v2549_v27  ;;  %4810 = vmatpush.bf16.msrb.mxu3 %v4709_v51  ;;  %v15909_v46 = vld [vmem:[%s24077_s4 + $0x830] sm:$0xf0]  ;;  %v15811_v27 = vld [vmem:[%s24077_s4 + $0x520] sm:$0xf0]  ;;  %v15774_v51 = vld [vmem:[%s24077_s4 + $0x3fc] sm:$0xf] }
 0x1f8   :  { %v2609_v38 = vadd.f32 %v2608_v2, %v2585_v16  ;;  %v15723_v2 = vld [vmem:[%s24077_s4 + $0x264] sm:$0xf]  ;;  %4883 = vmatpush.bf16.msrb.mxu1 %v12778_v35  ;;  %v12679_v16 = vld [vmem:[%s24077_s4 + $0x1fc] sm:$0xf0]  ;;  %v13470_v34 = vor.u32 %v15909_v46, %v13469_v10 }
 0x1f9   :  { %v12782_v25 = vor.u32 %v15723_v2, %v12779_v45  ;;  %v19358_v4 = vpop.f32.mrf.mxu3  ;;  %v12682_v15 = vor.u32 %v15698_v47, %v12679_v16  ;;  %v13571_v2 = vld [vmem:[%s24077_s4 + $0x8fc] sm:$0xf0]  ;;  %v4712_v45 = vsel %vm4707_vm6, %v4373_v30, 0  ;;  %v13369_v47 = vld [vmem:[%s24077_s4 + $0x708] sm:$0xf]  ;;  %v13086_v30 = vor.u32 %v15811_v27, %v13085_v31 }
 0x1fa   :  { %4858 = vmatpush.bf16.msrb.mxu2 %v4712_v45  ;;  %v13574_v14 = vor.u32 %v15922_v56, %v13571_v2  ;;  %v13371_v16 = vld [vmem:[%s24077_s4 + $0x76c] sm:$0xf0]  ;;  %v12985_v56 = vld [vmem:[%s24077_s4 + $0x3f8] sm:$0xf]  ;;  %v15786_v2 = vld [vmem:[%s24077_s4 + $0x458] sm:$0xf0] }
 0x1fb   :  { %4931 = vmatpush.bf16.msra.mxu0 %v12782_v25  ;;  %4811 = vmatpush.bf16.msrb.mxu3 %v13570_v29  ;;  %v12987_v45 = vld [vmem:[%s24077_s4 + $0x45c] sm:$0xf0] }
 0x1fc   :  { %4884 = vmatpush.bf16.msrb.mxu1 %v12678_v3  ;;  %v15872_v3 = vld [vmem:[%s24077_s4 + $0x70c] sm:$0xf] }
 0x1fe   :  { %v19273_v24 = vpop.f32.mrf.mxu2  ;;  %v19275_v61 = vpop.f32.mrf.mxu0  ;;  %4859 = vmatpush.bf16.msrb.mxu2 %v13574_v14  ;;  %v12986_v14 = vor.u32 %v15786_v2, %v12985_v56 }
 0x1ff   :  { %v2610_v19 = vpop.f32.mrf.mxu1  ;;  %4932 = vmatpush.bf16.msra.mxu0 %v12682_v15  ;;  %v2595_v35 = vadd.f32 %v19273_v24, %v2571_v59  ;;  %4812 = vmatpush.bf16.msrb.mxu3 %v13470_v34  ;;  %v13374_v15 = vor.u32 %v15872_v3, %v13371_v16 }
 0x200   :  { %v2611_v28 = vadd.f32 %v2610_v19, %v2587_v7  ;;  %v12577_v7 = vld [vmem:[%s24077_s4 + $0xd0] sm:$0xf]  ;;  %v15685_v19 = vld [vmem:[%s24077_s4 + $0x130] sm:$0xf0] }
 0x201   :  { %v19407_v37 = vpop.f32.mrf.mxu3 }
 0x202   :  { %v19301_v41 = vpack.c.bf16 %v2611_v28, %v2609_v38  ;;  %v12578_v28 = vor.u32 %v15685_v19, %v12577_v7 }
 0x203   :  { %4933 = vmatpush.bf16.msra.mxu0 %v12582_v54  ;;  %v13269_v54 = vld [vmem:[%s24077_s4 + $0x640] sm:$0xf] }
 0x204   :  { %4791 = vmatmul.bf16.vlgmr.msra.gmra.mxu1 %v19301_v41  ;;  %4839 = vmatmul.bf16.vlgmr.msrb.gmra.mxu0 %v19301_v41  ;;  %v13270_v12 = vor.u32 %v15859_v33, %v13269_v54  ;;  %v12685_v33 = vld [vmem:[%s24077_s4 + $0x1a0] sm:$0xf] }
 0x205   :  { %4885 = vmatpush.bf16.msrb.mxu1 %v12578_v28 }
 0x206   :  { %v19309_v42 = vpop.f32.mrf.mxu2  ;;  %v19311_v62 = vpop.f32.mrf.mxu0 }
 0x207   :  { %v2613_v6 = vpop.f32.mrf.mxu1  ;;  %v2597_v25 = vadd.f32 %v19309_v42, %v2573_v9  ;;  %v13471_v42 = vld [vmem:[%s24077_s4 + $0x834] sm:$0xf0]  ;;  %v13090_v9 = vor.u32 %v15799_v55, %v13087_v20  ;;  %v2659_v46 = vadd.f32 %v19311_v62, %v19269_v36 }
 0x208   :  { %v2614_v43 = vadd.f32 %v2613_v6, %v2590_v1  ;;  %v12479_v6 = vld [vmem:[%s24077_s4 + $0x6c] sm:$0xf0] }
 0x209   :  { %v12482_v13 = vor.u32 %v15648_v57, %v12479_v6  ;;  %4886 = vmatpush.bf16.msrb.mxu1 %v12478_v49  ;;  %v19454_v7 = vpop.f32.mrf.mxu3  ;;  %v13186_v57 = vor.u32 %v15836_v52, %v13185_v60  ;;  %v13187_v6 = vld [vmem:[%s24077_s4 + $0x5ec] sm:$0xf0] }
 0x20a   :  { %v13190_v49 = vor.u32 %v15824_v17, %v13187_v6  ;;  %v12585_v17 = vld [vmem:[%s24077_s4 + $0xd8] sm:$0xf]  ;;  %v15686_v6 = vld [vmem:[%s24077_s4 + $0x138] sm:$0xf0] }
 0x20b   :  { %4934 = vmatpush.bf16.msra.mxu0 %v12482_v13 }
 0x20d   :  { %4975 = vmatpush.bf16.msra.mxu1 %v13186_v57 }
 0x20e   :  { %v19345_v58 = vpop.f32.mrf.mxu2  ;;  %v19347_v5 = vpop.f32.mrf.mxu0 }
 0x20f   :  { %v2615_v8 = vpop.f32.mrf.mxu1  ;;  %5023 = vmatpush.bf16.msrb.mxu0 %v13190_v49  ;;  %v15674_v49 = vld [vmem:[%s24077_s4 + $0xdc] sm:$0xf] }
 0x210   :  { %v2616_v22 = vadd.f32 %v2615_v8, %v2592_v0  ;;  %v15897_v0 = vld [vmem:[%s24077_s4 + $0x7d4] sm:$0xf] }
 0x211   :  { %v13474_v21 = vor.u32 %v15897_v0, %v13471_v42  ;;  %v2728_v13 = vpop.f32.mrf.mxu3  ;;  %4976 = vmatpush.bf16.msra.mxu1 %v13086_v30  ;;  %v12885_v0 = vld [vmem:[%s24077_s4 + $0x330] sm:$0xf]  ;;  %v12586_v30 = vor.u32 %v15686_v6, %v12585_v17  ;;  %v15885_v17 = vld [vmem:[%s24077_s4 + $0x770] sm:$0xf0]  ;;  %v13379_v6 = vld [vmem:[%s24077_s4 + $0x774] sm:$0xf0] }
 0x212   :  { %v19375_v38 = vpack.c.bf16 %v2616_v22, %v2614_v43  ;;  %v15884_v22 = vld [vmem:[%s24077_s4 + $0x768] sm:$0xf0] }
 0x213   :  { %4860 = vmatpush.bf16.msrb.mxu2 %v13474_v21  ;;  %v13370_v19 = vor.u32 %v15884_v22, %v13369_v47  ;;  %5024 = vmatpush.bf16.msrb.mxu0 %v13090_v9  ;;  %v12785_v21 = vld [vmem:[%s24077_s4 + $0x268] sm:$0xf]  ;;  %v15736_v47 = vld [vmem:[%s24077_s4 + $0x2c8] sm:$0xf0] }
 0x214   :  { %4796 = vmatmul.bf16.gmra.mxu1 %v19375_v38  ;;  %4844 = vmatmul.bf16.gmra.mxu0 %v19375_v38  ;;  %v12786_v16 = vor.u32 %v15736_v47, %v12785_v21 }
 0x215   :  { %4813 = vmatpush.bf16.msrb.mxu3 %v13370_v19  ;;  %4977 = vmatpush.bf16.msra.mxu1 %v12986_v14  ;;  %v3110_v14 = vld [vmem:[%s24077_s4 + $0x968] sm:$0x33] }
 0x216   :  { %v19381_v18 = vpop.f32.mrf.mxu2  ;;  %v19383_v48 = vpop.f32.mrf.mxu0 }
 0x217   :  { %v2618_v39 = vpop.f32.mrf.mxu1  ;;  %4861 = vmatpush.bf16.msrb.mxu2 %v13374_v15  ;;  %v2683_v36 = vadd.f32 %v19381_v18, %v2659_v46  ;;  %v12787_v18 = vld [vmem:[%s24077_s4 + $0x2cc] sm:$0xf0] }
 0x218   :  { %v2619_v24 = vadd.f32 %v2618_v39, %v2595_v35  ;;  %v15847_v39 = vld [vmem:[%s24077_s4 + $0x644] sm:$0xf]  ;;  %v12990_v35 = vor.u32 %v15774_v51, %v12987_v45  ;;  %v2662_v45 = vadd.f32 %v19347_v5, %v19305_v50  ;;  %v4049_v50 = vunpack.c.l.b16 %v3110_v14 }
 0x219   :  { %v13274_v11 = vor.u32 %v15847_v39, %v13271_v40  ;;  %4814 = vmatpush.bf16.msrb.mxu3 %v13270_v12  ;;  %v2730_v10 = vpop.f32.mrf.mxu3  ;;  %v15711_v39 = vld [vmem:[%s24077_s4 + $0x200] sm:$0xf0]  ;;  %v12687_v40 = vld [vmem:[%s24077_s4 + $0x204] sm:$0xf0]  ;;  %v4050_v5 = vunpack.c.h.b16 %v3110_v14 }
 0x21a   :  { %5025 = vmatpush.bf16.msrb.mxu0 %v12990_v35  ;;  %v12686_v60 = vor.u32 %v15711_v39, %v12685_v33  ;;  %v12485_v35 = vld [vmem:[%s24077_s4 + $0x10] sm:$0xf]  ;;  %v13479_v33 = vld [vmem:[%s24077_s4 + $0x83c] sm:$0xf0] }
 0x21b   :  { %4862 = vmatpush.bf16.msrb.mxu2 %v13274_v11 }
 0x21e   :  { %v19424_v26 = vpop.f32.mrf.mxu2  ;;  %v19426_v63 = vpop.f32.mrf.mxu0 }
 0x21f   :  { %v2620_v1 = vpop.f32.mrf.mxu1  ;;  %v2686_v46 = vadd.f32 %v19424_v26, %v2662_v45  ;;  %v15935_v26 = vld [vmem:[%s24077_s4 + $0x900] sm:$0xf0]  ;;  %v15848_v45 = vld [vmem:[%s24077_s4 + $0x64c] sm:$0xf] }
 0x220   :  { %v2621_v8 = vadd.f32 %v2620_v1, %v2597_v25  ;;  %v2657_v1 = vadd.f32 %v19275_v61, %v19245_v44  ;;  %v12887_v44 = vld [vmem:[%s24077_s4 + $0x394] sm:$0xf0] }
 0x221   :  { %v2733_v57 = vpop.f32.mrf.mxu3 }
 0x222   :  { %v19443_v43 = vpack.c.bf16 %v2621_v8, %v2619_v24  ;;  %v15761_v24 = vld [vmem:[%s24077_s4 + $0x390] sm:$0xf0]  ;;  %v2681_v42 = vadd.f32 %v19345_v58, %v2657_v1  ;;  %v15724_v58 = vld [vmem:[%s24077_s4 + $0x26c] sm:$0xf] }
 0x223   :  { %v15749_v8 = vld [vmem:[%s24077_s4 + $0x334] sm:$0xf]  ;;  %v12886_v34 = vor.u32 %v15761_v24, %v12885_v0  ;;  %v12790_v15 = vor.u32 %v15724_v58, %v12787_v18  ;;  %v13477_v18 = vld [vmem:[%s24077_s4 + $0x7d8] sm:$0xf] }
 0x224   :  { %4801 = vmatmul.bf16.gmra.mxu1 %v19443_v43  ;;  %4849 = vmatmul.bf16.gmra.mxu0 %v19443_v43  ;;  %v12890_v62 = vor.u32 %v15749_v8, %v12887_v44  ;;  %v15661_v1 = vld [vmem:[%s24077_s4 + $0x70] sm:$0xf0]  ;;  %v13577_v8 = vld [vmem:[%s24077_s4 + $0x8a0] sm:$0xf]  ;;  %v4375_v44 = vpack.c.b16 %v4050_v5, %v4050_v5  ;;  %v13195_v5 = vld [vmem:[%s24077_s4 + $0x5f4] sm:$0xf0] }
 0x225   :  { %4978 = vmatpush.bf16.msra.mxu1 %v12886_v34  ;;  %v4374_v34 = vpack.c.b16 %v4049_v50, %v4049_v50 }
 0x226   :  { %v19458_v32 = vpop.f32.mrf.mxu2  ;;  %v19460_v23 = vpop.f32.mrf.mxu0  ;;  %5026 = vmatpush.bf16.msrb.mxu0 %v12890_v62  ;;  %v4718_v58 = vsel %vm4707_vm6, %v4375_v44, 0 }
 0x227   :  { %v2704_v28 = vpop.f32.mrf.mxu1  ;;  %v4715_v47 = vsel %vm4707_vm6, %v4374_v34, 0  ;;  %4954 = vmatpush.bf16.msra.mxu2 %v4718_v58 }
 0x228   :  { %v2705_v22 = vadd.f32 %v2704_v28, %v2681_v42  ;;  %v15699_v28 = vld [vmem:[%s24077_s4 + $0x1a4] sm:$0xf]  ;;  %4906 = vmatpush.bf16.msra.mxu3 %v4715_v47 }
 0x229   :  { %4979 = vmatpush.bf16.msra.mxu1 %v12786_v16  ;;  %v12690_v52 = vor.u32 %v15699_v28, %v12687_v40  ;;  %v2735_v42 = vpop.f32.mrf.mxu3 }
 0x22a   :  { %v2729_v12 = vadd.f32 %v2728_v13, %v2705_v22  ;;  %5027 = vmatpush.bf16.msrb.mxu0 %v12790_v15  ;;  %v12587_v13 = vld [vmem:[%s24077_s4 + $0x13c] sm:$0xf0]  ;;  %v13578_v22 = vor.u32 %v15935_v26, %v13577_v8  ;;  %v13095_v8 = vld [vmem:[%s24077_s4 + $0x52c] sm:$0xf0] }
 0x22b   :  { %v12590_v20 = vor.u32 %v15674_v49, %v12587_v13  ;;  %v12993_v26 = vld [vmem:[%s24077_s4 + $0x400] sm:$0xf] }
 0x22c   :  { %4907 = vmatpush.bf16.msra.mxu3 %v13578_v22 }
 0x22d   :  { %4980 = vmatpush.bf16.msra.mxu1 %v12686_v60 }
 0x22e   :  { %v19486_v53 = vpop.f32.mrf.mxu2  ;;  %v2752_v59 = vpop.f32.mrf.mxu0  ;;  %5028 = vmatpush.bf16.msrb.mxu0 %v12690_v52 }
 0x22f   :  { %v2706_v29 = vpop.f32.mrf.mxu1  ;;  %v2753_v31 = vadd.f32 %v2752_v59, %v2729_v12  ;;  %v2664_v59 = vadd.f32 %v19383_v48, %v19358_v4  ;;  %v15649_v4 = vld [vmem:[%s24077_s4 + $0x14] sm:$0xf]  ;;  %v12487_v48 = vld [vmem:[%s24077_s4 + $0x74] sm:$0xf0] }
 0x230   :  { %v2707_v19 = vadd.f32 %v2706_v29, %v2683_v36  ;;  %v12490_v24 = vor.u32 %v15649_v4, %v12487_v48  ;;  %v13579_v36 = vld [vmem:[%s24077_s4 + $0x904] sm:$0xf0]  ;;  %v15812_v4 = vld [vmem:[%s24077_s4 + $0x528] sm:$0xf0] }
 0x231   :  { %4981 = vmatpush.bf16.msra.mxu1 %v12586_v30  ;;  %v2688_v0 = vadd.f32 %v19458_v32, %v2664_v59  ;;  %v15923_v32 = vld [vmem:[%s24077_s4 + $0x8a4] sm:$0xf]  ;;  %v2738_v49 = vpop.f32.mrf.mxu3  ;;  %v13279_v59 = vld [vmem:[%s24077_s4 + $0x6ac] sm:$0xf0] }
 0x232   :  { %v2731_v11 = vadd.f32 %v2730_v10, %v2707_v19  ;;  %5029 = vmatpush.bf16.msrb.mxu0 %v12590_v20  ;;  %v12486_v10 = vor.u32 %v15661_v1, %v12485_v35  ;;  %v13582_v16 = vor.u32 %v15923_v32, %v13579_v36  ;;  %v13277_v20 = vld [vmem:[%s24077_s4 + $0x648] sm:$0xf]  ;;  %v13282_v1 = vor.u32 %v15848_v45, %v13279_v59  ;;  %v15787_v32 = vld [vmem:[%s24077_s4 + $0x460] sm:$0xf0] }
 0x233   :  { %v12994_v58 = vor.u32 %v15787_v32, %v12993_v26  ;;  %v15911_v26 = vld [vmem:[%s24077_s4 + $0x840] sm:$0xf0] }
 0x234   :  { %4887 = vmatmul.bf16.vlgmr.msrb.gmra.mxu1 %v19301_v41  ;;  %4935 = vmatmul.bf16.vlgmr.msra.gmra.mxu0 %v19301_v41 }
 0x235   :  { %4982 = vmatpush.bf16.msra.mxu1 %v12486_v10  ;;  %4955 = vmatpush.bf16.msra.mxu2 %v13582_v16  ;;  %v13093_v10 = vld [vmem:[%s24077_s4 + $0x4c8] sm:$0xf]  ;;  %v12893_v16 = vld [vmem:[%s24077_s4 + $0x338] sm:$0xf] }
 0x236   :  { %v19514_v25 = vpop.f32.mrf.mxu2  ;;  %v2754_v61 = vpop.f32.mrf.mxu0  ;;  %5030 = vmatpush.bf16.msrb.mxu0 %v12490_v24  ;;  %v15800_v24 = vld [vmem:[%s24077_s4 + $0x4cc] sm:$0xf]  ;;  %v13094_v34 = vor.u32 %v15812_v4, %v13093_v10  ;;  %v15650_v4 = vld [vmem:[%s24077_s4 + $0x1c] sm:$0xf] }
 0x237   :  { %v2709_v3 = vpop.f32.mrf.mxu1  ;;  %v2755_v27 = vadd.f32 %v2754_v61, %v2731_v11  ;;  %v13377_v11 = vld [vmem:[%s24077_s4 + $0x710] sm:$0xf]  ;;  %v13098_v44 = vor.u32 %v15800_v24, %v13095_v8  ;;  %v15936_v24 = vld [vmem:[%s24077_s4 + $0x908] sm:$0xf0] }
 0x238   :  { %v2710_v61 = vadd.f32 %v2709_v3, %v2686_v46  ;;  %v15910_v3 = vld [vmem:[%s24077_s4 + $0x838] sm:$0xf0]  ;;  %v15924_v8 = vld [vmem:[%s24077_s4 + $0x8ac] sm:$0xf] }
 0x239   :  { %v13478_v12 = vor.u32 %v15910_v3, %v13477_v18  ;;  %v2740_v36 = vpop.f32.mrf.mxu3  ;;  %v15762_v18 = vld [vmem:[%s24077_s4 + $0x398] sm:$0xf0] }
 0x23a   :  { %v2734_v39 = vadd.f32 %v2733_v57, %v2710_v61  ;;  %v15873_v57 = vld [vmem:[%s24077_s4 + $0x714] sm:$0xf]  ;;  %v15775_v61 = vld [vmem:[%s24077_s4 + $0x404] sm:$0xf] }
 0x23b   :  { %4908 = vmatpush.bf16.msra.mxu3 %v13478_v12  ;;  %v13382_v30 = vor.u32 %v15873_v57, %v13379_v6  ;;  %v15725_v57 = vld [vmem:[%s24077_s4 + $0x274] sm:$0xf] }
 0x23e   :  { %v2776_v54 = vpop.f32.mrf.mxu2  ;;  %v2757_v55 = vpop.f32.mrf.mxu0 }
 0x23f   :  { %v2711_v2 = vpop.f32.mrf.mxu1  ;;  %v2777_v9 = vadd.f32 %v2776_v54, %v2753_v31  ;;  %v15898_v54 = vld [vmem:[%s24077_s4 + $0x7dc] sm:$0xf]  ;;  %v2758_v60 = vadd.f32 %v2757_v55, %v2734_v39  ;;  %v13378_v55 = vor.u32 %v15885_v17, %v13377_v11  ;;  %v15737_v17 = vld [vmem:[%s24077_s4 + $0x2d0] sm:$0xf0] }
 0x240   :  { %v2712_v62 = vadd.f32 %v2711_v2, %v2688_v0  ;;  %v13482_v40 = vor.u32 %v15898_v54, %v13479_v33  ;;  %v2669_v2 = vadd.f32 %v19460_v23, %v19454_v7  ;;  %v13193_v7 = vld [vmem:[%s24077_s4 + $0x590] sm:$0xf]  ;;  %v15837_v23 = vld [vmem:[%s24077_s4 + $0x5f0] sm:$0xf0]  ;;  %v15750_v54 = vld [vmem:[%s24077_s4 + $0x33c] sm:$0xf] }
 0x241   :  { %4909 = vmatpush.bf16.msra.mxu3 %v13378_v55  ;;  %v13194_v50 = vor.u32 %v15837_v23, %v13193_v7  ;;  %v12895_v33 = vld [vmem:[%s24077_s4 + $0x39c] sm:$0xf0] }
 0x242   :  { %v2736_v28 = vadd.f32 %v2735_v42, %v2712_v62  ;;  %4956 = vmatpush.bf16.msra.mxu2 %v13482_v40  ;;  %v12995_v62 = vld [vmem:[%s24077_s4 + $0x464] sm:$0xf0]  ;;  %v12898_v11 = vor.u32 %v15750_v54, %v12895_v33  ;;  %v13285_v54 = vld [vmem:[%s24077_s4 + $0x650] sm:$0xf]  ;;  %v15861_v33 = vld [vmem:[%s24077_s4 + $0x6b0] sm:$0xf0] }
 0x243   :  { %5071 = vmatpush.bf16.msrb.mxu1 %v13194_v50  ;;  %v12998_v22 = vor.u32 %v15775_v61, %v12995_v62  ;;  %v13487_v61 = vld [vmem:[%s24077_s4 + $0x844] sm:$0xf0] }
 0x244   :  { %4892 = vmatmul.bf16.gmra.mxu1 %v19375_v38  ;;  %4940 = vmatmul.bf16.gmra.mxu0 %v19375_v38 }
 0x246   :  { %v2778_v56 = vpop.f32.mrf.mxu2  ;;  %v2759_v19 = vpop.f32.mrf.mxu0  ;;  %4957 = vmatpush.bf16.msra.mxu2 %v13382_v30  ;;  %v15700_v30 = vld [vmem:[%s24077_s4 + $0x1ac] sm:$0xf] }
 0x247   :  { %v2779_v51 = vadd.f32 %v2778_v56, %v2755_v27  ;;  %v2714_v15 = vpop.f32.mrf.mxu1  ;;  %v2760_v52 = vadd.f32 %v2759_v19, %v2736_v28  ;;  %v2667_v56 = vadd.f32 %v19426_v63, %v19407_v37  ;;  %v2693_v63 = vadd.f32 %v19514_v25, %v2669_v2  ;;  %5072 = vmatpush.bf16.msrb.mxu1 %v13094_v34  ;;  %v15687_v2 = vld [vmem:[%s24077_s4 + $0x140] sm:$0xf0]  ;;  %v13587_v34 = vld [vmem:[%s24077_s4 + $0x90c] sm:$0xf0] }
 0x248   :  { %v12894_v28 = vor.u32 %v15762_v18, %v12893_v16  ;;  %v13590_v32 = vor.u32 %v15924_v8, %v13587_v34  ;;  %v13387_v16 = vld [vmem:[%s24077_s4 + $0x77c] sm:$0xf0]  ;;  %v15713_v34 = vld [vmem:[%s24077_s4 + $0x210] sm:$0xf0] }
 0x249   :  { %v19576_v29 = vpack.c.bf16 %v2779_v51, %v2777_v9  ;;  %v15860_v51 = vld [vmem:[%s24077_s4 + $0x6a8] sm:$0xf0]  ;;  %v2691_v37 = vadd.f32 %v19486_v53, %v2667_v56  ;;  %v15825_v53 = vld [vmem:[%s24077_s4 + $0x594] sm:$0xf]  ;;  %v12593_v56 = vld [vmem:[%s24077_s4 + $0xe0] sm:$0xf] }
 0x24a   :  { %v13278_v25 = vor.u32 %v15860_v51, %v13277_v20  ;;  %v13198_v0 = vor.u32 %v15825_v53, %v13195_v5  ;;  %4958 = vmatpush.bf16.msra.mxu2 %v13282_v1  ;;  %v12695_v20 = vld [vmem:[%s24077_s4 + $0x20c] sm:$0xf0]  ;;  %v12493_v53 = vld [vmem:[%s24077_s4 + $0x18] sm:$0xf]  ;;  %v12803_v8 = vld [vmem:[%s24077_s4 + $0x2dc] sm:$0xf0] }
 0x24b   :  { %13667 = vmatmul.msk.bf16.vlgmr.msrb.gmra.mxu3 %vm4697_vm7, %v19576_v29  ;;  %13670 = vmatmul.msk.bf16.vlgmr.msrb.gmra.mxu2 %vm4697_vm7, %v19576_v29  ;;  %v2715_v48 = vadd.f32 %v2714_v15, %v2691_v37  ;;  %v3111_v51 = vld [vmem:[%s24077_s4 + $0x970] sm:$0x33]  ;;  %v15675_v37 = vld [vmem:[%s24077_s4 + $0xe4] sm:$0xf] }
 0x24c   :  { %5119 = vmatpush.bf16.msra.mxu0 %v13198_v0  ;;  %4910 = vmatpush.bf16.msra.mxu3 %v13278_v25  ;;  %v4051_v45 = vunpack.c.l.b16 %v3111_v51  ;;  %v4052_v59 = vunpack.c.h.b16 %v3111_v51  ;;  %v15662_v25 = vld [vmem:[%s24077_s4 + $0x78] sm:$0xf0]  ;;  %v13585_v0 = vld [vmem:[%s24077_s4 + $0x8a8] sm:$0xf] }
 0x24d   :  { %5073 = vmatpush.bf16.msrb.mxu1 %v12994_v58  ;;  %v12494_v10 = vor.u32 %v15662_v25, %v12493_v53  ;;  %v15886_v58 = vld [vmem:[%s24077_s4 + $0x778] sm:$0xf0]  ;;  %v13001_v51 = vld [vmem:[%s24077_s4 + $0x408] sm:$0xf]  ;;  %v15763_v53 = vld [vmem:[%s24077_s4 + $0x3a0] sm:$0xf0] }
 0x24e   :  { %v2781_v21 = vpop.f32.mrf.mxu2  ;;  %v2762_v14 = vpop.f32.mrf.mxu0  ;;  %v4376_v7 = vpack.c.b16 %v4051_v45, %v4051_v45  ;;  %v4377_v23 = vpack.c.b16 %v4052_v59, %v4052_v59  ;;  %v15788_v45 = vld [vmem:[%s24077_s4 + $0x468] sm:$0xf0]  ;;  %v15751_v25 = vld [vmem:[%s24077_s4 + $0x344] sm:$0xf] }
 0x24f   :  { %v2782_v31 = vadd.f32 %v2781_v21, %v2758_v60  ;;  %v2716_v35 = vpop.f32.mrf.mxu1  ;;  %v2739_v21 = vadd.f32 %v2738_v49, %v2715_v48  ;;  %v12795_v49 = vld [vmem:[%s24077_s4 + $0x2d4] sm:$0xf0]  ;;  %v12495_v48 = vld [vmem:[%s24077_s4 + $0x7c] sm:$0xf0]  ;;  %v15776_v59 = vld [vmem:[%s24077_s4 + $0x40c] sm:$0xf] }
 0x250   :  { %v2717_v46 = vadd.f32 %v2716_v35, %v2693_v63  ;;  %5120 = vmatpush.bf16.msra.mxu0 %v13098_v44  ;;  %v12594_v35 = vor.u32 %v15687_v2, %v12593_v56  ;;  %v12595_v63 = vld [vmem:[%s24077_s4 + $0x144] sm:$0xf0]  ;;  %v4721_v1 = vsel %vm4707_vm6, %v4376_v7, 0  ;;  %v4724_v50 = vsel %vm4707_vm6, %v4377_v23, 0  ;;  %v13485_v44 = vld [vmem:[%s24077_s4 + $0x7e0] sm:$0xf] }
 0x251   :  { %v2763_v15 = vadd.f32 %v2762_v14, %v2739_v21  ;;  %5074 = vmatpush.bf16.msrb.mxu1 %v12894_v28  ;;  %v12698_v14 = vor.u32 %v15700_v30, %v12695_v20  ;;  %v12598_v5 = vor.u32 %v15675_v37, %v12595_v63  ;;  %5002 = vmatpush.bf16.msrb.mxu3 %v4721_v1  ;;  %v13287_v28 = vld [vmem:[%s24077_s4 + $0x6b4] sm:$0xf0]  ;;  %v15801_v30 = vld [vmem:[%s24077_s4 + $0x4d4] sm:$0xf]  ;;  %v12901_v23 = vld [vmem:[%s24077_s4 + $0x340] sm:$0xf] }
 0x252   :  { %v2741_v47 = vadd.f32 %v2740_v36, %v2717_v46  ;;  %5050 = vmatpush.bf16.msrb.mxu2 %v4724_v50  ;;  %v12498_v46 = vor.u32 %v15650_v4, %v12495_v48  ;;  %v15899_v36 = vld [vmem:[%s24077_s4 + $0x7e4] sm:$0xf]  ;;  %v13486_v62 = vor.u32 %v15911_v26, %v13485_v44  ;;  %v13103_v20 = vld [vmem:[%s24077_s4 + $0x534] sm:$0xf0]  ;;  %v13002_v63 = vor.u32 %v15788_v45, %v13001_v51  ;;  %v12903_v1 = vld [vmem:[%s24077_s4 + $0x3a4] sm:$0xf0] }
 0x253   :  { %v13490_v21 = vor.u32 %v15899_v36, %v13487_v61  ;;  %v13106_v2 = vor.u32 %v15801_v30, %v13103_v20  ;;  %v12902_v50 = vor.u32 %v15763_v53, %v12901_v23  ;;  %v12801_v48 = vld [vmem:[%s24077_s4 + $0x278] sm:$0xf]  ;;  %v12601_v61 = vld [vmem:[%s24077_s4 + $0xe8] sm:$0xf]  ;;  %v13593_v20 = vld [vmem:[%s24077_s4 + $0x8b0] sm:$0xf] }
 0x254   :  { %4897 = vmatmul.bf16.gmra.mxu1 %v19443_v43  ;;  %4945 = vmatmul.bf16.gmra.mxu0 %v19443_v43  ;;  %v12703_v36 = vld [vmem:[%s24077_s4 + $0x214] sm:$0xf0]  ;;  %v15912_v23 = vld [vmem:[%s24077_s4 + $0x848] sm:$0xf0] }
 0x255   :  { %5121 = vmatpush.bf16.msra.mxu0 %v12998_v22  ;;  %v15874_v22 = vld [vmem:[%s24077_s4 + $0x71c] sm:$0xf]  ;;  %v13595_v45 = vld [vmem:[%s24077_s4 + $0x914] sm:$0xf0]  ;;  %v15900_v53 = vld [vmem:[%s24077_s4 + $0x7ec] sm:$0xf] }
 0x256   :  { %v2783_v13 = vpop.f32.mrf.mxu2  ;;  %v2764_v19 = vpop.f32.mrf.mxu0  ;;  %5051 = vmatpush.bf16.msrb.mxu2 %v13590_v32  ;;  %v15701_v32 = vld [vmem:[%s24077_s4 + $0x1b4] sm:$0xf] }
 0x257   :  { %v2784_v27 = vadd.f32 %v2783_v13, %v2760_v52  ;;  %v2765_v3 = vadd.f32 %v2764_v19, %v2741_v47  ;;  %v12793_v52 = vld [vmem:[%s24077_s4 + $0x270] sm:$0xf]  ;;  %v12693_v13 = vld [vmem:[%s24077_s4 + $0x1a8] sm:$0xf]  ;;  %v13385_v47 = vld [vmem:[%s24077_s4 + $0x718] sm:$0xf] }
 0x258   :  { %v12794_v6 = vor.u32 %v15737_v17, %v12793_v52  ;;  %v13201_v17 = vld [vmem:[%s24077_s4 + $0x598] sm:$0xf] }
 0x259   :  { %v19646_v9 = vpack.c.bf16 %v2784_v27, %v2782_v31  ;;  %5122 = vmatpush.bf16.msra.mxu0 %v12898_v11  ;;  %v15712_v31 = vld [vmem:[%s24077_s4 + $0x208] sm:$0xf0]  ;;  %v12798_v27 = vor.u32 %v15725_v57, %v12795_v49  ;;  %v15838_v57 = vld [vmem:[%s24077_s4 + $0x5f8] sm:$0xf0] }
 0x25a   :  { %5075 = vmatpush.bf16.msrb.mxu1 %v12794_v6  ;;  %v12694_v55 = vor.u32 %v15712_v31, %v12693_v13  ;;  %5052 = vmatpush.bf16.msrb.mxu2 %v13490_v21  ;;  %v15826_v6 = vld [vmem:[%s24077_s4 + $0x59c] sm:$0xf]  ;;  %v13202_v49 = vor.u32 %v15838_v57, %v13201_v17  ;;  %v13203_v13 = vld [vmem:[%s24077_s4 + $0x5fc] sm:$0xf0]  ;;  %v13101_v31 = vld [vmem:[%s24077_s4 + $0x4d0] sm:$0xf] }
 0x25b   :  { %13668 = vmatmul.msk.bf16.gmra.mxu3 %vm4697_vm7, %v19646_v9  ;;  %13671 = vmatmul.msk.bf16.gmra.mxu2 %vm4697_vm7, %v19646_v9  ;;  %v3112_v21 = vld [vmem:[%s24077_s4 + $0x978] sm:$0x33] }
 0x25d   :  { %5123 = vmatpush.bf16.msra.mxu0 %v12798_v27  ;;  %v15813_v27 = vld [vmem:[%s24077_s4 + $0x530] sm:$0xf0] }
 0x25e   :  { %v2786_v42 = vpop.f32.mrf.mxu2  ;;  %5076 = vmatpush.bf16.msrb.mxu1 %v12694_v55  ;;  %v13206_v55 = vor.u32 %v15826_v6, %v13203_v13  ;;  %v13102_v56 = vor.u32 %v15813_v27, %v13101_v31  ;;  %v15651_v13 = vld [vmem:[%s24077_s4 + $0x24] sm:$0xf]  ;;  %v12503_v31 = vld [vmem:[%s24077_s4 + $0x84] sm:$0xf0] }
 0x25f   :  { %v2787_v12 = vadd.f32 %v2786_v42, %v2763_v15  ;;  %v13586_v42 = vor.u32 %v15936_v24, %v13585_v0  ;;  %v13386_v15 = vor.u32 %v15886_v58, %v13385_v47  ;;  %v15726_v0 = vld [vmem:[%s24077_s4 + $0x27c] sm:$0xf]  ;;  %v4053_v47 = vunpack.c.l.b16 %v3112_v21 }
 0x260   :  { %v12806_v44 = vor.u32 %v15726_v0, %v12803_v8  ;;  %v4054_v58 = vunpack.c.h.b16 %v3112_v21  ;;  %v12506_v30 = vor.u32 %v15651_v13, %v12503_v31  ;;  %v13395_v0 = vld [vmem:[%s24077_s4 + $0x784] sm:$0xf0]  ;;  %v15839_v21 = vld [vmem:[%s24077_s4 + $0x600] sm:$0xf0]  ;;  %v15777_v31 = vld [vmem:[%s24077_s4 + $0x414] sm:$0xf] }
 0x261   :  { %5124 = vmatpush.bf16.msra.mxu0 %v12698_v14  ;;  %5003 = vmatpush.bf16.msrb.mxu3 %v13586_v42  ;;  %v13003_v14 = vld [vmem:[%s24077_s4 + $0x46c] sm:$0xf0] }
 0x262   :  { %5077 = vmatpush.bf16.msrb.mxu1 %v12594_v35  ;;  %v13006_v7 = vor.u32 %v15776_v59, %v13003_v14  ;;  %v12701_v42 = vld [vmem:[%s24077_s4 + $0x1b0] sm:$0xf] }
 0x263   :  { %v12702_v26 = vor.u32 %v15713_v34, %v12701_v42 }
 0x264   :  { %4983 = vmatmul.bf16.vlgmr.msra.gmra.mxu1 %v19301_v41  ;;  %5031 = vmatmul.bf16.vlgmr.msrb.gmra.mxu0 %v19301_v41 }
 0x265   :  { %5125 = vmatpush.bf16.msra.mxu0 %v12598_v5  ;;  %5004 = vmatpush.bf16.msrb.mxu3 %v13486_v62  ;;  %v12906_v5 = vor.u32 %v15751_v25, %v12903_v1  ;;  %v15688_v62 = vld [vmem:[%s24077_s4 + $0x148] sm:$0xf0]  ;;  %v13495_v1 = vld [vmem:[%s24077_s4 + $0x84c] sm:$0xf0] }
 0x266   :  { %v2788_v39 = vpop.f32.mrf.mxu2  ;;  %5078 = vmatpush.bf16.msrb.mxu1 %v12494_v10 }
 0x267   :  { %v2789_v40 = vadd.f32 %v2788_v39, %v2765_v3  ;;  %v13390_v3 = vor.u32 %v15874_v22, %v13387_v16  ;;  %v15849_v39 = vld [vmem:[%s24077_s4 + $0x654] sm:$0xf] }
 0x269   :  { %v19713_v60 = vpack.c.bf16 %v2789_v40, %v2787_v12  ;;  %5126 = vmatpush.bf16.msra.mxu0 %v12498_v46  ;;  %5005 = vmatpush.bf16.msrb.mxu3 %v13386_v15  ;;  %v13286_v12 = vor.u32 %v15861_v33, %v13285_v54  ;;  %v13290_v40 = vor.u32 %v15849_v39, %v13287_v28  ;;  %v15738_v46 = vld [vmem:[%s24077_s4 + $0x2d8] sm:$0xf0]  ;;  %v15676_v54 = vld [vmem:[%s24077_s4 + $0xec] sm:$0xf]  ;;  %v12603_v33 = vld [vmem:[%s24077_s4 + $0x14c] sm:$0xf0] }
 0x26a   :  { %5053 = vmatpush.bf16.msrb.mxu2 %v13390_v3  ;;  %5167 = vmatpush.bf16.msra.mxu1 %v13202_v49  ;;  %v12802_v24 = vor.u32 %v15738_v46, %v12801_v48  ;;  %v12706_v15 = vor.u32 %v15701_v32, %v12703_v36  ;;  %v12602_v3 = vor.u32 %v15688_v62, %v12601_v61  ;;  %v15875_v46 = vld [vmem:[%s24077_s4 + $0x724] sm:$0xf]  ;;  %v15850_v32 = vld [vmem:[%s24077_s4 + $0x65c] sm:$0xf]  ;;  %v13295_v61 = vld [vmem:[%s24077_s4 + $0x6bc] sm:$0xf0] }
 0x26b   :  { %13669 = vmatmul.msk.bf16.gmra.mxu3 %vm4697_vm7, %v19713_v60  ;;  %13672 = vmatmul.msk.bf16.gmra.mxu2 %vm4697_vm7, %v19713_v60  ;;  %v4378_v39 = vpack.c.b16 %v4053_v47, %v4053_v47  ;;  %v4379_v28 = vpack.c.b16 %v4054_v58, %v4054_v58  ;;  %v12606_v6 = vor.u32 %v15676_v54, %v12603_v33  ;;  %v13209_v62 = vld [vmem:[%s24077_s4 + $0x5a0] sm:$0xf] }
 0x26c   :  { %v13498_v48 = vor.u32 %v15900_v53, %v13495_v1  ;;  %v13398_v8 = vor.u32 %v15875_v46, %v13395_v0  ;;  %v13298_v47 = vor.u32 %v15850_v32, %v13295_v61  ;;  %v13210_v58 = vor.u32 %v15839_v21, %v13209_v62  ;;  %v12911_v53 = vld [vmem:[%s24077_s4 + $0x3ac] sm:$0xf0]  ;;  %v15739_v1 = vld [vmem:[%s24077_s4 + $0x2e0] sm:$0xf0]  ;;  %v12709_v62 = vld [vmem:[%s24077_s4 + $0x1b8] sm:$0xf] }
 0x26d   :  { %5006 = vmatpush.bf16.msrb.mxu3 %v13286_v12  ;;  %5215 = vmatpush.bf16.msrb.mxu0 %v13206_v55  ;;  %v12501_v12 = vld [vmem:[%s24077_s4 + $0x20] sm:$0xf]  ;;  %v4727_v17 = vsel %vm4707_vm6, %v4378_v39, 0  ;;  %v4730_v57 = vsel %vm4707_vm6, %v4379_v28, 0  ;;  %v13109_v28 = vld [vmem:[%s24077_s4 + $0x4d8] sm:$0xf] }
 0x26e   :  { %5054 = vmatpush.bf16.msrb.mxu2 %v13290_v40  ;;  %5168 = vmatpush.bf16.msra.mxu1 %v13102_v56  ;;  %v15663_v40 = vld [vmem:[%s24077_s4 + $0x80] sm:$0xf0]  ;;  %v15937_v56 = vld [vmem:[%s24077_s4 + $0x910] sm:$0xf0]  ;;  %v15714_v21 = vld [vmem:[%s24077_s4 + $0x218] sm:$0xf0] }
 0x26f   :  { %v12502_v49 = vor.u32 %v15663_v40, %v12501_v12  ;;  %v13594_v51 = vor.u32 %v15937_v56, %v13593_v20  ;;  %v15814_v12 = vld [vmem:[%s24077_s4 + $0x538] sm:$0xf0]  ;;  %v15727_v0 = vld [vmem:[%s24077_s4 + $0x284] sm:$0xf] }
 0x270   :  { %v15802_v40 = vld [vmem:[%s24077_s4 + $0x4dc] sm:$0xf] }
 0x271   :  { %5216 = vmatpush.bf16.msrb.mxu0 %v13106_v2  ;;  %v15925_v2 = vld [vmem:[%s24077_s4 + $0x8b4] sm:$0xf] }
 0x272   :  { %5169 = vmatpush.bf16.msra.mxu1 %v13002_v63  ;;  %v13598_v59 = vor.u32 %v15925_v2, %v13595_v45  ;;  %v12909_v45 = vld [vmem:[%s24077_s4 + $0x348] sm:$0xf] }
 0x274   :  { %4988 = vmatmul.bf16.gmra.mxu1 %v19375_v38  ;;  %5036 = vmatmul.bf16.gmra.mxu0 %v19375_v38 }
 0x275   :  { %5217 = vmatpush.bf16.msrb.mxu0 %v13006_v7  ;;  %v13493_v7 = vld [vmem:[%s24077_s4 + $0x7e8] sm:$0xf] }
 0x276   :  { %5170 = vmatpush.bf16.msra.mxu1 %v12902_v50  ;;  %v13494_v25 = vor.u32 %v15912_v23, %v13493_v7  ;;  %v13393_v50 = vld [vmem:[%s24077_s4 + $0x720] sm:$0xf]  ;;  %v15752_v7 = vld [vmem:[%s24077_s4 + $0x34c] sm:$0xf] }
 0x279   :  { %5218 = vmatpush.bf16.msrb.mxu0 %v12906_v5  ;;  %v15887_v5 = vld [vmem:[%s24077_s4 + $0x780] sm:$0xf0] }
 0x27a   :  { %5171 = vmatpush.bf16.msra.mxu1 %v12802_v24  ;;  %v13394_v24 = vor.u32 %v15887_v5, %v13393_v50  ;;  %v12914_v50 = vor.u32 %v15752_v7, %v12911_v53  ;;  %v15664_v7 = vld [vmem:[%s24077_s4 + $0x88] sm:$0xf0] }
 0x27b   :  { %13673 = vmatmul.msk.bf16.vlgmr.msra.gmra.mxu3 %vm4697_vm7, %v19576_v29  ;;  %13676 = vmatmul.msk.bf16.vlgmr.msra.gmra.mxu2 %vm4697_vm7, %v19576_v29 }
 0x27c   :  { %5098 = vmatpush.bf16.msra.mxu3 %v4727_v17  ;;  %5146 = vmatpush.bf16.msra.mxu2 %v4730_v57  ;;  %v13110_v17 = vor.u32 %v15814_v12, %v13109_v28  ;;  %v13111_v57 = vld [vmem:[%s24077_s4 + $0x53c] sm:$0xf0] }
 0x27d   :  { %5219 = vmatpush.bf16.msrb.mxu0 %v12806_v44  ;;  %v13293_v44 = vld [vmem:[%s24077_s4 + $0x658] sm:$0xf]  ;;  %v13114_v13 = vor.u32 %v15802_v40, %v13111_v57  ;;  %v15677_v40 = vld [vmem:[%s24077_s4 + $0xf4] sm:$0xf] }
 0x27e   :  { %5172 = vmatpush.bf16.msra.mxu1 %v12702_v26  ;;  %v15862_v26 = vld [vmem:[%s24077_s4 + $0x6b8] sm:$0xf0] }
 0x27f   :  { %v13294_v36 = vor.u32 %v15862_v26, %v13293_v44 }
 0x280   :  { %5099 = vmatpush.bf16.msra.mxu3 %v13594_v51  ;;  %5147 = vmatpush.bf16.msra.mxu2 %v13598_v59  ;;  %v15764_v59 = vld [vmem:[%s24077_s4 + $0x3a8] sm:$0xf0] }
 0x281   :  { %v19814_v18 = vpop.f32.mrf.mxu1  ;;  %v19816_v19 = vpop.f32.mrf.mxu0  ;;  %5220 = vmatpush.bf16.msrb.mxu0 %v12706_v15  ;;  %v15827_v15 = vld [vmem:[%s24077_s4 + $0x5a4] sm:$0xf]  ;;  %v12910_v23 = vor.u32 %v15764_v59, %v12909_v45 }
 0x282   :  { %5173 = vmatpush.bf16.msra.mxu1 %v12602_v3  ;;  %v13211_v3 = vld [vmem:[%s24077_s4 + $0x604] sm:$0xf0] }
 0x283   :  { %v13214_v54 = vor.u32 %v15827_v15, %v13211_v3  ;;  %v15689_v15 = vld [vmem:[%s24077_s4 + $0x150] sm:$0xf0] }
 0x284   :  { %4993 = vmatmul.bf16.gmra.mxu1 %v19443_v43  ;;  %5041 = vmatmul.bf16.gmra.mxu0 %v19443_v43 }
 0x285   :  { %5221 = vmatpush.bf16.msrb.mxu0 %v12606_v6  ;;  %5100 = vmatpush.bf16.msra.mxu3 %v13494_v25  ;;  %v13009_v6 = vld [vmem:[%s24077_s4 + $0x410] sm:$0xf]  ;;  %v12809_v25 = vld [vmem:[%s24077_s4 + $0x280] sm:$0xf] }
 0x286   :  { %5174 = vmatpush.bf16.msra.mxu1 %v12502_v49  ;;  %5148 = vmatpush.bf16.msra.mxu2 %v13498_v48  ;;  %v15789_v49 = vld [vmem:[%s24077_s4 + $0x470] sm:$0xf0]  ;;  %v12810_v46 = vor.u32 %v15739_v1, %v12809_v25  ;;  %v15652_v1 = vld [vmem:[%s24077_s4 + $0x2c] sm:$0xf] }
 0x287   :  { %v13010_v20 = vor.u32 %v15789_v49, %v13009_v6 }
 0x289   :  { %v19832_v11 = vpop.f32.mrf.mxu1  ;;  %v19834_v52 = vpop.f32.mrf.mxu0  ;;  %5222 = vmatpush.bf16.msrb.mxu0 %v12506_v30  ;;  %5101 = vmatpush.bf16.msra.mxu3 %v13394_v24  ;;  %v13011_v30 = vld [vmem:[%s24077_s4 + $0x474] sm:$0xf0]  ;;  %v12811_v24 = vld [vmem:[%s24077_s4 + $0x2e4] sm:$0xf0] }
 0x28a   :  { %5149 = vmatpush.bf16.msra.mxu2 %v13398_v8  ;;  %v13014_v56 = vor.u32 %v15777_v31, %v13011_v30  ;;  %v12814_v61 = vor.u32 %v15727_v0, %v12811_v24 }
 0x28b   :  { %13674 = vmatmul.msk.bf16.gmra.mxu3 %vm4697_vm7, %v19646_v9  ;;  %13677 = vmatmul.msk.bf16.gmra.mxu2 %vm4697_vm7, %v19646_v9 }
 0x28d   :  { %5102 = vmatpush.bf16.msra.mxu3 %v13294_v36 }
 0x28e   :  { %5150 = vmatpush.bf16.msra.mxu2 %v13298_v47  ;;  %v12711_v47 = vld [vmem:[%s24077_s4 + $0x21c] sm:$0xf0] }
 0x291   :  { %v19876_v35 = vpop.f32.mrf.mxu1  ;;  %v19878_v37 = vpop.f32.mrf.mxu0 }
 0x294   :  { %5079 = vmatmul.bf16.vlgmr.msrb.gmra.mxu1 %v19301_v41  ;;  %5127 = vmatmul.bf16.vlgmr.msra.gmra.mxu0 %v19301_v41 }
 0x295   :  { %5263 = vmatpush.bf16.msrb.mxu1 %v13210_v58  ;;  %5311 = vmatpush.bf16.msra.mxu0 %v13214_v54  ;;  %v12609_v58 = vld [vmem:[%s24077_s4 + $0xf0] sm:$0xf] }
 0x296   :  { %v12610_v12 = vor.u32 %v15689_v15, %v12609_v58 }
 0x299   :  { %v19894_v10 = vpop.f32.mrf.mxu1  ;;  %v19896_v4 = vpop.f32.mrf.mxu0  ;;  %5264 = vmatpush.bf16.msrb.mxu1 %v13110_v17  ;;  %5312 = vmatpush.bf16.msra.mxu0 %v13114_v13  ;;  %v12611_v17 = vld [vmem:[%s24077_s4 + $0x154] sm:$0xf0] }
 0x29a   :  { %v12614_v30 = vor.u32 %v15677_v40, %v12611_v17  ;;  %v15901_v40 = vld [vmem:[%s24077_s4 + $0x7f4] sm:$0xf]  ;;  %v13503_v17 = vld [vmem:[%s24077_s4 + $0x854] sm:$0xf0] }
 0x29b   :  { %13675 = vmatmul.msk.bf16.gmra.mxu3 %vm4697_vm7, %v19713_v60  ;;  %13678 = vmatmul.msk.bf16.gmra.mxu2 %vm4697_vm7, %v19713_v60 }
 0x29d   :  { %5265 = vmatpush.bf16.msrb.mxu1 %v13010_v20  ;;  %5313 = vmatpush.bf16.msra.mxu0 %v13014_v56 }
 0x2a1   :  { %v19935_v22 = vpop.f32.mrf.mxu1  ;;  %v19937_v16 = vpop.f32.mrf.mxu0  ;;  %5266 = vmatpush.bf16.msrb.mxu1 %v12910_v23  ;;  %5314 = vmatpush.bf16.msra.mxu0 %v12914_v50  ;;  %v12511_v50 = vld [vmem:[%s24077_s4 + $0x8c] sm:$0xf0] }
 0x2a4   :  { %5084 = vmatmul.bf16.gmra.mxu1 %v19375_v38  ;;  %5132 = vmatmul.bf16.gmra.mxu0 %v19375_v38 }
 0x2a5   :  { %5267 = vmatpush.bf16.msrb.mxu1 %v12810_v46  ;;  %5315 = vmatpush.bf16.msra.mxu0 %v12814_v61  ;;  %v15938_v61 = vld [vmem:[%s24077_s4 + $0x918] sm:$0xf0] }
 0x2a9   :  { %v19961_v27 = vpop.f32.mrf.mxu1  ;;  %v19963_v55 = vpop.f32.mrf.mxu0 }
 0x2ab   :  { %13679 = vmatmul.msk.bf16.vlgmr.msrb.gmra.mxu3 %vm4697_vm7, %v19576_v29  ;;  %13682 = vmatmul.msk.bf16.vlgmr.msrb.gmra.mxu2 %vm4697_vm7, %v19576_v29 }
 0x2b1   :  { %v19981_v14 = vpop.f32.mrf.mxu1  ;;  %v19983_v63 = vpop.f32.mrf.mxu0 }
 0x2b4   :  { %5089 = vmatmul.bf16.gmra.mxu1 %v19443_v43  ;;  %5137 = vmatmul.bf16.gmra.mxu0 %v19443_v43 }
 0x2b9   :  { %v20011_v42 = vpop.f32.mrf.mxu1  ;;  %v20013_v34 = vpop.f32.mrf.mxu0 }
 0x2bb   :  { %13680 = vmatmul.msk.bf16.gmra.mxu3 %vm4697_vm7, %v19646_v9  ;;  %13683 = vmatmul.msk.bf16.gmra.mxu2 %vm4697_vm7, %v19646_v9 }
 0x2c1   :  { %v20043_v33 = vpop.f32.mrf.mxu1  ;;  %v20045_v39 = vpop.f32.mrf.mxu0 }
 0x2c4   :  { %5175 = vmatmul.bf16.vlgmr.msra.gmra.mxu1 %v19301_v41  ;;  %5223 = vmatmul.bf16.vlgmr.msrb.gmra.mxu0 %v19301_v41 }
 0x2c9   :  { %v20073_v2 = vpop.f32.mrf.mxu1  ;;  %v20075_v51 = vpop.f32.mrf.mxu0 }
 0x2cb   :  { %13681 = vmatmul.msk.bf16.gmra.mxu3 %vm4697_vm7, %v19713_v60  ;;  %13684 = vmatmul.msk.bf16.gmra.mxu2 %vm4697_vm7, %v19713_v60 }
 0x2ce   :  { %v4816_v5 = vpop.f32.mrf.mxu3  ;;  %v4864_v48 = vpop.f32.mrf.mxu2 }
 0x2cf   :  { %v4817_v8 = vadd.f32 %v4816_v5, %v19814_v18  ;;  %v4865_v44 = vadd.f32 %v4864_v48, %v19816_v19  ;;  %v15702_v18 = vld [vmem:[%s24077_s4 + $0x1bc] sm:$0xf]  ;;  %v12710_v19 = vor.u32 %v15714_v21, %v12709_v62  ;;  %v13601_v5 = vld [vmem:[%s24077_s4 + $0x8b8] sm:$0xf]  ;;  %v13603_v21 = vld [vmem:[%s24077_s4 + $0x91c] sm:$0xf0] }
 0x2d0   :  { %v12714_v3 = vor.u32 %v15702_v18, %v12711_v47  ;;  %v15926_v62 = vld [vmem:[%s24077_s4 + $0x8bc] sm:$0xf] }
 0x2d1   :  { %v5983_v26 = vpack.c.bf16 %v4865_v44, %v4817_v8  ;;  %v20107_v32 = vpop.f32.mrf.mxu1  ;;  %v20109_v36 = vpop.f32.mrf.mxu0  ;;  %5268 = vmatpush.bf16.msrb.mxu1 %v12710_v19 }
 0x2d2   :  { %5316 = vmatpush.bf16.msra.mxu0 %v12714_v3 }
 0x2d3   :  { %v6140_v20 = vunpack.c.h.b16 %v5983_v26  ;;  %v6266_v56 = vunpack.c.l.b16 %v5983_v26  ;;  %v12514_v26 = vor.u32 %v15652_v1, %v12511_v50 }
 0x2d4   :  { %5180 = vmatmul.bf16.gmra.mxu1 %v19375_v38  ;;  %5228 = vmatmul.bf16.gmra.mxu0 %v19375_v38 }
 0x2d5   :  { %5269 = vmatpush.bf16.msrb.mxu1 %v12610_v12  ;;  %v13606_v12 = vor.u32 %v15926_v62, %v13603_v21  ;;  %v15840_v62 = vld [vmem:[%s24077_s4 + $0x608] sm:$0xf0] }
 0x2d6   :  { %v4818_v54 = vpop.f32.mrf.mxu3  ;;  %v4866_v28 = vpop.f32.mrf.mxu2  ;;  %5317 = vmatpush.bf16.msra.mxu0 %v12614_v30 }
 0x2d7   :  { %v4819_v57 = vadd.f32 %v4818_v54, %v19832_v11  ;;  %v4867_v6 = vadd.f32 %v4866_v28, %v19834_v52  ;;  %v3113_v11 = vld [vmem:[%s24077_s4 + $0x980] sm:$0x33]  ;;  %v12509_v52 = vld [vmem:[%s24077_s4 + $0x28] sm:$0xf]  ;;  %v13602_v28 = vor.u32 %v15938_v61, %v13601_v5 }
 0x2d8   :  { %v4055_v23 = vunpack.c.l.b16 %v3113_v11  ;;  %v4056_v53 = vunpack.c.h.b16 %v3113_v11  ;;  %v12510_v25 = vor.u32 %v15664_v7, %v12509_v52  ;;  %v13217_v61 = vld [vmem:[%s24077_s4 + $0x5a8] sm:$0xf] }
 0x2d9   :  { %v5996_v49 = vpack.c.bf16 %v4867_v6, %v4819_v57  ;;  %v20139_v13 = vpop.f32.mrf.mxu1  ;;  %v20141_v31 = vpop.f32.mrf.mxu0  ;;  %v13506_v6 = vor.u32 %v15901_v40, %v13503_v17 }
 0x2da   :  { %v4380_v8 = vpack.c.b16 %v4055_v23, %v4055_v23  ;;  %v4381_v44 = vpack.c.b16 %v4056_v53, %v4056_v53  ;;  %5270 = vmatpush.bf16.msrb.mxu1 %v12510_v25  ;;  %5318 = vmatpush.bf16.msra.mxu0 %v12514_v26  ;;  %v13303_v26 = vld [vmem:[%s24077_s4 + $0x6c4] sm:$0xf0] }
 0x2db   :  { %v6141_v45 = vunpack.c.h.b16 %v5996_v49  ;;  %v6267_v59 = vunpack.c.l.b16 %v5996_v49  ;;  %13685 = vmatmul.msk.bf16.vlgmr.msra.gmra.mxu3 %vm4697_vm7, %v19576_v29  ;;  %13688 = vmatmul.msk.bf16.vlgmr.msra.gmra.mxu2 %vm4697_vm7, %v19576_v29  ;;  %v13401_v49 = vld [vmem:[%s24077_s4 + $0x728] sm:$0xf] }
 0x2dc   :  { %v4733_v47 = vsel %vm4707_vm6, %v4380_v8, 0  ;;  %v4736_v58 = vsel %vm4707_vm6, %v4381_v44, 0 }
 0x2dd   :  { %v20165_v48 = vpack.c.b16 %v6141_v45, %v6140_v20  ;;  %v20167_v46 = vpack.c.b16 %v6267_v59, %v6266_v56  ;;  %5194 = vmatpush.bf16.msrb.mxu3 %v4733_v47  ;;  %5242 = vmatpush.bf16.msrb.mxu2 %v4736_v58  ;;  %v15888_v56 = vld [vmem:[%s24077_s4 + $0x788] sm:$0xf0]  ;;  %v13403_v59 = vld [vmem:[%s24077_s4 + $0x78c] sm:$0xf0] }
 0x2de   :  { %v4821_v0 = vpop.f32.mrf.mxu3  ;;  %v4869_v24 = vpop.f32.mrf.mxu2  ;;  %v15876_v45 = vld [vmem:[%s24077_s4 + $0x72c] sm:$0xf]  ;;  %v13402_v25 = vor.u32 %v15888_v56, %v13401_v49  ;;  %v13219_v47 = vld [vmem:[%s24077_s4 + $0x60c] sm:$0xf0]  ;;  %v13117_v49 = vld [vmem:[%s24077_s4 + $0x4e0] sm:$0xf] }
 0x2df   :  { %v4822_v18 = vadd.f32 %v4821_v0, %v19876_v35  ;;  %v4870_v19 = vadd.f32 %v4869_v24, %v19878_v37  ;;  %v13501_v35 = vld [vmem:[%s24077_s4 + $0x7f0] sm:$0xf]  ;;  %v15913_v37 = vld [vmem:[%s24077_s4 + $0x850] sm:$0xf0]  ;;  %v13406_v1 = vor.u32 %v15876_v45, %v13403_v59  ;;  %v15851_v24 = vld [vmem:[%s24077_s4 + $0x664] sm:$0xf] }
 0x2e0   :  { %v13502_v57 = vor.u32 %v15913_v37, %v13501_v35  ;;  %v13306_v21 = vor.u32 %v15851_v24, %v13303_v26  ;;  %v13017_v56 = vld [vmem:[%s24077_s4 + $0x418] sm:$0xf]  ;;  %v15790_v45 = vld [vmem:[%s24077_s4 + $0x478] sm:$0xf0] }
 0x2e1   :  { %v6009_v15 = vpack.c.bf16 %v4870_v19, %v4822_v18  ;;  %v20182_v3 = vpop.f32.mrf.mxu1  ;;  %v20184_v54 = vpop.f32.mrf.mxu0  ;;  %5195 = vmatpush.bf16.msrb.mxu3 %v13602_v28  ;;  %5243 = vmatpush.bf16.msrb.mxu2 %v13606_v12  ;;  %v13218_v18 = vor.u32 %v15840_v62, %v13217_v61  ;;  %v15828_v19 = vld [vmem:[%s24077_s4 + $0x5ac] sm:$0xf]  ;;  %v15753_v62 = vld [vmem:[%s24077_s4 + $0x354] sm:$0xf] }
 0x2e2   :  { %v13222_v12 = vor.u32 %v15828_v19, %v13219_v47  ;;  %v12817_v19 = vld [vmem:[%s24077_s4 + $0x288] sm:$0xf]  ;;  %v15740_v47 = vld [vmem:[%s24077_s4 + $0x2e8] sm:$0xf0] }
 0x2e3   :  { %v6142_v50 = vunpack.c.h.b16 %v6009_v15  ;;  %v6268_v8 = vunpack.c.l.b16 %v6009_v15  ;;  %5359 = vmatpush.bf16.msra.mxu1 %v13218_v18  ;;  %v12919_v18 = vld [vmem:[%s24077_s4 + $0x3b4] sm:$0xf0] }
 0x2e4   :  { %5185 = vmatmul.bf16.gmra.mxu1 %v19443_v43  ;;  %5233 = vmatmul.bf16.gmra.mxu0 %v19443_v43 }
 0x2e5   :  { %5196 = vmatpush.bf16.msrb.mxu3 %v13502_v57  ;;  %5244 = vmatpush.bf16.msrb.mxu2 %v13506_v6 }
 0x2e6   :  { %v4823_v30 = vpop.f32.mrf.mxu3  ;;  %v4871_v20 = vpop.f32.mrf.mxu2  ;;  %5407 = vmatpush.bf16.msrb.mxu0 %v13222_v12 }
 0x2e7   :  { %v4824_v11 = vadd.f32 %v4823_v30, %v19894_v10  ;;  %v4872_v52 = vadd.f32 %v4871_v20, %v19896_v4  ;;  %v13301_v10 = vld [vmem:[%s24077_s4 + $0x660] sm:$0xf]  ;;  %v15863_v4 = vld [vmem:[%s24077_s4 + $0x6c0] sm:$0xf0]  ;;  %v13119_v20 = vld [vmem:[%s24077_s4 + $0x544] sm:$0xf0] }
 0x2e8   :  { %v13302_v44 = vor.u32 %v15863_v4, %v13301_v10  ;;  %v15815_v30 = vld [vmem:[%s24077_s4 + $0x540] sm:$0xf0] }
 0x2e9   :  { %v6022_v7 = vpack.c.bf16 %v4872_v52, %v4824_v11  ;;  %v20214_v23 = vpop.f32.mrf.mxu1  ;;  %v20216_v53 = vpop.f32.mrf.mxu0  ;;  %5197 = vmatpush.bf16.msrb.mxu3 %v13402_v25  ;;  %5245 = vmatpush.bf16.msrb.mxu2 %v13406_v1  ;;  %v15778_v11 = vld [vmem:[%s24077_s4 + $0x41c] sm:$0xf]  ;;  %v13019_v52 = vld [vmem:[%s24077_s4 + $0x47c] sm:$0xf0]  ;;  %v13018_v1 = vor.u32 %v15790_v45, %v13017_v56 }
 0x2eb   :  { %v6143_v5 = vunpack.c.h.b16 %v6022_v7  ;;  %v6269_v0 = vunpack.c.l.b16 %v6022_v7  ;;  %13686 = vmatmul.msk.bf16.gmra.mxu3 %vm4697_vm7, %v19646_v9  ;;  %13689 = vmatmul.msk.bf16.gmra.mxu2 %vm4697_vm7, %v19646_v9 }
 0x2ed   :  { %v20246_v58 = vpack.c.b16 %v6143_v5, %v6142_v50  ;;  %v20248_v35 = vpack.c.b16 %v6269_v0, %v6268_v8  ;;  %5198 = vmatpush.bf16.msrb.mxu3 %v13302_v44  ;;  %5246 = vmatpush.bf16.msrb.mxu2 %v13306_v21  ;;  %v13022_v0 = vor.u32 %v15778_v11, %v13019_v52  ;;  %v12717_v11 = vld [vmem:[%s24077_s4 + $0x1c0] sm:$0xf]  ;;  %v15715_v52 = vld [vmem:[%s24077_s4 + $0x220] sm:$0xf0] }
 0x2ee   :  { %v4826_v15 = vpop.f32.mrf.mxu3  ;;  %v4874_v28 = vpop.f32.mrf.mxu2 }
 0x2ef   :  { %v4827_v37 = vadd.f32 %v4826_v15, %v19935_v22  ;;  %v4875_v40 = vadd.f32 %v4874_v28, %v19937_v16  ;;  %v15803_v22 = vld [vmem:[%s24077_s4 + $0x4e4] sm:$0xf]  ;;  %v13118_v16 = vor.u32 %v15815_v30, %v13117_v49  ;;  %v12922_v15 = vor.u32 %v15753_v62, %v12919_v18  ;;  %v15728_v49 = vld [vmem:[%s24077_s4 + $0x28c] sm:$0xf]  ;;  %v12819_v30 = vld [vmem:[%s24077_s4 + $0x2ec] sm:$0xf0] }
 0x2f0   :  { %v13122_v59 = vor.u32 %v15803_v22, %v13119_v20 }
 0x2f1   :  { %v6035_v17 = vpack.c.bf16 %v4875_v40, %v4827_v37  ;;  %v20252_v57 = vpop.f32.mrf.mxu1  ;;  %v20254_v6 = vpop.f32.mrf.mxu0  ;;  %5360 = vmatpush.bf16.msra.mxu1 %v13118_v16 }
 0x2f2   :  { %5408 = vmatpush.bf16.msrb.mxu0 %v13122_v59  ;;  %v12822_v59 = vor.u32 %v15728_v49, %v12819_v30  ;;  %v15653_v30 = vld [vmem:[%s24077_s4 + $0x34] sm:$0xf] }
 0x2f3   :  { %v6144_v8 = vunpack.c.h.b16 %v6035_v17  ;;  %v6270_v44 = vunpack.c.l.b16 %v6035_v17  ;;  %v12818_v17 = vor.u32 %v15740_v47, %v12817_v19 }
 0x2f4   :  { %5271 = vmatmul.bf16.vlgmr.msrb.gmra.mxu1 %v19301_v41  ;;  %5319 = vmatmul.bf16.vlgmr.msra.gmra.mxu0 %v19301_v41 }
 0x2f5   :  { %5361 = vmatpush.bf16.msra.mxu1 %v13018_v1  ;;  %v15690_v1 = vld [vmem:[%s24077_s4 + $0x158] sm:$0xf0] }
 0x2f6   :  { %v4828_v7 = vpop.f32.mrf.mxu3  ;;  %v4876_v25 = vpop.f32.mrf.mxu2  ;;  %5409 = vmatpush.bf16.msrb.mxu0 %v13022_v0 }
 0x2f7   :  { %v4829_v50 = vadd.f32 %v4828_v7, %v19961_v27  ;;  %v4877_v5 = vadd.f32 %v4876_v25, %v19963_v55  ;;  %v12917_v27 = vld [vmem:[%s24077_s4 + $0x350] sm:$0xf]  ;;  %v15765_v55 = vld [vmem:[%s24077_s4 + $0x3b0] sm:$0xf0]  ;;  %v12719_v7 = vld [vmem:[%s24077_s4 + $0x224] sm:$0xf0] }
 0x2f8   :  { %v12918_v21 = vor.u32 %v15765_v55, %v12917_v27  ;;  %v12617_v25 = vld [vmem:[%s24077_s4 + $0xf8] sm:$0xf] }
 0x2f9   :  { %v6048_v10 = vpack.c.bf16 %v4877_v5, %v4829_v50  ;;  %v20284_v4 = vpop.f32.mrf.mxu1  ;;  %v20286_v24 = vpop.f32.mrf.mxu0 }
 0x2fa   :  { %5362 = vmatpush.bf16.msra.mxu1 %v12918_v21  ;;  %5410 = vmatpush.bf16.msrb.mxu0 %v12922_v15 }
 0x2fb   :  { %v6145_v26 = vunpack.c.h.b16 %v6048_v10  ;;  %v6271_v61 = vunpack.c.l.b16 %v6048_v10  ;;  %13687 = vmatmul.msk.bf16.gmra.mxu3 %vm4697_vm7, %v19713_v60  ;;  %13690 = vmatmul.msk.bf16.gmra.mxu2 %vm4697_vm7, %v19713_v60  ;;  %v12618_v10 = vor.u32 %v15690_v1, %v12617_v25  ;;  %v15939_v25 = vld [vmem:[%s24077_s4 + $0x920] sm:$0xf0] }
 0x2fc   :  { %v15927_v1 = vld [vmem:[%s24077_s4 + $0x8c4] sm:$0xf] }
 0x2fd   :  { %v20310_v28 = vpack.c.b16 %v6145_v26, %v6144_v8  ;;  %v20312_v12 = vpack.c.b16 %v6271_v61, %v6270_v44  ;;  %v15678_v8 = vld [vmem:[%s24077_s4 + $0xfc] sm:$0xf]  ;;  %v12619_v44 = vld [vmem:[%s24077_s4 + $0x15c] sm:$0xf0] }
 0x2fe   :  { %v4912_v37 = vpop.f32.mrf.mxu3  ;;  %v4960_v40 = vpop.f32.mrf.mxu2  ;;  %5363 = vmatpush.bf16.msra.mxu1 %v12818_v17  ;;  %5411 = vmatpush.bf16.msrb.mxu0 %v12822_v59  ;;  %v12622_v21 = vor.u32 %v15678_v8, %v12619_v44 }
 0x2ff   :  { %v4913_v22 = vadd.f32 %v4912_v37, %v19981_v14  ;;  %v4961_v16 = vadd.f32 %v4960_v40, %v19983_v63  ;;  %v15703_v14 = vld [vmem:[%s24077_s4 + $0x1c4] sm:$0xf]  ;;  %v12718_v63 = vor.u32 %v15715_v52, %v12717_v11  ;;  %v15665_v37 = vld [vmem:[%s24077_s4 + $0x90] sm:$0xf0] }
 0x300   :  { %v12722_v50 = vor.u32 %v15703_v14, %v12719_v7 }
 0x301   :  { %v5984_v20 = vpack.c.bf16 %v4961_v16, %v4913_v22  ;;  %v20322_v56 = vpop.f32.mrf.mxu1  ;;  %v20324_v45 = vpop.f32.mrf.mxu0  ;;  %v12519_v22 = vld [vmem:[%s24077_s4 + $0x94] sm:$0xf0]  ;;  %v13609_v16 = vld [vmem:[%s24077_s4 + $0x8c0] sm:$0xf] }
 0x302   :  { %5364 = vmatpush.bf16.msra.mxu1 %v12718_v63  ;;  %5412 = vmatpush.bf16.msrb.mxu0 %v12722_v50  ;;  %v12522_v7 = vor.u32 %v15653_v30, %v12519_v22  ;;  %v13611_v50 = vld [vmem:[%s24077_s4 + $0x924] sm:$0xf0] }
 0x303   :  { %v6414_v18 = vunpack.c.l.b16 %v5984_v20  ;;  %v6572_v19 = vunpack.c.h.b16 %v5984_v20 }
 0x304   :  { %5276 = vmatmul.bf16.gmra.mxu1 %v19375_v38  ;;  %5324 = vmatmul.bf16.gmra.mxu0 %v19375_v38 }
 0x306   :  { %v4914_v5 = vpop.f32.mrf.mxu3  ;;  %v4962_v0 = vpop.f32.mrf.mxu2  ;;  %5365 = vmatpush.bf16.msra.mxu1 %v12618_v10  ;;  %5413 = vmatpush.bf16.msrb.mxu0 %v12622_v21  ;;  %v13614_v21 = vor.u32 %v15927_v1, %v13611_v50  ;;  %v15852_v50 = vld [vmem:[%s24077_s4 + $0x66c] sm:$0xf] }
 0x307   :  { %v4915_v26 = vadd.f32 %v4914_v5, %v20011_v42  ;;  %v4963_v61 = vadd.f32 %v4962_v0, %v20013_v34  ;;  %v3114_v42 = vld [vmem:[%s24077_s4 + $0x988] sm:$0x33]  ;;  %v12517_v34 = vld [vmem:[%s24077_s4 + $0x30] sm:$0xf] }
 0x308   :  { %v4057_v40 = vunpack.c.l.b16 %v3114_v42  ;;  %v4058_v17 = vunpack.c.h.b16 %v3114_v42  ;;  %v12518_v49 = vor.u32 %v15665_v37, %v12517_v34  ;;  %v13409_v42 = vld [vmem:[%s24077_s4 + $0x730] sm:$0xf] }
 0x309   :  { %v5997_v27 = vpack.c.bf16 %v4963_v61, %v4915_v26  ;;  %v20354_v55 = vpop.f32.mrf.mxu1  ;;  %v20356_v62 = vpop.f32.mrf.mxu0 }
 0x30a   :  { %v4382_v14 = vpack.c.b16 %v4057_v40, %v4057_v40  ;;  %v4383_v63 = vpack.c.b16 %v4058_v17, %v4058_v17  ;;  %5366 = vmatpush.bf16.msra.mxu1 %v12518_v49  ;;  %5414 = vmatpush.bf16.msrb.mxu0 %v12522_v7  ;;  %v15889_v40 = vld [vmem:[%s24077_s4 + $0x790] sm:$0xf0]  ;;  %v13411_v49 = vld [vmem:[%s24077_s4 + $0x794] sm:$0xf0] }
 0x30b   :  { %v6415_v47 = vunpack.c.l.b16 %v5997_v27  ;;  %v6573_v15 = vunpack.c.h.b16 %v5997_v27  ;;  %13691 = vmatmul.msk.bf16.vlgmr.msrb.gmra.mxu3 %vm4697_vm7, %v19576_v29  ;;  %13694 = vmatmul.msk.bf16.vlgmr.msrb.gmra.mxu2 %vm4697_vm7, %v19576_v29  ;;  %v13610_v27 = vor.u32 %v15939_v25, %v13609_v16  ;;  %v15877_v17 = vld [vmem:[%s24077_s4 + $0x734] sm:$0xf] }
 0x30c   :  { %v4739_v10 = vsel %vm4707_vm6, %v4382_v14, 0  ;;  %v4742_v8 = vsel %vm4707_vm6, %v4383_v63, 0  ;;  %v13410_v14 = vor.u32 %v15889_v40, %v13409_v42  ;;  %v13414_v63 = vor.u32 %v15877_v17, %v13411_v49 }
 0x30d   :  { %v20380_v20 = vpack.c.b16 %v6415_v47, %v6414_v18  ;;  %v20382_v59 = vpack.c.b16 %v6573_v15, %v6572_v19  ;;  %5290 = vmatpush.bf16.msra.mxu3 %v4739_v10  ;;  %5338 = vmatpush.bf16.msra.mxu2 %v4742_v8  ;;  %v15902_v18 = vld [vmem:[%s24077_s4 + $0x7fc] sm:$0xf]  ;;  %v13511_v19 = vld [vmem:[%s24077_s4 + $0x85c] sm:$0xf0]  ;;  %v13311_v10 = vld [vmem:[%s24077_s4 + $0x6cc] sm:$0xf0] }
 0x30e   :  { %v4917_v11 = vpop.f32.mrf.mxu3  ;;  %v4965_v52 = vpop.f32.mrf.mxu2  ;;  %v13514_v15 = vor.u32 %v15902_v18, %v13511_v19  ;;  %v13225_v8 = vld [vmem:[%s24077_s4 + $0x5b0] sm:$0xf] }
 0x30f   :  { %24208 = vst [vmem:[#allocation2_spill] sm:$0xff] %v20382_v59  ;;  %v4918_v5 = vadd.f32 %v4917_v11, %v20043_v33  ;;  %v4966_v0 = vadd.f32 %v4965_v52, %v20045_v39  ;;  %v13509_v33 = vld [vmem:[%s24077_s4 + $0x7f8] sm:$0xf]  ;;  %v15914_v39 = vld [vmem:[%s24077_s4 + $0x858] sm:$0xf0] }
 0x310   :  { %v13510_v47 = vor.u32 %v15914_v39, %v13509_v33  ;;  %v13227_v39 = vld [vmem:[%s24077_s4 + $0x614] sm:$0xf0] }
 0x311   :  { %v6010_v44 = vpack.c.bf16 %v4966_v0, %v4918_v5  ;;  %v20397_v26 = vpop.f32.mrf.mxu1  ;;  %v20399_v61 = vpop.f32.mrf.mxu0  ;;  %5291 = vmatpush.bf16.msra.mxu3 %v13610_v27  ;;  %5339 = vmatpush.bf16.msra.mxu2 %v13614_v21  ;;  %v15841_v27 = vld [vmem:[%s24077_s4 + $0x610] sm:$0xf0]  ;;  %v13314_v21 = vor.u32 %v15852_v50, %v13311_v10 }
 0x312   :  { %v13226_v33 = vor.u32 %v15841_v27, %v13225_v8 }
 0x313   :  { %v6416_v7 = vunpack.c.l.b16 %v6010_v44  ;;  %v6574_v5 = vunpack.c.h.b16 %v6010_v44  ;;  %v15829_v44 = vld [vmem:[%s24077_s4 + $0x5b4] sm:$0xf] }
 0x314   :  { %5281 = vmatmul.bf16.gmra.mxu1 %v19443_v43  ;;  %5329 = vmatmul.bf16.gmra.mxu0 %v19443_v43 }
 0x315   :  { %5292 = vmatpush.bf16.msra.mxu3 %v13510_v47  ;;  %5340 = vmatpush.bf16.msra.mxu2 %v13514_v15  ;;  %v13230_v15 = vor.u32 %v15829_v44, %v13227_v39 }
 0x316   :  { %v4919_v34 = vpop.f32.mrf.mxu3  ;;  %v4967_v37 = vpop.f32.mrf.mxu2  ;;  %5455 = vmatpush.bf16.msrb.mxu1 %v13226_v33 }
 0x317   :  { %v4920_v30 = vadd.f32 %v4919_v34, %v20073_v2  ;;  %v4968_v22 = vadd.f32 %v4967_v37, %v20075_v51  ;;  %v13309_v2 = vld [vmem:[%s24077_s4 + $0x668] sm:$0xf]  ;;  %v15864_v51 = vld [vmem:[%s24077_s4 + $0x6c8] sm:$0xf0]  ;;  %5503 = vmatpush.bf16.msra.mxu0 %v13230_v15 }
 0x318   :  { %v13310_v0 = vor.u32 %v15864_v51, %v13309_v2 }
 0x319   :  { %v6023_v16 = vpack.c.bf16 %v4968_v22, %v4920_v30  ;;  %v20429_v11 = vpop.f32.mrf.mxu1  ;;  %v20431_v52 = vpop.f32.mrf.mxu0  ;;  %5293 = vmatpush.bf16.msra.mxu3 %v13410_v14  ;;  %5341 = vmatpush.bf16.msra.mxu2 %v13414_v63  ;;  %v13125_v30 = vld [vmem:[%s24077_s4 + $0x4e8] sm:$0xf]  ;;  %v15816_v22 = vld [vmem:[%s24077_s4 + $0x548] sm:$0xf0]  ;;  %v13025_v14 = vld [vmem:[%s24077_s4 + $0x420] sm:$0xf] }
 0x31a   :  { %v15791_v63 = vld [vmem:[%s24077_s4 + $0x480] sm:$0xf0] }
 0x31b   :  { %v6417_v25 = vunpack.c.l.b16 %v6023_v16  ;;  %v6575_v1 = vunpack.c.h.b16 %v6023_v16  ;;  %13692 = vmatmul.msk.bf16.gmra.mxu3 %vm4697_vm7, %v19646_v9  ;;  %13695 = vmatmul.msk.bf16.gmra.mxu2 %vm4697_vm7, %v19646_v9  ;;  %v13127_v16 = vld [vmem:[%s24077_s4 + $0x54c] sm:$0xf0]  ;;  %v13026_v50 = vor.u32 %v15791_v63, %v13025_v14  ;;  %v15729_v63 = vld [vmem:[%s24077_s4 + $0x294] sm:$0xf] }
 0x31d   :  { %v20461_v18 = vpack.c.b16 %v6417_v25, %v6416_v7  ;;  %v20463_v42 = vpack.c.b16 %v6575_v1, %v6574_v5  ;;  %5294 = vmatpush.bf16.msra.mxu3 %v13310_v0  ;;  %5342 = vmatpush.bf16.msra.mxu2 %v13314_v21  ;;  %v15779_v25 = vld [vmem:[%s24077_s4 + $0x424] sm:$0xf]  ;;  %v13027_v1 = vld [vmem:[%s24077_s4 + $0x484] sm:$0xf0] }
 0x31e   :  { %v4922_v19 = vpop.f32.mrf.mxu3  ;;  %v4970_v47 = vpop.f32.mrf.mxu2  ;;  %v13030_v10 = vor.u32 %v15779_v25, %v13027_v1 }
 0x31f   :  { %24209 = vst [vmem:[#allocation5_spill] sm:$0xff] %v20463_v42  ;;  %v4923_v34 = vadd.f32 %v4922_v19, %v20107_v32  ;;  %v4971_v37 = vadd.f32 %v4970_v47, %v20109_v36  ;;  %v15804_v32 = vld [vmem:[%s24077_s4 + $0x4ec] sm:$0xf]  ;;  %v13126_v36 = vor.u32 %v15816_v22, %v13125_v30  ;;  %v15754_v47 = vld [vmem:[%s24077_s4 + $0x35c] sm:$0xf] }
 0x320   :  { %v13130_v7 = vor.u32 %v15804_v32, %v13127_v16 }
 0x321   :  { %v6036_v40 = vpack.c.bf16 %v4971_v37, %v4923_v34  ;;  %v20467_v17 = vpop.f32.mrf.mxu1  ;;  %v20469_v49 = vpop.f32.mrf.mxu0  ;;  %5456 = vmatpush.bf16.msrb.mxu1 %v13126_v36  ;;  %v12927_v34 = vld [vmem:[%s24077_s4 + $0x3bc] sm:$0xf0]  ;;  %v12825_v37 = vld [vmem:[%s24077_s4 + $0x290] sm:$0xf] }
 0x322   :  { %5504 = vmatpush.bf16.msra.mxu0 %v13130_v7  ;;  %v12930_v30 = vor.u32 %v15754_v47, %v12927_v34  ;;  %v12827_v7 = vld [vmem:[%s24077_s4 + $0x2f4] sm:$0xf0]  ;;  %v15679_v47 = vld [vmem:[%s24077_s4 + $0x104] sm:$0xf] }
 0x323   :  { %v6418_v33 = vunpack.c.l.b16 %v6036_v40  ;;  %v6576_v44 = vunpack.c.h.b16 %v6036_v40  ;;  %v15741_v40 = vld [vmem:[%s24077_s4 + $0x2f0] sm:$0xf0] }
 0x324   :  { %5367 = vmatmul.bf16.vlgmr.msra.gmra.mxu1 %v19301_v41  ;;  %5415 = vmatmul.bf16.vlgmr.msrb.gmra.mxu0 %v19301_v41  ;;  %v12826_v14 = vor.u32 %v15741_v40, %v12825_v37 }
 0x325   :  { %5457 = vmatpush.bf16.msrb.mxu1 %v13026_v50 }
 0x326   :  { %v4924_v2 = vpop.f32.mrf.mxu3  ;;  %v4972_v51 = vpop.f32.mrf.mxu2  ;;  %5505 = vmatpush.bf16.msra.mxu0 %v13030_v10  ;;  %v15716_v10 = vld [vmem:[%s24077_s4 + $0x228] sm:$0xf0] }
 0x327   :  { %v4925_v5 = vadd.f32 %v4924_v2, %v20139_v13  ;;  %v4973_v0 = vadd.f32 %v4972_v51, %v20141_v31  ;;  %v12925_v13 = vld [vmem:[%s24077_s4 + $0x358] sm:$0xf]  ;;  %v15766_v31 = vld [vmem:[%s24077_s4 + $0x3b8] sm:$0xf0] }
 0x328   :  { %v12926_v15 = vor.u32 %v15766_v31, %v12925_v13 }
 0x329   :  { %v6049_v8 = vpack.c.bf16 %v4973_v0, %v4925_v5  ;;  %v20499_v27 = vpop.f32.mrf.mxu1  ;;  %v20501_v21 = vpop.f32.mrf.mxu0  ;;  %v12830_v5 = vor.u32 %v15729_v63, %v12827_v7  ;;  %v12725_v0 = vld [vmem:[%s24077_s4 + $0x1c8] sm:$0xf] }
 0x32a   :  { %5458 = vmatpush.bf16.msrb.mxu1 %v12926_v15  ;;  %5506 = vmatpush.bf16.msra.mxu0 %v12930_v30  ;;  %v12627_v15 = vld [vmem:[%s24077_s4 + $0x164] sm:$0xf0] }
 0x32b   :  { %v6419_v39 = vunpack.c.l.b16 %v6049_v8  ;;  %v6577_v19 = vunpack.c.h.b16 %v6049_v8  ;;  %13693 = vmatmul.msk.bf16.gmra.mxu3 %vm4697_vm7, %v19713_v60  ;;  %13696 = vmatmul.msk.bf16.gmra.mxu2 %vm4697_vm7, %v19713_v60  ;;  %v12727_v8 = vld [vmem:[%s24077_s4 + $0x22c] sm:$0xf0] }
 0x32d   :  { %v20525_v22 = vpack.c.b16 %v6419_v39, %v6418_v33  ;;  %v20527_v32 = vpack.c.b16 %v6577_v19, %v6576_v44  ;;  %v12625_v33 = vld [vmem:[%s24077_s4 + $0x100] sm:$0xf]  ;;  %v15691_v44 = vld [vmem:[%s24077_s4 + $0x160] sm:$0xf0] }
 0x32e   :  { %v5008_v36 = vpop.f32.mrf.mxu3  ;;  %v5056_v16 = vpop.f32.mrf.mxu2  ;;  %5459 = vmatpush.bf16.msrb.mxu1 %v12826_v14  ;;  %5507 = vmatpush.bf16.msra.mxu0 %v12830_v5  ;;  %v12626_v31 = vor.u32 %v15691_v44, %v12625_v33 }
 0x32f   :  { %24210 = vst [vmem:[#allocation3_spill] sm:$0xff] %v20527_v32  ;;  %v5009_v25 = vadd.f32 %v5008_v36, %v20182_v3  ;;  %v5057_v1 = vadd.f32 %v5056_v16, %v20184_v54  ;;  %v15704_v3 = vld [vmem:[%s24077_s4 + $0x1cc] sm:$0xf]  ;;  %v12726_v54 = vor.u32 %v15716_v10, %v12725_v0  ;;  %v12630_v16 = vor.u32 %v15679_v47, %v12627_v15  ;;  %v15654_v10 = vld [vmem:[%s24077_s4 + $0x3c] sm:$0xf] }
 0x330   :  { %v12730_v39 = vor.u32 %v15704_v3, %v12727_v8  ;;  %v12527_v3 = vld [vmem:[%s24077_s4 + $0x9c] sm:$0xf0]  ;;  %v15940_v47 = vld [vmem:[%s24077_s4 + $0x928] sm:$0xf0] }
 0x331   :  { %v5985_v2 = vpack.c.bf16 %v5057_v1, %v5009_v25  ;;  %v20537_v51 = vpop.f32.mrf.mxu1  ;;  %v20539_v50 = vpop.f32.mrf.mxu0  ;;  %v15666_v1 = vld [vmem:[%s24077_s4 + $0x98] sm:$0xf0]  ;;  %v15928_v15 = vld [vmem:[%s24077_s4 + $0x8cc] sm:$0xf] }
 0x332   :  { %5460 = vmatpush.bf16.msrb.mxu1 %v12726_v54  ;;  %5508 = vmatpush.bf16.msra.mxu0 %v12730_v39  ;;  %v13617_v54 = vld [vmem:[%s24077_s4 + $0x8c8] sm:$0xf] }
 0x333   :  { %v6736_v14 = vunpack.c.l.b16 %v5985_v2  ;;  %v6894_v63 = vunpack.c.h.b16 %v5985_v2 }
 0x334   :  { %5372 = vmatmul.bf16.gmra.mxu1 %v19375_v38  ;;  %5420 = vmatmul.bf16.gmra.mxu0 %v19375_v38 }
 0x336   :  { %v5010_v19 = vpop.f32.mrf.mxu3  ;;  %v5058_v13 = vpop.f32.mrf.mxu2  ;;  %5461 = vmatpush.bf16.msrb.mxu1 %v12626_v31  ;;  %5509 = vmatpush.bf16.msra.mxu0 %v12630_v16  ;;  %v12530_v31 = vor.u32 %v15654_v10, %v12527_v3  ;;  %v13417_v10 = vld [vmem:[%s24077_s4 + $0x738] sm:$0xf] }
 0x337   :  { %v5011_v34 = vadd.f32 %v5010_v19, %v20214_v23  ;;  %v5059_v37 = vadd.f32 %v5058_v13, %v20216_v53  ;;  %v3115_v23 = vld [vmem:[%s24077_s4 + $0x990] sm:$0x33]  ;;  %v12525_v53 = vld [vmem:[%s24077_s4 + $0x38] sm:$0xf] }
 0x338   :  { %v4059_v2 = vunpack.c.l.b16 %v3115_v23  ;;  %v4060_v5 = vunpack.c.h.b16 %v3115_v23  ;;  %v12526_v0 = vor.u32 %v15666_v1, %v12525_v53  ;;  %v13618_v23 = vor.u32 %v15940_v47, %v13617_v54  ;;  %v15903_v1 = vld [vmem:[%s24077_s4 + $0x804] sm:$0xf] }
 0x339   :  { %v5998_v40 = vpack.c.bf16 %v5059_v37, %v5011_v34  ;;  %v20569_v30 = vpop.f32.mrf.mxu1  ;;  %v20571_v36 = vpop.f32.mrf.mxu0  ;;  %v13619_v34 = vld [vmem:[%s24077_s4 + $0x92c] sm:$0xf0] }
 0x33a   :  { %v4384_v19 = vpack.c.b16 %v4059_v2, %v4059_v2  ;;  %v4385_v13 = vpack.c.b16 %v4060_v5, %v4060_v5  ;;  %5462 = vmatpush.bf16.msrb.mxu1 %v12526_v0  ;;  %v13622_v53 = vor.u32 %v15928_v15, %v13619_v34  ;;  %5510 = vmatpush.bf16.msra.mxu0 %v12530_v31  ;;  %v13519_v2 = vld [vmem:[%s24077_s4 + $0x864] sm:$0xf0] }
 0x33b   :  { %v6737_v7 = vunpack.c.l.b16 %v5998_v40  ;;  %v6895_v25 = vunpack.c.h.b16 %v5998_v40  ;;  %13697 = vmatmul.msk.bf16.vlgmr.msra.gmra.mxu3 %vm4697_vm7, %v19576_v29  ;;  %13700 = vmatmul.msk.bf16.vlgmr.msra.gmra.mxu2 %vm4697_vm7, %v19576_v29  ;;  %v13522_v0 = vor.u32 %v15903_v1, %v13519_v2  ;;  %v13319_v1 = vld [vmem:[%s24077_s4 + $0x6d4] sm:$0xf0] }
 0x33c   :  { %v4745_v16 = vsel %vm4707_vm6, %v4384_v19, 0  ;;  %v13419_v19 = vld [vmem:[%s24077_s4 + $0x79c] sm:$0xf0]  ;;  %v13233_v2 = vld [vmem:[%s24077_s4 + $0x5b8] sm:$0xf] }
 0x33d   :  { %v20595_v8 = vpack.c.b16 %v6737_v7, %v6736_v14  ;;  %v20597_v33 = vpack.c.b16 %v6895_v25, %v6894_v63  ;;  %v4748_v14 = vsel %vm4707_vm6, %v4385_v13, 0  ;;  %5386 = vmatpush.bf16.msrb.mxu3 %v4745_v16 }
 0x33e   :  { %v5013_v44 = vpop.f32.mrf.mxu3  ;;  %v5061_v39 = vpop.f32.mrf.mxu2  ;;  %5434 = vmatpush.bf16.msrb.mxu2 %v4748_v14 }
 0x33f   :  { %24211 = vst [vmem:[#allocation4_spill] sm:$0xff] %v20597_v33  ;;  %v5014_v37 = vadd.f32 %v5013_v44, %v20252_v57  ;;  %v5062_v40 = vadd.f32 %v5061_v39, %v20254_v6  ;;  %v13517_v57 = vld [vmem:[%s24077_s4 + $0x800] sm:$0xf]  ;;  %v15915_v6 = vld [vmem:[%s24077_s4 + $0x860] sm:$0xf0] }
 0x340   :  { %v13518_v5 = vor.u32 %v15915_v6, %v13517_v57  ;;  %v15890_v44 = vld [vmem:[%s24077_s4 + $0x798] sm:$0xf0] }
 0x341   :  { %v6011_v63 = vpack.c.bf16 %v5062_v40, %v5014_v37  ;;  %v20612_v7 = vpop.f32.mrf.mxu1  ;;  %v20614_v25 = vpop.f32.mrf.mxu0  ;;  %5387 = vmatpush.bf16.msrb.mxu3 %v13618_v23  ;;  %v15878_v39 = vld [vmem:[%s24077_s4 + $0x73c] sm:$0xf]  ;;  %v13418_v37 = vor.u32 %v15890_v44, %v13417_v10 }
 0x342   :  { %5435 = vmatpush.bf16.msrb.mxu2 %v13622_v53  ;;  %v13422_v40 = vor.u32 %v15878_v39, %v13419_v19  ;;  %v15853_v53 = vld [vmem:[%s24077_s4 + $0x674] sm:$0xf] }
 0x343   :  { %v6738_v16 = vunpack.c.l.b16 %v6011_v63  ;;  %v6896_v57 = vunpack.c.h.b16 %v6011_v63  ;;  %v15830_v63 = vld [vmem:[%s24077_s4 + $0x5bc] sm:$0xf] }
 0x344   :  { %5377 = vmatmul.bf16.gmra.mxu1 %v19443_v43  ;;  %5425 = vmatmul.bf16.gmra.mxu0 %v19443_v43 }
 0x345   :  { %5388 = vmatpush.bf16.msrb.mxu3 %v13518_v5  ;;  %v15842_v5 = vld [vmem:[%s24077_s4 + $0x618] sm:$0xf0] }
 0x346   :  { %v5015_v3 = vpop.f32.mrf.mxu3  ;;  %v5063_v54 = vpop.f32.mrf.mxu2  ;;  %5436 = vmatpush.bf16.msrb.mxu2 %v13522_v0  ;;  %v13322_v0 = vor.u32 %v15853_v53, %v13319_v1  ;;  %v13234_v10 = vor.u32 %v15842_v5, %v13233_v2  ;;  %v15792_v53 = vld [vmem:[%s24077_s4 + $0x488] sm:$0xf0]  ;;  %v13035_v1 = vld [vmem:[%s24077_s4 + $0x48c] sm:$0xf0] }
 0x347   :  { %v5016_v13 = vadd.f32 %v5015_v3, %v20284_v4  ;;  %v5064_v31 = vadd.f32 %v5063_v54, %v20286_v24  ;;  %v13317_v4 = vld [vmem:[%s24077_s4 + $0x670] sm:$0xf]  ;;  %v15865_v24 = vld [vmem:[%s24077_s4 + $0x6d0] sm:$0xf0]  ;;  %v13235_v3 = vld [vmem:[%s24077_s4 + $0x61c] sm:$0xf0] }
 0x348   :  { %v13318_v6 = vor.u32 %v15865_v24, %v13317_v4  ;;  %v13238_v19 = vor.u32 %v15830_v63, %v13235_v3  ;;  %5551 = vmatpush.bf16.msra.mxu1 %v13234_v10  ;;  %v13033_v24 = vld [vmem:[%s24077_s4 + $0x428] sm:$0xf] }
 0x349   :  { %v6024_v47 = vpack.c.bf16 %v5064_v31, %v5016_v13  ;;  %v20644_v15 = vpop.f32.mrf.mxu1  ;;  %v20646_v34 = vpop.f32.mrf.mxu0  ;;  %5389 = vmatpush.bf16.msrb.mxu3 %v13418_v37 }
 0x34a   :  { %5437 = vmatpush.bf16.msrb.mxu2 %v13422_v40  ;;  %5599 = vmatpush.bf16.msrb.mxu0 %v13238_v19 }
 0x34b   :  { %v6739_v14 = vunpack.c.l.b16 %v6024_v47  ;;  %v6897_v23 = vunpack.c.h.b16 %v6024_v47  ;;  %13698 = vmatmul.msk.bf16.gmra.mxu3 %vm4697_vm7, %v19646_v9  ;;  %13701 = vmatmul.msk.bf16.gmra.mxu2 %vm4697_vm7, %v19646_v9 }
 0x34d   :  { %v20676_v54 = vpack.c.b16 %v6739_v14, %v6738_v16  ;;  %v20678_v13 = vpack.c.b16 %v6897_v23, %v6896_v57  ;;  %5390 = vmatpush.bf16.msrb.mxu3 %v13318_v6  ;;  %v13133_v16 = vld [vmem:[%s24077_s4 + $0x4f0] sm:$0xf]  ;;  %v15817_v14 = vld [vmem:[%s24077_s4 + $0x550] sm:$0xf0]  ;;  %v13135_v23 = vld [vmem:[%s24077_s4 + $0x554] sm:$0xf0] }
 0x34e   :  { %v5018_v44 = vpop.f32.mrf.mxu3  ;;  %v5066_v39 = vpop.f32.mrf.mxu2  ;;  %5438 = vmatpush.bf16.msrb.mxu2 %v13322_v0  ;;  %v15780_v6 = vld [vmem:[%s24077_s4 + $0x42c] sm:$0xf]  ;;  %v13034_v0 = vor.u32 %v15792_v53, %v13033_v24  ;;  %v15742_v24 = vld [vmem:[%s24077_s4 + $0x2f8] sm:$0xf0] }
 0x34f   :  { %24212 = vst [vmem:[#allocation7_spill] sm:$0xff] %v20678_v13  ;;  %v5019_v31 = vadd.f32 %v5018_v44, %v20322_v56  ;;  %v5067_v47 = vadd.f32 %v5066_v39, %v20324_v45  ;;  %v15805_v56 = vld [vmem:[%s24077_s4 + $0x4f4] sm:$0xf]  ;;  %v13134_v45 = vor.u32 %v15817_v14, %v13133_v16  ;;  %v13038_v3 = vor.u32 %v15780_v6, %v13035_v1 }
 0x350   :  { %v13138_v57 = vor.u32 %v15805_v56, %v13135_v23  ;;  %v12833_v23 = vld [vmem:[%s24077_s4 + $0x298] sm:$0xf] }
 0x351   :  { %v6037_v37 = vpack.c.bf16 %v5067_v47, %v5019_v31  ;;  %v20682_v40 = vpop.f32.mrf.mxu1  ;;  %v20684_v4 = vpop.f32.mrf.mxu0  ;;  %5552 = vmatpush.bf16.msra.mxu1 %v13134_v45  ;;  %v12935_v45 = vld [vmem:[%s24077_s4 + $0x3c4] sm:$0xf0] }
 0x352   :  { %5600 = vmatpush.bf16.msrb.mxu0 %v13138_v57 }
 0x353   :  { %v6740_v31 = vunpack.c.l.b16 %v6037_v37  ;;  %v6898_v47 = vunpack.c.h.b16 %v6037_v37  ;;  %v15755_v37 = vld [vmem:[%s24077_s4 + $0x364] sm:$0xf] }
 0x354   :  { %5463 = vmatmul.bf16.vlgmr.msrb.gmra.mxu1 %v19301_v41  ;;  %5511 = vmatmul.bf16.vlgmr.msra.gmra.mxu0 %v19301_v41  ;;  %v12938_v53 = vor.u32 %v15755_v37, %v12935_v45  ;;  %v12633_v37 = vld [vmem:[%s24077_s4 + $0x108] sm:$0xf] }
 0x355   :  { %5553 = vmatpush.bf16.msra.mxu1 %v13034_v0  ;;  %v15730_v0 = vld [vmem:[%s24077_s4 + $0x29c] sm:$0xf] }
 0x356   :  { %v5020_v2 = vpop.f32.mrf.mxu3  ;;  %v5068_v5 = vpop.f32.mrf.mxu2  ;;  %5601 = vmatpush.bf16.msrb.mxu0 %v13038_v3 }
 0x357   :  { %v5021_v10 = vadd.f32 %v5020_v2, %v20354_v55  ;;  %v5069_v63 = vadd.f32 %v5068_v5, %v20356_v62  ;;  %v12933_v55 = vld [vmem:[%s24077_s4 + $0x360] sm:$0xf]  ;;  %v15767_v62 = vld [vmem:[%s24077_s4 + $0x3c0] sm:$0xf0]  ;;  %v12834_v5 = vor.u32 %v15742_v24, %v12833_v23 }
 0x358   :  { %v12934_v56 = vor.u32 %v15767_v62, %v12933_v55  ;;  %v15717_v55 = vld [vmem:[%s24077_s4 + $0x230] sm:$0xf0]  ;;  %v12735_v62 = vld [vmem:[%s24077_s4 + $0x234] sm:$0xf0] }
 0x359   :  { %v6050_v44 = vpack.c.bf16 %v5069_v63, %v5021_v10  ;;  %v20714_v39 = vpop.f32.mrf.mxu1  ;;  %v20716_v19 = vpop.f32.mrf.mxu0  ;;  %v12835_v10 = vld [vmem:[%s24077_s4 + $0x2fc] sm:$0xf0] }
 0x35a   :  { %5554 = vmatpush.bf16.msra.mxu1 %v12934_v56  ;;  %5602 = vmatpush.bf16.msrb.mxu0 %v12938_v53  ;;  %v15692_v56 = vld [vmem:[%s24077_s4 + $0x168] sm:$0xf0] }
 0x35b   :  { %v6741_v16 = vunpack.c.l.b16 %v6050_v44  ;;  %v6899_v14 = vunpack.c.h.b16 %v6050_v44  ;;  %13699 = vmatmul.msk.bf16.gmra.mxu3 %vm4697_vm7, %v19713_v60  ;;  %13702 = vmatmul.msk.bf16.gmra.mxu2 %vm4697_vm7, %v19713_v60  ;;  %v12634_v53 = vor.u32 %v15692_v56, %v12633_v37 }
 0x35d   :  { %v20740_v57 = vpack.c.b16 %v6741_v16, %v6740_v31  ;;  %v20742_v6 = vpack.c.b16 %v6899_v14, %v6898_v47  ;;  %v12838_v16 = vor.u32 %v15730_v0, %v12835_v10  ;;  %v12733_v14 = vld [vmem:[%s24077_s4 + $0x1d0] sm:$0xf] }
 0x35e   :  { %v5104_v1 = vpop.f32.mrf.mxu3  ;;  %v5152_v2 = vpop.f32.mrf.mxu2  ;;  %5555 = vmatpush.bf16.msra.mxu1 %v12834_v5 }
 0x35f   :  { %24213 = vst [vmem:[#allocation6_spill] sm:$0xff] %v20742_v6  ;;  %v5105_v63 = vadd.f32 %v5104_v1, %v20397_v26  ;;  %v5153_v3 = vadd.f32 %v5152_v2, %v20399_v61  ;;  %v15705_v26 = vld [vmem:[%s24077_s4 + $0x1d4] sm:$0xf]  ;;  %v12734_v61 = vor.u32 %v15717_v55, %v12733_v14  ;;  %5603 = vmatpush.bf16.msrb.mxu0 %v12838_v16  ;;  %v15680_v1 = vld [vmem:[%s24077_s4 + $0x10c] sm:$0xf] }
 0x360   :  { %v12738_v45 = vor.u32 %v15705_v26, %v12735_v62  ;;  %v12635_v2 = vld [vmem:[%s24077_s4 + $0x16c] sm:$0xf0] }
 0x361   :  { %v5986_v44 = vpack.c.bf16 %v5153_v3, %v5105_v63  ;;  %v20752_v31 = vpop.f32.mrf.mxu1  ;;  %v20754_v47 = vpop.f32.mrf.mxu0  ;;  %v12638_v16 = vor.u32 %v15680_v1, %v12635_v2 }
 0x362   :  { %5556 = vmatpush.bf16.msra.mxu1 %v12734_v61 }
 0x363   :  { %5604 = vmatpush.bf16.msrb.mxu0 %v12738_v45  ;;  %v7058_v14 = vunpack.c.l.b16 %v5986_v44  ;;  %v7216_v55 = vunpack.c.h.b16 %v5986_v44  ;;  %v15667_v44 = vld [vmem:[%s24077_s4 + $0xa0] sm:$0xf0] }
 0x364   :  { %5468 = vmatmul.bf16.gmra.mxu1 %v19375_v38  ;;  %5516 = vmatmul.bf16.gmra.mxu0 %v19375_v38  ;;  %v15655_v45 = vld [vmem:[%s24077_s4 + $0x44] sm:$0xf] }
 0x366   :  { %v5106_v23 = vpop.f32.mrf.mxu3  ;;  %v5154_v24 = vpop.f32.mrf.mxu2  ;;  %5557 = vmatpush.bf16.msra.mxu1 %v12634_v53 }
 0x367   :  { %v5107_v5 = vadd.f32 %v5106_v23, %v20429_v11  ;;  %v5155_v0 = vadd.f32 %v5154_v24, %v20431_v52  ;;  %v3116_v11 = vld [vmem:[%s24077_s4 + $0x998] sm:$0x33]  ;;  %v12533_v52 = vld [vmem:[%s24077_s4 + $0x40] sm:$0xf]  ;;  %v12535_v23 = vld [vmem:[%s24077_s4 + $0xa4] sm:$0xf0]  ;;  %5605 = vmatpush.bf16.msrb.mxu0 %v12638_v16 }
 0x368   :  { %v4061_v62 = vunpack.c.l.b16 %v3116_v11  ;;  %v4062_v37 = vunpack.c.h.b16 %v3116_v11  ;;  %v12534_v56 = vor.u32 %v15667_v44, %v12533_v52  ;;  %v13625_v24 = vld [vmem:[%s24077_s4 + $0x8d0] sm:$0xf]  ;;  %v12538_v11 = vor.u32 %v15655_v45, %v12535_v23  ;;  %v15941_v52 = vld [vmem:[%s24077_s4 + $0x930] sm:$0xf0] }
 0x369   :  { %v5999_v10 = vpack.c.bf16 %v5155_v0, %v5107_v5  ;;  %v20784_v63 = vpop.f32.mrf.mxu1  ;;  %v20786_v3 = vpop.f32.mrf.mxu0  ;;  %v15929_v16 = vld [vmem:[%s24077_s4 + $0x8d4] sm:$0xf]  ;;  %v13626_v45 = vor.u32 %v15941_v52, %v13625_v24  ;;  %v13527_v24 = vld [vmem:[%s24077_s4 + $0x86c] sm:$0xf0]  ;;  %v15831_v52 = vld [vmem:[%s24077_s4 + $0x5c4] sm:$0xf] }
 0x36a   :  { %v4386_v0 = vpack.c.b16 %v4061_v62, %v4061_v62  ;;  %5558 = vmatpush.bf16.msra.mxu1 %v12534_v56 }
 0x36b   :  { %v7059_v26 = vunpack.c.l.b16 %v5999_v10  ;;  %v7217_v61 = vunpack.c.h.b16 %v5999_v10  ;;  %13703 = vmatmul.msk.bf16.vlgmr.msrb.gmra.mxu3 %vm4697_vm7, %v19576_v29  ;;  %13706 = vmatmul.msk.bf16.vlgmr.msrb.gmra.mxu2 %vm4697_vm7, %v19576_v29  ;;  %v4387_v10 = vpack.c.b16 %v4062_v37, %v4062_v37 }
 0x36c   :  { %5606 = vmatpush.bf16.msrb.mxu0 %v12538_v11  ;;  %v15891_v11 = vld [vmem:[%s24077_s4 + $0x7a0] sm:$0xf0] }
 0x36d   :  { %v20810_v53 = vpack.c.b16 %v7059_v26, %v7058_v14  ;;  %v20812_v1 = vpack.c.b16 %v7217_v61, %v7216_v55  ;;  %v13627_v14 = vld [vmem:[%s24077_s4 + $0x934] sm:$0xf0]  ;;  %v4751_v61 = vsel %vm4707_vm6, %v4386_v0, 0  ;;  %v4754_v44 = vsel %vm4707_vm6, %v4387_v10, 0  ;;  %v13425_v10 = vld [vmem:[%s24077_s4 + $0x740] sm:$0xf] }
 0x36e   :  { %v5109_v2 = vpop.f32.mrf.mxu3  ;;  %v5157_v5 = vpop.f32.mrf.mxu2  ;;  %5482 = vmatpush.bf16.msra.mxu3 %v4751_v61  ;;  %5530 = vmatpush.bf16.msra.mxu2 %v4754_v44  ;;  %v13630_v23 = vor.u32 %v15929_v16, %v13627_v14  ;;  %v13243_v61 = vld [vmem:[%s24077_s4 + $0x624] sm:$0xf0] }
 0x36f   :  { %24214 = vst [vmem:[#allocation8_spill] sm:$0xff] %v20812_v1  ;;  %v5110_v55 = vadd.f32 %v5109_v2, %v20467_v17  ;;  %v5158_v26 = vadd.f32 %v5157_v5, %v20469_v49  ;;  %v13525_v17 = vld [vmem:[%s24077_s4 + $0x808] sm:$0xf]  ;;  %v15916_v49 = vld [vmem:[%s24077_s4 + $0x868] sm:$0xf0] }
 0x370   :  { %v15904_v2 = vld [vmem:[%s24077_s4 + $0x80c] sm:$0xf]  ;;  %v13526_v5 = vor.u32 %v15916_v49, %v13525_v17 }
 0x371   :  { %v20827_v62 = vpack.c.bf16 %v5158_v26, %v5110_v55  ;;  %v20829_v37 = vpop.f32.mrf.mxu1  ;;  %v20831_v56 = vpop.f32.mrf.mxu0  ;;  %v13530_v0 = vor.u32 %v15904_v2, %v13527_v24  ;;  %v15879_v55 = vld [vmem:[%s24077_s4 + $0x744] sm:$0xf]  ;;  %v13427_v26 = vld [vmem:[%s24077_s4 + $0x7a4] sm:$0xf0]  ;;  %v13426_v24 = vor.u32 %v15891_v11, %v13425_v10  ;;  %v13327_v11 = vld [vmem:[%s24077_s4 + $0x6dc] sm:$0xf0] }
 0x372   :  { %5483 = vmatpush.bf16.msra.mxu3 %v13626_v45  ;;  %5531 = vmatpush.bf16.msra.mxu2 %v13630_v23  ;;  %v13246_v23 = vor.u32 %v15831_v52, %v13243_v61  ;;  %v13430_v1 = vor.u32 %v15879_v55, %v13427_v26  ;;  %v15806_v52 = vld [vmem:[%s24077_s4 + $0x4fc] sm:$0xf]  ;;  %v15843_v26 = vld [vmem:[%s24077_s4 + $0x620] sm:$0xf0]  ;;  %v15781_v61 = vld [vmem:[%s24077_s4 + $0x434] sm:$0xf] }
 0x373   :  { %v7060_v33 = vunpack.c.l.b16 %v20827_v62 }
 0x374   :  { %5473 = vmatmul.bf16.gmra.mxu1 %v19443_v43  ;;  %5521 = vmatmul.bf16.gmra.mxu0 %v19443_v43 }
 0x375   :  { %5695 = vmatpush.bf16.msra.mxu0 %v13246_v23 }
 0x376   :  { %v5111_v16 = vpop.f32.mrf.mxu3  ;;  %v5159_v14 = vpop.f32.mrf.mxu2  ;;  %5484 = vmatpush.bf16.msra.mxu3 %v13526_v5  ;;  %5532 = vmatpush.bf16.msra.mxu2 %v13530_v0  ;;  %v15854_v5 = vld [vmem:[%s24077_s4 + $0x67c] sm:$0xf]  ;;  %v7218_v0 = vunpack.c.h.b16 %v20827_v62  ;;  %v13241_v62 = vld [vmem:[%s24077_s4 + $0x5c0] sm:$0xf] }
 0x377   :  { %v5112_v44 = vadd.f32 %v5111_v16, %v20499_v27  ;;  %v5160_v45 = vadd.f32 %v5159_v14, %v20501_v21  ;;  %v13325_v27 = vld [vmem:[%s24077_s4 + $0x678] sm:$0xf]  ;;  %v15866_v21 = vld [vmem:[%s24077_s4 + $0x6d8] sm:$0xf0]  ;;  %v13143_v16 = vld [vmem:[%s24077_s4 + $0x55c] sm:$0xf0]  ;;  %v13330_v14 = vor.u32 %v15854_v5, %v13327_v11 }
 0x378   :  { %v13326_v10 = vor.u32 %v15866_v21, %v13325_v27  ;;  %v13146_v55 = vor.u32 %v15806_v52, %v13143_v16  ;;  %v15793_v16 = vld [vmem:[%s24077_s4 + $0x490] sm:$0xf0] }
 0x379   :  { %v6025_v17 = vpack.c.bf16 %v5160_v45, %v5112_v44  ;;  %v20867_v49 = vpop.f32.mrf.mxu1  ;;  %v20869_v2 = vpop.f32.mrf.mxu0 }
 0x37a   :  { %5485 = vmatpush.bf16.msra.mxu3 %v13426_v24  ;;  %5533 = vmatpush.bf16.msra.mxu2 %v13430_v1  ;;  %v13043_v1 = vld [vmem:[%s24077_s4 + $0x494] sm:$0xf0] }
 0x37b   :  { %v7061_v59 = vunpack.c.l.b16 %v6025_v17  ;;  %v7219_v13 = vunpack.c.h.b16 %v6025_v17  ;;  %13704 = vmatmul.msk.bf16.gmra.mxu3 %vm4697_vm7, %v19646_v9  ;;  %13707 = vmatmul.msk.bf16.gmra.mxu2 %vm4697_vm7, %v19646_v9  ;;  %v13242_v17 = vor.u32 %v15843_v26, %v13241_v62  ;;  %v13046_v5 = vor.u32 %v15781_v61, %v13043_v1  ;;  %v12843_v62 = vld [vmem:[%s24077_s4 + $0x304] sm:$0xf0] }
 0x37c   :  { %5696 = vmatpush.bf16.msra.mxu0 %v13146_v55  ;;  %v15731_v55 = vld [vmem:[%s24077_s4 + $0x2a4] sm:$0xf] }
 0x37d   :  { %v20904_v44 = vpack.c.b16 %v7061_v59, %v7060_v33  ;;  %v20909_v24 = vpack.c.b16 %v7219_v13, %v7218_v0  ;;  %5647 = vmatpush.bf16.msrb.mxu1 %v13242_v17  ;;  %v13141_v33 = vld [vmem:[%s24077_s4 + $0x4f8] sm:$0xf]  ;;  %v12943_v0 = vld [vmem:[%s24077_s4 + $0x3cc] sm:$0xf0]  ;;  %v12846_v1 = vor.u32 %v15731_v55, %v12843_v62 }
 0x37e   :  { %v5114_v45 = vpop.f32.mrf.mxu3  ;;  %v5162_v23 = vpop.f32.mrf.mxu2  ;;  %5486 = vmatpush.bf16.msra.mxu3 %v13326_v10  ;;  %5534 = vmatpush.bf16.msra.mxu2 %v13330_v14  ;;  %v13041_v10 = vld [vmem:[%s24077_s4 + $0x430] sm:$0xf] }
 0x37f   :  { %24215 = vst [vmem:[#allocation9_spill] sm:$0xff] %v20909_v24  ;;  %v5115_v27 = vadd.f32 %v5114_v45, %v20537_v51  ;;  %v5163_v21 = vadd.f32 %v5162_v23, %v20539_v50  ;;  %v15818_v51 = vld [vmem:[%s24077_s4 + $0x558] sm:$0xf0]  ;;  %v15756_v50 = vld [vmem:[%s24077_s4 + $0x36c] sm:$0xf]  ;;  %v13042_v45 = vor.u32 %v15793_v16, %v13041_v10 }
 0x380   :  { %5697 = vmatpush.bf16.msra.mxu0 %v13046_v5  ;;  %v13142_v13 = vor.u32 %v15818_v51, %v13141_v33  ;;  %v12946_v14 = vor.u32 %v15756_v50, %v12943_v0  ;;  %v12743_v10 = vld [vmem:[%s24077_s4 + $0x23c] sm:$0xf0] }
 0x381   :  { %v6038_v11 = vpack.c.bf16 %v5163_v21, %v5115_v27  ;;  %v20913_v52 = vpop.f32.mrf.mxu1  ;;  %v20915_v59 = vpop.f32.mrf.mxu0  ;;  %v12841_v16 = vld [vmem:[%s24077_s4 + $0x2a0] sm:$0xf] }
 0x382   :  { %5648 = vmatpush.bf16.msrb.mxu1 %v13142_v13 }
 0x383   :  { %v7062_v33 = vunpack.c.l.b16 %v6038_v11  ;;  %v7220_v51 = vunpack.c.h.b16 %v6038_v11  ;;  %v15706_v11 = vld [vmem:[%s24077_s4 + $0x1dc] sm:$0xf] }
 0x384   :  { %5559 = vmatmul.bf16.vlgmr.msra.gmra.mxu1 %v19301_v41  ;;  %5607 = vmatmul.bf16.vlgmr.msrb.gmra.mxu0 %v19301_v41  ;;  %v12746_v55 = vor.u32 %v15706_v11, %v12743_v10  ;;  %v15718_v11 = vld [vmem:[%s24077_s4 + $0x238] sm:$0xf0]  ;;  %v15832_v10 = vld [vmem:[%s24077_s4 + $0x5cc] sm:$0xf] }
 0x385   :  { %5698 = vmatpush.bf16.msra.mxu0 %v12946_v14  ;;  %v15743_v14 = vld [vmem:[%s24077_s4 + $0x300] sm:$0xf0] }
 0x386   :  { %v5116_v26 = vpop.f32.mrf.mxu3  ;;  %v5164_v61 = vpop.f32.mrf.mxu2  ;;  %5649 = vmatpush.bf16.msrb.mxu1 %v13042_v45 }
 0x387   :  { %v5117_v23 = vadd.f32 %v5116_v26, %v20569_v30  ;;  %v5165_v17 = vadd.f32 %v5164_v61, %v20571_v36  ;;  %v12941_v30 = vld [vmem:[%s24077_s4 + $0x368] sm:$0xf]  ;;  %v15768_v36 = vld [vmem:[%s24077_s4 + $0x3c8] sm:$0xf0] }
 0x388   :  { %v12942_v13 = vor.u32 %v15768_v36, %v12941_v30  ;;  %v12741_v36 = vld [vmem:[%s24077_s4 + $0x1d8] sm:$0xf] }
 0x389   :  { %v6051_v27 = vpack.c.bf16 %v5165_v17, %v5117_v23  ;;  %v20945_v21 = vpop.f32.mrf.mxu1  ;;  %v20947_v5 = vpop.f32.mrf.mxu0  ;;  %5699 = vmatpush.bf16.msra.mxu0 %v12846_v1  ;;  %v12842_v23 = vor.u32 %v15743_v14, %v12841_v16  ;;  %v15681_v17 = vld [vmem:[%s24077_s4 + $0x114] sm:$0xf]  ;;  %v12643_v1 = vld [vmem:[%s24077_s4 + $0x174] sm:$0xf0]  ;;  %v13251_v16 = vld [vmem:[%s24077_s4 + $0x62c] sm:$0xf0] }
 0x38a   :  { %5650 = vmatpush.bf16.msrb.mxu1 %v12942_v13  ;;  %v12543_v13 = vld [vmem:[%s24077_s4 + $0xac] sm:$0xf0] }
 0x38b   :  { %v7063_v50 = vunpack.c.l.b16 %v6051_v27  ;;  %v7221_v0 = vunpack.c.h.b16 %v6051_v27  ;;  %13705 = vmatmul.msk.bf16.gmra.mxu3 %vm4697_vm7, %v19713_v60  ;;  %13708 = vmatmul.msk.bf16.gmra.mxu2 %vm4697_vm7, %v19713_v60 }
 0x38d   :  { %v20971_v62 = vpack.c.b16 %v7063_v50, %v7062_v33  ;;  %v20973_v26 = vpack.c.b16 %v7221_v0, %v7220_v51  ;;  %5700 = vmatpush.bf16.msra.mxu0 %v12746_v55  ;;  %v12646_v0 = vor.u32 %v15681_v17, %v12643_v1  ;;  %v12641_v55 = vld [vmem:[%s24077_s4 + $0x110] sm:$0xf]  ;;  %v13254_v17 = vor.u32 %v15832_v10, %v13251_v16 }
 0x38e   :  { %v5200_v61 = vpop.f32.mrf.mxu3  ;;  %v5248_v45 = vpop.f32.mrf.mxu2  ;;  %5651 = vmatpush.bf16.msrb.mxu1 %v12842_v23 }
 0x38f   :  { %24216 = vst [vmem:[#allocation10_spill] sm:$0xff] %v20973_v26  ;;  %v5201_v27 = vadd.f32 %v5200_v61, %v20612_v7  ;;  %v5249_v30 = vadd.f32 %v5248_v45, %v20614_v25  ;;  %v15656_v7 = vld [vmem:[%s24077_s4 + $0x4c] sm:$0xf]  ;;  %v12742_v25 = vor.u32 %v15718_v11, %v12741_v36  ;;  %v15693_v61 = vld [vmem:[%s24077_s4 + $0x170] sm:$0xf0] }
 0x390   :  { %v12546_v14 = vor.u32 %v15656_v7, %v12543_v13  ;;  %v12642_v1 = vor.u32 %v15693_v61, %v12641_v55  ;;  %v15668_v55 = vld [vmem:[%s24077_s4 + $0xa8] sm:$0xf0]  ;;  %v15782_v61 = vld [vmem:[%s24077_s4 + $0x43c] sm:$0xf] }
 0x391   :  { %v5987_v33 = vpack.c.bf16 %v5249_v30, %v5201_v27  ;;  %v20983_v51 = vpop.f32.mrf.mxu1  ;;  %v20985_v50 = vpop.f32.mrf.mxu0  ;;  %5701 = vmatpush.bf16.msra.mxu0 %v12646_v0 }
 0x392   :  { %5652 = vmatpush.bf16.msrb.mxu1 %v12742_v25 }
 0x393   :  { %v7380_v7 = vunpack.c.l.b16 %v5987_v33  ;;  %v7538_v13 = vunpack.c.h.b16 %v5987_v33  ;;  %v3117_v33 = vld [vmem:[%s24077_s4 + $0x9a0] sm:$0x33] }
 0x394   :  { %5564 = vmatmul.bf16.gmra.mxu1 %v19375_v38  ;;  %5612 = vmatmul.bf16.gmra.mxu0 %v19375_v38  ;;  %v4063_v10 = vunpack.c.l.b16 %v3117_v33  ;;  %v4064_v16 = vunpack.c.h.b16 %v3117_v33 }
 0x395   :  { %5702 = vmatpush.bf16.msra.mxu0 %v12546_v14  ;;  %v12541_v14 = vld [vmem:[%s24077_s4 + $0x48] sm:$0xf] }
 0x396   :  { %v5202_v45 = vpop.f32.mrf.mxu3  ;;  %v5250_v23 = vpop.f32.mrf.mxu2  ;;  %5653 = vmatpush.bf16.msrb.mxu1 %v12642_v1 }
 0x397   :  { %v5203_v27 = vadd.f32 %v5202_v45, %v20644_v15  ;;  %v5251_v30 = vadd.f32 %v5250_v23, %v20646_v34  ;;  %v15807_v15 = vld [vmem:[%s24077_s4 + $0x504] sm:$0xf]  ;;  %v13151_v34 = vld [vmem:[%s24077_s4 + $0x564] sm:$0xf0]  ;;  %v12542_v45 = vor.u32 %v15668_v55, %v12541_v14  ;;  %v13051_v23 = vld [vmem:[%s24077_s4 + $0x49c] sm:$0xf0] }
 0x398   :  { %v13154_v25 = vor.u32 %v15807_v15, %v13151_v34  ;;  %v4388_v15 = vpack.c.b16 %v4063_v10, %v4063_v10  ;;  %v4389_v34 = vpack.c.b16 %v4064_v16, %v4064_v16  ;;  %v13054_v33 = vor.u32 %v15782_v61, %v13051_v23  ;;  %v15942_v14 = vld [vmem:[%s24077_s4 + $0x938] sm:$0xf0] }
 0x399   :  { %v6000_v36 = vpack.c.bf16 %v5251_v30, %v5203_v27  ;;  %v21015_v0 = vpop.f32.mrf.mxu1  ;;  %v21017_v11 = vpop.f32.mrf.mxu0  ;;  %5791 = vmatpush.bf16.msrb.mxu0 %v13254_v17  ;;  %v13633_v17 = vld [vmem:[%s24077_s4 + $0x8d8] sm:$0xf]  ;;  %v15930_v55 = vld [vmem:[%s24077_s4 + $0x8dc] sm:$0xf] }
 0x39a   :  { %5654 = vmatpush.bf16.msrb.mxu1 %v12542_v45  ;;  %v13634_v23 = vor.u32 %v15942_v14, %v13633_v17  ;;  %v13533_v45 = vld [vmem:[%s24077_s4 + $0x810] sm:$0xf]  ;;  %v15917_v17 = vld [vmem:[%s24077_s4 + $0x870] sm:$0xf0]  ;;  %v15732_v14 = vld [vmem:[%s24077_s4 + $0x2ac] sm:$0xf] }
 0x39b   :  { %v7381_v24 = vunpack.c.l.b16 %v6000_v36  ;;  %v7539_v26 = vunpack.c.h.b16 %v6000_v36  ;;  %13709 = vmatmul.msk.bf16.vlgmr.msra.gmra.mxu3 %vm4697_vm7, %v19576_v29  ;;  %13712 = vmatmul.msk.bf16.vlgmr.msra.gmra.mxu2 %vm4697_vm7, %v19576_v29 }
 0x39d   :  { %v21047_v1 = vpack.c.b16 %v7381_v24, %v7380_v7  ;;  %v21049_v27 = vpack.c.b16 %v7539_v26, %v7538_v13  ;;  %5792 = vmatpush.bf16.msrb.mxu0 %v13154_v25  ;;  %v13635_v24 = vld [vmem:[%s24077_s4 + $0x93c] sm:$0xf0]  ;;  %v4757_v13 = vsel %vm4707_vm6, %v4388_v15, 0  ;;  %v4760_v25 = vsel %vm4707_vm6, %v4389_v34, 0  ;;  %v13535_v15 = vld [vmem:[%s24077_s4 + $0x874] sm:$0xf0] }
 0x39e   :  { %v5205_v30 = vpop.f32.mrf.mxu3  ;;  %v5253_v36 = vpop.f32.mrf.mxu2  ;;  %5578 = vmatpush.bf16.msrb.mxu3 %v4757_v13  ;;  %5626 = vmatpush.bf16.msrb.mxu2 %v4760_v25  ;;  %v13534_v34 = vor.u32 %v15917_v17, %v13533_v45  ;;  %v15880_v25 = vld [vmem:[%s24077_s4 + $0x74c] sm:$0xf]  ;;  %v13249_v45 = vld [vmem:[%s24077_s4 + $0x5c8] sm:$0xf] }
 0x39f   :  { %24217 = vst [vmem:[#allocation11_spill] sm:$0xff] %v21049_v27  ;;  %v5206_v26 = vadd.f32 %v5205_v30, %v20682_v40  ;;  %v5254_v7 = vadd.f32 %v5253_v36, %v20684_v4  ;;  %v13638_v27 = vor.u32 %v15930_v55, %v13635_v24  ;;  %v15757_v40 = vld [vmem:[%s24077_s4 + $0x374] sm:$0xf]  ;;  %v12951_v4 = vld [vmem:[%s24077_s4 + $0x3d4] sm:$0xf0] }
 0x3a0   :  { %v12954_v30 = vor.u32 %v15757_v40, %v12951_v4  ;;  %v15905_v36 = vld [vmem:[%s24077_s4 + $0x814] sm:$0xf]  ;;  %v12851_v55 = vld [vmem:[%s24077_s4 + $0x30c] sm:$0xf0]  ;;  %v13433_v24 = vld [vmem:[%s24077_s4 + $0x748] sm:$0xf] }
 0x3a1   :  { %v21064_v10 = vpack.c.bf16 %v5254_v7, %v5206_v26  ;;  %v21066_v16 = vpop.f32.mrf.mxu1  ;;  %v21068_v61 = vpop.f32.mrf.mxu0  ;;  %5793 = vmatpush.bf16.msrb.mxu0 %v13054_v33  ;;  %v13538_v33 = vor.u32 %v15905_v36, %v13535_v15  ;;  %v12854_v13 = vor.u32 %v15732_v14, %v12851_v55 }
 0x3a2   :  { %5579 = vmatpush.bf16.msrb.mxu3 %v13634_v23  ;;  %5627 = vmatpush.bf16.msrb.mxu2 %v13638_v27  ;;  %v15892_v27 = vld [vmem:[%s24077_s4 + $0x7a8] sm:$0xf0]  ;;  %v13435_v23 = vld [vmem:[%s24077_s4 + $0x7ac] sm:$0xf0] }
 0x3a3   :  { %v13434_v55 = vor.u32 %v15892_v27, %v13433_v24  ;;  %v7540_v24 = vunpack.c.h.b16 %v21064_v10  ;;  %v15867_v27 = vld [vmem:[%s24077_s4 + $0x6e0] sm:$0xf0] }
 0x3a4   :  { %5569 = vmatmul.bf16.gmra.mxu1 %v19443_v43  ;;  %5617 = vmatmul.bf16.gmra.mxu0 %v19443_v43 }
 0x3a5   :  { %5794 = vmatpush.bf16.msrb.mxu0 %v12954_v30  ;;  %v15844_v30 = vld [vmem:[%s24077_s4 + $0x628] sm:$0xf0] }
 0x3a6   :  { %v5207_v26 = vpop.f32.mrf.mxu3  ;;  %v5255_v7 = vpop.f32.mrf.mxu2  ;;  %v13250_v17 = vor.u32 %v15844_v30, %v13249_v45  ;;  %5580 = vmatpush.bf16.msrb.mxu3 %v13534_v34  ;;  %5628 = vmatpush.bf16.msrb.mxu2 %v13538_v33  ;;  %v12751_v34 = vld [vmem:[%s24077_s4 + $0x244] sm:$0xf0]  ;;  %v13333_v33 = vld [vmem:[%s24077_s4 + $0x680] sm:$0xf]  ;;  %v15819_v30 = vld [vmem:[%s24077_s4 + $0x560] sm:$0xf0] }
 0x3a7   :  { %v5208_v40 = vadd.f32 %v5207_v26, %v20714_v39  ;;  %v5256_v4 = vadd.f32 %v5255_v7, %v20716_v19  ;;  %v13438_v39 = vor.u32 %v15880_v25, %v13435_v23  ;;  %v7382_v19 = vunpack.c.l.b16 %v21064_v10  ;;  %v15855_v25 = vld [vmem:[%s24077_s4 + $0x684] sm:$0xf]  ;;  %v13335_v23 = vld [vmem:[%s24077_s4 + $0x6e4] sm:$0xf0]  ;;  %v13149_v10 = vld [vmem:[%s24077_s4 + $0x500] sm:$0xf] }
 0x3a8   :  { %5743 = vmatpush.bf16.msra.mxu1 %v13250_v17  ;;  %v13338_v45 = vor.u32 %v15855_v25, %v13335_v23  ;;  %v15682_v17 = vld [vmem:[%s24077_s4 + $0x11c] sm:$0xf] }
 0x3a9   :  { %v6026_v36 = vpack.c.bf16 %v5256_v4, %v5208_v40  ;;  %v21116_v15 = vpop.f32.mrf.mxu1  ;;  %v21118_v14 = vpop.f32.mrf.mxu0  ;;  %5795 = vmatpush.bf16.msrb.mxu0 %v12854_v13  ;;  %v15707_v40 = vld [vmem:[%s24077_s4 + $0x1e4] sm:$0xf]  ;;  %v13334_v4 = vor.u32 %v15867_v27, %v13333_v33  ;;  %v13049_v33 = vld [vmem:[%s24077_s4 + $0x438] sm:$0xf]  ;;  %v15794_v27 = vld [vmem:[%s24077_s4 + $0x498] sm:$0xf0] }
 0x3aa   :  { %v12754_v13 = vor.u32 %v15707_v40, %v12751_v34  ;;  %5581 = vmatpush.bf16.msrb.mxu3 %v13434_v55  ;;  %5629 = vmatpush.bf16.msrb.mxu2 %v13438_v39  ;;  %v13150_v55 = vor.u32 %v15819_v30, %v13149_v10  ;;  %v12651_v39 = vld [vmem:[%s24077_s4 + $0x17c] sm:$0xf0]  ;;  %v13050_v42 = vor.u32 %v15794_v27, %v13049_v33 }
 0x3ab   :  { %v7383_v26 = vunpack.c.l.b16 %v6026_v36  ;;  %v7541_v7 = vunpack.c.h.b16 %v6026_v36  ;;  %13710 = vmatmul.msk.bf16.gmra.mxu3 %vm4697_vm7, %v19646_v9  ;;  %13713 = vmatmul.msk.bf16.gmra.mxu2 %vm4697_vm7, %v19646_v9 }
 0x3ac   :  { %5744 = vmatpush.bf16.msra.mxu1 %v13150_v55  ;;  %v15808_v55 = vld [vmem:[%s24077_s4 + $0x50c] sm:$0xf] }
 0x3ad   :  { %v21153_v36 = vpack.c.b16 %v7383_v26, %v7382_v19  ;;  %5796 = vmatpush.bf16.msrb.mxu0 %v12754_v13  ;;  %v21164_v25 = vpack.c.b16 %v7541_v7, %v7540_v24  ;;  %v12654_v13 = vor.u32 %v15682_v17, %v12651_v39  ;;  %v15657_v7 = vld [vmem:[%s24077_s4 + $0x54] sm:$0xf]  ;;  %v13159_v39 = vld [vmem:[%s24077_s4 + $0x56c] sm:$0xf0] }
 0x3ae   :  { %v5210_v40 = vpop.f32.mrf.mxu3  ;;  %v5258_v34 = vpop.f32.mrf.mxu2  ;;  %5582 = vmatpush.bf16.msrb.mxu3 %v13334_v4  ;;  %5630 = vmatpush.bf16.msrb.mxu2 %v13338_v45  ;;  %v13259_v4 = vld [vmem:[%s24077_s4 + $0x634] sm:$0xf0]  ;;  %v12949_v45 = vld [vmem:[%s24077_s4 + $0x370] sm:$0xf]  ;;  %v15769_v17 = vld [vmem:[%s24077_s4 + $0x3d0] sm:$0xf0] }
 0x3af   :  { %24218 = vst [vmem:[#allocation12_spill] sm:$0xff] %v21164_v25  ;;  %v5211_v19 = vadd.f32 %v5210_v40, %v20752_v31  ;;  %v5259_v26 = vadd.f32 %v5258_v34, %v20754_v47  ;;  %v12551_v31 = vld [vmem:[%s24077_s4 + $0xb4] sm:$0xf0]  ;;  %v15833_v47 = vld [vmem:[%s24077_s4 + $0x5d4] sm:$0xf]  ;;  %v12950_v34 = vor.u32 %v15769_v17, %v12949_v45 }
 0x3b0   :  { %v12554_v24 = vor.u32 %v15657_v7, %v12551_v31  ;;  %5745 = vmatpush.bf16.msra.mxu1 %v13050_v42  ;;  %v13262_v40 = vor.u32 %v15833_v47, %v13259_v4  ;;  %v15744_v42 = vld [vmem:[%s24077_s4 + $0x308] sm:$0xf0]  ;;  %v13162_v7 = vor.u32 %v15808_v55, %v13159_v39  ;;  %v15758_v39 = vld [vmem:[%s24077_s4 + $0x37c] sm:$0xf] }
 0x3b1   :  { %v6039_v23 = vpack.c.bf16 %v5259_v26, %v5211_v19  ;;  %v21168_v10 = vpop.f32.mrf.mxu1  ;;  %v21170_v30 = vpop.f32.mrf.mxu0  ;;  %5797 = vmatpush.bf16.msrb.mxu0 %v12654_v13  ;;  %v12849_v19 = vld [vmem:[%s24077_s4 + $0x2a8] sm:$0xf] }
 0x3b3   :  { %v7384_v45 = vunpack.c.l.b16 %v6039_v23  ;;  %v7542_v17 = vunpack.c.h.b16 %v6039_v23  ;;  %v12749_v23 = vld [vmem:[%s24077_s4 + $0x1e0] sm:$0xf] }
 0x3b4   :  { %5655 = vmatmul.bf16.vlgmr.msrb.gmra.mxu1 %v19301_v41  ;;  %5703 = vmatmul.bf16.vlgmr.msra.gmra.mxu0 %v19301_v41 }
 0x3b5   :  { %5798 = vmatpush.bf16.msrb.mxu0 %v12554_v24  ;;  %5746 = vmatpush.bf16.msra.mxu1 %v12950_v34  ;;  %v12850_v24 = vor.u32 %v15744_v42, %v12849_v19  ;;  %v15719_v34 = vld [vmem:[%s24077_s4 + $0x240] sm:$0xf0] }
 0x3b6   :  { %v5212_v33 = vpop.f32.mrf.mxu3  ;;  %v5260_v27 = vpop.f32.mrf.mxu2  ;;  %v12750_v55 = vor.u32 %v15719_v34, %v12749_v23  ;;  %v12859_v23 = vld [vmem:[%s24077_s4 + $0x314] sm:$0xf0]  ;;  %v15845_v34 = vld [vmem:[%s24077_s4 + $0x630] sm:$0xf0] }
 0x3b7   :  { %v5213_v26 = vadd.f32 %v5212_v33, %v20784_v63  ;;  %v5261_v13 = vadd.f32 %v5260_v27, %v20786_v3  ;;  %v15783_v63 = vld [vmem:[%s24077_s4 + $0x444] sm:$0xf]  ;;  %v13059_v3 = vld [vmem:[%s24077_s4 + $0x4a4] sm:$0xf0] }
 0x3b9   :  { %5887 = vmatpush.bf16.msra.mxu0 %v13262_v40  ;;  %v6052_v31 = vpack.c.bf16 %v5261_v13, %v5213_v26  ;;  %v21206_v47 = vpop.f32.mrf.mxu1  ;;  %v21208_v4 = vpop.f32.mrf.mxu0  ;;  %v13062_v40 = vor.u32 %v15783_v63, %v13059_v3  ;;  %5747 = vmatpush.bf16.msra.mxu1 %v12850_v24  ;;  %v12959_v26 = vld [vmem:[%s24077_s4 + $0x3dc] sm:$0xf0]  ;;  %v12649_v13 = vld [vmem:[%s24077_s4 + $0x118] sm:$0xf]  ;;  %v15733_v3 = vld [vmem:[%s24077_s4 + $0x2b4] sm:$0xf] }
 0x3bb   :  { %v7385_v25 = vunpack.c.l.b16 %v6052_v31  ;;  %v7543_v6 = vunpack.c.h.b16 %v6052_v31  ;;  %13711 = vmatmul.msk.bf16.gmra.mxu3 %vm4697_vm7, %v19713_v60  ;;  %13714 = vmatmul.msk.bf16.gmra.mxu2 %vm4697_vm7, %v19713_v60 }
 0x3bd   :  { %5888 = vmatpush.bf16.msra.mxu0 %v13162_v7  ;;  %v21229_v33 = vpack.c.b16 %v7385_v25, %v7384_v45  ;;  %v21231_v27 = vpack.c.b16 %v7543_v6, %v7542_v17  ;;  %v15694_v7 = vld [vmem:[%s24077_s4 + $0x178] sm:$0xf0]  ;;  %5748 = vmatpush.bf16.msra.mxu1 %v12750_v55  ;;  %v12962_v17 = vor.u32 %v15758_v39, %v12959_v26 }
 0x3be   :  { %v5296_v19 = vpop.f32.mrf.mxu3  ;;  %v5344_v42 = vpop.f32.mrf.mxu2  ;;  %v12650_v63 = vor.u32 %v15694_v7, %v12649_v13  ;;  %v12862_v55 = vor.u32 %v15733_v3, %v12859_v23  ;;  %v15708_v13 = vld [vmem:[%s24077_s4 + $0x1ec] sm:$0xf]  ;;  %v12759_v7 = vld [vmem:[%s24077_s4 + $0x24c] sm:$0xf0] }
 0x3bf   :  { %24219 = vst [vmem:[#allocation13_spill] sm:$0xff] %v21231_v27  ;;  %v5297_v31 = vadd.f32 %v5296_v19, %v20829_v37  ;;  %v5345_v25 = vadd.f32 %v5344_v42, %v20831_v56  ;;  %v12549_v37 = vld [vmem:[%s24077_s4 + $0x50] sm:$0xf]  ;;  %v15669_v56 = vld [vmem:[%s24077_s4 + $0xb0] sm:$0xf0]  ;;  %v12762_v3 = vor.u32 %v15708_v13, %v12759_v7 }
 0x3c0   :  { %v12550_v39 = vor.u32 %v15669_v56, %v12549_v37 }
 0x3c1   :  { %5889 = vmatpush.bf16.msra.mxu0 %v13062_v40  ;;  %v5988_v6 = vpack.c.bf16 %v5345_v25, %v5297_v31  ;;  %v21244_v24 = vpop.f32.mrf.mxu1  ;;  %v21246_v45 = vpop.f32.mrf.mxu0  ;;  %v13257_v40 = vld [vmem:[%s24077_s4 + $0x5d0] sm:$0xf]  ;;  %5749 = vmatpush.bf16.msra.mxu1 %v12650_v63 }
 0x3c2   :  { %v13258_v26 = vor.u32 %v15845_v34, %v13257_v40  ;;  %v15683_v40 = vld [vmem:[%s24077_s4 + $0x124] sm:$0xf] }
 0x3c3   :  { %v7702_v23 = vunpack.c.l.b16 %v5988_v6  ;;  %v7860_v34 = vunpack.c.h.b16 %v5988_v6  ;;  %v15795_v6 = vld [vmem:[%s24077_s4 + $0x4a0] sm:$0xf0] }
 0x3c4   :  { %5660 = vmatmul.bf16.gmra.mxu1 %v19375_v38  ;;  %5708 = vmatmul.bf16.gmra.mxu0 %v19375_v38 }
 0x3c5   :  { %5890 = vmatpush.bf16.msra.mxu0 %v12962_v17  ;;  %5750 = vmatpush.bf16.msra.mxu1 %v12550_v39  ;;  %v3118_v39 = vld [vmem:[%s24077_s4 + $0x9a8] sm:$0x33] }
 0x3c6   :  { %v5298_v19 = vpop.f32.mrf.mxu3  ;;  %v5346_v42 = vpop.f32.mrf.mxu2  ;;  %v4066_v13 = vunpack.c.h.b16 %v3118_v39 }
 0x3c7   :  { %v5299_v31 = vadd.f32 %v5298_v19, %v20867_v49  ;;  %v5347_v25 = vadd.f32 %v5346_v42, %v20869_v2  ;;  %v13157_v49 = vld [vmem:[%s24077_s4 + $0x508] sm:$0xf]  ;;  %v15820_v2 = vld [vmem:[%s24077_s4 + $0x568] sm:$0xf0]  ;;  %v13057_v19 = vld [vmem:[%s24077_s4 + $0x440] sm:$0xf] }
 0x3c9   :  { %v6001_v27 = vpack.c.bf16 %v5347_v25, %v5299_v31  ;;  %v21276_v17 = vpop.f32.mrf.mxu1  ;;  %v21278_v63 = vpop.f32.mrf.mxu0  ;;  %5891 = vmatpush.bf16.msra.mxu0 %v12862_v55  ;;  %5839 = vmatpush.bf16.msrb.mxu1 %v13258_v26  ;;  %v12659_v55 = vld [vmem:[%s24077_s4 + $0x184] sm:$0xf0]  ;;  %v4065_v26 = vunpack.c.l.b16 %v3118_v39  ;;  %v4391_v39 = vpack.c.b16 %v4066_v13, %v4066_v13 }
 0x3ca   :  { %v12662_v42 = vor.u32 %v15683_v40, %v12659_v55  ;;  %v13641_v40 = vld [vmem:[%s24077_s4 + $0x8e0] sm:$0xf] }
 0x3cb   :  { %v7703_v37 = vunpack.c.l.b16 %v6001_v27  ;;  %v7861_v56 = vunpack.c.h.b16 %v6001_v27  ;;  %13715 = vmatmul.msk.bf16.vlgmr.msrb.gmra.mxu3 %vm4697_vm7, %v19576_v29  ;;  %13718 = vmatmul.msk.bf16.vlgmr.msrb.gmra.mxu2 %vm4697_vm7, %v19576_v29  ;;  %v13158_v27 = vor.u32 %v15820_v2, %v13157_v49  ;;  %v13058_v49 = vor.u32 %v15795_v6, %v13057_v19  ;;  %v15658_v2 = vld [vmem:[%s24077_s4 + $0x5c] sm:$0xf]  ;;  %v15943_v19 = vld [vmem:[%s24077_s4 + $0x940] sm:$0xf0] }
 0x3cc   :  { %v15931_v6 = vld [vmem:[%s24077_s4 + $0x8e4] sm:$0xf] }
 0x3cd   :  { %5892 = vmatpush.bf16.msra.mxu0 %v12762_v3  ;;  %v21305_v7 = vpack.c.b16 %v7703_v37, %v7702_v23  ;;  %5840 = vmatpush.bf16.msrb.mxu1 %v13158_v27  ;;  %v12559_v3 = vld [vmem:[%s24077_s4 + $0xbc] sm:$0xf0]  ;;  %v21316_v55 = vpack.c.b16 %v7861_v56, %v7860_v34  ;;  %v4390_v27 = vpack.c.b16 %v4065_v26, %v4065_v26  ;;  %v4766_v26 = vsel %vm4707_vm6, %v4391_v39, 0 }
 0x3ce   :  { %v5301_v31 = vpop.f32.mrf.mxu3  ;;  %v5349_v25 = vpop.f32.mrf.mxu2  ;;  %v12562_v13 = vor.u32 %v15658_v2, %v12559_v3  ;;  %5722 = vmatpush.bf16.msra.mxu2 %v4766_v26  ;;  %v13543_v3 = vld [vmem:[%s24077_s4 + $0x87c] sm:$0xf0] }
 0x3cf   :  { %24220 = vst [vmem:[#allocation14_spill] sm:$0xff] %v21305_v7  ;;  %v5302_v23 = vadd.f32 %v5301_v31, %v20913_v52  ;;  %v5350_v37 = vadd.f32 %v5349_v25, %v20915_v59  ;;  %v13643_v7 = vld [vmem:[%s24077_s4 + $0x944] sm:$0xf0]  ;;  %v4763_v59 = vsel %vm4707_vm6, %v4390_v27, 0  ;;  %v13642_v31 = vor.u32 %v15943_v19, %v13641_v40  ;;  %v12857_v40 = vld [vmem:[%s24077_s4 + $0x2b0] sm:$0xf] }
 0x3d0   :  { %24221 = vst [vmem:[#allocation15_spill] sm:$0xff] %v21316_v55  ;;  %5674 = vmatpush.bf16.msra.mxu3 %v4763_v59  ;;  %v13646_v25 = vor.u32 %v15931_v6, %v13643_v7  ;;  %v12957_v55 = vld [vmem:[%s24077_s4 + $0x378] sm:$0xf]  ;;  %v15918_v7 = vld [vmem:[%s24077_s4 + $0x878] sm:$0xf0] }
 0x3d1   :  { %v6014_v56 = vpack.c.bf16 %v5350_v37, %v5302_v23  ;;  %v21329_v34 = vpop.f32.mrf.mxu1  ;;  %v21331_v52 = vpop.f32.mrf.mxu0  ;;  %5893 = vmatpush.bf16.msra.mxu0 %v12662_v42  ;;  %5841 = vmatpush.bf16.msrb.mxu1 %v13058_v49  ;;  %v15770_v23 = vld [vmem:[%s24077_s4 + $0x3d8] sm:$0xf0]  ;;  %v13541_v42 = vld [vmem:[%s24077_s4 + $0x818] sm:$0xf]  ;;  %v13441_v6 = vld [vmem:[%s24077_s4 + $0x750] sm:$0xf] }
 0x3d2   :  { %v12958_v2 = vor.u32 %v15770_v23, %v12957_v55  ;;  %v15906_v49 = vld [vmem:[%s24077_s4 + $0x81c] sm:$0xf]  ;;  %v15745_v55 = vld [vmem:[%s24077_s4 + $0x310] sm:$0xf0]  ;;  %5723 = vmatpush.bf16.msra.mxu2 %v13646_v25  ;;  %v13542_v39 = vor.u32 %v15918_v7, %v13541_v42  ;;  %v13443_v25 = vld [vmem:[%s24077_s4 + $0x7b4] sm:$0xf0] }
 0x3d3   :  { %v13546_v19 = vor.u32 %v15906_v49, %v13543_v3  ;;  %v12858_v23 = vor.u32 %v15745_v55, %v12857_v40  ;;  %v7704_v49 = vunpack.c.l.b16 %v6014_v56  ;;  %v7862_v3 = vunpack.c.h.b16 %v6014_v56  ;;  %v12757_v40 = vld [vmem:[%s24077_s4 + $0x1e8] sm:$0xf]  ;;  %v15720_v55 = vld [vmem:[%s24077_s4 + $0x248] sm:$0xf0] }
 0x3d4   :  { %5665 = vmatmul.bf16.gmra.mxu1 %v19443_v43  ;;  %5713 = vmatmul.bf16.gmra.mxu0 %v19443_v43  ;;  %v13341_v56 = vld [vmem:[%s24077_s4 + $0x688] sm:$0xf] }
 0x3d5   :  { %5894 = vmatpush.bf16.msra.mxu0 %v12562_v13  ;;  %5675 = vmatpush.bf16.msra.mxu3 %v13642_v31  ;;  %v15893_v13 = vld [vmem:[%s24077_s4 + $0x7b0] sm:$0xf0] }
 0x3d6   :  { %v5303_v37 = vpop.f32.mrf.mxu3  ;;  %v5351_v27 = vpop.f32.mrf.mxu2  ;;  %5842 = vmatpush.bf16.msrb.mxu1 %v12958_v2  ;;  %v15881_v31 = vld [vmem:[%s24077_s4 + $0x754] sm:$0xf]  ;;  %5724 = vmatpush.bf16.msra.mxu2 %v13546_v19  ;;  %v15868_v19 = vld [vmem:[%s24077_s4 + $0x6e8] sm:$0xf0] }
 0x3d7   :  { %v5304_v59 = vadd.f32 %v5303_v37, %v20945_v21  ;;  %v5352_v26 = vadd.f32 %v5351_v27, %v20947_v5  ;;  %v13442_v5 = vor.u32 %v15893_v13, %v13441_v6  ;;  %v13446_v2 = vor.u32 %v15881_v31, %v13443_v25  ;;  %v15856_v6 = vld [vmem:[%s24077_s4 + $0x68c] sm:$0xf] }
 0x3d9   :  { %v6027_v42 = vpack.c.bf16 %v5352_v26, %v5304_v59  ;;  %v21375_v7 = vpop.f32.mrf.mxu1  ;;  %v21377_v21 = vpop.f32.mrf.mxu0  ;;  %5676 = vmatpush.bf16.msra.mxu3 %v13542_v39  ;;  %v12758_v39 = vor.u32 %v15720_v55, %v12757_v40  ;;  %v13343_v59 = vld [vmem:[%s24077_s4 + $0x6ec] sm:$0xf0]  ;;  %v12657_v40 = vld [vmem:[%s24077_s4 + $0x120] sm:$0xf]  ;;  %v15695_v55 = vld [vmem:[%s24077_s4 + $0x180] sm:$0xf0] }
 0x3da   :  { %5843 = vmatpush.bf16.msrb.mxu1 %v12858_v23  ;;  %5725 = vmatpush.bf16.msra.mxu2 %v13446_v2  ;;  %v13342_v23 = vor.u32 %v15868_v19, %v13341_v56  ;;  %v12658_v2 = vor.u32 %v15695_v55, %v12657_v40  ;;  %v15670_v56 = vld [vmem:[%s24077_s4 + $0xb8] sm:$0xf0] }
 0x3db   :  { %v7705_v37 = vunpack.c.l.b16 %v6027_v42  ;;  %v7863_v27 = vunpack.c.h.b16 %v6027_v42  ;;  %13716 = vmatmul.msk.bf16.gmra.mxu3 %vm4697_vm7, %v19646_v9  ;;  %13719 = vmatmul.msk.bf16.gmra.mxu2 %vm4697_vm7, %v19646_v9  ;;  %v13346_v42 = vor.u32 %v15856_v6, %v13343_v59 }
 0x3dd   :  { %v21401_v26 = vpack.c.b16 %v7705_v37, %v7704_v49  ;;  %v21403_v13 = vpack.c.b16 %v7863_v27, %v7862_v3  ;;  %5677 = vmatpush.bf16.msra.mxu3 %v13442_v5  ;;  %v12557_v27 = vld [vmem:[%s24077_s4 + $0x58] sm:$0xf] }
 0x3de   :  { %v5306_v31 = vpop.f32.mrf.mxu3  ;;  %v5354_v25 = vpop.f32.mrf.mxu2  ;;  %5844 = vmatpush.bf16.msrb.mxu1 %v12758_v39  ;;  %5726 = vmatpush.bf16.msra.mxu2 %v13346_v42 }
 0x3df   :  { %24222 = vst [vmem:[#allocation16_spill] sm:$0xff] %v21401_v26  ;;  %v5307_v32 = vadd.f32 %v5306_v31, %v20983_v51  ;;  %v5355_v49 = vadd.f32 %v5354_v25, %v20985_v50  ;;  %v13265_v51 = vld [vmem:[%s24077_s4 + $0x5d8] sm:$0xf]  ;;  %v12558_v50 = vor.u32 %v15670_v56, %v12557_v27  ;;  %v13165_v25 = vld [vmem:[%s24077_s4 + $0x510] sm:$0xf] }
 0x3e0   :  { %24223 = vst [vmem:[#allocation17_spill] sm:$0xff] %v21403_v13  ;;  %v15796_v27 = vld [vmem:[%s24077_s4 + $0x4a8] sm:$0xf0]  ;;  %v13649_v13 = vld [vmem:[%s24077_s4 + $0x8e8] sm:$0xf] }
 0x3e1   :  { %v6040_v3 = vpack.c.bf16 %v5355_v49, %v5307_v32  ;;  %v21413_v37 = vpop.f32.mrf.mxu1  ;;  %v21415_v5 = vpop.f32.mrf.mxu0  ;;  %5678 = vmatpush.bf16.msra.mxu3 %v13342_v23  ;;  %v15846_v32 = vld [vmem:[%s24077_s4 + $0x638] sm:$0xf0]  ;;  %v15821_v23 = vld [vmem:[%s24077_s4 + $0x570] sm:$0xf0] }
 0x3e2   :  { %5845 = vmatpush.bf16.msrb.mxu1 %v12658_v2  ;;  %v13266_v6 = vor.u32 %v15846_v32, %v13265_v51 }
 0x3e3   :  { %v7706_v55 = vunpack.c.l.b16 %v6040_v3 }
 0x3e4   :  { %5751 = vmatmul.bf16.vlgmr.msra.gmra.mxu1 %v19301_v41  ;;  %5799 = vmatmul.bf16.vlgmr.msrb.gmra.mxu0 %v19301_v41 }
 0x3e5   :  { %6182 = vmatpush.bf16.msrb.mxu0 %v20310_v28 }
 0x3e6   :  { %v5308_v39 = vpop.f32.mrf.mxu3  ;;  %v5356_v19 = vpop.f32.mrf.mxu2  ;;  %5846 = vmatpush.bf16.msrb.mxu1 %v12558_v50 }
 0x3e7   :  { %v5309_v59 = vadd.f32 %v5308_v39, %v21015_v0  ;;  %v5357_v31 = vadd.f32 %v5356_v19, %v21017_v11  ;;  %v13166_v0 = vor.u32 %v15821_v23, %v13165_v25  ;;  %v7864_v11 = vunpack.c.h.b16 %v6040_v3  ;;  %v21458_v3 = vld [vmem:[%s24077_s4 + $0x9b0] sm:$0x33]  ;;  %v12965_v23 = vld [vmem:[%s24077_s4 + $0x380] sm:$0xf] }
 0x3e8   :  { %v4068_v56 = vunpack.c.h.b16 %v21458_v3 }
 0x3e9   :  { %v6053_v42 = vpack.c.bf16 %v5357_v31, %v5309_v59  ;;  %6183 = vmatpush.bf16.msrb.mxu0 %v20246_v58  ;;  %v21441_v28 = vpop.f32.mrf.mxu1  ;;  %v21443_v40 = vpop.f32.mrf.mxu0  ;;  %v13065_v58 = vld [vmem:[%s24077_s4 + $0x448] sm:$0xf]  ;;  %v15932_v59 = vld [vmem:[%s24077_s4 + $0x8ec] sm:$0xf]  ;;  %v13651_v31 = vld [vmem:[%s24077_s4 + $0x94c] sm:$0xf0] }
 0x3ea   :  { %5935 = vmatpush.bf16.msra.mxu1 %v13266_v6  ;;  %v13066_v19 = vor.u32 %v15796_v27, %v13065_v58  ;;  %v4393_v6 = vpack.c.b16 %v4068_v56, %v4068_v56  ;;  %v15746_v58 = vld [vmem:[%s24077_s4 + $0x318] sm:$0xf0]  ;;  %v15907_v27 = vld [vmem:[%s24077_s4 + $0x824] sm:$0xf]  ;;  %v13551_v56 = vld [vmem:[%s24077_s4 + $0x884] sm:$0xf0] }
 0x3eb   :  { %v7707_v49 = vunpack.c.l.b16 %v6053_v42  ;;  %v7865_v2 = vunpack.c.h.b16 %v6053_v42  ;;  %13717 = vmatmul.msk.bf16.gmra.mxu3 %vm4697_vm7, %v19713_v60  ;;  %13720 = vmatmul.msk.bf16.gmra.mxu2 %vm4697_vm7, %v19713_v60  ;;  %v15771_v42 = vld [vmem:[%s24077_s4 + $0x3e0] sm:$0xf0] }
 0x3ed   :  { %6184 = vmatpush.bf16.msrb.mxu0 %v20165_v48  ;;  %v21462_v51 = vpack.c.b16 %v7707_v49, %v7706_v55  ;;  %v21464_v32 = vpack.c.b16 %v7865_v2, %v7864_v11  ;;  %v13654_v2 = vor.u32 %v15932_v59, %v13651_v31  ;;  %v15882_v59 = vld [vmem:[%s24077_s4 + $0x75c] sm:$0xf]  ;;  %v13451_v31 = vld [vmem:[%s24077_s4 + $0x7bc] sm:$0xf0] }
 0x3ee   :  { %v5392_v50 = vpop.f32.mrf.mxu3  ;;  %v5440_v39 = vpop.f32.mrf.mxu2  ;;  %5936 = vmatpush.bf16.msra.mxu1 %v13166_v0  ;;  %v4772_v0 = vsel %vm4707_vm6, %v4393_v6, 0 }
 0x3ef   :  { %24224 = vst [vmem:[#allocation18_spill] sm:$0xff] %v21464_v32  ;;  %v5393_v25 = vadd.f32 %v5392_v50, %v21066_v16  ;;  %v5441_v48 = vadd.f32 %v5440_v39, %v21068_v61  ;;  %5818 = vmatpush.bf16.msrb.mxu2 %v4772_v0  ;;  %v12966_v16 = vor.u32 %v15771_v42, %v12965_v23  ;;  %v12865_v61 = vld [vmem:[%s24077_s4 + $0x2b8] sm:$0xf]  ;;  %v12765_v23 = vld [vmem:[%s24077_s4 + $0x1f0] sm:$0xf] }
 0x3f0   :  { %v13554_v50 = vor.u32 %v15907_v27, %v13551_v56  ;;  %v12866_v6 = vor.u32 %v15746_v58, %v12865_v61  ;;  %v15721_v42 = vld [vmem:[%s24077_s4 + $0x250] sm:$0xf0]  ;;  %v13454_v61 = vor.u32 %v15882_v59, %v13451_v31  ;;  %v12665_v56 = vld [vmem:[%s24077_s4 + $0x128] sm:$0xf]  ;;  %v13351_v59 = vld [vmem:[%s24077_s4 + $0x6f4] sm:$0xf0] }
 0x3f1   :  { %v5989_v55 = vpack.c.bf16 %v5441_v48, %v5393_v25  ;;  %v21481_v11 = vpop.f32.mrf.mxu1  ;;  %v21483_v49 = vpop.f32.mrf.mxu0  ;;  %v12766_v58 = vor.u32 %v15721_v42, %v12765_v23  ;;  %v21537_v31 = vld [vmem:[%s24077_s4 + $0x9b8] sm:$0x33]  ;;  %v15944_v32 = vld [vmem:[%s24077_s4 + $0x948] sm:$0xf0] }
 0x3f2   :  { %5937 = vmatpush.bf16.msra.mxu1 %v13066_v19  ;;  %v4070_v23 = vunpack.c.h.b16 %v21537_v31 }
 0x3f3   :  { %5819 = vmatpush.bf16.msrb.mxu2 %v13654_v2 }
 0x3f4   :  { %5756 = vmatmul.bf16.gmra.mxu1 %v19375_v38  ;;  %5804 = vmatmul.bf16.gmra.mxu0 %v19375_v38 }
 0x3f6   :  { %v5394_v39 = vpop.f32.mrf.mxu3  ;;  %v5442_v19 = vpop.f32.mrf.mxu2  ;;  %5938 = vmatpush.bf16.msra.mxu1 %v12966_v16 }
 0x3f7   :  { %v5395_v25 = vadd.f32 %v5394_v39, %v21116_v15  ;;  %v5443_v48 = vadd.f32 %v5442_v19, %v21118_v14  ;;  %5820 = vmatpush.bf16.msrb.mxu2 %v13554_v50  ;;  %v8024_v15 = vunpack.c.l.b16 %v5989_v55  ;;  %v15696_v50 = vld [vmem:[%s24077_s4 + $0x188] sm:$0xf0]  ;;  %v4067_v39 = vunpack.c.l.b16 %v21458_v3  ;;  %v15857_v19 = vld [vmem:[%s24077_s4 + $0x694] sm:$0xf] }
 0x3f9   :  { %v6002_v0 = vpack.c.bf16 %v5443_v48, %v5395_v25  ;;  %v21513_v2 = vpop.f32.mrf.mxu1  ;;  %v21515_v16 = vpop.f32.mrf.mxu0  ;;  %v4392_v25 = vpack.c.b16 %v4067_v39, %v4067_v39  ;;  %v13354_v48 = vor.u32 %v15857_v19, %v13351_v59  ;;  %v15933_v59 = vld [vmem:[%s24077_s4 + $0x8f4] sm:$0xf] }
 0x3fa   :  { %5939 = vmatpush.bf16.msra.mxu1 %v12866_v6  ;;  %v8182_v6 = vunpack.c.h.b16 %v5989_v55  ;;  %v12666_v55 = vor.u32 %v15696_v50, %v12665_v56  ;;  %v15671_v56 = vld [vmem:[%s24077_s4 + $0xc0] sm:$0xf0] }
 0x3fb   :  { %v8025_v27 = vunpack.c.l.b16 %v6002_v0  ;;  %v8183_v14 = vunpack.c.h.b16 %v6002_v0  ;;  %13721 = vmatmul.msk.bf16.vlgmr.msra.gmra.mxu3 %vm4697_vm7, %v19576_v29  ;;  %13724 = vmatmul.msk.bf16.vlgmr.msra.gmra.mxu2 %vm4697_vm7, %v19576_v29 }
 0x3fc   :  { %5821 = vmatpush.bf16.msrb.mxu2 %v13454_v61 }
 0x3fd   :  { %v21540_v3 = vpack.c.b16 %v8025_v27, %v8024_v15  ;;  %v21548_v26 = vpack.c.b16 %v8183_v14, %v8182_v6  ;;  %v4769_v15 = vsel %vm4707_vm6, %v4392_v25, 0  ;;  %v4395_v27 = vpack.c.b16 %v4070_v23, %v4070_v23  ;;  %v13659_v25 = vld [vmem:[%s24077_s4 + $0x954] sm:$0xf0]  ;;  %v13549_v23 = vld [vmem:[%s24077_s4 + $0x820] sm:$0xf] }
 0x3fe   :  { %v5397_v42 = vpop.f32.mrf.mxu3  ;;  %v5445_v0 = vpop.f32.mrf.mxu2  ;;  %5940 = vmatpush.bf16.msra.mxu1 %v12766_v58  ;;  %v12565_v58 = vld [vmem:[%s24077_s4 + $0x60] sm:$0xf]  ;;  %5770 = vmatpush.bf16.msrb.mxu3 %v4769_v15  ;;  %v13449_v15 = vld [vmem:[%s24077_s4 + $0x758] sm:$0xf] }
 0x3ff   :  { %24225 = vst [vmem:[#allocation19_spill] sm:$0xff] %v21540_v3  ;;  %v5398_v61 = vadd.f32 %v5397_v42, %v21168_v10  ;;  %v5446_v39 = vadd.f32 %v5445_v0, %v21170_v30  ;;  %v4778_v10 = vsel %vm4707_vm6, %v4395_v27, 0  ;;  %v13650_v30 = vor.u32 %v15944_v32, %v13649_v13  ;;  %v15919_v32 = vld [vmem:[%s24077_s4 + $0x880] sm:$0xf0]  ;;  %v13559_v42 = vld [vmem:[%s24077_s4 + $0x88c] sm:$0xf0] }
 0x400   :  { %24226 = vst [vmem:[#allocation20_spill] sm:$0xff] %v21548_v26  ;;  %5822 = vmatpush.bf16.msrb.mxu2 %v13354_v48  ;;  %v12566_v6 = vor.u32 %v15671_v56, %v12565_v58  ;;  %v13662_v13 = vor.u32 %v15933_v59, %v13659_v25  ;;  %v15908_v48 = vld [vmem:[%s24077_s4 + $0x82c] sm:$0xf]  ;;  %v13550_v0 = vor.u32 %v15919_v32, %v13549_v23  ;;  %v15894_v27 = vld [vmem:[%s24077_s4 + $0x7b8] sm:$0xf0] }
 0x401   :  { %v6015_v50 = vpack.c.bf16 %v5446_v39, %v5398_v61  ;;  %v21559_v19 = vpop.f32.mrf.mxu1  ;;  %v21561_v14 = vpop.f32.mrf.mxu0  ;;  %v13562_v39 = vor.u32 %v15908_v48, %v13559_v42  ;;  %v15869_v42 = vld [vmem:[%s24077_s4 + $0x6f0] sm:$0xf0] }
 0x402   :  { %5941 = vmatpush.bf16.msra.mxu1 %v12666_v55  ;;  %5771 = vmatpush.bf16.msrb.mxu3 %v13650_v30 }
 0x403   :  { %v8026_v25 = vunpack.c.l.b16 %v6015_v50  ;;  %v8184_v23 = vunpack.c.h.b16 %v6015_v50  ;;  %v13349_v50 = vld [vmem:[%s24077_s4 + $0x690] sm:$0xf] }
 0x404   :  { %5914 = vmatpush.bf16.msra.mxu2 %v4778_v10  ;;  %5761 = vmatmul.bf16.gmra.mxu1 %v19443_v43 }
 0x405   :  { %5809 = vmatmul.bf16.gmra.mxu0 %v19443_v43 }
 0x406   :  { %v5399_v55 = vpop.f32.mrf.mxu3  ;;  %v5447_v61 = vpop.f32.mrf.mxu2  ;;  %5942 = vmatpush.bf16.msra.mxu1 %v12566_v6  ;;  %5772 = vmatpush.bf16.msrb.mxu3 %v13550_v0  ;;  %v13450_v6 = vor.u32 %v15894_v27, %v13449_v15  ;;  %v15858_v0 = vld [vmem:[%s24077_s4 + $0x69c] sm:$0xf] }
 0x407   :  { %v5400_v58 = vadd.f32 %v5399_v55, %v21206_v47  ;;  %v5448_v56 = vadd.f32 %v5447_v61, %v21208_v4  ;;  %v15883_v47 = vld [vmem:[%s24077_s4 + $0x764] sm:$0xf]  ;;  %v13459_v4 = vld [vmem:[%s24077_s4 + $0x7c4] sm:$0xf0]  ;;  %v13359_v55 = vld [vmem:[%s24077_s4 + $0x6fc] sm:$0xf0]  ;;  %v13350_v61 = vor.u32 %v15869_v42, %v13349_v50 }
 0x408   :  { %5915 = vmatpush.bf16.msra.mxu2 %v13662_v13  ;;  %v13462_v48 = vor.u32 %v15883_v47, %v13459_v4 }
 0x409   :  { %v6028_v10 = vpack.c.bf16 %v5448_v56, %v5400_v58  ;;  %v21592_v30 = vpop.f32.mrf.mxu1  ;;  %v21594_v59 = vpop.f32.mrf.mxu0  ;;  %v13362_v56 = vor.u32 %v15858_v0, %v13359_v55  ;;  %v13657_v55 = vld [vmem:[%s24077_s4 + $0x8f0] sm:$0xf] }
 0x40a   :  { %5773 = vmatpush.bf16.msrb.mxu3 %v13450_v6 }
 0x40b   :  { %v8027_v13 = vunpack.c.l.b16 %v6028_v10  ;;  %v8185_v32 = vunpack.c.h.b16 %v6028_v10  ;;  %13722 = vmatmul.msk.bf16.gmra.mxu3 %vm4697_vm7, %v19646_v9  ;;  %13725 = vmatmul.msk.bf16.gmra.mxu2 %vm4697_vm7, %v19646_v9 }
 0x40c   :  { %5916 = vmatpush.bf16.msra.mxu2 %v13562_v39 }
 0x40d   :  { %v21618_v39 = vpack.c.b16 %v8027_v13, %v8026_v25  ;;  %v21620_v15 = vpack.c.b16 %v8185_v32, %v8184_v23 }
 0x40e   :  { %v5402_v27 = vpop.f32.mrf.mxu3  ;;  %v5450_v58 = vpop.f32.mrf.mxu2  ;;  %5774 = vmatpush.bf16.msrb.mxu3 %v13350_v61  ;;  %v15945_v61 = vld [vmem:[%s24077_s4 + $0x950] sm:$0xf0] }
 0x40f   :  { %v5403_v10 = vadd.f32 %v5402_v27, %v21244_v24  ;;  %v5451_v47 = vadd.f32 %v5450_v58, %v21246_v45 }
 0x410   :  { %5917 = vmatpush.bf16.msra.mxu2 %v13462_v48 }
 0x411   :  { %v6041_v4 = vpack.c.bf16 %v5451_v47, %v5403_v10  ;;  %v21624_v26 = vpop.f32.mrf.mxu1  ;;  %v21626_v3 = vpop.f32.mrf.mxu0  ;;  %v13658_v10 = vor.u32 %v15945_v61, %v13657_v55  ;;  %v13557_v47 = vld [vmem:[%s24077_s4 + $0x828] sm:$0xf]  ;;  %v3121_v55 = vld [vmem:[%s24077_s4 + $0x9c0] sm:$0x3] }
 0x412   :  { %v4071_v61 = vunpack.c.l.b16 %v3121_v55 }
 0x413   :  { %v8028_v50 = vunpack.c.l.b16 %v6041_v4  ;;  %v8186_v48 = vunpack.c.h.b16 %v6041_v4  ;;  %v15920_v4 = vld [vmem:[%s24077_s4 + $0x888] sm:$0xf0] }
 0x414   :  { %5918 = vmatpush.bf16.msra.mxu2 %v13362_v56  ;;  %5847 = vmatmul.bf16.vlgmr.msrb.gmra.mxu1 %v19301_v41 }
 0x415   :  { %5895 = vmatmul.bf16.vlgmr.msra.gmra.mxu0 %v19301_v41  ;;  %6455 = vmatpush.bf16.msrb.mxu1 %v20525_v22 }
 0x416   :  { %6777 = vmatpush.bf16.msra.mxu0 %v20740_v57  ;;  %v5404_v6 = vpop.f32.mrf.mxu3  ;;  %v5452_v25 = vpop.f32.mrf.mxu2  ;;  %v4069_v57 = vunpack.c.l.b16 %v21537_v31 }
 0x417   :  { %v5405_v24 = vadd.f32 %v5404_v6, %v21276_v17  ;;  %v5453_v45 = vadd.f32 %v5452_v25, %v21278_v63  ;;  %v13457_v25 = vld [vmem:[%s24077_s4 + $0x760] sm:$0xf] }
 0x419   :  { %v6054_v23 = vpack.c.bf16 %v5453_v45, %v5405_v24  ;;  %6456 = vmatpush.bf16.msrb.mxu1 %v20461_v18  ;;  %v21636_v13 = vpop.f32.mrf.mxu1  ;;  %v21638_v32 = vpop.f32.mrf.mxu0  ;;  %v4394_v18 = vpack.c.b16 %v4069_v57, %v4069_v57  ;;  %v15895_v24 = vld [vmem:[%s24077_s4 + $0x7c0] sm:$0xf0] }
 0x41a   :  { %6778 = vmatpush.bf16.msra.mxu0 %v20676_v54 }
 0x41b   :  { %v8029_v22 = vunpack.c.l.b16 %v6054_v23  ;;  %v8187_v42 = vunpack.c.h.b16 %v6054_v23  ;;  %13723 = vmatmul.msk.bf16.gmra.mxu3 %vm4697_vm7, %v19713_v60  ;;  %13726 = vmatmul.msk.bf16.gmra.mxu2 %vm4697_vm7, %v19713_v60 }
 0x41d   :  { %6457 = vmatpush.bf16.msrb.mxu1 %v20380_v20  ;;  %v21647_v54 = vpack.c.b16 %v8029_v22, %v8028_v50  ;;  %v21649_v17 = vpack.c.b16 %v8187_v42, %v8186_v48  ;;  %v13458_v42 = vor.u32 %v15895_v24, %v13457_v25  ;;  %v13665_v24 = vld [vmem:[%s24077_s4 + $0x8f8] sm:$0xf] }
 0x41e   :  { %6779 = vmatpush.bf16.msra.mxu0 %v20595_v8  ;;  %v5488_v63 = vpop.f32.mrf.mxu3  ;;  %v5536_v0 = vpop.f32.mrf.mxu2  ;;  %v4775_v8 = vsel %vm4707_vm6, %v4394_v18, 0 }
 0x41f   :  { %v5489_v31 = vadd.f32 %v5488_v63, %v21329_v34  ;;  %v5537_v20 = vadd.f32 %v5536_v0, %v21331_v52  ;;  %5866 = vmatpush.bf16.msra.mxu3 %v4775_v8  ;;  %v13558_v34 = vor.u32 %v15920_v4, %v13557_v47  ;;  %v4396_v47 = vpack.c.b16 %v4071_v61, %v4071_v61 }
 0x421   :  { %v5990_v27 = vpack.c.bf16 %v5537_v20, %v5489_v31  ;;  %v21660_v58 = vpop.f32.mrf.mxu1  ;;  %v21662_v56 = vpop.f32.mrf.mxu0 }
 0x423   :  { %5867 = vmatpush.bf16.msra.mxu3 %v13658_v10  ;;  %v8346_v57 = vunpack.c.l.b16 %v5990_v27  ;;  %v8504_v18 = vunpack.c.h.b16 %v5990_v27 }
 0x424   :  { %5852 = vmatmul.bf16.gmra.mxu1 %v19375_v38 }
 0x425   :  { %5900 = vmatmul.bf16.gmra.mxu0 %v19375_v38 }
 0x426   :  { %v5490_v52 = vpop.f32.mrf.mxu3  ;;  %v5538_v6 = vpop.f32.mrf.mxu2 }
 0x427   :  { %v5491_v45 = vadd.f32 %v5490_v52, %v21375_v7  ;;  %v5539_v23 = vadd.f32 %v5538_v6, %v21377_v21  ;;  %5868 = vmatpush.bf16.msra.mxu3 %v13558_v34  ;;  %v13357_v7 = vld [vmem:[%s24077_s4 + $0x698] sm:$0xf]  ;;  %v15870_v21 = vld [vmem:[%s24077_s4 + $0x6f8] sm:$0xf0]  ;;  %v4781_v52 = vsel %vm4707_vm6, %v4396_v47, 0 }
 0x428   :  { %v13358_v31 = vor.u32 %v15870_v21, %v13357_v7 }
 0x429   :  { %v6003_v50 = vpack.c.bf16 %v5539_v23, %v5491_v45  ;;  %v21680_v48 = vpop.f32.mrf.mxu1  ;;  %v21682_v22 = vpop.f32.mrf.mxu0  ;;  %v15921_v45 = vld [vmem:[%s24077_s4 + $0x890] sm:$0xf0] }
 0x42b   :  { %v8347_v63 = vunpack.c.l.b16 %v6003_v50  ;;  %v8505_v0 = vunpack.c.h.b16 %v6003_v50  ;;  %13727 = vmatmul.msk.bf16.vlgmr.msrb.gmra.mxu3 %vm4697_vm7, %v19576_v29  ;;  %13730 = vmatmul.msk.bf16.vlgmr.msrb.gmra.mxu2 %vm4697_vm7, %v19576_v29 }
 0x42c   :  { %6307 = vmatpush.bf16.msrb.mxu2 %v20312_v12  ;;  %5869 = vmatpush.bf16.msra.mxu3 %v13458_v42 }
 0x42d   :  { %v21698_v20 = vpack.c.b16 %v8347_v63, %v8346_v57  ;;  %v21700_v8 = vpack.c.b16 %v8505_v0, %v8504_v18 }
 0x42e   :  { %v5493_v27 = vpop.f32.mrf.mxu3  ;;  %v5541_v10 = vpop.f32.mrf.mxu2 }
 0x42f   :  { %v5494_v4 = vadd.f32 %v5493_v27, %v21413_v37  ;;  %v5542_v34 = vadd.f32 %v5541_v10, %v21415_v5  ;;  %v15946_v37 = vld [vmem:[%s24077_s4 + $0x958] sm:$0xf0]  ;;  %v15871_v10 = vld [vmem:[%s24077_s4 + $0x700] sm:$0xf0] }
 0x430   :  { %6308 = vmatpush.bf16.msrb.mxu2 %v20248_v35  ;;  %5870 = vmatpush.bf16.msra.mxu3 %v13358_v31  ;;  %v13565_v35 = vld [vmem:[%s24077_s4 + $0x830] sm:$0xf]  ;;  %v13666_v5 = vor.u32 %v15946_v37, %v13665_v24  ;;  %v13365_v31 = vld [vmem:[%s24077_s4 + $0x6a0] sm:$0xf] }
 0x431   :  { %v6016_v6 = vpack.c.bf16 %v5542_v34, %v5494_v4  ;;  %v21706_v12 = vpop.f32.mrf.mxu1  ;;  %v21708_v25 = vpop.f32.mrf.mxu0  ;;  %v13566_v42 = vor.u32 %v15921_v45, %v13565_v35 }
 0x433   :  { %v8348_v7 = vunpack.c.l.b16 %v6016_v6  ;;  %v8506_v21 = vunpack.c.h.b16 %v6016_v6  ;;  %v13366_v6 = vor.u32 %v15871_v10, %v13365_v31 }
 0x434   :  { %5962 = vmatpush.bf16.msrb.mxu3 %v4781_v52  ;;  %6309 = vmatpush.bf16.msrb.mxu2 %v20167_v46 }
 0x435   :  { %5857 = vmatmul.bf16.gmra.mxu1 %v19443_v43  ;;  %5905 = vmatmul.bf16.gmra.mxu0 %v19443_v43 }
 0x436   :  { %v5495_v23 = vpop.f32.mrf.mxu3  ;;  %v5543_v50 = vpop.f32.mrf.mxu2 }
 0x437   :  { %v5496_v57 = vadd.f32 %v5495_v23, %v21441_v28  ;;  %v5544_v18 = vadd.f32 %v5543_v50, %v21443_v40  ;;  %v13465_v28 = vld [vmem:[%s24077_s4 + $0x768] sm:$0xf]  ;;  %v15896_v40 = vld [vmem:[%s24077_s4 + $0x7c8] sm:$0xf0]  ;;  %v15955_v23 = vld [vmem:[%s24078_s5 + $0x40] sm:$0xff] }
 0x438   :  { %5963 = vmatpush.bf16.msrb.mxu3 %v13666_v5  ;;  %v13466_v27 = vor.u32 %v15896_v40, %v13465_v28 }
 0x439   :  { %v6029_v63 = vpack.c.bf16 %v5544_v18, %v5496_v57  ;;  %v21727_v0 = vpop.f32.mrf.mxu1  ;;  %v21729_v46 = vpop.f32.mrf.mxu0 }
 0x43b   :  { %v8349_v55 = vunpack.c.l.b16 %v6029_v63  ;;  %v8507_v61 = vunpack.c.h.b16 %v6029_v63  ;;  %13728 = vmatmul.msk.bf16.gmra.mxu3 %vm4697_vm7, %v19646_v9  ;;  %13731 = vmatmul.msk.bf16.gmra.mxu2 %vm4697_vm7, %v19646_v9 }
 0x43c   :  { %5964 = vmatpush.bf16.msrb.mxu3 %v13566_v42 }
 0x43d   :  { %v21747_v47 = vpack.c.b16 %v8349_v55, %v8348_v7  ;;  %v21749_v4 = vpack.c.b16 %v8507_v61, %v8506_v21 }
 0x43e   :  { %v5498_v34 = vpop.f32.mrf.mxu3  ;;  %v5546_v52 = vpop.f32.mrf.mxu2 }
 0x43f   :  { %v5499_v24 = vadd.f32 %v5498_v34, %v21481_v11  ;;  %v5547_v37 = vadd.f32 %v5546_v52, %v21483_v49 }
 0x440   :  { %5965 = vmatpush.bf16.msrb.mxu3 %v13466_v27 }
 0x441   :  { %v6042_v35 = vpack.c.bf16 %v5547_v37, %v5499_v24  ;;  %v21753_v5 = vpop.f32.mrf.mxu1  ;;  %v21755_v45 = vpop.f32.mrf.mxu0 }
 0x443   :  { %v8508_v7 = vunpack.c.h.b16 %v6042_v35 }
 0x444   :  { %5966 = vmatpush.bf16.msrb.mxu3 %v13366_v6 }
 0x445   :  { %5943 = vmatmul.bf16.vlgmr.msra.gmra.mxu1 %v19301_v41  ;;  %13790 = vmatmul.msk.bf16.vlgmr.msrb.gmra.mxu0 %vm6152_vm8, %v15955_v23  ;;  %v8350_v41 = vunpack.c.l.b16 %v6042_v35 }
 0x446   :  { %7099 = vmatpush.bf16.msra.mxu1 %v20971_v62  ;;  %v5500_v11 = vpop.f32.mrf.mxu3  ;;  %v5548_v50 = vpop.f32.mrf.mxu2  ;;  %7421 = vmatpush.bf16.msrb.mxu0 %v21229_v33 }
 0x447   :  { %v5501_v49 = vadd.f32 %v5500_v11, %v21513_v2  ;;  %v5549_v42 = vadd.f32 %v5548_v50, %v21515_v16 }
 0x449   :  { %v6055_v57 = vpack.c.bf16 %v5549_v42, %v5501_v49  ;;  %v21767_v18 = vpop.f32.mrf.mxu1  ;;  %v21769_v63 = vpop.f32.mrf.mxu0  ;;  %v24229_v42 = vld [vmem:[#allocation5_spill] sm:$0xff] }
 0x44a   :  { %7100 = vmatpush.bf16.msra.mxu1 %v20904_v44  ;;  %7422 = vmatpush.bf16.msrb.mxu0 %v21153_v36 }
 0x44b   :  { %v8351_v62 = vunpack.c.l.b16 %v6055_v57  ;;  %v8509_v21 = vunpack.c.h.b16 %v6055_v57  ;;  %13729 = vmatmul.msk.bf16.gmra.mxu3 %vm4697_vm7, %v19713_v60  ;;  %13732 = vmatmul.msk.bf16.gmra.mxu2 %vm4697_vm7, %v19713_v60  ;;  %v24230_v57 = vld [vmem:[#allocation7_spill] sm:$0xff] }
 0x44d   :  { %v21777_v33 = vpack.c.b16 %v8351_v62, %v8350_v41  ;;  %v21779_v44 = vpack.c.b16 %v8509_v21, %v8508_v7  ;;  %v15957_v21 = vld [vmem:[%s24078_s5 + $0x50] sm:$0xff] }
 0x44e   :  { %7101 = vmatpush.bf16.msra.mxu1 %v20810_v53  ;;  %v5584_v2 = vpop.f32.mrf.mxu3  ;;  %v5632_v16 = vpop.f32.mrf.mxu2  ;;  %7423 = vmatpush.bf16.msrb.mxu0 %v21047_v1  ;;  %v15956_v53 = vld [vmem:[%s24078_s5 + $0x48] sm:$0xff] }
 0x44f   :  { %v5585_v36 = vadd.f32 %v5584_v2, %v21559_v19  ;;  %v5633_v55 = vadd.f32 %v5632_v16, %v21561_v14  ;;  %v24231_v2 = vld [vmem:[#allocation2_spill] sm:$0xff]  ;;  %v24232_v16 = vld [vmem:[#allocation4_spill] sm:$0xff] }
 0x451   :  { %v5991_v61 = vpack.c.bf16 %v5633_v55, %v5585_v36  ;;  %v21784_v28 = vpop.f32.mrf.mxu1  ;;  %v21786_v40 = vpop.f32.mrf.mxu0 }
 0x453   :  { %v8668_v52 = vunpack.c.l.b16 %v5991_v61  ;;  %v8826_v6 = vunpack.c.h.b16 %v5991_v61 }
 0x455   :  { %5948 = vmatmul.bf16.gmra.mxu1 %v19375_v38  ;;  %13791 = vmatmul.msk.bf16.gmra.mxu0 %vm6152_vm8, %v15956_v53  ;;  %v24227_v38 = vld [vmem:[#allocation3_spill] sm:$0xff] }
 0x456   :  { %v5586_v31 = vpop.f32.mrf.mxu3  ;;  %v5634_v27 = vpop.f32.mrf.mxu2 }
 0x457   :  { %v5587_v1 = vadd.f32 %v5586_v31, %v21592_v30  ;;  %v5635_v19 = vadd.f32 %v5634_v27, %v21594_v59  ;;  %v24228_v30 = vld [vmem:[#allocation6_spill] sm:$0xff] }
 0x459   :  { %v6004_v14 = vpack.c.bf16 %v5635_v19, %v5587_v1  ;;  %v21795_v10 = vpop.f32.mrf.mxu1  ;;  %v21797_v34 = vpop.f32.mrf.mxu0 }
 0x45b   :  { %v8669_v24 = vunpack.c.l.b16 %v6004_v14  ;;  %v8827_v37 = vunpack.c.h.b16 %v6004_v14  ;;  %13733 = vmatmul.msk.bf16.vlgmr.msra.gmra.mxu3 %vm4697_vm7, %v19576_v29  ;;  %13736 = vmatmul.msk.bf16.vlgmr.msra.gmra.mxu2 %vm4697_vm7, %v19576_v29 }
 0x45c   :  { %6613 = vmatpush.bf16.msra.mxu3 %v24227_v38  ;;  %6935 = vmatpush.bf16.msra.mxu2 %v24228_v30 }
 0x45d   :  { %v21805_v59 = vpack.c.b16 %v8669_v24, %v8668_v52  ;;  %v21807_v35 = vpack.c.b16 %v8827_v37, %v8826_v6 }
 0x45e   :  { %v5589_v23 = vpop.f32.mrf.mxu3  ;;  %v5637_v11 = vpop.f32.mrf.mxu2 }
 0x45f   :  { %v5590_v50 = vadd.f32 %v5589_v23, %v21624_v26  ;;  %v5638_v49 = vadd.f32 %v5637_v11, %v21626_v3  ;;  %v15958_v23 = vld [vmem:[%s24078_s5 + $0x58] sm:$0xff]  ;;  %v15963_v11 = vld [vmem:[%s24078_s5 + $0x80] sm:$0xff] }
 0x460   :  { %6614 = vmatpush.bf16.msra.mxu3 %v24229_v42  ;;  %6936 = vmatpush.bf16.msra.mxu2 %v24230_v57 }
 0x461   :  { %v6017_v41 = vpack.c.bf16 %v5638_v49, %v5590_v50  ;;  %v21813_v7 = vpop.f32.mrf.mxu1  ;;  %v21815_v62 = vpop.f32.mrf.mxu0 }
 0x463   :  { %v8670_v27 = vunpack.c.l.b16 %v6017_v41  ;;  %v8828_v1 = vunpack.c.h.b16 %v6017_v41 }
 0x464   :  { %6615 = vmatpush.bf16.msra.mxu3 %v24231_v2  ;;  %6937 = vmatpush.bf16.msra.mxu2 %v24232_v16 }
 0x465   :  { %5953 = vmatmul.bf16.gmra.mxu1 %v19443_v43  ;;  %13792 = vmatmul.msk.bf16.gmra.mxu0 %vm6152_vm8, %v15957_v21  ;;  %v24233_v21 = vld [vmem:[#allocation16_spill] sm:$0xff] }
 0x466   :  { %v5591_v26 = vpop.f32.mrf.mxu3  ;;  %v5639_v3 = vpop.f32.mrf.mxu2 }
 0x467   :  { %v5592_v36 = vadd.f32 %v5591_v26, %v21636_v13  ;;  %v5640_v55 = vadd.f32 %v5639_v3, %v21638_v32 }
 0x469   :  { %v6030_v61 = vpack.c.bf16 %v5640_v55, %v5592_v36  ;;  %v21826_v53 = vpop.f32.mrf.mxu1  ;;  %v21828_v31 = vpop.f32.mrf.mxu0  ;;  %v24234_v55 = vld [vmem:[#allocation14_spill] sm:$0xff] }
 0x46b   :  { %v8671_v19 = vunpack.c.l.b16 %v6030_v61  ;;  %v8829_v14 = vunpack.c.h.b16 %v6030_v61  ;;  %13734 = vmatmul.msk.bf16.gmra.mxu3 %vm4697_vm7, %v19646_v9  ;;  %13737 = vmatmul.msk.bf16.gmra.mxu2 %vm4697_vm7, %v19646_v9 }
 0x46d   :  { %v21834_v43 = vpack.c.b16 %v8671_v19, %v8670_v27  ;;  %v21836_v13 = vpack.c.b16 %v8829_v14, %v8828_v1 }
 0x46e   :  { %v5594_v32 = vpop.f32.mrf.mxu3  ;;  %v5642_v52 = vpop.f32.mrf.mxu2 }
 0x46f   :  { %v5595_v6 = vadd.f32 %v5594_v32, %v21660_v58  ;;  %v5643_v24 = vadd.f32 %v5642_v52, %v21662_v56  ;;  %v15959_v32 = vld [vmem:[%s24078_s5 + $0x60] sm:$0xff]  ;;  %v15964_v52 = vld [vmem:[%s24078_s5 + $0x88] sm:$0xff] }
 0x471   :  { %v6043_v37 = vpack.c.bf16 %v5643_v24, %v5595_v6  ;;  %v21840_v38 = vpop.f32.mrf.mxu1  ;;  %v21842_v30 = vpop.f32.mrf.mxu0 }
 0x473   :  { %v8672_v2 = vunpack.c.l.b16 %v6043_v37  ;;  %v8830_v16 = vunpack.c.h.b16 %v6043_v37  ;;  %v15947_v37 = vld [vmem:[%s24078_s5] sm:$0xff] }
 0x475   :  { %13793 = vmatmul.msk.bf16.gmra.mxu0 %vm6152_vm8, %v15958_v23  ;;  %13886 = vmatmul.msk.bf16.vlgmr.msrb.gmra.mxu1 %vm6152_vm8, %v15963_v11 }
 0x476   :  { %v5596_v58 = vpop.f32.mrf.mxu3  ;;  %v5644_v50 = vpop.f32.mrf.mxu2  ;;  %7743 = vmatpush.bf16.msrb.mxu1 %v21462_v51 }
 0x477   :  { %v5597_v56 = vadd.f32 %v5596_v58, %v21680_v48  ;;  %v5645_v49 = vadd.f32 %v5644_v50, %v21682_v22 }
 0x479   :  { %v6056_v42 = vpack.c.bf16 %v5645_v49, %v5597_v56  ;;  %v21855_v57 = vpop.f32.mrf.mxu1  ;;  %v21857_v41 = vpop.f32.mrf.mxu0 }
 0x47a   :  { %7744 = vmatpush.bf16.msrb.mxu1 %v24233_v21 }
 0x47b   :  { %v8673_v26 = vunpack.c.l.b16 %v6056_v42  ;;  %v8831_v3 = vunpack.c.h.b16 %v6056_v42  ;;  %13735 = vmatmul.msk.bf16.gmra.mxu3 %vm4697_vm7, %v19713_v60  ;;  %13738 = vmatmul.msk.bf16.gmra.mxu2 %vm4697_vm7, %v19713_v60 }
 0x47d   :  { %v21864_v51 = vpack.c.b16 %v8673_v26, %v8672_v2  ;;  %v21866_v48 = vpack.c.b16 %v8831_v3, %v8830_v16 }
 0x47e   :  { %v5680_v22 = vpop.f32.mrf.mxu3  ;;  %v5728_v36 = vpop.f32.mrf.mxu2  ;;  %7745 = vmatpush.bf16.msrb.mxu1 %v24234_v55  ;;  %v24238_v55 = vld [vmem:[#allocation12_spill] sm:$0xff] }
 0x47f   :  { %v5681_v61 = vadd.f32 %v5680_v22, %v21706_v12  ;;  %v5729_v27 = vadd.f32 %v5728_v36, %v21708_v25  ;;  %v24237_v36 = vld [vmem:[#allocation9_spill] sm:$0xff] }
 0x481   :  { %v5992_v1 = vpack.c.bf16 %v5729_v27, %v5681_v61  ;;  %v21871_v19 = vpop.f32.mrf.mxu1 }
 0x482   :  { %v21873_v14 = vpop.f32.mrf.mxu0 }
 0x483   :  { %v8990_v50 = vunpack.c.l.b16 %v5992_v1  ;;  %v9148_v56 = vunpack.c.h.b16 %v5992_v1  ;;  %v15960_v1 = vld [vmem:[%s24078_s5 + $0x68] sm:$0xff] }
 0x485   :  { %13794 = vmatmul.msk.bf16.gmra.mxu0 %vm6152_vm8, %v15959_v32  ;;  %13887 = vmatmul.msk.bf16.gmra.mxu1 %vm6152_vm8, %v15964_v52  ;;  %v15965_v32 = vld [vmem:[%s24078_s5 + $0x90] sm:$0xff] }
 0x486   :  { %v5682_v12 = vpop.f32.mrf.mxu3  ;;  %v5730_v6 = vpop.f32.mrf.mxu2 }
 0x487   :  { %v5683_v25 = vadd.f32 %v5682_v12, %v21727_v0  ;;  %v5731_v24 = vadd.f32 %v5730_v6, %v21729_v46  ;;  %v24235_v0 = vld [vmem:[#allocation10_spill] sm:$0xff]  ;;  %v24236_v46 = vld [vmem:[#allocation13_spill] sm:$0xff] }
 0x489   :  { %v6005_v23 = vpack.c.bf16 %v5731_v24, %v5683_v25  ;;  %v21888_v11 = vpop.f32.mrf.mxu1  ;;  %v15948_v24 = vld [vmem:[%s24078_s5 + $0x8] sm:$0xff] }
 0x48a   :  { %v21890_v58 = vpop.f32.mrf.mxu0 }
 0x48b   :  { %v8991_v49 = vunpack.c.l.b16 %v6005_v23  ;;  %v9149_v42 = vunpack.c.h.b16 %v6005_v23  ;;  %13739 = vmatmul.msk.bf16.vlgmr.msrb.gmra.mxu3 %vm4697_vm7, %v19576_v29  ;;  %13830 = vmatmul.msk.bf16.vlgmr.msrb.gmra.mxu2 %vm6152_vm8, %v15947_v37 }
 0x48c   :  { %7257 = vmatpush.bf16.msrb.mxu3 %v24235_v0  ;;  %7579 = vmatpush.bf16.msrb.mxu2 %v24236_v46 }
 0x48d   :  { %v21897_v21 = vpack.c.b16 %v8991_v49, %v8990_v50  ;;  %v21899_v2 = vpack.c.b16 %v9149_v42, %v9148_v56 }
 0x48e   :  { %v5685_v16 = vpop.f32.mrf.mxu3  ;;  %v5733_v26 = vpop.f32.mrf.mxu2 }
 0x48f   :  { %v5686_v3 = vadd.f32 %v5685_v16, %v21753_v5  ;;  %v5734_v22 = vadd.f32 %v5733_v26, %v21755_v45  ;;  %v24239_v5 = vld [vmem:[#allocation8_spill] sm:$0xff]  ;;  %v24240_v45 = vld [vmem:[#allocation11_spill] sm:$0xff] }
 0x490   :  { %7258 = vmatpush.bf16.msrb.mxu3 %v24237_v36  ;;  %7580 = vmatpush.bf16.msrb.mxu2 %v24238_v55 }
 0x491   :  { %v6018_v29 = vpack.c.bf16 %v5734_v22, %v5686_v3  ;;  %v21905_v61 = vpop.f32.mrf.mxu1 }
 0x492   :  { %v21907_v27 = vpop.f32.mrf.mxu0 }
 0x493   :  { %v8992_v56 = vunpack.c.l.b16 %v6018_v29  ;;  %v9150_v49 = vunpack.c.h.b16 %v6018_v29  ;;  %v15966_v29 = vld [vmem:[%s24078_s5 + $0x98] sm:$0xff] }
 0x494   :  { %7259 = vmatpush.bf16.msrb.mxu3 %v24239_v5  ;;  %7581 = vmatpush.bf16.msrb.mxu2 %v24240_v45  ;;  %v15949_v5 = vld [vmem:[%s24078_s5 + $0x10] sm:$0xff] }
 0x495   :  { %13795 = vmatmul.msk.bf16.gmra.mxu0 %vm6152_vm8, %v15960_v1  ;;  %13888 = vmatmul.msk.bf16.gmra.mxu1 %vm6152_vm8, %v15965_v32 }
 0x496   :  { %v5687_v52 = vpop.f32.mrf.mxu3  ;;  %v5735_v12 = vpop.f32.mrf.mxu2 }
 0x497   :  { %v5688_v6 = vadd.f32 %v5687_v52, %v21767_v18  ;;  %v5736_v25 = vadd.f32 %v5735_v12, %v21769_v63 }
 0x499   :  { %v6031_v37 = vpack.c.bf16 %v5736_v25, %v5688_v6  ;;  %v21924_v23 = vpop.f32.mrf.mxu1 }
 0x49a   :  { %v21926_v50 = vpop.f32.mrf.mxu0 }
 0x49b   :  { %v8993_v42 = vunpack.c.l.b16 %v6031_v37  ;;  %v9151_v0 = vunpack.c.h.b16 %v6031_v37  ;;  %13740 = vmatmul.msk.bf16.gmra.mxu3 %vm4697_vm7, %v19646_v9  ;;  %13831 = vmatmul.msk.bf16.gmra.mxu2 %vm6152_vm8, %v15948_v24  ;;  %v15961_v9 = vld [vmem:[%s24078_s5 + $0x70] sm:$0xff] }
 0x49d   :  { %v21931_v18 = vpack.c.b16 %v8993_v42, %v8992_v56  ;;  %v21933_v63 = vpack.c.b16 %v9151_v0, %v9150_v49 }
 0x49e   :  { %v5690_v46 = vpop.f32.mrf.mxu3  ;;  %v5738_v16 = vpop.f32.mrf.mxu2 }
 0x49f   :  { %v5691_v26 = vadd.f32 %v5690_v46, %v21784_v28  ;;  %v5739_v3 = vadd.f32 %v5738_v16, %v21786_v40 }
 0x4a1   :  { %v6044_v22 = vpack.c.bf16 %v5739_v3, %v5691_v26  ;;  %v21937_v36 = vpop.f32.mrf.mxu1  ;;  %v15962_v26 = vld [vmem:[%s24078_s5 + $0x78] sm:$0xff] }
 0x4a2   :  { %v21939_v55 = vpop.f32.mrf.mxu0 }
 0x4a3   :  { %v8994_v6 = vunpack.c.l.b16 %v6044_v22  ;;  %v9152_v25 = vunpack.c.h.b16 %v6044_v22 }
 0x4a5   :  { %13796 = vmatmul.msk.bf16.gmra.mxu0 %vm6152_vm8, %v15961_v9  ;;  %13889 = vmatmul.msk.bf16.gmra.mxu1 %vm6152_vm8, %v15966_v29  ;;  %v15950_v29 = vld [vmem:[%s24078_s5 + $0x18] sm:$0xff] }
 0x4a6   :  { %v5692_v28 = vpop.f32.mrf.mxu3  ;;  %v5740_v1 = vpop.f32.mrf.mxu2 }
 0x4a7   :  { %v5693_v40 = vadd.f32 %v5692_v28, %v21795_v10  ;;  %v5741_v32 = vadd.f32 %v5740_v1, %v21797_v34  ;;  %v15971_v28 = vld [vmem:[%s24078_s5 + $0xc0] sm:$0xff] }
 0x4a9   :  { %v6057_v45 = vpack.c.bf16 %v5741_v32, %v5693_v40  ;;  %v21954_v52 = vpop.f32.mrf.mxu1 }
 0x4aa   :  { %v21956_v12 = vpop.f32.mrf.mxu0 }
 0x4ab   :  { %v8995_v24 = vunpack.c.l.b16 %v6057_v45  ;;  %v9153_v37 = vunpack.c.h.b16 %v6057_v45  ;;  %13741 = vmatmul.msk.bf16.gmra.mxu3 %vm4697_vm7, %v19713_v60  ;;  %13832 = vmatmul.msk.bf16.gmra.mxu2 %vm6152_vm8, %v15949_v5  ;;  %v15967_v60 = vld [vmem:[%s24078_s5 + $0xa0] sm:$0xff] }
 0x4ad   :  { %v21961_v10 = vpack.c.b16 %v8995_v24, %v8994_v6  ;;  %v21963_v34 = vpack.c.b16 %v9153_v37, %v9152_v25 }
 0x4ae   :  { %v5776_v56 = vpop.f32.mrf.mxu3  ;;  %v5824_v49 = vpop.f32.mrf.mxu2 }
 0x4af   :  { %v5777_v42 = vadd.f32 %v5776_v56, %v21813_v7  ;;  %v5825_v0 = vadd.f32 %v5824_v49, %v21815_v62 }
 0x4b1   :  { %v5993_v46 = vpack.c.bf16 %v5825_v0, %v5777_v42  ;;  %v24242_v0 = vld [vmem:[#allocation17_spill] sm:$0xff] }
 0x4b2   :  { %v21967_v16 = vpop.f32.mrf.mxu1  ;;  %v21975_v3 = vpop.f32.mrf.mxu0 }
 0x4b3   :  { %v9312_v5 = vunpack.c.l.b16 %v5993_v46  ;;  %v9470_v45 = vunpack.c.h.b16 %v5993_v46 }
 0x4b5   :  { %13797 = vmatmul.msk.bf16.gmra.mxu0 %vm6152_vm8, %v15962_v26  ;;  %13890 = vmatmul.msk.bf16.gmra.mxu1 %vm6152_vm8, %v15967_v60  ;;  %v15968_v60 = vld [vmem:[%s24078_s5 + $0xa8] sm:$0xff] }
 0x4b6   :  { %v5778_v7 = vpop.f32.mrf.mxu3  ;;  %v5826_v22 = vpop.f32.mrf.mxu2 }
 0x4b7   :  { %v5779_v62 = vadd.f32 %v5778_v7, %v21826_v53  ;;  %v5827_v9 = vadd.f32 %v5826_v22, %v21828_v31  ;;  %v24241_v53 = vld [vmem:[#allocation18_spill] sm:$0xff] }
 0x4b8   :  { %v15979_v7 = vld [vmem:[%s24078_s5 + $0x100] sm:$0xff] }
 0x4b9   :  { %v6006_v1 = vpack.c.bf16 %v5827_v9, %v5779_v62  ;;  %v24243_v62 = vld [vmem:[#allocation15_spill] sm:$0xff] }
 0x4ba   :  { %v21987_v40 = vpop.f32.mrf.mxu1  ;;  %v21989_v32 = vpop.f32.mrf.mxu0 }
 0x4bb   :  { %v9313_v6 = vunpack.c.l.b16 %v6006_v1  ;;  %v9471_v25 = vunpack.c.h.b16 %v6006_v1  ;;  %13833 = vmatmul.msk.bf16.gmra.mxu2 %vm6152_vm8, %v15950_v29  ;;  %13942 = vmatmul.msk.bf16.vlgmr.msra.gmra.mxu3 %vm6152_vm8, %v15971_v28  ;;  %v15951_v28 = vld [vmem:[%s24078_s5 + $0x20] sm:$0xff]  ;;  %v15972_v1 = vld [vmem:[%s24078_s5 + $0xc8] sm:$0xff] }
 0x4bc   :  { %7901 = vmatpush.bf16.msra.mxu3 %v24241_v53 }
 0x4bd   :  { %v21994_v31 = vpack.c.b16 %v9313_v6, %v9312_v5  ;;  %v21996_v24 = vpack.c.b16 %v9471_v25, %v9470_v45 }
 0x4be   :  { %v5781_v37 = vpop.f32.mrf.mxu3  ;;  %v5829_v56 = vpop.f32.mrf.mxu2 }
 0x4bf   :  { %v5782_v49 = vadd.f32 %v5781_v37, %v21840_v38  ;;  %v5830_v42 = vadd.f32 %v5829_v56, %v21842_v30 }
 0x4c0   :  { %7902 = vmatpush.bf16.msra.mxu3 %v24242_v0 }
 0x4c1   :  { %v6019_v46 = vpack.c.bf16 %v5830_v42, %v5782_v49  ;;  %v24244_v42 = vld [vmem:[#allocation19_spill] sm:$0xff] }
 0x4c2   :  { %v22001_v26 = vpop.f32.mrf.mxu1  ;;  %v22009_v22 = vpop.f32.mrf.mxu0 }
 0x4c3   :  { %v9472_v25 = vunpack.c.h.b16 %v6019_v46 }
 0x4c4   :  { %7903 = vmatpush.bf16.msra.mxu3 %v24243_v62  ;;  %v15980_v62 = vld [vmem:[%s24078_s5 + $0x108] sm:$0xff] }
 0x4c5   :  { %13891 = vmatmul.msk.bf16.gmra.mxu1 %vm6152_vm8, %v15968_v60  ;;  %13998 = vmatmul.msk.bf16.vlgmr.msra.gmra.mxu0 %vm6152_vm8, %v15979_v7  ;;  %v15969_v7 = vld [vmem:[%s24078_s5 + $0xb0] sm:$0xff] }
 0x4c6   :  { %v5783_v38 = vpop.f32.mrf.mxu3  ;;  %v5831_v30 = vpop.f32.mrf.mxu2  ;;  %8065 = vmatpush.bf16.msra.mxu0 %v21647_v54  ;;  %v9314_v54 = vunpack.c.l.b16 %v6019_v46 }
 0x4c7   :  { %v5784_v9 = vadd.f32 %v5783_v38, %v21855_v57  ;;  %v5832_v29 = vadd.f32 %v5831_v30, %v21857_v41 }
 0x4c9   :  { %v6032_v5 = vpack.c.bf16 %v5832_v29, %v5784_v9  ;;  %v15952_v29 = vld [vmem:[%s24078_s5 + $0x28] sm:$0xff] }
 0x4ca   :  { %v22023_v45 = vpop.f32.mrf.mxu1  ;;  %8066 = vmatpush.bf16.msra.mxu0 %v21618_v39  ;;  %v22026_v6 = vpop.f32.mrf.mxu0 }
 0x4cb   :  { %v9315_v57 = vunpack.c.l.b16 %v6032_v5  ;;  %v9473_v53 = vunpack.c.h.b16 %v6032_v5  ;;  %13834 = vmatmul.msk.bf16.gmra.mxu2 %vm6152_vm8, %v15951_v28  ;;  %13943 = vmatmul.msk.bf16.gmra.mxu3 %vm6152_vm8, %v15972_v1  ;;  %v15973_v28 = vld [vmem:[%s24078_s5 + $0xd0] sm:$0xff] }
 0x4cd   :  { %v22030_v41 = vpack.c.b16 %v9315_v57, %v9314_v54  ;;  %v22032_v37 = vpack.c.b16 %v9473_v53, %v9472_v25 }
 0x4ce   :  { %v5786_v56 = vpop.f32.mrf.mxu3  ;;  %v5834_v49 = vpop.f32.mrf.mxu2  ;;  %8067 = vmatpush.bf16.msra.mxu0 %v24244_v42 }
 0x4cf   :  { %v5787_v39 = vadd.f32 %v5786_v56, %v21871_v19  ;;  %v5835_v0 = vadd.f32 %v5834_v49, %v21873_v14 }
 0x4d1   :  { %v6045_v60 = vpack.c.bf16 %v5835_v0, %v5787_v39 }
 0x4d2   :  { %v22037_v46 = vpop.f32.mrf.mxu1  ;;  %v22045_v38 = vpop.f32.mrf.mxu0 }
 0x4d3   :  { %v9316_v25 = vunpack.c.l.b16 %v6045_v60  ;;  %v9474_v57 = vunpack.c.h.b16 %v6045_v60  ;;  %v15970_v60 = vld [vmem:[%s24078_s5 + $0xb8] sm:$0xff] }
 0x4d5   :  { %13892 = vmatmul.msk.bf16.gmra.mxu1 %vm6152_vm8, %v15969_v7  ;;  %13999 = vmatmul.msk.bf16.gmra.mxu0 %vm6152_vm8, %v15980_v62  ;;  %v15981_v62 = vld [vmem:[%s24078_s5 + $0x110] sm:$0xff] }
 0x4d6   :  { %v5788_v19 = vpop.f32.mrf.mxu3  ;;  %v5836_v30 = vpop.f32.mrf.mxu2 }
 0x4d7   :  { %v5789_v14 = vadd.f32 %v5788_v19, %v21888_v11  ;;  %v5837_v9 = vadd.f32 %v5836_v30, %v21890_v58 }
 0x4d9   :  { %v6058_v1 = vpack.c.bf16 %v5837_v9, %v5789_v14 }
 0x4da   :  { %v22057_v5 = vpop.f32.mrf.mxu1  ;;  %v22059_v54 = vpop.f32.mrf.mxu0 }
 0x4db   :  { %v9317_v53 = vunpack.c.l.b16 %v6058_v1  ;;  %v9475_v56 = vunpack.c.h.b16 %v6058_v1  ;;  %13835 = vmatmul.msk.bf16.gmra.mxu2 %vm6152_vm8, %v15952_v29  ;;  %13944 = vmatmul.msk.bf16.gmra.mxu3 %vm6152_vm8, %v15973_v28  ;;  %v15953_v29 = vld [vmem:[%s24078_s5 + $0x30] sm:$0xff]  ;;  %v15974_v28 = vld [vmem:[%s24078_s5 + $0xd8] sm:$0xff] }
 0x4dd   :  { %v22063_v11 = vpack.c.b16 %v9317_v53, %v9316_v25  ;;  %v22065_v58 = vpack.c.b16 %v9475_v56, %v9474_v57 }
 0x4de   :  { %v5872_v49 = vpop.f32.mrf.mxu3  ;;  %v5920_v42 = vpop.f32.mrf.mxu2 }
 0x4df   :  { %v5873_v39 = vadd.f32 %v5872_v49, %v21905_v61  ;;  %v5921_v0 = vadd.f32 %v5920_v42, %v21907_v27 }
 0x4e1   :  { %v5994_v7 = vpack.c.bf16 %v5921_v0, %v5873_v39 }
 0x4e2   :  { %v22075_v19 = vpop.f32.mrf.mxu1  ;;  %v22077_v30 = vpop.f32.mrf.mxu0 }
 0x4e3   :  { %v9634_v57 = vunpack.c.l.b16 %v5994_v7  ;;  %v9792_v53 = vunpack.c.h.b16 %v5994_v7  ;;  %v15982_v7 = vld [vmem:[%s24078_s5 + $0x118] sm:$0xff] }
 0x4e5   :  { %13893 = vmatmul.msk.bf16.gmra.mxu1 %vm6152_vm8, %v15970_v60  ;;  %14000 = vmatmul.msk.bf16.gmra.mxu0 %vm6152_vm8, %v15981_v62 }
 0x4e6   :  { %v5874_v61 = vpop.f32.mrf.mxu3  ;;  %v5922_v14 = vpop.f32.mrf.mxu2 }
 0x4e7   :  { %v5875_v27 = vadd.f32 %v5874_v61, %v21924_v23  ;;  %v5923_v9 = vadd.f32 %v5922_v14, %v21926_v50  ;;  %v15995_v14 = vld [vmem:[%s24078_s5 + $0x180] sm:$0xff] }
 0x4e9   :  { %v6007_v1 = vpack.c.bf16 %v5923_v9, %v5875_v27 }
 0x4ea   :  { %v22089_v25 = vpop.f32.mrf.mxu0  ;;  %v22093_v23 = vpop.f32.mrf.mxu1 }
 0x4eb   :  { %v9635_v56 = vunpack.c.l.b16 %v6007_v1  ;;  %v9793_v49 = vunpack.c.h.b16 %v6007_v1  ;;  %13836 = vmatmul.msk.bf16.gmra.mxu2 %vm6152_vm8, %v15953_v29  ;;  %13945 = vmatmul.msk.bf16.gmra.mxu3 %vm6152_vm8, %v15974_v28  ;;  %v15954_v1 = vld [vmem:[%s24078_s5 + $0x38] sm:$0xff] }
 0x4ed   :  { %v22095_v50 = vpack.c.b16 %v9635_v56, %v9634_v57  ;;  %v22097_v42 = vpack.c.b16 %v9793_v49, %v9792_v53  ;;  %v15975_v57 = vld [vmem:[%s24078_s5 + $0xe0] sm:$0xff] }
 0x4ee   :  { %v5877_v39 = vpop.f32.mrf.mxu3  ;;  %v5925_v0 = vpop.f32.mrf.mxu2 }
 0x4ef   :  { %v5878_v60 = vadd.f32 %v5877_v39, %v21937_v36  ;;  %v5926_v62 = vadd.f32 %v5925_v0, %v21939_v55 }
 0x4f1   :  { %v6020_v61 = vpack.c.bf16 %v5926_v62, %v5878_v60 }
 0x4f2   :  { %v22107_v27 = vpop.f32.mrf.mxu0  ;;  %v6459_v9 = vpop.f32.mrf.mxu1 }
 0x4f3   :  { %v9636_v49 = vunpack.c.l.b16 %v6020_v61  ;;  %v9794_v39 = vunpack.c.h.b16 %v6020_v61 }
 0x4f5   :  { %14001 = vmatmul.msk.bf16.gmra.mxu0 %vm6152_vm8, %v15982_v7  ;;  %14110 = vmatmul.msk.bf16.vlgmr.msra.gmra.mxu1 %vm6152_vm8, %v15995_v14 }
 0x4f6   :  { %v5879_v29 = vpop.f32.mrf.mxu3  ;;  %v5927_v36 = vpop.f32.mrf.mxu2  ;;  %8387 = vmatpush.bf16.msra.mxu1 %v21777_v33 }
 0x4f7   :  { %v5880_v55 = vadd.f32 %v5879_v29, %v21954_v52  ;;  %v5928_v28 = vadd.f32 %v5927_v36, %v21956_v12  ;;  %v15983_v29 = vld [vmem:[%s24078_s5 + $0x120] sm:$0xff]  ;;  %v15996_v36 = vld [vmem:[%s24078_s5 + $0x188] sm:$0xff] }
 0x4f9   :  { %v6033_v53 = vpack.c.bf16 %v5928_v28, %v5880_v55 }
 0x4fa   :  { %8388 = vmatpush.bf16.msra.mxu1 %v21747_v47  ;;  %v22121_v56 = vpop.f32.mrf.mxu0  ;;  %v6461_v52 = vpop.f32.mrf.mxu1 }
 0x4fb   :  { %v9637_v33 = vunpack.c.l.b16 %v6033_v53  ;;  %v9795_v0 = vunpack.c.h.b16 %v6033_v53  ;;  %13837 = vmatmul.msk.bf16.gmra.mxu2 %vm6152_vm8, %v15954_v1  ;;  %13946 = vmatmul.msk.bf16.gmra.mxu3 %vm6152_vm8, %v15975_v57  ;;  %v15976_v57 = vld [vmem:[%s24078_s5 + $0xe8] sm:$0xff]  ;;  %v15987_v53 = vld [vmem:[%s24078_s5 + $0x140] sm:$0xff] }
 0x4fd   :  { %v22125_v12 = vpack.c.b16 %v9637_v33, %v9636_v49  ;;  %v22127_v60 = vpack.c.b16 %v9795_v0, %v9794_v39 }
 0x4fe   :  { %v5882_v62 = vpop.f32.mrf.mxu3  ;;  %v5930_v7 = vpop.f32.mrf.mxu2  ;;  %8389 = vmatpush.bf16.msra.mxu1 %v21698_v20 }
 0x4ff   :  { %v5883_v47 = vadd.f32 %v5882_v62, %v21967_v16  ;;  %v5931_v14 = vadd.f32 %v5930_v7, %v21975_v3 }
 0x501   :  { %v6046_v61 = vpack.c.bf16 %v5931_v14, %v5883_v47 }
 0x502   :  { %v22138_v55 = vpop.f32.mrf.mxu0  ;;  %v6464_v28 = vpop.f32.mrf.mxu1 }
 0x503   :  { %v9638_v33 = vunpack.c.l.b16 %v6046_v61  ;;  %v9796_v0 = vunpack.c.h.b16 %v6046_v61 }
 0x505   :  { %14002 = vmatmul.msk.bf16.gmra.mxu0 %vm6152_vm8, %v15983_v29  ;;  %14111 = vmatmul.msk.bf16.gmra.mxu1 %vm6152_vm8, %v15996_v36 }
 0x506   :  { %v5884_v20 = vpop.f32.mrf.mxu3  ;;  %v5932_v16 = vpop.f32.mrf.mxu2 }
 0x507   :  { %v5885_v3 = vadd.f32 %v5884_v20, %v21987_v40  ;;  %v5933_v1 = vadd.f32 %v5932_v16, %v21989_v32  ;;  %v15984_v20 = vld [vmem:[%s24078_s5 + $0x128] sm:$0xff] }
 0x509   :  { %v6059_v49 = vpack.c.bf16 %v5933_v1, %v5885_v3 }
 0x50a   :  { %v22150_v39 = vpop.f32.mrf.mxu0  ;;  %v6466_v40 = vpop.f32.mrf.mxu1 }
 0x50b   :  { %v9639_v62 = vunpack.c.l.b16 %v6059_v49  ;;  %v9797_v7 = vunpack.c.h.b16 %v6059_v49  ;;  %13947 = vmatmul.msk.bf16.gmra.mxu3 %vm6152_vm8, %v15976_v57  ;;  %14054 = vmatmul.msk.bf16.vlgmr.msra.gmra.mxu2 %vm6152_vm8, %v15987_v53  ;;  %v24245_v57 = vld [vmem:[#allocation20_spill] sm:$0xff] }
 0x50c   :  { %8223 = vmatpush.bf16.msra.mxu2 %v21649_v17  ;;  %v15997_v17 = vld [vmem:[%s24078_s5 + $0x190] sm:$0xff] }
 0x50d   :  { %v22155_v32 = vpack.c.b16 %v9639_v62, %v9638_v33  ;;  %v22157_v47 = vpack.c.b16 %v9797_v7, %v9796_v0  ;;  %v15977_v33 = vld [vmem:[%s24078_s5 + $0xf0] sm:$0xff] }
 0x50e   :  { %v5968_v14 = vpop.f32.mrf.mxu3  ;;  %v6311_v29 = vpop.f32.mrf.mxu2 }
 0x50f   :  { %v6312_v36 = vadd.f32 %v6311_v29, %v22009_v22  ;;  %v5969_v3 = vadd.f32 %v5968_v14, %v22001_v26  ;;  %v15988_v26 = vld [vmem:[%s24078_s5 + $0x148] sm:$0xff] }
 0x510   :  { %8224 = vmatpush.bf16.msra.mxu2 %v21620_v15 }
 0x511   :  { %v22161_v61 = vadd.f32 %v6459_v9, %v6312_v36  ;;  %v5995_v9 = vpack.c.bf16 %v5969_v3, %v5969_v3  ;;  %v15985_v3 = vld [vmem:[%s24078_s5 + $0x130] sm:$0xff] }
 0x512   :  { %v22169_v16 = vpop.f32.mrf.mxu0  ;;  %v6469_v1 = vpop.f32.mrf.mxu1 }
 0x513   :  { %v22187_v14 = vunpack.c.l.b16 %v5995_v9 }
 0x514   :  { %8225 = vmatpush.bf16.msra.mxu2 %v24245_v57  ;;  %v15998_v57 = vld [vmem:[%s24078_s5 + $0x198] sm:$0xff] }
 0x515   :  { %14003 = vmatmul.msk.bf16.gmra.mxu0 %vm6152_vm8, %v15984_v20  ;;  %14112 = vmatmul.msk.bf16.gmra.mxu1 %vm6152_vm8, %v15997_v17 }
 0x516   :  { %v5970_v15 = vpop.f32.mrf.mxu3  ;;  %v6313_v22 = vpop.f32.mrf.mxu2 }
 0x517   :  { %v5971_v53 = vadd.f32 %v5970_v15, %v22023_v45  ;;  %v6314_v49 = vadd.f32 %v6313_v22, %v22026_v6 }
 0x519   :  { %v6008_v0 = vpack.c.bf16 %v5971_v53, %v5971_v53  ;;  %v22183_v62 = vadd.f32 %v6461_v52, %v6314_v49 }
 0x51a   :  { %v22185_v7 = vpop.f32.mrf.mxu0  ;;  %v6471_v45 = vpop.f32.mrf.mxu1 }
 0x51b   :  { %v22189_v29 = vunpack.c.l.b16 %v6008_v0  ;;  %13948 = vmatmul.msk.bf16.gmra.mxu3 %vm6152_vm8, %v15977_v33  ;;  %14055 = vmatmul.msk.bf16.gmra.mxu2 %vm6152_vm8, %v15988_v26  ;;  %v15978_v26 = vld [vmem:[%s24078_s5 + $0xf8] sm:$0xff] }
 0x51e   :  { %v5973_v36 = vpop.f32.mrf.mxu3  ;;  %v6316_v20 = vpop.f32.mrf.mxu2 }
 0x51f   :  { %v6317_v17 = vadd.f32 %v6316_v20, %v22045_v38  ;;  %v5974_v22 = vadd.f32 %v5973_v36, %v22037_v46  ;;  %v15989_v46 = vld [vmem:[%s24078_s5 + $0x150] sm:$0xff] }
 0x521   :  { %v22196_v52 = vadd.f32 %v6464_v28, %v6317_v17  ;;  %v6021_v53 = vpack.c.bf16 %v5974_v22, %v5974_v22 }
 0x522   :  { %v22204_v15 = vpop.f32.mrf.mxu0  ;;  %v6474_v9 = vpop.f32.mrf.mxu1 }
 0x523   :  { %v22221_v17 = vunpack.c.l.b16 %v6021_v53  ;;  %v15999_v53 = vld [vmem:[%s24078_s5 + $0x1a0] sm:$0xff] }
 0x525   :  { %14004 = vmatmul.msk.bf16.gmra.mxu0 %vm6152_vm8, %v15985_v3  ;;  %14113 = vmatmul.msk.bf16.gmra.mxu1 %vm6152_vm8, %v15998_v57 }
 0x526   :  { %v5975_v38 = vpop.f32.mrf.mxu3  ;;  %v6318_v28 = vpop.f32.mrf.mxu2 }
 0x527   :  { %v5976_v49 = vadd.f32 %v5975_v38, %v22057_v5  ;;  %v6319_v33 = vadd.f32 %v6318_v28, %v22059_v54  ;;  %v15986_v28 = vld [vmem:[%s24078_s5 + $0x138] sm:$0xff] }
 0x529   :  { %v6034_v0 = vpack.c.bf16 %v5976_v49, %v5976_v49  ;;  %v22217_v36 = vadd.f32 %v6466_v40, %v6319_v33 }
 0x52a   :  { %v22219_v20 = vpop.f32.mrf.mxu0  ;;  %v6476_v5 = vpop.f32.mrf.mxu1 }
 0x52b   :  { %v22223_v3 = vunpack.c.l.b16 %v6034_v0  ;;  %13949 = vmatmul.msk.bf16.gmra.mxu3 %vm6152_vm8, %v15978_v26  ;;  %14056 = vmatmul.msk.bf16.gmra.mxu2 %vm6152_vm8, %v15989_v46 }
 0x52d   :  { %v9963_v54 = vpack.c.b16 %v22223_v3, %v22221_v17  ;;  %v16076_v3 = vld [vmem:[%s24078_s5 + $0x408] sm:$0xff] }
 0x52e   :  { %v5978_v57 = vpop.f32.mrf.mxu3  ;;  %v6321_v22 = vpop.f32.mrf.mxu2 }
 0x52f   :  { %v6322_v38 = vadd.f32 %v6321_v22, %v22077_v30  ;;  %v5979_v33 = vadd.f32 %v5978_v57, %v22075_v19  ;;  %v16003_v19 = vld [vmem:[%s24078_s5 + $0x1c0] sm:$0xff] }
 0x531   :  { %v22230_v40 = vadd.f32 %v6469_v1, %v6322_v38  ;;  %v6047_v46 = vpack.c.bf16 %v5979_v33, %v5979_v33  ;;  %v15990_v38 = vld [vmem:[%s24078_s5 + $0x158] sm:$0xff] }
 0x532   :  { %v22238_v49 = vpop.f32.mrf.mxu0  ;;  %v6479_v26 = vpop.f32.mrf.mxu1 }
 0x533   :  { %v22255_v6 = vunpack.c.l.b16 %v6047_v46 }
 0x535   :  { %14005 = vmatmul.msk.bf16.gmra.mxu0 %vm6152_vm8, %v15986_v28  ;;  %14114 = vmatmul.msk.bf16.gmra.mxu1 %vm6152_vm8, %v15999_v53 }
 0x536   :  { %v5980_v30 = vpop.f32.mrf.mxu3  ;;  %v6323_v1 = vpop.f32.mrf.mxu2 }
 0x537   :  { %v5981_v0 = vadd.f32 %v5980_v30, %v22093_v23  ;;  %v6324_v22 = vadd.f32 %v6323_v1, %v22089_v25 }
 0x539   :  { %v6060_v57 = vpack.c.bf16 %v5981_v0, %v5981_v0  ;;  %v22251_v28 = vadd.f32 %v6471_v45, %v6324_v22  ;;  %v16000_v22 = vld [vmem:[%s24078_s5 + $0x1a8] sm:$0xff] }
 0x53a   :  { %v22253_v53 = vpop.f32.mrf.mxu0  ;;  %v6481_v23 = vpop.f32.mrf.mxu1 }
 0x53b   :  { %v22257_v33 = vunpack.c.l.b16 %v6060_v57  ;;  %14057 = vmatmul.msk.bf16.gmra.mxu2 %vm6152_vm8, %v15990_v38  ;;  %14166 = vmatmul.msk.bf16.vlgmr.msrb.gmra.mxu3 %vm6152_vm8, %v16003_v19 }
 0x53c   :  { %8545 = vmatpush.bf16.msrb.mxu3 %v21779_v44  ;;  %v16011_v44 = vld [vmem:[%s24078_s5 + $0x200] sm:$0xff] }
 0x53d   :  { %v9964_v25 = vpack.c.b16 %v22257_v33, %v22255_v6 }
 0x53e   :  { %v6326_v30 = vpop.f32.mrf.mxu2  ;;  %v6617_v1 = vpop.f32.mrf.mxu3 }
 0x53f   :  { %v6327_v45 = vadd.f32 %v6326_v30, %v22107_v27  ;;  %v6657_v0 = vadd.f32 %v6617_v1, %v22161_v61  ;;  %v15991_v30 = vld [vmem:[%s24078_s5 + $0x160] sm:$0xff] }
 0x540   :  { %8546 = vmatpush.bf16.msrb.mxu3 %v21749_v4 }
 0x541   :  { %v22267_v46 = vadd.f32 %v6474_v9, %v6327_v45 }
 0x542   :  { %v6781_v38 = vpop.f32.mrf.mxu0  ;;  %v6484_v4 = vpop.f32.mrf.mxu1 }
 0x543   :  { %v22275_v19 = vadd.f32 %v6781_v38, %v6657_v0  ;;  %v16012_v38 = vld [vmem:[%s24078_s5 + $0x208] sm:$0xff] }
 0x544   :  { %8547 = vmatpush.bf16.msrb.mxu3 %v21700_v8  ;;  %v16004_v8 = vld [vmem:[%s24078_s5 + $0x1c8] sm:$0xff] }
 0x545   :  { %14115 = vmatmul.msk.bf16.gmra.mxu1 %vm6152_vm8, %v16000_v22  ;;  %14222 = vmatmul.msk.bf16.vlgmr.msrb.gmra.mxu0 %vm6152_vm8, %v16011_v44 }
 0x546   :  { %v6328_v27 = vpop.f32.mrf.mxu2  ;;  %v6619_v61 = vpop.f32.mrf.mxu3  ;;  %8709 = vmatpush.bf16.msrb.mxu0 %v21864_v51 }
 0x547   :  { %v6329_v9 = vadd.f32 %v6328_v27, %v22121_v56  ;;  %v6658_v57 = vadd.f32 %v6619_v61, %v22183_v62 }
 0x549   :  { %v22289_v1 = vadd.f32 %v6476_v5, %v6329_v9 }
 0x54a   :  { %8710 = vmatpush.bf16.msrb.mxu0 %v21834_v43  ;;  %v6783_v45 = vpop.f32.mrf.mxu0  ;;  %v6486_v56 = vpop.f32.mrf.mxu1  ;;  %v16001_v43 = vld [vmem:[%s24078_s5 + $0x1b0] sm:$0xff] }
 0x54b   :  { %14058 = vmatmul.msk.bf16.gmra.mxu2 %vm6152_vm8, %v15991_v30  ;;  %14167 = vmatmul.msk.bf16.gmra.mxu3 %vm6152_vm8, %v16004_v8  ;;  %v22294_v51 = vadd.f32 %v6783_v45, %v6658_v57  ;;  %v15992_v57 = vld [vmem:[%s24078_s5 + $0x168] sm:$0xff]  ;;  %v16005_v30 = vld [vmem:[%s24078_s5 + $0x1d0] sm:$0xff] }
 0x54e   :  { %v6331_v62 = vpop.f32.mrf.mxu2  ;;  %v6622_v0 = vpop.f32.mrf.mxu3  ;;  %8711 = vmatpush.bf16.msrb.mxu0 %v21805_v59 }
 0x54f   :  { %v6332_v22 = vadd.f32 %v6331_v62, %v22138_v55  ;;  %v6659_v44 = vadd.f32 %v6622_v0, %v22196_v52 }
 0x551   :  { %v22299_v5 = vadd.f32 %v6479_v26, %v6332_v22 }
 0x552   :  { %v6786_v27 = vpop.f32.mrf.mxu0  ;;  %v6489_v59 = vpop.f32.mrf.mxu1 }
 0x553   :  { %v22307_v61 = vadd.f32 %v6786_v27, %v6659_v44 }
 0x555   :  { %14116 = vmatmul.msk.bf16.gmra.mxu1 %vm6152_vm8, %v16001_v43  ;;  %14223 = vmatmul.msk.bf16.gmra.mxu0 %vm6152_vm8, %v16012_v38  ;;  %v16013_v38 = vld [vmem:[%s24078_s5 + $0x210] sm:$0xff] }
 0x556   :  { %v6333_v55 = vpop.f32.mrf.mxu2  ;;  %v6624_v52 = vpop.f32.mrf.mxu3 }
 0x557   :  { %v6334_v26 = vadd.f32 %v6333_v55, %v22150_v39  ;;  %v6660_v9 = vadd.f32 %v6624_v52, %v22217_v36 }
 0x559   :  { %v22319_v8 = vadd.f32 %v6481_v23, %v6334_v26  ;;  %v16002_v23 = vld [vmem:[%s24078_s5 + $0x1b8] sm:$0xff] }
 0x55a   :  { %v6788_v45 = vpop.f32.mrf.mxu0  ;;  %v6491_v39 = vpop.f32.mrf.mxu1 }
 0x55b   :  { %14059 = vmatmul.msk.bf16.gmra.mxu2 %vm6152_vm8, %v15992_v57  ;;  %14168 = vmatmul.msk.bf16.gmra.mxu3 %vm6152_vm8, %v16005_v30  ;;  %v22323_v62 = vadd.f32 %v6788_v45, %v6660_v9  ;;  %v15993_v9 = vld [vmem:[%s24078_s5 + $0x170] sm:$0xff]  ;;  %v16006_v57 = vld [vmem:[%s24078_s5 + $0x1d8] sm:$0xff] }
 0x55e   :  { %v6336_v0 = vpop.f32.mrf.mxu2  ;;  %v6627_v36 = vpop.f32.mrf.mxu3 }
 0x55f   :  { %v6337_v22 = vadd.f32 %v6336_v0, %v22169_v16  ;;  %v6661_v44 = vadd.f32 %v6627_v36, %v22230_v40 }
 0x561   :  { %v22327_v43 = vadd.f32 %v6484_v4, %v6337_v22 }
 0x562   :  { %v6791_v27 = vpop.f32.mrf.mxu0  ;;  %v6494_v16 = vpop.f32.mrf.mxu1 }
 0x563   :  { %v22335_v55 = vadd.f32 %v6791_v27, %v6661_v44 }
 0x565   :  { %14117 = vmatmul.msk.bf16.gmra.mxu1 %vm6152_vm8, %v16002_v23  ;;  %14224 = vmatmul.msk.bf16.gmra.mxu0 %vm6152_vm8, %v16013_v38  ;;  %v16027_v38 = vld [vmem:[%s24078_s5 + $0x280] sm:$0xff] }
 0x566   :  { %v6338_v52 = vpop.f32.mrf.mxu2  ;;  %v6629_v40 = vpop.f32.mrf.mxu3 }
 0x567   :  { %v6339_v4 = vadd.f32 %v6338_v52, %v22185_v7  ;;  %v6662_v26 = vadd.f32 %v6629_v40, %v22251_v28 }
 0x569   :  { %v22347_v30 = vadd.f32 %v6486_v56, %v6339_v4  ;;  %v16014_v56 = vld [vmem:[%s24078_s5 + $0x218] sm:$0xff] }
 0x56a   :  { %v6793_v45 = vpop.f32.mrf.mxu0  ;;  %v6496_v7 = vpop.f32.mrf.mxu1 }
 0x56b   :  { %14060 = vmatmul.msk.bf16.gmra.mxu2 %vm6152_vm8, %v15993_v9  ;;  %14169 = vmatmul.msk.bf16.gmra.mxu3 %vm6152_vm8, %v16006_v57  ;;  %v22351_v0 = vadd.f32 %v6793_v45, %v6662_v26  ;;  %v15994_v26 = vld [vmem:[%s24078_s5 + $0x178] sm:$0xff]  ;;  %v16007_v9 = vld [vmem:[%s24078_s5 + $0x1e0] sm:$0xff] }
 0x56e   :  { %v6341_v36 = vpop.f32.mrf.mxu2  ;;  %v6632_v28 = vpop.f32.mrf.mxu3 }
 0x56f   :  { %v6342_v22 = vadd.f32 %v6341_v36, %v22204_v15  ;;  %v6663_v44 = vadd.f32 %v6632_v28, %v22267_v46 }
 0x571   :  { %v22355_v23 = vadd.f32 %v6489_v59, %v6342_v22 }
 0x572   :  { %v6796_v27 = vpop.f32.mrf.mxu0  ;;  %v7103_v15 = vpop.f32.mrf.mxu1 }
 0x573   :  { %v22363_v52 = vadd.f32 %v6796_v27, %v6663_v44  ;;  %v16028_v44 = vld [vmem:[%s24078_s5 + $0x288] sm:$0xff] }
 0x575   :  { %14225 = vmatmul.msk.bf16.gmra.mxu0 %vm6152_vm8, %v16014_v56  ;;  %14334 = vmatmul.msk.bf16.vlgmr.msrb.gmra.mxu1 %vm6152_vm8, %v16027_v38 }
 0x576   :  { %v6343_v40 = vpop.f32.mrf.mxu2  ;;  %v6634_v46 = vpop.f32.mrf.mxu3  ;;  %9031 = vmatpush.bf16.msrb.mxu1 %v21961_v10 }
 0x577   :  { %v6344_v59 = vadd.f32 %v6343_v40, %v22219_v20  ;;  %v6664_v4 = vadd.f32 %v6634_v46, %v22289_v1  ;;  %v16008_v40 = vld [vmem:[%s24078_s5 + $0x1e8] sm:$0xff]  ;;  %v16019_v46 = vld [vmem:[%s24078_s5 + $0x240] sm:$0xff] }
 0x579   :  { %v22376_v57 = vadd.f32 %v6491_v39, %v6344_v59 }
 0x57a   :  { %9032 = vmatpush.bf16.msrb.mxu1 %v21931_v18  ;;  %v6798_v45 = vpop.f32.mrf.mxu0  ;;  %v7105_v20 = vpop.f32.mrf.mxu1  ;;  %v16015_v18 = vld [vmem:[%s24078_s5 + $0x220] sm:$0xff] }
 0x57b   :  { %14061 = vmatmul.msk.bf16.gmra.mxu2 %vm6152_vm8, %v15994_v26  ;;  %14170 = vmatmul.msk.bf16.gmra.mxu3 %vm6152_vm8, %v16007_v9  ;;  %v22381_v10 = vadd.f32 %v6798_v45, %v6664_v4 }
 0x57e   :  { %v6346_v1 = vpop.f32.mrf.mxu2  ;;  %v6637_v36 = vpop.f32.mrf.mxu3  ;;  %9033 = vmatpush.bf16.msrb.mxu1 %v21897_v21 }
 0x57f   :  { %v6347_v28 = vadd.f32 %v6346_v1, %v22238_v49  ;;  %v6665_v22 = vadd.f32 %v6637_v36, %v22299_v5  ;;  %v16016_v36 = vld [vmem:[%s24078_s5 + $0x228] sm:$0xff] }
 0x581   :  { %v22386_v39 = vadd.f32 %v6494_v16, %v6347_v28  ;;  %v16029_v28 = vld [vmem:[%s24078_s5 + $0x290] sm:$0xff] }
 0x582   :  { %v6801_v56 = vpop.f32.mrf.mxu0  ;;  %v7108_v21 = vpop.f32.mrf.mxu1 }
 0x583   :  { %v22394_v38 = vadd.f32 %v6801_v56, %v6665_v22  ;;  %v16020_v56 = vld [vmem:[%s24078_s5 + $0x248] sm:$0xff] }
 0x585   :  { %14226 = vmatmul.msk.bf16.gmra.mxu0 %vm6152_vm8, %v16015_v18  ;;  %14335 = vmatmul.msk.bf16.gmra.mxu1 %vm6152_vm8, %v16028_v44  ;;  %v16009_v44 = vld [vmem:[%s24078_s5 + $0x1f0] sm:$0xff] }
 0x586   :  { %v6348_v49 = vpop.f32.mrf.mxu2  ;;  %v6639_v5 = vpop.f32.mrf.mxu3 }
 0x587   :  { %v6349_v16 = vadd.f32 %v6348_v49, %v22253_v53  ;;  %v6666_v27 = vadd.f32 %v6639_v5, %v22319_v8 }
 0x589   :  { %v22406_v59 = vadd.f32 %v6496_v7, %v6349_v16 }
 0x58a   :  { %v6803_v4 = vpop.f32.mrf.mxu0  ;;  %v7110_v53 = vpop.f32.mrf.mxu1 }
 0x58b   :  { %14171 = vmatmul.msk.bf16.gmra.mxu3 %vm6152_vm8, %v16008_v40  ;;  %14278 = vmatmul.msk.bf16.vlgmr.msrb.gmra.mxu2 %vm6152_vm8, %v16019_v46  ;;  %v22410_v26 = vadd.f32 %v6803_v4, %v6666_v27  ;;  %v16030_v4 = vld [vmem:[%s24078_s5 + $0x298] sm:$0xff] }
 0x58c   :  { %8867 = vmatpush.bf16.msrb.mxu2 %v21866_v48 }
 0x58e   :  { %v6642_v8 = vpop.f32.mrf.mxu3  ;;  %v6939_v9 = vpop.f32.mrf.mxu2 }
 0x58f   :  { %v6667_v45 = vadd.f32 %v6642_v8, %v22327_v43  ;;  %v6979_v1 = vadd.f32 %v6939_v9, %v22275_v19 }
 0x590   :  { %8868 = vmatpush.bf16.msrb.mxu2 %v21836_v13 }
 0x591   :  { %v22416_v7 = vadd.f32 %v7103_v15, %v6979_v1 }
 0x592   :  { %v6806_v48 = vpop.f32.mrf.mxu0  ;;  %v7113_v13 = vpop.f32.mrf.mxu1 }
 0x593   :  { %v22424_v22 = vadd.f32 %v6806_v48, %v6667_v45 }
 0x594   :  { %8869 = vmatpush.bf16.msrb.mxu2 %v21807_v35 }
 0x595   :  { %14227 = vmatmul.msk.bf16.gmra.mxu0 %vm6152_vm8, %v16016_v36  ;;  %14336 = vmatmul.msk.bf16.gmra.mxu1 %vm6152_vm8, %v16029_v28  ;;  %v16010_v36 = vld [vmem:[%s24078_s5 + $0x1f8] sm:$0xff]  ;;  %v16021_v28 = vld [vmem:[%s24078_s5 + $0x250] sm:$0xff] }
 0x596   :  { %v6644_v19 = vpop.f32.mrf.mxu3  ;;  %v6941_v43 = vpop.f32.mrf.mxu2 }
 0x597   :  { %v6668_v15 = vadd.f32 %v6644_v19, %v22347_v30  ;;  %v6980_v18 = vadd.f32 %v6941_v43, %v22294_v51 }
 0x599   :  { %v22437_v35 = vadd.f32 %v7105_v20, %v6980_v18  ;;  %v16017_v20 = vld [vmem:[%s24078_s5 + $0x230] sm:$0xff] }
 0x59a   :  { %v6808_v49 = vpop.f32.mrf.mxu0  ;;  %v7115_v30 = vpop.f32.mrf.mxu1 }
 0x59b   :  { %14172 = vmatmul.msk.bf16.gmra.mxu3 %vm6152_vm8, %v16009_v44  ;;  %14279 = vmatmul.msk.bf16.gmra.mxu2 %vm6152_vm8, %v16020_v56  ;;  %v22441_v5 = vadd.f32 %v6808_v49, %v6668_v15  ;;  %v16031_v49 = vld [vmem:[%s24078_s5 + $0x2a0] sm:$0xff] }
 0x59e   :  { %v6647_v16 = vpop.f32.mrf.mxu3  ;;  %v6944_v51 = vpop.f32.mrf.mxu2 }
 0x59f   :  { %v6669_v27 = vadd.f32 %v6647_v16, %v22355_v23  ;;  %v6981_v40 = vadd.f32 %v6944_v51, %v22307_v61 }
 0x5a1   :  { %v22445_v46 = vadd.f32 %v7108_v21, %v6981_v40 }
 0x5a2   :  { %v6811_v8 = vpop.f32.mrf.mxu0  ;;  %v7118_v23 = vpop.f32.mrf.mxu1 }
 0x5a3   :  { %v22453_v9 = vadd.f32 %v6811_v8, %v6669_v27 }
 0x5a5   :  { %14228 = vmatmul.msk.bf16.gmra.mxu0 %vm6152_vm8, %v16017_v20  ;;  %14337 = vmatmul.msk.bf16.gmra.mxu1 %vm6152_vm8, %v16030_v4  ;;  %v16022_v20 = vld [vmem:[%s24078_s5 + $0x258] sm:$0xff]  ;;  %v16035_v4 = vld [vmem:[%s24078_s5 + $0x2c0] sm:$0xff] }
 0x5a6   :  { %v6649_v45 = vpop.f32.mrf.mxu3  ;;  %v6946_v61 = vpop.f32.mrf.mxu2 }
 0x5a7   :  { %v6670_v21 = vadd.f32 %v6649_v45, %v22376_v57  ;;  %v6982_v1 = vadd.f32 %v6946_v61, %v22323_v62 }
 0x5a9   :  { %v22465_v48 = vadd.f32 %v7110_v53, %v6982_v1  ;;  %v16018_v53 = vld [vmem:[%s24078_s5 + $0x238] sm:$0xff] }
 0x5aa   :  { %v6813_v19 = vpop.f32.mrf.mxu0  ;;  %v7120_v57 = vpop.f32.mrf.mxu1 }
 0x5ab   :  { %14173 = vmatmul.msk.bf16.gmra.mxu3 %vm6152_vm8, %v16010_v36  ;;  %14280 = vmatmul.msk.bf16.gmra.mxu2 %vm6152_vm8, %v16021_v28  ;;  %v22469_v43 = vadd.f32 %v6813_v19, %v6670_v21  ;;  %v16032_v28 = vld [vmem:[%s24078_s5 + $0x2a8] sm:$0xff]  ;;  %v16043_v19 = vld [vmem:[%s24078_s5 + $0x300] sm:$0xff] }
 0x5ae   :  { %v6652_v15 = vpop.f32.mrf.mxu3  ;;  %v6949_v62 = vpop.f32.mrf.mxu2 }
 0x5af   :  { %v6671_v18 = vadd.f32 %v6652_v15, %v22386_v39  ;;  %v6983_v44 = vadd.f32 %v6949_v62, %v22335_v55 }
 0x5b1   :  { %v22473_v56 = vadd.f32 %v7113_v13, %v6983_v44 }
 0x5b2   :  { %v6816_v16 = vpop.f32.mrf.mxu0  ;;  %v7123_v39 = vpop.f32.mrf.mxu1 }
 0x5b3   :  { %v22481_v51 = vadd.f32 %v6816_v16, %v6671_v18  ;;  %v16023_v18 = vld [vmem:[%s24078_s5 + $0x260] sm:$0xff] }
 0x5b5   :  { %14229 = vmatmul.msk.bf16.gmra.mxu0 %vm6152_vm8, %v16018_v53  ;;  %14338 = vmatmul.msk.bf16.gmra.mxu1 %vm6152_vm8, %v16031_v49 }
 0x5b6   :  { %v6654_v27 = vpop.f32.mrf.mxu3  ;;  %v6951_v55 = vpop.f32.mrf.mxu2 }
 0x5b7   :  { %v6672_v13 = vadd.f32 %v6654_v27, %v22406_v59  ;;  %v6984_v40 = vadd.f32 %v6951_v55, %v22351_v0  ;;  %v16044_v55 = vld [vmem:[%s24078_s5 + $0x308] sm:$0xff] }
 0x5b9   :  { %v22493_v8 = vadd.f32 %v7115_v30, %v6984_v40 }
 0x5ba   :  { %v6818_v45 = vpop.f32.mrf.mxu0  ;;  %v7125_v0 = vpop.f32.mrf.mxu1 }
 0x5bb   :  { %14281 = vmatmul.msk.bf16.gmra.mxu2 %vm6152_vm8, %v16022_v20  ;;  %14390 = vmatmul.msk.bf16.vlgmr.msra.gmra.mxu3 %vm6152_vm8, %v16035_v4  ;;  %v22497_v61 = vadd.f32 %v6818_v45, %v6672_v13  ;;  %v16024_v4 = vld [vmem:[%s24078_s5 + $0x268] sm:$0xff]  ;;  %v16037_v45 = vld [vmem:[%s24078_s5 + $0x2d0] sm:$0xff] }
 0x5bc   :  { %9189 = vmatpush.bf16.msra.mxu3 %v21963_v34 }
 0x5be   :  { %v6954_v59 = vpop.f32.mrf.mxu2  ;;  %v7261_v21 = vpop.f32.mrf.mxu3 }
 0x5bf   :  { %v6985_v1 = vadd.f32 %v6954_v59, %v22363_v52  ;;  %v7301_v36 = vadd.f32 %v7261_v21, %v22416_v7 }
 0x5c0   :  { %9190 = vmatpush.bf16.msra.mxu3 %v21933_v63 }
 0x5c1   :  { %v22503_v30 = vadd.f32 %v7118_v23, %v6985_v1 }
 0x5c2   :  { %v7425_v34 = vpop.f32.mrf.mxu0  ;;  %v7128_v63 = vpop.f32.mrf.mxu1 }
 0x5c3   :  { %v22511_v15 = vadd.f32 %v7425_v34, %v7301_v36 }
 0x5c4   :  { %9191 = vmatpush.bf16.msra.mxu3 %v21899_v2  ;;  %v16036_v2 = vld [vmem:[%s24078_s5 + $0x2c8] sm:$0xff] }
 0x5c5   :  { %14339 = vmatmul.msk.bf16.gmra.mxu1 %vm6152_vm8, %v16032_v28  ;;  %14446 = vmatmul.msk.bf16.vlgmr.msra.gmra.mxu0 %vm6152_vm8, %v16043_v19 }
 0x5c6   :  { %v6956_v52 = vpop.f32.mrf.mxu2  ;;  %v7263_v7 = vpop.f32.mrf.mxu3  ;;  %9353 = vmatpush.bf16.msra.mxu0 %v22063_v11 }
 0x5c7   :  { %v6986_v23 = vadd.f32 %v6956_v52, %v22381_v10  ;;  %v7302_v62 = vadd.f32 %v7263_v7, %v22437_v35  ;;  %v16045_v52 = vld [vmem:[%s24078_s5 + $0x310] sm:$0xff] }
 0x5c9   :  { %v22525_v44 = vadd.f32 %v7120_v57, %v6986_v23 }
 0x5ca   :  { %9354 = vmatpush.bf16.msra.mxu0 %v22030_v41  ;;  %v7427_v53 = vpop.f32.mrf.mxu0  ;;  %v7130_v10 = vpop.f32.mrf.mxu1  ;;  %v16033_v41 = vld [vmem:[%s24078_s5 + $0x2b0] sm:$0xff] }
 0x5cb   :  { %14282 = vmatmul.msk.bf16.gmra.mxu2 %vm6152_vm8, %v16023_v18  ;;  %14391 = vmatmul.msk.bf16.gmra.mxu3 %vm6152_vm8, %v16036_v2  ;;  %v22530_v11 = vadd.f32 %v7427_v53, %v7302_v62  ;;  %v16025_v2 = vld [vmem:[%s24078_s5 + $0x270] sm:$0xff]  ;;  %v16038_v53 = vld [vmem:[%s24078_s5 + $0x2d8] sm:$0xff] }
 0x5ce   :  { %v6959_v35 = vpop.f32.mrf.mxu2  ;;  %v7266_v49 = vpop.f32.mrf.mxu3  ;;  %9355 = vmatpush.bf16.msra.mxu0 %v21994_v31 }
 0x5cf   :  { %v6987_v16 = vadd.f32 %v6959_v35, %v22394_v38  ;;  %v7303_v27 = vadd.f32 %v7266_v49, %v22445_v46 }
 0x5d1   :  { %v22535_v57 = vadd.f32 %v7123_v39, %v6987_v16 }
 0x5d2   :  { %v7430_v13 = vpop.f32.mrf.mxu0  ;;  %v7133_v31 = vpop.f32.mrf.mxu1 }
 0x5d3   :  { %v22543_v40 = vadd.f32 %v7430_v13, %v7303_v27 }
 0x5d5   :  { %14340 = vmatmul.msk.bf16.gmra.mxu1 %vm6152_vm8, %v16033_v41  ;;  %14447 = vmatmul.msk.bf16.gmra.mxu0 %vm6152_vm8, %v16044_v55 }
 0x5d6   :  { %v6961_v38 = vpop.f32.mrf.mxu2  ;;  %v7268_v46 = vpop.f32.mrf.mxu3 }
 0x5d7   :  { %v6988_v39 = vadd.f32 %v6961_v38, %v22410_v26  ;;  %v7304_v20 = vadd.f32 %v7268_v46, %v22465_v48  ;;  %v16059_v38 = vld [vmem:[%s24078_s5 + $0x380] sm:$0xff] }
 0x5d9   :  { %v22555_v59 = vadd.f32 %v7125_v0, %v6988_v39  ;;  %v16034_v0 = vld [vmem:[%s24078_s5 + $0x2b8] sm:$0xff] }
 0x5da   :  { %v7432_v21 = vpop.f32.mrf.mxu0  ;;  %v7135_v26 = vpop.f32.mrf.mxu1 }
 0x5db   :  { %14283 = vmatmul.msk.bf16.gmra.mxu2 %vm6152_vm8, %v16024_v4  ;;  %14392 = vmatmul.msk.bf16.gmra.mxu3 %vm6152_vm8, %v16037_v45  ;;  %v22559_v1 = vadd.f32 %v7432_v21, %v7304_v20  ;;  %v16026_v45 = vld [vmem:[%s24078_s5 + $0x278] sm:$0xff]  ;;  %v16039_v21 = vld [vmem:[%s24078_s5 + $0x2e0] sm:$0xff] }
 0x5de   :  { %v6964_v36 = vpop.f32.mrf.mxu2  ;;  %v7271_v48 = vpop.f32.mrf.mxu3 }
 0x5df   :  { %v6989_v28 = vadd.f32 %v6964_v36, %v22424_v22  ;;  %v7305_v19 = vadd.f32 %v7271_v48, %v22473_v56 }
 0x5e1   :  { %v22563_v34 = vadd.f32 %v7128_v63, %v6989_v28 }
 0x5e2   :  { %v7435_v7 = vpop.f32.mrf.mxu0  ;;  %v7138_v22 = vpop.f32.mrf.mxu1 }
 0x5e3   :  { %v22571_v23 = vadd.f32 %v7435_v7, %v7305_v19 }
 0x5e5   :  { %14341 = vmatmul.msk.bf16.gmra.mxu1 %vm6152_vm8, %v16034_v0  ;;  %14448 = vmatmul.msk.bf16.gmra.mxu0 %vm6152_vm8, %v16045_v52  ;;  %v16060_v52 = vld [vmem:[%s24078_s5 + $0x388] sm:$0xff] }
 0x5e6   :  { %v6966_v62 = vpop.f32.mrf.mxu2  ;;  %v7273_v56 = vpop.f32.mrf.mxu3 }
 0x5e7   :  { %v6990_v63 = vadd.f32 %v6966_v62, %v22441_v5  ;;  %v7306_v18 = vadd.f32 %v7273_v56, %v22493_v8 }
 0x5e9   :  { %v22583_v35 = vadd.f32 %v7130_v10, %v6990_v63  ;;  %v16046_v10 = vld [vmem:[%s24078_s5 + $0x318] sm:$0xff]  ;;  %v16040_v63 = vld [vmem:[%s24078_s5 + $0x2e8] sm:$0xff] }
 0x5ea   :  { %v7437_v49 = vpop.f32.mrf.mxu0  ;;  %v7140_v5 = vpop.f32.mrf.mxu1 }
 0x5eb   :  { %14284 = vmatmul.msk.bf16.gmra.mxu2 %vm6152_vm8, %v16025_v2  ;;  %14393 = vmatmul.msk.bf16.gmra.mxu3 %vm6152_vm8, %v16038_v53  ;;  %v22587_v16 = vadd.f32 %v7437_v49, %v7306_v18  ;;  %v16051_v18 = vld [vmem:[%s24078_s5 + $0x340] sm:$0xff] }
 0x5ee   :  { %v6969_v27 = vpop.f32.mrf.mxu2  ;;  %v7276_v8 = vpop.f32.mrf.mxu3 }
 0x5ef   :  { %v6991_v41 = vadd.f32 %v6969_v27, %v22453_v9  ;;  %v7307_v55 = vadd.f32 %v7276_v8, %v22503_v30 }
 0x5f1   :  { %v22591_v13 = vadd.f32 %v7133_v31, %v6991_v41 }
 0x5f2   :  { %v7440_v46 = vpop.f32.mrf.mxu0  ;;  %v7747_v9 = vpop.f32.mrf.mxu1 }
 0x5f3   :  { %v22599_v39 = vadd.f32 %v7440_v46, %v7307_v55  ;;  %v16048_v55 = vld [vmem:[%s24078_s5 + $0x328] sm:$0xff] }
 0x5f5   :  { %14449 = vmatmul.msk.bf16.gmra.mxu0 %vm6152_vm8, %v16046_v10  ;;  %14558 = vmatmul.msk.bf16.vlgmr.msra.gmra.mxu1 %vm6152_vm8, %v16059_v38  ;;  %v16061_v10 = vld [vmem:[%s24078_s5 + $0x390] sm:$0xff] }
 0x5f6   :  { %v6971_v20 = vpop.f32.mrf.mxu2  ;;  %v7278_v30 = vpop.f32.mrf.mxu3  ;;  %9675 = vmatpush.bf16.msra.mxu1 %v22155_v32 }
 0x5f7   :  { %v6992_v31 = vadd.f32 %v6971_v20, %v22469_v43  ;;  %v7308_v4 = vadd.f32 %v7278_v30, %v22525_v44  ;;  %v16041_v20 = vld [vmem:[%s24078_s5 + $0x2f0] sm:$0xff]  ;;  %v16052_v30 = vld [vmem:[%s24078_s5 + $0x348] sm:$0xff] }
 0x5f9   :  { %v22612_v36 = vadd.f32 %v7135_v26, %v6992_v31 }
 0x5fa   :  { %9676 = vmatpush.bf16.msra.mxu1 %v22125_v12  ;;  %v7442_v48 = vpop.f32.mrf.mxu0  ;;  %v7749_v43 = vpop.f32.mrf.mxu1  ;;  %v16047_v12 = vld [vmem:[%s24078_s5 + $0x320] sm:$0xff] }
 0x5fb   :  { %14285 = vmatmul.msk.bf16.gmra.mxu2 %vm6152_vm8, %v16026_v45  ;;  %14394 = vmatmul.msk.bf16.gmra.mxu3 %vm6152_vm8, %v16039_v21  ;;  %v22617_v32 = vadd.f32 %v7442_v48, %v7308_v4 }
 0x5fe   :  { %v6974_v44 = vpop.f32.mrf.mxu2  ;;  %v7281_v28 = vpop.f32.mrf.mxu3  ;;  %9677 = vmatpush.bf16.msra.mxu1 %v22095_v50 }
 0x5ff   :  { %v6993_v19 = vadd.f32 %v6974_v44, %v22481_v51  ;;  %v7309_v0 = vadd.f32 %v7281_v28, %v22535_v57  ;;  %v16062_v28 = vld [vmem:[%s24078_s5 + $0x398] sm:$0xff] }
 0x601   :  { %v22622_v26 = vadd.f32 %v7138_v22, %v6993_v19 }
 0x602   :  { %v7445_v7 = vpop.f32.mrf.mxu0  ;;  %v7752_v50 = vpop.f32.mrf.mxu1 }
 0x603   :  { %v22630_v62 = vadd.f32 %v7445_v7, %v7309_v0 }
 0x605   :  { %14450 = vmatmul.msk.bf16.gmra.mxu0 %vm6152_vm8, %v16047_v12  ;;  %14559 = vmatmul.msk.bf16.gmra.mxu1 %vm6152_vm8, %v16060_v52 }
 0x606   :  { %v6976_v51 = vpop.f32.mrf.mxu2  ;;  %v7283_v57 = vpop.f32.mrf.mxu3 }
 0x607   :  { %v6994_v22 = vadd.f32 %v6976_v51, %v22497_v61  ;;  %v7310_v56 = vadd.f32 %v7283_v57, %v22555_v59  ;;  %v16053_v51 = vld [vmem:[%s24078_s5 + $0x350] sm:$0xff] }
 0x609   :  { %v22642_v2 = vadd.f32 %v7140_v5, %v6994_v22 }
 0x60a   :  { %v7447_v53 = vpop.f32.mrf.mxu0  ;;  %v7754_v61 = vpop.f32.mrf.mxu1 }
 0x60b   :  { %14395 = vmatmul.msk.bf16.gmra.mxu3 %vm6152_vm8, %v16040_v63  ;;  %14502 = vmatmul.msk.bf16.vlgmr.msra.gmra.mxu2 %vm6152_vm8, %v16051_v18  ;;  %v22646_v49 = vadd.f32 %v7447_v53, %v7310_v56 }
 0x60c   :  { %9511 = vmatpush.bf16.msra.mxu2 %v22065_v58 }
 0x60e   :  { %v7286_v59 = vpop.f32.mrf.mxu3  ;;  %v7583_v27 = vpop.f32.mrf.mxu2 }
 0x60f   :  { %v7311_v8 = vadd.f32 %v7286_v59, %v22563_v34  ;;  %v7623_v41 = vadd.f32 %v7583_v27, %v22511_v15  ;;  %v16063_v27 = vld [vmem:[%s24078_s5 + $0x3a0] sm:$0xff] }
 0x610   :  { %9512 = vmatpush.bf16.msra.mxu2 %v22032_v37 }
 0x611   :  { %v22652_v5 = vadd.f32 %v7747_v9, %v7623_v41 }
 0x612   :  { %v7450_v58 = vpop.f32.mrf.mxu0  ;;  %v7757_v15 = vpop.f32.mrf.mxu1 }
 0x613   :  { %v22660_v38 = vadd.f32 %v7450_v58, %v7311_v8 }
 0x614   :  { %9513 = vmatpush.bf16.msra.mxu2 %v21996_v24 }
 0x615   :  { %14451 = vmatmul.msk.bf16.gmra.mxu0 %vm6152_vm8, %v16048_v55  ;;  %14560 = vmatmul.msk.bf16.gmra.mxu1 %vm6152_vm8, %v16061_v10 }
 0x616   :  { %v7288_v37 = vpop.f32.mrf.mxu3  ;;  %v7585_v34 = vpop.f32.mrf.mxu2 }
 0x617   :  { %v7312_v46 = vadd.f32 %v7288_v37, %v22583_v35  ;;  %v7624_v9 = vadd.f32 %v7585_v34, %v22530_v11  ;;  %v16067_v37 = vld [vmem:[%s24078_s5 + $0x3c0] sm:$0xff] }
 0x619   :  { %v22673_v24 = vadd.f32 %v7749_v43, %v7624_v9  ;;  %v16049_v43 = vld [vmem:[%s24078_s5 + $0x330] sm:$0xff] }
 0x61a   :  { %v7452_v31 = vpop.f32.mrf.mxu0  ;;  %v7759_v35 = vpop.f32.mrf.mxu1 }
 0x61b   :  { %14396 = vmatmul.msk.bf16.gmra.mxu3 %vm6152_vm8, %v16041_v20  ;;  %14503 = vmatmul.msk.bf16.gmra.mxu2 %vm6152_vm8, %v16052_v30  ;;  %v22677_v4 = vadd.f32 %v7452_v31, %v7312_v46 }
 0x61e   :  { %v7291_v45 = vpop.f32.mrf.mxu3  ;;  %v7588_v11 = vpop.f32.mrf.mxu2 }
 0x61f   :  { %v7313_v21 = vadd.f32 %v7291_v45, %v22591_v13  ;;  %v7625_v48 = vadd.f32 %v7588_v11, %v22543_v40  ;;  %v16075_v45 = vld [vmem:[%s24078_s5 + $0x400] sm:$0xff]  ;;  %v16064_v11 = vld [vmem:[%s24078_s5 + $0x3a8] sm:$0xff] }
 0x621   :  { %v22681_v44 = vadd.f32 %v7752_v50, %v7625_v48  ;;  %v16042_v50 = vld [vmem:[%s24078_s5 + $0x2f8] sm:$0xff] }
 0x622   :  { %v7455_v19 = vpop.f32.mrf.mxu0  ;;  %v7762_v12 = vpop.f32.mrf.mxu1 }
 0x623   :  { %v22689_v0 = vadd.f32 %v7455_v19, %v7313_v21 }
 0x625   :  { %14452 = vmatmul.msk.bf16.gmra.mxu0 %vm6152_vm8, %v16049_v43  ;;  %14561 = vmatmul.msk.bf16.gmra.mxu1 %vm6152_vm8, %v16062_v28  ;;  %v16055_v28 = vld [vmem:[%s24078_s5 + $0x360] sm:$0xff] }
 0x626   :  { %v7293_v13 = vpop.f32.mrf.mxu3  ;;  %v7590_v40 = vpop.f32.mrf.mxu2 }
 0x627   :  { %v7314_v52 = vadd.f32 %v7293_v13, %v22612_v36  ;;  %v7626_v7 = vadd.f32 %v7590_v40, %v22559_v1 }
 0x629   :  { %v22701_v57 = vadd.f32 %v7754_v61, %v7626_v7  ;;  %v16050_v61 = vld [vmem:[%s24078_s5 + $0x338] sm:$0xff] }
 0x62a   :  { %v7457_v22 = vpop.f32.mrf.mxu0  ;;  %v7764_v36 = vpop.f32.mrf.mxu1 }
 0x62b   :  { %14397 = vmatmul.msk.bf16.gmra.mxu3 %vm6152_vm8, %v16042_v50  ;;  %14504 = vmatmul.msk.bf16.gmra.mxu2 %vm6152_vm8, %v16053_v51  ;;  %v22705_v56 = vadd.f32 %v7457_v22, %v7314_v52  ;;  %v16056_v51 = vld [vmem:[%s24078_s5 + $0x368] sm:$0xff]  ;;  %v16069_v22 = vld [vmem:[%s24078_s5 + $0x3d0] sm:$0xff] }
 0x62e   :  { %v7296_v63 = vpop.f32.mrf.mxu3  ;;  %v7593_v1 = vpop.f32.mrf.mxu2 }
 0x62f   :  { %v7315_v18 = vadd.f32 %v7296_v63, %v22622_v26  ;;  %v7627_v53 = vadd.f32 %v7593_v1, %v22571_v23 }
 0x631   :  { %v22709_v59 = vadd.f32 %v7757_v15, %v7627_v53  ;;  %v16054_v15 = vld [vmem:[%s24078_s5 + $0x358] sm:$0xff] }
 0x632   :  { %v7460_v8 = vpop.f32.mrf.mxu0  ;;  %v7767_v55 = vpop.f32.mrf.mxu1 }
 0x633   :  { %v22717_v41 = vadd.f32 %v7460_v8, %v7315_v18  ;;  %v16077_v8 = vld [vmem:[%s24078_s5 + $0x410] sm:$0xff] }
 0x635   :  { %14453 = vmatmul.msk.bf16.gmra.mxu0 %vm6152_vm8, %v16050_v61  ;;  %14562 = vmatmul.msk.bf16.gmra.mxu1 %vm6152_vm8, %v16063_v27 }
 0x636   :  { %v7298_v26 = vpop.f32.mrf.mxu3  ;;  %v7595_v23 = vpop.f32.mrf.mxu2 }
 0x637   :  { %v7316_v10 = vadd.f32 %v7298_v26, %v22642_v2  ;;  %v7628_v58 = vadd.f32 %v7595_v23, %v22587_v16 }
 0x639   :  { %v22729_v34 = vadd.f32 %v7759_v35, %v7628_v58 }
 0x63a   :  { %v7462_v46 = vpop.f32.mrf.mxu0  ;;  %v7769_v16 = vpop.f32.mrf.mxu1 }
 0x63b   :  { %14505 = vmatmul.msk.bf16.gmra.mxu2 %vm6152_vm8, %v16054_v15  ;;  %14614 = vmatmul.msk.bf16.vlgmr.msrb.gmra.mxu3 %vm6152_vm8, %v16067_v37  ;;  %v22733_v9 = vadd.f32 %v7462_v46, %v7316_v10  ;;  %v16057_v37 = vld [vmem:[%s24078_s5 + $0x370] sm:$0xff]  ;;  %v16070_v46 = vld [vmem:[%s24078_s5 + $0x3d8] sm:$0xff] }
 0x63c   :  { %9833 = vmatpush.bf16.msrb.mxu3 %v22157_v47 }
 0x63e   :  { %v7598_v2 = vpop.f32.mrf.mxu2  ;;  %v7905_v20 = vpop.f32.mrf.mxu3 }
 0x63f   :  { %v7629_v30 = vadd.f32 %v7598_v2, %v22599_v39  ;;  %v7945_v31 = vadd.f32 %v7905_v20, %v22652_v5 }
 0x640   :  { %9834 = vmatpush.bf16.msrb.mxu3 %v22127_v60 }
 0x641   :  { %v22739_v35 = vadd.f32 %v7762_v12, %v7629_v30  ;;  %v24246_v12 = vpack.c.b16 %v22189_v29, %v22187_v14 }
 0x642   :  { %v8069_v47 = vpop.f32.mrf.mxu0  ;;  %v7772_v39 = vpop.f32.mrf.mxu1 }
 0x643   :  { %v22747_v21 = vadd.f32 %v8069_v47, %v7945_v31  ;;  %v16078_v47 = vld [vmem:[%s24078_s5 + $0x418] sm:$0xff] }
 0x644   :  { %9835 = vmatpush.bf16.msrb.mxu3 %v22097_v42  ;;  %v16068_v42 = vld [vmem:[%s24078_s5 + $0x3c8] sm:$0xff] }
 0x645   :  { %14670 = vmatmul.msk.bf16.vlgmr.msrb.gmra.mxu0 %vm6152_vm8, %v16075_v45  ;;  %14563 = vmatmul.msk.bf16.gmra.mxu1 %vm6152_vm8, %v16064_v11 }
 0x646   :  { %v7600_v60 = vpop.f32.mrf.mxu2  ;;  %v7907_v5 = vpop.f32.mrf.mxu3  ;;  %9997 = vmatpush.bf16.msrb.mxu0 %v9964_v25 }
 0x647   :  { %v7630_v48 = vadd.f32 %v7600_v60, %v22617_v32  ;;  %v7946_v43 = vadd.f32 %v7907_v5, %v22673_v24 }
 0x649   :  { %v22763_v19 = vadd.f32 %v7764_v36, %v7630_v48 }
 0x64a   :  { %9998 = vmatpush.bf16.msrb.mxu0 %v9963_v54  ;;  %v8071_v6 = vpop.f32.mrf.mxu0  ;;  %v7774_v25 = vpop.f32.mrf.mxu1  ;;  %v16065_v54 = vld [vmem:[%s24078_s5 + $0x3b0] sm:$0xff] }
 0x64b   :  { %14506 = vmatmul.msk.bf16.gmra.mxu2 %vm6152_vm8, %v16055_v28  ;;  %14615 = vmatmul.msk.bf16.gmra.mxu3 %vm6152_vm8, %v16068_v42  ;;  %v22770_v33 = vadd.f32 %v8071_v6, %v7946_v43  ;;  %v16058_v42 = vld [vmem:[%s24078_s5 + $0x378] sm:$0xff]  ;;  %v16071_v6 = vld [vmem:[%s24078_s5 + $0x3e0] sm:$0xff] }
 0x64e   :  { %v7603_v32 = vpop.f32.mrf.mxu2  ;;  %v7910_v24 = vpop.f32.mrf.mxu3  ;;  %9999 = vmatpush.bf16.msrb.mxu0 %v24246_v12 }
 0x64f   :  { %v7631_v13 = vadd.f32 %v7603_v32, %v22630_v62  ;;  %v7947_v40 = vadd.f32 %v7910_v24, %v22681_v44 }
 0x651   :  { %v22777_v17 = vadd.f32 %v7767_v55, %v7631_v13  ;;  %v16066_v55 = vld [vmem:[%s24078_s5 + $0x3b8] sm:$0xff] }
 0x652   :  { %v8074_v52 = vpop.f32.mrf.mxu0  ;;  %v7777_v14 = vpop.f32.mrf.mxu1 }
 0x653   :  { %v22785_v7 = vadd.f32 %v8074_v52, %v7947_v40  ;;  %v16092_v52 = vld [vmem:[%s24078_s5 + $0x488] sm:$0xff] }
 0x655   :  { %14671 = vmatmul.msk.bf16.gmra.mxu0 %vm6152_vm8, %v16076_v3  ;;  %14564 = vmatmul.msk.bf16.gmra.mxu1 %vm6152_vm8, %v16065_v54  ;;  %v16079_v54 = vld [vmem:[%s24078_s5 + $0x420] sm:$0xff] }
 0x656   :  { %v7605_v29 = vpop.f32.mrf.mxu2  ;;  %v7912_v62 = vpop.f32.mrf.mxu3 }
 0x657   :  { %v7632_v44 = vadd.f32 %v7605_v29, %v22646_v49  ;;  %v7948_v50 = vadd.f32 %v7912_v62, %v22701_v57 }
 0x659   :  { %v22797_v36 = vadd.f32 %v7769_v16, %v7632_v44 }
 0x65a   :  { %v8076_v63 = vpop.f32.mrf.mxu0  ;;  %v7779_v49 = vpop.f32.mrf.mxu1 }
 0x65b   :  { %14507 = vmatmul.msk.bf16.gmra.mxu2 %vm6152_vm8, %v16056_v51  ;;  %14616 = vmatmul.msk.bf16.gmra.mxu3 %vm6152_vm8, %v16069_v22  ;;  %v22801_v1 = vadd.f32 %v8076_v63, %v7948_v50  ;;  %v16072_v51 = vld [vmem:[%s24078_s5 + $0x3e8] sm:$0xff]  ;;  %v16083_v22 = vld [vmem:[%s24078_s5 + $0x440] sm:$0xff] }
 0x65e   :  { %v7608_v18 = vpop.f32.mrf.mxu2  ;;  %v7915_v57 = vpop.f32.mrf.mxu3 }
 0x65f   :  { %v7633_v53 = vadd.f32 %v7608_v18, %v22660_v38  ;;  %v7949_v61 = vadd.f32 %v7915_v57, %v22709_v59 }
 0x661   :  { %v22805_v27 = vadd.f32 %v7772_v39, %v7633_v53  ;;  %v16091_v39 = vld [vmem:[%s24078_s5 + $0x480] sm:$0xff] }
 0x662   :  { %v8079_v26 = vpop.f32.mrf.mxu0  ;;  %v7782_v10 = vpop.f32.mrf.mxu1 }
 0x663   :  { %v22813_v23 = vadd.f32 %v8079_v26, %v7949_v61  ;;  %v16093_v26 = vld [vmem:[%s24078_s5 + $0x490] sm:$0xff] }
 0x665   :  { %14672 = vmatmul.msk.bf16.gmra.mxu0 %vm6152_vm8, %v16077_v8  ;;  %14565 = vmatmul.msk.bf16.gmra.mxu1 %vm6152_vm8, %v16066_v55  ;;  %v16080_v55 = vld [vmem:[%s24078_s5 + $0x428] sm:$0xff] }
 0x666   :  { %v7610_v38 = vpop.f32.mrf.mxu2  ;;  %v7917_v59 = vpop.f32.mrf.mxu3 }
 0x667   :  { %v7634_v58 = vadd.f32 %v7610_v38, %v22677_v4  ;;  %v7950_v15 = vadd.f32 %v7917_v59, %v22729_v34 }
 0x669   :  { %v22825_v16 = vadd.f32 %v7774_v25, %v7634_v58 }
 0x66a   :  { %v8081_v2 = vpop.f32.mrf.mxu0  ;;  %v7784_v4 = vpop.f32.mrf.mxu1 }
 0x66b   :  { %14508 = vmatmul.msk.bf16.gmra.mxu2 %vm6152_vm8, %v16057_v37  ;;  %14617 = vmatmul.msk.bf16.gmra.mxu3 %vm6152_vm8, %v16070_v46  ;;  %v22829_v20 = vadd.f32 %v8081_v2, %v7950_v15  ;;  %v16073_v37 = vld [vmem:[%s24078_s5 + $0x3f0] sm:$0xff]  ;;  %v16084_v46 = vld [vmem:[%s24078_s5 + $0x448] sm:$0xff] }
 0x66e   :  { %v7613_v30 = vpop.f32.mrf.mxu2  ;;  %v7920_v34 = vpop.f32.mrf.mxu3 }
 0x66f   :  { %v7635_v31 = vadd.f32 %v7613_v30, %v22689_v0  ;;  %v7951_v45 = vadd.f32 %v7920_v34, %v22739_v35 }
 0x671   :  { %v22833_v11 = vadd.f32 %v7777_v14, %v7635_v31 }
 0x672   :  { %v8084_v60 = vpop.f32.mrf.mxu0  ;;  %v8391_v48 = vpop.f32.mrf.mxu1 }
 0x673   :  { %v22841_v5 = vadd.f32 %v8084_v60, %v7951_v45  ;;  %v16094_v60 = vld [vmem:[%s24078_s5 + $0x498] sm:$0xff] }
 0x675   :  { %14673 = vmatmul.msk.bf16.gmra.mxu0 %vm6152_vm8, %v16078_v47  ;;  %14782 = vmatmul.msk.bf16.vlgmr.msrb.gmra.mxu1 %vm6152_vm8, %v16091_v39  ;;  %v16081_v39 = vld [vmem:[%s24078_s5 + $0x430] sm:$0xff] }
 0x676   :  { %v7615_v0 = vpop.f32.mrf.mxu2  ;;  %v7922_v35 = vpop.f32.mrf.mxu3 }
 0x677   :  { %v7636_v43 = vadd.f32 %v7615_v0, %v22705_v56  ;;  %v7952_v28 = vadd.f32 %v7922_v35, %v22763_v19 }
 0x679   :  { %v22853_v25 = vadd.f32 %v7779_v49, %v7636_v43 }
 0x67a   :  { %v8086_v32 = vpop.f32.mrf.mxu0  ;;  %v8393_v56 = vpop.f32.mrf.mxu1 }
 0x67b   :  { %14509 = vmatmul.msk.bf16.gmra.mxu2 %vm6152_vm8, %v16058_v42  ;;  %14618 = vmatmul.msk.bf16.gmra.mxu3 %vm6152_vm8, %v16071_v6  ;;  %v22857_v24 = vadd.f32 %v8086_v32, %v7952_v28  ;;  %v16074_v42 = vld [vmem:[%s24078_s5 + $0x3f8] sm:$0xff]  ;;  %v16085_v6 = vld [vmem:[%s24078_s5 + $0x450] sm:$0xff] }
 0x67e   :  { %v7618_v12 = vpop.f32.mrf.mxu2  ;;  %v7925_v19 = vpop.f32.mrf.mxu3 }
 0x67f   :  { %v7637_v13 = vadd.f32 %v7618_v12, %v22717_v41  ;;  %v7953_v40 = vadd.f32 %v7925_v19, %v22777_v17 }
 0x681   :  { %v22861_v3 = vadd.f32 %v7782_v10, %v7637_v13 }
 0x682   :  { %v8089_v14 = vpop.f32.mrf.mxu0  ;;  %v8396_v62 = vpop.f32.mrf.mxu1 }
 0x683   :  { %v22869_v29 = vadd.f32 %v8089_v14, %v7953_v40  ;;  %v16095_v14 = vld [vmem:[%s24078_s5 + $0x4a0] sm:$0xff] }
 0x685   :  { %14674 = vmatmul.msk.bf16.gmra.mxu0 %vm6152_vm8, %v16079_v54  ;;  %14783 = vmatmul.msk.bf16.gmra.mxu1 %vm6152_vm8, %v16092_v52  ;;  %v16082_v52 = vld [vmem:[%s24078_s5 + $0x438] sm:$0xff] }
 0x686   :  { %v7620_v41 = vpop.f32.mrf.mxu2  ;;  %v7927_v17 = vpop.f32.mrf.mxu3 }
 0x687   :  { %v7638_v44 = vadd.f32 %v7620_v41, %v22733_v9  ;;  %v7954_v50 = vadd.f32 %v7927_v17, %v22797_v36 }
 0x689   :  { %v22881_v63 = vadd.f32 %v7784_v4, %v7638_v44 }
 0x68a   :  { %v8091_v49 = vpop.f32.mrf.mxu0  ;;  %v8398_v9 = vpop.f32.mrf.mxu1 }
 0x68b   :  { %14619 = vmatmul.msk.bf16.gmra.mxu3 %vm6152_vm8, %v16072_v51  ;;  %14726 = vmatmul.msk.bf16.vlgmr.msrb.gmra.mxu2 %vm6152_vm8, %v16083_v22  ;;  %v22885_v18 = vadd.f32 %v8091_v49, %v7954_v50  ;;  %v16086_v51 = vld [vmem:[%s24078_s5 + $0x458] sm:$0xff]  ;;  %v16099_v22 = vld [vmem:[%s24078_s5 + $0x4c0] sm:$0xff] }
 0x68e   :  { %v7930_v57 = vpop.f32.mrf.mxu3  ;;  %v8227_v36 = vpop.f32.mrf.mxu2 }
 0x68f   :  { %v7955_v53 = vadd.f32 %v7930_v57, %v22805_v27  ;;  %v8267_v61 = vadd.f32 %v8227_v36, %v22747_v21 }
 0x691   :  { %v22889_v8 = vadd.f32 %v8391_v48, %v8267_v61 }
 0x692   :  { %v8094_v10 = vpop.f32.mrf.mxu0  ;;  %v8401_v59 = vpop.f32.mrf.mxu1 }
 0x693   :  { %v22897_v38 = vadd.f32 %v8094_v10, %v7955_v53  ;;  %v16096_v10 = vld [vmem:[%s24078_s5 + $0x4a8] sm:$0xff] }
 0x695   :  { %14675 = vmatmul.msk.bf16.gmra.mxu0 %vm6152_vm8, %v16080_v55  ;;  %14784 = vmatmul.msk.bf16.gmra.mxu1 %vm6152_vm8, %v16093_v26  ;;  %v16107_v26 = vld [vmem:[%s24078_s5 + $0x500] sm:$0xff] }
 0x696   :  { %v7932_v27 = vpop.f32.mrf.mxu3  ;;  %v8229_v21 = vpop.f32.mrf.mxu2 }
 0x697   :  { %v7956_v58 = vadd.f32 %v7932_v27, %v22825_v16  ;;  %v8268_v15 = vadd.f32 %v8229_v21, %v22770_v33 }
 0x699   :  { %v22909_v2 = vadd.f32 %v8393_v56, %v8268_v15 }
 0x69a   :  { %v8096_v4 = vpop.f32.mrf.mxu0  ;;  %v8403_v16 = vpop.f32.mrf.mxu1 }
 0x69b   :  { %14620 = vmatmul.msk.bf16.gmra.mxu3 %vm6152_vm8, %v16073_v37  ;;  %14727 = vmatmul.msk.bf16.gmra.mxu2 %vm6152_vm8, %v16084_v46  ;;  %v22913_v30 = vadd.f32 %v8096_v4, %v7956_v58  ;;  %v16087_v37 = vld [vmem:[%s24078_s5 + $0x460] sm:$0xff]  ;;  %v16100_v46 = vld [vmem:[%s24078_s5 + $0x4c8] sm:$0xff] }
 0x69e   :  { %v7935_v34 = vpop.f32.mrf.mxu3  ;;  %v8232_v33 = vpop.f32.mrf.mxu2 }
 0x69f   :  { %v7957_v31 = vadd.f32 %v7935_v34, %v22833_v11  ;;  %v8269_v45 = vadd.f32 %v8232_v33, %v22785_v7 }
 0x6a1   :  { %v22917_v47 = vadd.f32 %v8396_v62, %v8269_v45 }
 0x6a2   :  { %v8099_v48 = vpop.f32.mrf.mxu0  ;;  %v8406_v35 = vpop.f32.mrf.mxu1 }
 0x6a3   :  { %v22925_v0 = vadd.f32 %v8099_v48, %v7957_v31  ;;  %v16097_v48 = vld [vmem:[%s24078_s5 + $0x4b0] sm:$0xff] }
 0x6a5   :  { %14676 = vmatmul.msk.bf16.gmra.mxu0 %vm6152_vm8, %v16081_v39  ;;  %14785 = vmatmul.msk.bf16.gmra.mxu1 %vm6152_vm8, %v16094_v60  ;;  %v16108_v60 = vld [vmem:[%s24078_s5 + $0x508] sm:$0xff] }
 0x6a6   :  { %v7937_v11 = vpop.f32.mrf.mxu3  ;;  %v8234_v7 = vpop.f32.mrf.mxu2 }
 0x6a7   :  { %v7958_v43 = vadd.f32 %v7937_v11, %v22853_v25  ;;  %v8270_v28 = vadd.f32 %v8234_v7, %v22801_v1 }
 0x6a9   :  { %v22937_v32 = vadd.f32 %v8398_v9, %v8270_v28 }
 0x6aa   :  { %v8101_v56 = vpop.f32.mrf.mxu0  ;;  %v8408_v25 = vpop.f32.mrf.mxu1 }
 0x6ab   :  { %14621 = vmatmul.msk.bf16.gmra.mxu3 %vm6152_vm8, %v16074_v42  ;;  %14728 = vmatmul.msk.bf16.gmra.mxu2 %vm6152_vm8, %v16085_v6  ;;  %v22941_v12 = vadd.f32 %v8101_v56, %v7958_v43  ;;  %v16088_v42 = vld [vmem:[%s24078_s5 + $0x468] sm:$0xff]  ;;  %v16101_v6 = vld [vmem:[%s24078_s5 + $0x4d0] sm:$0xff] }
 0x6ae   :  { %v7940_v19 = vpop.f32.mrf.mxu3  ;;  %v8237_v1 = vpop.f32.mrf.mxu2 }
 0x6af   :  { %v7959_v13 = vadd.f32 %v7940_v19, %v22861_v3  ;;  %v8271_v40 = vadd.f32 %v8237_v1, %v22813_v23 }
 0x6b1   :  { %v22945_v54 = vadd.f32 %v8401_v59, %v8271_v40 }
 0x6b2   :  { %v8104_v62 = vpop.f32.mrf.mxu0  ;;  %v8411_v17 = vpop.f32.mrf.mxu1 }
 0x6b3   :  { %v22953_v41 = vadd.f32 %v8104_v62, %v7959_v13  ;;  %v16098_v62 = vld [vmem:[%s24078_s5 + $0x4b8] sm:$0xff] }
 0x6b5   :  { %14677 = vmatmul.msk.bf16.gmra.mxu0 %vm6152_vm8, %v16082_v52  ;;  %14786 = vmatmul.msk.bf16.gmra.mxu1 %vm6152_vm8, %v16095_v14  ;;  %v16109_v14 = vld [vmem:[%s24078_s5 + $0x510] sm:$0xff] }
 0x6b6   :  { %v7942_v3 = vpop.f32.mrf.mxu3  ;;  %v8239_v23 = vpop.f32.mrf.mxu2 }
 0x6b7   :  { %v7960_v44 = vadd.f32 %v7942_v3, %v22881_v63  ;;  %v8272_v50 = vadd.f32 %v8239_v23, %v22829_v20 }
 0x6b9   :  { %v22965_v49 = vadd.f32 %v8403_v16, %v8272_v50 }
 0x6ba   :  { %v8106_v9 = vpop.f32.mrf.mxu0  ;;  %v8413_v63 = vpop.f32.mrf.mxu1 }
 0x6bb   :  { %14729 = vmatmul.msk.bf16.gmra.mxu2 %vm6152_vm8, %v16086_v51  ;;  %14838 = vmatmul.msk.bf16.vlgmr.msra.gmra.mxu3 %vm6152_vm8, %v16099_v22  ;;  %v22969_v57 = vadd.f32 %v8106_v9, %v7960_v44  ;;  %v16089_v51 = vld [vmem:[%s24078_s5 + $0x470] sm:$0xff]  ;;  %v16102_v22 = vld [vmem:[%s24078_s5 + $0x4d8] sm:$0xff] }
 0x6be   :  { %v8242_v36 = vpop.f32.mrf.mxu2  ;;  %v8549_v20 = vpop.f32.mrf.mxu3 }
 0x6bf   :  { %v8273_v53 = vadd.f32 %v8242_v36, %v22841_v5  ;;  %v8589_v61 = vadd.f32 %v8549_v20, %v22889_v8 }
 0x6c1   :  { %v22973_v55 = vadd.f32 %v8406_v35, %v8273_v53 }
 0x6c2   :  { %v8713_v59 = vpop.f32.mrf.mxu0  ;;  %v8416_v21 = vpop.f32.mrf.mxu1 }
 0x6c3   :  { %v22981_v27 = vadd.f32 %v8713_v59, %v8589_v61  ;;  %v16123_v59 = vld [vmem:[%s24078_s5 + $0x580] sm:$0xff] }
 0x6c5   :  { %14894 = vmatmul.msk.bf16.vlgmr.msra.gmra.mxu0 %vm6152_vm8, %v16107_v26  ;;  %14787 = vmatmul.msk.bf16.gmra.mxu1 %vm6152_vm8, %v16096_v10  ;;  %v16110_v10 = vld [vmem:[%s24078_s5 + $0x518] sm:$0xff] }
 0x6c6   :  { %v8244_v5 = vpop.f32.mrf.mxu2  ;;  %v8551_v8 = vpop.f32.mrf.mxu3 }
 0x6c7   :  { %v8274_v58 = vadd.f32 %v8244_v5, %v22857_v24  ;;  %v8590_v15 = vadd.f32 %v8551_v8, %v22909_v2 }
 0x6c9   :  { %v22993_v4 = vadd.f32 %v8408_v25, %v8274_v58 }
 0x6ca   :  { %v8715_v16 = vpop.f32.mrf.mxu0  ;;  %v8418_v24 = vpop.f32.mrf.mxu1 }
 0x6cb   :  { %14730 = vmatmul.msk.bf16.gmra.mxu2 %vm6152_vm8, %v16087_v37  ;;  %14839 = vmatmul.msk.bf16.gmra.mxu3 %vm6152_vm8, %v16100_v46  ;;  %v22997_v34 = vadd.f32 %v8715_v16, %v8590_v15  ;;  %v16090_v37 = vld [vmem:[%s24078_s5 + $0x478] sm:$0xff]  ;;  %v16103_v46 = vld [vmem:[%s24078_s5 + $0x4e0] sm:$0xff] }
 0x6ce   :  { %v8247_v33 = vpop.f32.mrf.mxu2  ;;  %v8554_v2 = vpop.f32.mrf.mxu3 }
 0x6cf   :  { %v8275_v31 = vadd.f32 %v8247_v33, %v22869_v29  ;;  %v8591_v45 = vadd.f32 %v8554_v2, %v22917_v47 }
 0x6d1   :  { %v23001_v39 = vadd.f32 %v8411_v17, %v8275_v31 }
 0x6d2   :  { %v8718_v35 = vpop.f32.mrf.mxu0  ;;  %v8421_v7 = vpop.f32.mrf.mxu1 }
 0x6d3   :  { %v23009_v11 = vadd.f32 %v8718_v35, %v8591_v45  ;;  %v16124_v35 = vld [vmem:[%s24078_s5 + $0x588] sm:$0xff] }
 0x6d5   :  { %14895 = vmatmul.msk.bf16.gmra.mxu0 %vm6152_vm8, %v16108_v60  ;;  %14788 = vmatmul.msk.bf16.gmra.mxu1 %vm6152_vm8, %v16097_v48  ;;  %v16111_v48 = vld [vmem:[%s24078_s5 + $0x520] sm:$0xff] }
 0x6d6   :  { %v8249_v29 = vpop.f32.mrf.mxu2  ;;  %v8556_v47 = vpop.f32.mrf.mxu3 }
 0x6d7   :  { %v8276_v43 = vadd.f32 %v8249_v29, %v22885_v18  ;;  %v8592_v28 = vadd.f32 %v8556_v47, %v22937_v32 }
 0x6d9   :  { %v23021_v56 = vadd.f32 %v8413_v63, %v8276_v43 }
 0x6da   :  { %v8720_v25 = vpop.f32.mrf.mxu0  ;;  %v8423_v18 = vpop.f32.mrf.mxu1 }
 0x6db   :  { %14731 = vmatmul.msk.bf16.gmra.mxu2 %vm6152_vm8, %v16088_v42  ;;  %14840 = vmatmul.msk.bf16.gmra.mxu3 %vm6152_vm8, %v16101_v6  ;;  %v23025_v19 = vadd.f32 %v8720_v25, %v8592_v28  ;;  %v16104_v42 = vld [vmem:[%s24078_s5 + $0x4e8] sm:$0xff]  ;;  %v16115_v6 = vld [vmem:[%s24078_s5 + $0x540] sm:$0xff] }
 0x6de   :  { %v8252_v1 = vpop.f32.mrf.mxu2  ;;  %v8559_v32 = vpop.f32.mrf.mxu3 }
 0x6df   :  { %v8277_v13 = vadd.f32 %v8252_v1, %v22897_v38  ;;  %v8593_v40 = vadd.f32 %v8559_v32, %v22945_v54 }
 0x6e1   :  { %v23029_v52 = vadd.f32 %v8416_v21, %v8277_v13 }
 0x6e2   :  { %v8723_v17 = vpop.f32.mrf.mxu0  ;;  %v8426_v23 = vpop.f32.mrf.mxu1 }
 0x6e3   :  { %v23037_v3 = vadd.f32 %v8723_v17, %v8593_v40  ;;  %v16125_v17 = vld [vmem:[%s24078_s5 + $0x590] sm:$0xff] }
 0x6e5   :  { %14896 = vmatmul.msk.bf16.gmra.mxu0 %vm6152_vm8, %v16109_v14  ;;  %14789 = vmatmul.msk.bf16.gmra.mxu1 %vm6152_vm8, %v16098_v62  ;;  %v16112_v62 = vld [vmem:[%s24078_s5 + $0x528] sm:$0xff] }
 0x6e6   :  { %v8254_v38 = vpop.f32.mrf.mxu2  ;;  %v8561_v54 = vpop.f32.mrf.mxu3 }
 0x6e7   :  { %v8278_v44 = vadd.f32 %v8254_v38, %v22913_v30  ;;  %v8594_v50 = vadd.f32 %v8561_v54, %v22965_v49 }
 0x6e9   :  { %v23049_v9 = vadd.f32 %v8418_v24, %v8278_v44 }
 0x6ea   :  { %v8725_v63 = vpop.f32.mrf.mxu0  ;;  %v8428_v30 = vpop.f32.mrf.mxu1 }
 0x6eb   :  { %14732 = vmatmul.msk.bf16.gmra.mxu2 %vm6152_vm8, %v16089_v51  ;;  %14841 = vmatmul.msk.bf16.gmra.mxu3 %vm6152_vm8, %v16102_v22  ;;  %v23053_v36 = vadd.f32 %v8725_v63, %v8594_v50  ;;  %v16105_v50 = vld [vmem:[%s24078_s5 + $0x4f0] sm:$0xff]  ;;  %v16116_v51 = vld [vmem:[%s24078_s5 + $0x548] sm:$0xff] }
 0x6ee   :  { %v8257_v20 = vpop.f32.mrf.mxu2  ;;  %v8564_v49 = vpop.f32.mrf.mxu3 }
 0x6ef   :  { %v8279_v53 = vadd.f32 %v8257_v20, %v22925_v0  ;;  %v8595_v61 = vadd.f32 %v8564_v49, %v22973_v55 }
 0x6f1   :  { %v23057_v26 = vadd.f32 %v8421_v7, %v8279_v53 }
 0x6f2   :  { %v8728_v21 = vpop.f32.mrf.mxu0  ;;  %v9035_v8 = vpop.f32.mrf.mxu1 }
 0x6f3   :  { %v23065_v5 = vadd.f32 %v8728_v21, %v8595_v61 }
 0x6f5   :  { %14897 = vmatmul.msk.bf16.gmra.mxu0 %vm6152_vm8, %v16110_v10  ;;  %15006 = vmatmul.msk.bf16.vlgmr.msra.gmra.mxu1 %vm6152_vm8, %v16123_v59  ;;  %v16113_v10 = vld [vmem:[%s24078_s5 + $0x530] sm:$0xff]  ;;  %v16126_v59 = vld [vmem:[%s24078_s5 + $0x598] sm:$0xff] }
 0x6f6   :  { %v8259_v0 = vpop.f32.mrf.mxu2  ;;  %v8566_v55 = vpop.f32.mrf.mxu3 }
 0x6f7   :  { %v8280_v58 = vadd.f32 %v8259_v0, %v22941_v12  ;;  %v8596_v15 = vadd.f32 %v8566_v55, %v22993_v4 }
 0x6f9   :  { %v23077_v16 = vadd.f32 %v8423_v18, %v8280_v58 }
 0x6fa   :  { %v8730_v24 = vpop.f32.mrf.mxu0  ;;  %v9037_v12 = vpop.f32.mrf.mxu1 }
 0x6fb   :  { %14733 = vmatmul.msk.bf16.gmra.mxu2 %vm6152_vm8, %v16090_v37  ;;  %14842 = vmatmul.msk.bf16.gmra.mxu3 %vm6152_vm8, %v16103_v46  ;;  %v23081_v33 = vadd.f32 %v8730_v24, %v8596_v15  ;;  %v16106_v15 = vld [vmem:[%s24078_s5 + $0x4f8] sm:$0xff]  ;;  %v16117_v37 = vld [vmem:[%s24078_s5 + $0x550] sm:$0xff] }
 0x6fe   :  { %v8262_v2 = vpop.f32.mrf.mxu2  ;;  %v8569_v4 = vpop.f32.mrf.mxu3 }
 0x6ff   :  { %v8281_v31 = vadd.f32 %v8262_v2, %v22953_v41  ;;  %v8597_v45 = vadd.f32 %v8569_v4, %v23001_v39 }
 0x701   :  { %v23085_v60 = vadd.f32 %v8426_v23, %v8281_v31 }
 0x702   :  { %v8733_v7 = vpop.f32.mrf.mxu0  ;;  %v9040_v47 = vpop.f32.mrf.mxu1 }
 0x703   :  { %v23093_v29 = vadd.f32 %v8733_v7, %v8597_v45 }
 0x705   :  { %14898 = vmatmul.msk.bf16.gmra.mxu0 %vm6152_vm8, %v16111_v48  ;;  %15007 = vmatmul.msk.bf16.gmra.mxu1 %vm6152_vm8, %v16124_v35  ;;  %v16114_v48 = vld [vmem:[%s24078_s5 + $0x538] sm:$0xff]  ;;  %v16127_v35 = vld [vmem:[%s24078_s5 + $0x5a0] sm:$0xff] }
 0x706   :  { %v8264_v41 = vpop.f32.mrf.mxu2  ;;  %v8571_v39 = vpop.f32.mrf.mxu3 }
 0x707   :  { %v8282_v43 = vadd.f32 %v8264_v41, %v22969_v57  ;;  %v8598_v28 = vadd.f32 %v8571_v39, %v23021_v56 }
 0x709   :  { %v23105_v25 = vadd.f32 %v8428_v30, %v8282_v43  ;;  %v16118_v43 = vld [vmem:[%s24078_s5 + $0x558] sm:$0xff] }
 0x70a   :  { %v8735_v18 = vpop.f32.mrf.mxu0  ;;  %v9042_v40 = vpop.f32.mrf.mxu1 }
 0x70b   :  { %14843 = vmatmul.msk.bf16.gmra.mxu3 %vm6152_vm8, %v16104_v42  ;;  %14950 = vmatmul.msk.bf16.vlgmr.msra.gmra.mxu2 %vm6152_vm8, %v16115_v6  ;;  %v23109_v1 = vadd.f32 %v8735_v18, %v8598_v28  ;;  %v16131_v28 = vld [vmem:[%s24078_s5 + $0x5c0] sm:$0xff] }
 0x70e   :  { %v8574_v57 = vpop.f32.mrf.mxu3  ;;  %v8871_v32 = vpop.f32.mrf.mxu2 }
 0x70f   :  { %v8599_v56 = vadd.f32 %v8574_v57, %v23029_v52  ;;  %v8911_v13 = vadd.f32 %v8871_v32, %v22981_v27 }
 0x711   :  { %v23113_v14 = vadd.f32 %v9035_v8, %v8911_v13 }
 0x712   :  { %v8738_v23 = vpop.f32.mrf.mxu0  ;;  %v9045_v63 = vpop.f32.mrf.mxu1 }
 0x713   :  { %v23121_v38 = vadd.f32 %v8738_v23, %v8599_v56 }
 0x715   :  { %14899 = vmatmul.msk.bf16.gmra.mxu0 %vm6152_vm8, %v16112_v62  ;;  %15008 = vmatmul.msk.bf16.gmra.mxu1 %vm6152_vm8, %v16125_v17  ;;  %v16128_v17 = vld [vmem:[%s24078_s5 + $0x5a8] sm:$0xff] }
 0x716   :  { %v8576_v52 = vpop.f32.mrf.mxu3  ;;  %v8873_v27 = vpop.f32.mrf.mxu2 }
 0x717   :  { %v8600_v54 = vadd.f32 %v8576_v52, %v23049_v9  ;;  %v8912_v44 = vadd.f32 %v8873_v27, %v22997_v34 }
 0x719   :  { %v23133_v22 = vadd.f32 %v9037_v12, %v8912_v44  ;;  %v16119_v44 = vld [vmem:[%s24078_s5 + $0x560] sm:$0xff] }
 0x71a   :  { %v8740_v30 = vpop.f32.mrf.mxu0  ;;  %v9047_v0 = vpop.f32.mrf.mxu1 }
 0x71b   :  { %14844 = vmatmul.msk.bf16.gmra.mxu3 %vm6152_vm8, %v16105_v50  ;;  %14951 = vmatmul.msk.bf16.gmra.mxu2 %vm6152_vm8, %v16116_v51  ;;  %v23137_v20 = vadd.f32 %v8740_v30, %v8600_v54  ;;  %v16132_v50 = vld [vmem:[%s24078_s5 + $0x5c8] sm:$0xff] }
 0x71e   :  { %v8579_v9 = vpop.f32.mrf.mxu3  ;;  %v8876_v34 = vpop.f32.mrf.mxu2 }
 0x71f   :  { %v8601_v49 = vadd.f32 %v8579_v9, %v23057_v26  ;;  %v8913_v53 = vadd.f32 %v8876_v34, %v23009_v11 }
 0x721   :  { %v23141_v61 = vadd.f32 %v9040_v47, %v8913_v53 }
 0x722   :  { %v8743_v21 = vpop.f32.mrf.mxu0 }
 0x723   :  { %v23149_v8 = vadd.f32 %v8743_v21, %v8601_v49 }
 0x725   :  { %14900 = vmatmul.msk.bf16.gmra.mxu0 %vm6152_vm8, %v16113_v10  ;;  %15009 = vmatmul.msk.bf16.gmra.mxu1 %vm6152_vm8, %v16126_v59  ;;  %v16140_v10 = vld [vmem:[%s24078_s5 + $0x608] sm:$0xff]  ;;  %v16129_v59 = vld [vmem:[%s24078_s5 + $0x5b0] sm:$0xff] }
 0x726   :  { %v8581_v26 = vpop.f32.mrf.mxu3  ;;  %v8878_v11 = vpop.f32.mrf.mxu2 }
 0x727   :  { %v8602_v55 = vadd.f32 %v8581_v26, %v23077_v16  ;;  %v8914_v58 = vadd.f32 %v8878_v11, %v23025_v19  ;;  %v9050_v16 = vpop.f32.mrf.mxu1 }
 0x729   :  { %v23161_v46 = vadd.f32 %v9042_v40, %v8914_v58  ;;  %v16139_v40 = vld [vmem:[%s24078_s5 + $0x600] sm:$0xff]  ;;  %v16133_v58 = vld [vmem:[%s24078_s5 + $0x5d0] sm:$0xff] }
 0x72a   :  { %v8745_v24 = vpop.f32.mrf.mxu0 }
 0x72b   :  { %14845 = vmatmul.msk.bf16.gmra.mxu3 %vm6152_vm8, %v16106_v15  ;;  %14952 = vmatmul.msk.bf16.gmra.mxu2 %vm6152_vm8, %v16117_v37  ;;  %v23165_v12 = vadd.f32 %v8745_v24, %v8602_v55  ;;  %v16120_v55 = vld [vmem:[%s24078_s5 + $0x568] sm:$0xff] }
 0x72e   :  { %v8584_v2 = vpop.f32.mrf.mxu3  ;;  %v8881_v19 = vpop.f32.mrf.mxu2 }
 0x72f   :  { %v8603_v4 = vadd.f32 %v8584_v2, %v23085_v60  ;;  %v8915_v31 = vadd.f32 %v8881_v19, %v23037_v3  ;;  %v9052_v42 = vpop.f32.mrf.mxu1 }
 0x731   :  { %v23169_v45 = vadd.f32 %v9045_v63, %v8915_v31  ;;  %v16141_v31 = vld [vmem:[%s24078_s5 + $0x610] sm:$0xff] }
 0x732   :  { %v8748_v7 = vpop.f32.mrf.mxu0 }
 0x733   :  { %v23177_v47 = vadd.f32 %v8748_v7, %v8603_v4 }
 0x735   :  { %14901 = vmatmul.msk.bf16.gmra.mxu0 %vm6152_vm8, %v16114_v48  ;;  %15010 = vmatmul.msk.bf16.gmra.mxu1 %vm6152_vm8, %v16127_v35  ;;  %v16130_v48 = vld [vmem:[%s24078_s5 + $0x5b8] sm:$0xff] }
 0x736   :  { %v8586_v60 = vpop.f32.mrf.mxu3  ;;  %v8883_v41 = vpop.f32.mrf.mxu2 }
 0x737   :  { %v8604_v3 = vadd.f32 %v8586_v60, %v23105_v25  ;;  %v8916_v39 = vadd.f32 %v8883_v41, %v23053_v36  ;;  %v9055_v62 = vpop.f32.mrf.mxu1  ;;  %v16121_v41 = vld [vmem:[%s24078_s5 + $0x570] sm:$0xff] }
 0x739   :  { %v23189_v6 = vadd.f32 %v9047_v0, %v8916_v39 }
 0x73a   :  { %v8750_v18 = vpop.f32.mrf.mxu0 }
 0x73b   :  { %14953 = vmatmul.msk.bf16.gmra.mxu2 %vm6152_vm8, %v16118_v43  ;;  %15062 = vmatmul.msk.bf16.vlgmr.msrb.gmra.mxu3 %vm6152_vm8, %v16131_v28  ;;  %v23193_v57 = vadd.f32 %v8750_v18, %v8604_v3  ;;  %v16134_v3 = vld [vmem:[%s24078_s5 + $0x5d8] sm:$0xff] }
 0x73e   :  { %v8886_v25 = vpop.f32.mrf.mxu2  ;;  %v9193_v36 = vpop.f32.mrf.mxu3 }
 0x73f   :  { %v8917_v32 = vadd.f32 %v8886_v25, %v23065_v5  ;;  %v9233_v56 = vadd.f32 %v9193_v36, %v23113_v14  ;;  %v23221_v9 = vpop.f32.mrf.mxu1 }
 0x741   :  { %v23197_v13 = vadd.f32 %v9050_v16, %v8917_v32  ;;  %v16142_v32 = vld [vmem:[%s24078_s5 + $0x618] sm:$0xff] }
 0x742   :  { %v9357_v23 = vpop.f32.mrf.mxu0 }
 0x743   :  { %v23205_v52 = vadd.f32 %v9357_v23, %v9233_v56 }
 0x745   :  { %15118 = vmatmul.msk.bf16.vlgmr.msrb.gmra.mxu0 %vm6152_vm8, %v16139_v40  ;;  %15011 = vmatmul.msk.bf16.gmra.mxu1 %vm6152_vm8, %v16128_v17 }
 0x746   :  { %v8888_v5 = vpop.f32.mrf.mxu2  ;;  %v9195_v14 = vpop.f32.mrf.mxu3 }
 0x747   :  { %v8918_v27 = vadd.f32 %v8888_v5, %v23081_v33  ;;  %v9234_v54 = vadd.f32 %v9195_v14, %v23133_v22  ;;  %v9060_v26 = vpop.f32.mrf.mxu1 }
 0x749   :  { %v9082_v51 = vadd.f32 %v9052_v42, %v8918_v27 }
 0x74a   :  { %v9359_v63 = vpop.f32.mrf.mxu0 }
 0x74b   :  { %14954 = vmatmul.msk.bf16.gmra.mxu2 %vm6152_vm8, %v16119_v44  ;;  %15063 = vmatmul.msk.bf16.gmra.mxu3 %vm6152_vm8, %v16132_v50  ;;  %v23219_v30 = vadd.f32 %v9359_v63, %v9234_v54 }
 0x74e   :  { %v8891_v33 = vpop.f32.mrf.mxu2  ;;  %v9198_v22 = vpop.f32.mrf.mxu3 }
 0x74f   :  { %v8919_v34 = vadd.f32 %v8891_v33, %v23093_v29  ;;  %v9235_v49 = vadd.f32 %v9198_v22, %v23141_v61  ;;  %v23250_v19 = vpop.f32.mrf.mxu1  ;;  %v16143_v22 = vld [vmem:[%s24078_s5 + $0x620] sm:$0xff] }
 0x751   :  { %v9083_v53 = vadd.f32 %v9055_v62, %v8919_v34 }
 0x752   :  { %v9362_v21 = vpop.f32.mrf.mxu0 }
 0x753   :  { %v23231_v0 = vadd.f32 %v9362_v21, %v9235_v49 }
 0x755   :  { %15119 = vmatmul.msk.bf16.gmra.mxu0 %vm6152_vm8, %v16140_v10  ;;  %15012 = vmatmul.msk.bf16.gmra.mxu1 %vm6152_vm8, %v16129_v59  ;;  %v16136_v59 = vld [vmem:[%s24078_s5 + $0x5e8] sm:$0xff] }
 0x756   :  { %v23235_v29 = vpop.f32.mrf.mxu2  ;;  %v9200_v61 = vpop.f32.mrf.mxu3 }
 0x757   :  { %v9236_v11 = vadd.f32 %v9200_v61, %v23161_v46  ;;  %v9065_v39 = vpop.f32.mrf.mxu1  ;;  %v16144_v61 = vld [vmem:[%s24078_s5 + $0x628] sm:$0xff] }
 0x75a   :  { %v9364_v15 = vpop.f32.mrf.mxu0 }
 0x75b   :  { %14955 = vmatmul.msk.bf16.gmra.mxu2 %vm6152_vm8, %v16120_v55  ;;  %15064 = vmatmul.msk.bf16.gmra.mxu3 %vm6152_vm8, %v16133_v58  ;;  %v23246_v37 = vadd.f32 %v9364_v15, %v9236_v11 }
 0x75e   :  { %v8896_v24 = vpop.f32.mrf.mxu2  ;;  %v9203_v16 = vpop.f32.mrf.mxu3 }
 0x75f   :  { %v8921_v2 = vadd.f32 %v8896_v24, %v23121_v38  ;;  %v9237_v46 = vadd.f32 %v9203_v16, %v23169_v45  ;;  %v23280_v40 = vpop.f32.mrf.mxu1  ;;  %v16137_v24 = vld [vmem:[%s24078_s5 + $0x5f0] sm:$0xff] }
 0x761   :  { %v9085_v4 = vadd.f32 %v9060_v26, %v8921_v2 }
 0x762   :  { %v9367_v35 = vpop.f32.mrf.mxu0 }
 0x763   :  { %v23258_v7 = vadd.f32 %v9367_v35, %v9237_v46 }
 0x765   :  { %15120 = vmatmul.msk.bf16.gmra.mxu0 %vm6152_vm8, %v16141_v31  ;;  %15013 = vmatmul.msk.bf16.gmra.mxu1 %vm6152_vm8, %v16130_v48  ;;  %v16145_v48 = vld [vmem:[%s24078_s5 + $0x630] sm:$0xff] }
 0x766   :  { %v23262_v38 = vpop.f32.mrf.mxu2  ;;  %v9205_v45 = vpop.f32.mrf.mxu3 }
 0x767   :  { %v9238_v60 = vadd.f32 %v9205_v45, %v23189_v6  ;;  %v9070_v54 = vpop.f32.mrf.mxu1 }
 0x76a   :  { %v9369_v43 = vpop.f32.mrf.mxu0 }
 0x76b   :  { %14956 = vmatmul.msk.bf16.gmra.mxu2 %vm6152_vm8, %v16121_v41  ;;  %15065 = vmatmul.msk.bf16.gmra.mxu3 %vm6152_vm8, %v16134_v3  ;;  %v23273_v28 = vadd.f32 %v9369_v43, %v9238_v60 }
 0x76e   :  { %v8901_v42 = vpop.f32.mrf.mxu2  ;;  %v9208_v18 = vpop.f32.mrf.mxu3 }
 0x76f   :  { %v8923_v6 = vadd.f32 %v8901_v42, %v23149_v8  ;;  %v9239_v25 = vadd.f32 %v9208_v18, %v23197_v13  ;;  %v16122_v8 = vld [vmem:[%s24078_s5 + $0x578] sm:$0xff]  ;;  %v16135_v13 = vld [vmem:[%s24078_s5 + $0x5e0] sm:$0xff]  ;;  %v23317_v55 = vpop.f32.mrf.mxu1 }
 0x771   :  { %v9087_v36 = vadd.f32 %v9065_v39, %v8923_v6  ;;  %v16138_v39 = vld [vmem:[%s24078_s5 + $0x5f8] sm:$0xff] }
 0x772   :  { %v9372_v56 = vpop.f32.mrf.mxu0 }
 0x773   :  { %v23282_v62 = vadd.f32 %v9372_v56, %v9239_v25 }
 0x775   :  { %15121 = vmatmul.msk.bf16.gmra.mxu0 %vm6152_vm8, %v16142_v32 }
 0x776   :  { %v23285_v17 = vpop.f32.mrf.mxu2  ;;  %v9210_v23 = vpop.f32.mrf.mxu3 }
 0x777   :  { %v9240_v5 = vadd.f32 %v9210_v23, %v9082_v51  ;;  %v9679_v46 = vpop.f32.mrf.mxu1 }
 0x77a   :  { %v9374_v14 = vpop.f32.mrf.mxu0 }
 0x77b   :  { %14957 = vmatmul.msk.bf16.gmra.mxu2 %vm6152_vm8, %v16122_v8  ;;  %15066 = vmatmul.msk.bf16.gmra.mxu3 %vm6152_vm8, %v16135_v13  ;;  %v23295_v27 = vadd.f32 %v9374_v14, %v9240_v5 }
 0x77e   :  { %v8906_v44 = vpop.f32.mrf.mxu2  ;;  %v9213_v50 = vpop.f32.mrf.mxu3 }
 0x77f   :  { %v8925_v51 = vadd.f32 %v8906_v44, %v23177_v47  ;;  %v9241_v63 = vadd.f32 %v9213_v50, %v9083_v53  ;;  %v9681_v3 = vpop.f32.mrf.mxu1 }
 0x781   :  { %v9089_v33 = vadd.f32 %v9070_v54, %v8925_v51 }
 0x782   :  { %v9377_v34 = vpop.f32.mrf.mxu0 }
 0x783   :  { %v23301_v49 = vadd.f32 %v9377_v34, %v9241_v63  ;;  %v16154_v63 = vld [vmem:[%s24079_s7 + $0x38] sm:$0xff] }
 0x784   :  { %10545 = vmatpush.bf16.msrb.mxu2 %v16154_v63  ;;  %v10086_v63 = vpop.permute.xlu2 %10085 }
 0x785   :  { %15122 = vmatmul.msk.bf16.gmra.mxu0 %vm6152_vm8, %v16143_v22 }
 0x786   :  { %v23304_v10 = vpop.f32.mrf.mxu3  ;;  %v23312_v53 = vpop.f32.mrf.mxu2 }
 0x787   :  { %v9684_v25 = vpop.f32.mrf.mxu1 }
 0x78a   :  { %v23309_v21 = vpop.f32.mrf.mxu0 }
 0x78b   :  { %15067 = vmatmul.msk.bf16.gmra.mxu3 %vm6152_vm8, %v16136_v59  ;;  %v10076_v59 = vpop.permute.xlu0 %10075 }
 0x78e   :  { %v9218_v47 = vpop.f32.mrf.mxu3  ;;  %v9515_v16 = vpop.f32.mrf.mxu2 }
 0x78f   :  { %v9243_v26 = vadd.f32 %v9218_v47, %v9085_v4  ;;  %v9555_v13 = vadd.f32 %v9515_v16, %v23205_v52  ;;  %v9686_v14 = vpop.f32.mrf.mxu1  ;;  %v16153_v52 = vld [vmem:[%s24079_s7 + $0x30] sm:$0xff]  ;;  %v16152_v16 = vld [vmem:[%s24079_s7 + $0x28] sm:$0xff] }
 0x790   :  { %10546 = vmatpush.bf16.msrb.mxu2 %v16153_v52 }
 0x791   :  { %v9719_v44 = vadd.f32 %v9679_v46, %v9555_v13 }
 0x792   :  { %v9382_v11 = vpop.f32.mrf.mxu0 }
 0x793   :  { %v23319_v58 = vadd.f32 %v9382_v11, %v9243_v26 }
 0x794   :  { %10547 = vmatpush.bf16.msrb.mxu2 %v16152_v16 }
 0x795   :  { %15123 = vmatmul.msk.bf16.gmra.mxu0 %vm6152_vm8, %v16144_v61 }
 0x796   :  { %v23322_v15 = vpop.f32.mrf.mxu3  ;;  %v9517_v45 = vpop.f32.mrf.mxu2 }
 0x797   :  { %v9556_v22 = vadd.f32 %v9517_v45, %v23219_v30  ;;  %v9689_v47 = vpop.f32.mrf.mxu1  ;;  %v10081_v45 = vpop.permute.xlu1 %10080 }
 0x799   :  { %v9720_v11 = vadd.f32 %v9681_v3, %v9556_v22 }
 0x79a   :  { %v23327_v2 = vpop.f32.mrf.mxu0 }
 0x79b   :  { %15068 = vmatmul.msk.bf16.gmra.mxu3 %vm6152_vm8, %v16137_v24 }
 0x79e   :  { %v9223_v4 = vpop.f32.mrf.mxu3  ;;  %v9520_v42 = vpop.f32.mrf.mxu2 }
 0x79f   :  { %v9245_v31 = vadd.f32 %v9223_v4, %v9087_v36  ;;  %v16146_v36 = vld [vmem:[%s24078_s5 + $0x638] sm:$0xff]  ;;  %v9557_v4 = vadd.f32 %v9520_v42, %v23231_v0 }
 0x7a0   :  { %v16150_v0 = vld [vmem:[%s24079_s7 + $0x18] sm:$0xff] }
 0x7a2   :  { %v9387_v35 = vpop.f32.mrf.mxu0 }
 0x7a3   :  { %v23333_v60 = vadd.f32 %v9387_v35, %v9245_v31  ;;  %v16151_v35 = vld [vmem:[%s24079_s7 + $0x20] sm:$0xff] }
 0x7a4   :  { %10548 = vmatpush.bf16.msrb.mxu2 %v16151_v35  ;;  %v10091_v35 = vpop.permute.xlu0 %10090 }
 0x7a5   :  { %15124 = vmatmul.msk.bf16.gmra.mxu0 %vm6152_vm8, %v16145_v48 }
 0x7a6   :  { %v23336_v41 = vpop.f32.mrf.mxu3  ;;  %v9522_v5 = vpop.f32.mrf.mxu2 }
 0x7a8   :  { %10549 = vmatpush.bf16.msrb.mxu2 %v16150_v0 }
 0x7aa   :  { %v23341_v43 = vpop.f32.mrf.mxu0 }
 0x7ab   :  { %15069 = vmatmul.msk.bf16.gmra.mxu3 %vm6152_vm8, %v16138_v39 }
 0x7ae   :  { %v9228_v18 = vpop.f32.mrf.mxu3  ;;  %v9525_v50 = vpop.f32.mrf.mxu2 }
 0x7af   :  { %v9247_v6 = vadd.f32 %v9228_v18, %v9089_v33 }
 0x7b2   :  { %v9392_v32 = vpop.f32.mrf.mxu0 }
 0x7b3   :  { %v23347_v56 = vadd.f32 %v9392_v32, %v9247_v6  ;;  %v9721_v6 = vadd.f32 %v9684_v25, %v9557_v4  ;;  %v16149_v25 = vld [vmem:[%s24079_s7 + $0x10] sm:$0xff] }
 0x7b4   :  { %10550 = vmatpush.bf16.msrb.mxu2 %v16149_v25 }
 0x7b5   :  { %15125 = vmatmul.msk.bf16.gmra.mxu0 %vm6152_vm8, %v16146_v36  ;;  %v23369_v36 = vpop.f32.mrf.mxu1 }
 0x7b6   :  { %v23350_v23 = vpop.f32.mrf.mxu3  ;;  %v9527_v31 = vpop.f32.mrf.mxu2 }
 0x7ba   :  { %v23352_v8 = vpop.f32.mrf.mxu0 }
 0x7be   :  { %v9837_v54 = vpop.f32.mrf.mxu3 }
 0x7bf   :  { %v9877_v51 = vadd.f32 %v9837_v54, %v9719_v44  ;;  %v9558_v44 = vadd.f32 %v9522_v5, %v23246_v37 }
 0x7c2   :  { %v10001_v33 = vpop.f32.mrf.mxu0 }
 0x7c3   :  { %v10041_v34 = vadd.f32 %v10001_v33, %v9877_v51  ;;  %v23381_v33 = vpop.f32.mrf.mxu2 }
 0x7c5   :  { %v10153_v26 = vadd.f32 %v10076_v59, %v10041_v34 }
 0x7c6   :  { %v9839_v61 = vpop.f32.mrf.mxu3 }
 0x7c7   :  { %v15126_v24 = vmul.f32 -1.442695, %v10153_v26  ;;  %v9878_v46 = vadd.f32 %v9839_v61, %v9720_v11  ;;  %v9722_v26 = vadd.f32 %v9686_v14, %v9558_v44  ;;  %v16148_v61 = vld [vmem:[%s24079_s7 + $0x8] sm:$0xff]  ;;  %v23388_v11 = vpop.f32.mrf.mxu1  ;;  %v9559_v14 = vadd.f32 %v9525_v50, %v23258_v7 }
 0x7c8   :  { %10551 = vmatpush.bf16.msrb.mxu2 %v16148_v61  ;;  %v9560_v44 = vadd.f32 %v9527_v31, %v23273_v28 }
 0x7c9   :  { %16387 = vpow2.f32 %v15126_v24 }
 0x7ca   :  { %v10003_v30 = vpop.f32.mrf.mxu0 }
 0x7cb   :  { %v10042_v48 = vadd.f32 %v10003_v30, %v9878_v46 }
 0x7cd   :  { %v10154_v3 = vadd.f32 %v10081_v45, %v10042_v48  ;;  %v16147_v48 = vld [vmem:[%s24079_s7] sm:$0xff] }
 0x7ce   :  { %v9842_v39 = vpop.f32.mrf.mxu3  ;;  %10552 = vmatpush.bf16.msrb.mxu2 %v16147_v48 }
 0x7cf   :  { %v16388_v18 = vpop.eup %16387  ;;  %v15127_v32 = vmul.f32 -1.442695, %v10154_v3  ;;  %v9879_v13 = vadd.f32 %v9842_v39, %v9721_v6  ;;  %v23396_v6 = vpop.f32.mrf.mxu2 }
 0x7d0   :  { %v23374_v42 = vadd.f32 1.0, %v16388_v18  ;;  %v9723_v18 = vadd.f32 %v9689_v47, %v9559_v14  ;;  %v23404_v47 = vpop.f32.mrf.mxu1 }
 0x7d1   :  { %16389 = vpow2.f32 %v15127_v32 }
 0x7d2   :  { %16391 = vrcp.f32 %v23374_v42  ;;  %v10006_v54 = vpop.f32.mrf.mxu0  ;;  %v10242_v25 = vand.u32 2147483647, %v23374_v42  ;;  %vm10238_vm10 = vweird.f32 %v23374_v42 }
 0x7d3   :  { %v10043_v51 = vadd.f32 %v10006_v54, %v9879_v13 }
 0x7d4   :  { %vm23415_vm13 = vcmp.eq.f32.partialorder %v10242_v25, 8.507059e+37 }
 0x7d5   :  { %v10155_v22 = vadd.f32 %v10086_v63, %v10043_v51 }
 0x7d6   :  { %v9844_v34 = vpop.f32.mrf.mxu3 }
 0x7d7   :  { %v16390_v59 = vpop.eup %16389  ;;  %v15128_v52 = vmul.f32 -1.442695, %v10155_v22  ;;  %v9880_v16 = vadd.f32 %v9844_v34, %v9722_v26  ;;  %v10244_v26 = vand.u32 2147483648, %v23374_v42 }
 0x7d8   :  { %v23386_v37 = vpop.eup %16391  ;;  %v10218_v5 = vadd.f32 1.0, %v16390_v59  ;;  %v10096_v59 = vpop.permute.xlu1 %10095 }
 0x7d9   :  { %v10234_v24 = vmul.f32 %v23386_v37, %v23374_v42  ;;  %16393 = vpow2.f32 %v15128_v52  ;;  %vm10239_vm9 = vweird.f32 %v23386_v37 }
 0x7da   :  { %16395 = vrcp.f32 %v10218_v5  ;;  %v10008_v46 = vpop.f32.mrf.mxu0  ;;  %v10257_v52 = vand.u32 2147483647, %v10218_v5  ;;  %v10259_v61 = vand.u32 2147483648, %v10218_v5  ;;  %vm23411_vm12 = vmor %vm10238_vm10, %vm10239_vm9  ;;  %vm10253_vm3 = vweird.f32 %v10218_v5 }
 0x7db   :  { %v10235_v30 = vsub.f32 1.0, %v10234_v24  ;;  %v10044_v4 = vadd.f32 %v10008_v46, %v9880_v16  ;;  %v9724_v24 = vadd.f32 %v23369_v36, %v9560_v44 }
 0x7dc   :  { %vm10258_vm4 = vcmp.eq.f32.partialorder %v10257_v52, 8.507059e+37 }
 0x7dd   :  { %v10156_v45 = vadd.f32 %v10091_v35, %v10044_v4  ;;  %v10236_v32 = vmul.f32 %v23386_v37, %v10235_v30 }
 0x7de   :  { %v9847_v3 = vpop.f32.mrf.mxu3 }
 0x7df   :  { %v16394_v39 = vpop.eup %16393  ;;  %v15129_v0 = vmul.f32 -1.442695, %v10156_v45  ;;  %v9881_v54 = vadd.f32 %v9847_v3, %v9723_v18  ;;  %v10237_v34 = vadd.f32 %v23386_v37, %v10236_v32  ;;  %v10245_v45 = vor.u32 1.1754944e-38, %v10244_v26 }
 0x7e0   :  { %v16396_v13 = vpop.eup %16395  ;;  %v23399_v7 = vadd.f32 1.0, %v16394_v39  ;;  %v10260_v3 = vor.u32 1.1754944e-38, %v10259_v61  ;;  %v23426_v39 = vpop.f32.mrf.mxu2 }
 0x7e1   :  { %v10249_v50 = vmul.f32 %v16396_v13, %v10218_v5  ;;  %16397 = vpow2.f32 %v15129_v0  ;;  %vm10254_vm11 = vweird.f32 %v16396_v13  ;;  %v10241_v42 = vsel %vm23411_vm12, %v23386_v37, %v10237_v34 }
 0x7e2   :  { %16399 = vrcp.f32 %v23399_v7  ;;  %v10011_v51 = vpop.f32.mrf.mxu0  ;;  %vm10255_vm15 = vmor %vm10253_vm3, %vm10254_vm11  ;;  %v10246_v5 = vsel %vm23415_vm13, %v10245_v45, %v10241_v42  ;;  %v10272_v46 = vand.u32 2147483647, %v23399_v7  ;;  %v10106_v42 = vpop.permute.xlu0 %10105  ;;  %vm10268_vm5 = vweird.f32 %v23399_v7 }
 0x7e3   :  { %v10250_v63 = vsub.f32 1.0, %v10249_v50  ;;  %v10045_v22 = vadd.f32 %v10011_v51, %v9881_v54  ;;  %v9561_v54 = vadd.f32 %v23381_v33, %v23282_v62  ;;  %v9562_v33 = vadd.f32 %v23396_v6, %v23295_v27 }
 0x7e4   :  { %vm23459_vm6 = vcmp.eq.f32.partialorder %v10272_v46, 8.507059e+37 }
 0x7e5   :  { %v10251_v28 = vmul.f32 %v16396_v13, %v10250_v63  ;;  %v10157_v31 = vadd.f32 %v10096_v59, %v10045_v22  ;;  %v10101_v63 = vpop.permute.xlu2 %10100  ;;  %v23435_v22 = vpop.f32.mrf.mxu1  ;;  %v9725_v26 = vadd.f32 %v23388_v11, %v9561_v54 }
 0x7e6   :  { %v9849_v16 = vpop.f32.mrf.mxu3 }
 0x7e7   :  { %v16398_v30 = vpop.eup %16397  ;;  %v15130_v4 = vmul.f32 -1.442695, %v10157_v31  ;;  %v10252_v48 = vadd.f32 %v16396_v13, %v10251_v28  ;;  %v9882_v18 = vadd.f32 %v9849_v16, %v9724_v24 }
 0x7e8   :  { %v23422_v35 = vpop.eup %16399  ;;  %v23424_v36 = vadd.f32 1.0, %v16398_v30  ;;  %v9537_v14 = vpop.f32.mrf.mxu2 }
 0x7e9   :  { %16401 = vpow2.f32 %v15130_v4  ;;  %v10256_v32 = vsel %vm10255_vm15, %v16396_v13, %v10252_v48  ;;  %v10264_v0 = vmul.f32 %v23422_v35, %v23399_v7  ;;  %vm10269_vm1 = vweird.f32 %v23422_v35 }
 0x7ea   :  { %16403 = vrcp.f32 %v23424_v36  ;;  %v10013_v37 = vpop.f32.mrf.mxu0  ;;  %v10261_v50 = vsel %vm10258_vm4, %v10260_v3, %v10256_v32  ;;  %v10274_v48 = vand.u32 2147483648, %v23399_v7  ;;  %v10287_v45 = vand.u32 2147483647, %v23424_v36  ;;  %vm23455_vm2 = vmor %vm10268_vm5, %vm10269_vm1 }
 0x7eb   :  { %v10046_v44 = vadd.f32 %v10013_v37, %v9882_v18  ;;  %v10473_v51 = vpack.c.bf16 %v10261_v50, %v10246_v5  ;;  %v10265_v25 = vsub.f32 1.0, %v10264_v0  ;;  %v10289_v3 = vand.u32 2147483648, %v23424_v36 }
 0x7ec   :  { %v8920_v18 = vadd.f32 %v23235_v29, %v23109_v1  ;;  %v9726_v32 = vadd.f32 %v23404_v47, %v9562_v33  ;;  %vm10283_vm7 = vweird.f32 %v23424_v36  ;;  %v10275_v47 = vor.u32 1.1754944e-38, %v10274_v48 }
 0x7ed   :  { %v10158_v13 = vadd.f32 %v10101_v63, %v10046_v44  ;;  %10553 = vmatmul.bf16.vlgmr.msrb.gmra.mxu2 %v10473_v51  ;;  %v10266_v61 = vmul.f32 %v23422_v35, %v10265_v25  ;;  %v9701_v54 = vpop.f32.mrf.mxu1  ;;  %vm10288_vm9 = vcmp.eq.f32.partialorder %v10287_v45, 8.507059e+37  ;;  %v10290_v25 = vor.u32 1.1754944e-38, %v10289_v3 }
 0x7ee   :  { %v9852_v34 = vpop.f32.mrf.mxu3  ;;  %v9084_v33 = vadd.f32 %v23221_v9, %v8920_v18 }
 0x7ef   :  { %v16402_v59 = vpop.eup %16401  ;;  %v15131_v52 = vmul.f32 -1.442695, %v10158_v13  ;;  %v9883_v24 = vadd.f32 %v9852_v34, %v9725_v26  ;;  %v10267_v30 = vadd.f32 %v23422_v35, %v10266_v61  ;;  %v9563_v26 = vadd.f32 %v23426_v39, %v23301_v49 }
 0x7f0   :  { %v16404_v28 = vpop.eup %16403  ;;  %v23439_v31 = vadd.f32 1.0, %v16402_v59  ;;  %v9242_v46 = vadd.f32 %v23304_v10, %v9084_v33 }
 0x7f1   :  { %16405 = vpow2.f32 %v15131_v52  ;;  %v10279_v62 = vmul.f32 %v16404_v28, %v23424_v36  ;;  %vm10284_vm14 = vweird.f32 %v16404_v28  ;;  %v10271_v7 = vsel %vm23455_vm2, %v23422_v35, %v10267_v30 }
 0x7f2   :  { %16407 = vrcp.f32 %v23439_v31  ;;  %v10016_v16 = vpop.f32.mrf.mxu0  ;;  %vm10285_vm8 = vmor %vm10283_vm7, %vm10284_vm14  ;;  %v10276_v36 = vsel %vm23459_vm6, %v10275_v47, %v10271_v7  ;;  %v9406_v49 = vadd.f32 %v23309_v21, %v9242_v46  ;;  %v10302_v18 = vand.u32 2147483647, %v23439_v31  ;;  %v10116_v21 = vpop.permute.xlu2 %10115 }
 0x7f3   :  { %v10047_v11 = vadd.f32 %v10016_v16, %v9883_v24  ;;  %v10280_v4 = vsub.f32 1.0, %v10279_v62  ;;  %v10111_v62 = vpop.permute.xlu1 %10110  ;;  %v10304_v37 = vand.u32 2147483648, %v23439_v31  ;;  %vm10298_vm11 = vweird.f32 %v23439_v31 }
 0x7f4   :  { %v8922_v7 = vadd.f32 %v23262_v38, %v23137_v20  ;;  %vm23501_vm3 = vcmp.eq.f32.partialorder %v10302_v18, 8.507059e+37 }
 0x7f5   :  { %v10159_v27 = vadd.f32 %v10106_v42, %v10047_v11  ;;  %v10281_v6 = vmul.f32 %v16404_v28, %v10280_v4  ;;  %v9727_v4 = vadd.f32 %v23435_v22, %v9563_v26  ;;  %v9704_v3 = vpop.f32.mrf.mxu1 }
 0x7f6   :  { %v9854_v0 = vpop.f32.mrf.mxu3 }
 0x7f7   :  { %v16406_v50 = vpop.eup %16405  ;;  %v15132_v44 = vmul.f32 -1.442695, %v10159_v27  ;;  %v10282_v51 = vadd.f32 %v16404_v28, %v10281_v6  ;;  %v9884_v63 = vadd.f32 %v9854_v0, %v9726_v32  ;;  %v9564_v6 = vadd.f32 %v9537_v14, %v9406_v49 }
 0x7f8   :  { %v23467_v1 = vpop.eup %16407  ;;  %v23469_v29 = vadd.f32 1.0, %v16406_v50 }
 0x7f9   :  { %16409 = vpow2.f32 %v15132_v44  ;;  %v10286_v13 = vsel %vm10285_vm8, %v16404_v28, %v10282_v51  ;;  %v10294_v34 = vmul.f32 %v23467_v1, %v23439_v31  ;;  %v9540_v28 = vpop.f32.mrf.mxu2  ;;  %vm10299_vm10 = vweird.f32 %v23467_v1 }
 0x7fa   :  { %16411 = vrcp.f32 %v23469_v29  ;;  %v10018_v35 = vpop.f32.mrf.mxu0  ;;  %v10291_v59 = vsel %vm10288_vm9, %v10290_v25, %v10286_v13  ;;  %v10317_v5 = vand.u32 2147483647, %v23469_v29  ;;  %v10319_v50 = vand.u32 2147483648, %v23469_v29  ;;  %vm23497_vm13 = vmor %vm10298_vm11, %vm10299_vm10 }
 0x7fb   :  { %v10048_v52 = vadd.f32 %v10018_v35, %v9884_v63  ;;  %v10474_v61 = vpack.c.bf16 %v10291_v59, %v10276_v36  ;;  %v10295_v24 = vsub.f32 1.0, %v10294_v34  ;;  %v9728_v51 = vadd.f32 %v9701_v54, %v9564_v6 }
 0x7fc   :  { %vm10313_vm15 = vweird.f32 %v23469_v29  ;;  %v10305_v54 = vor.u32 1.1754944e-38, %v10304_v37  ;;  %vm10318_vm1 = vcmp.eq.f32.partialorder %v10317_v5, 8.507059e+37  ;;  %v10320_v59 = vor.u32 1.1754944e-38, %v10319_v50 }
 0x7fd   :  { %v10160_v16 = vadd.f32 %v10111_v62, %v10048_v52  ;;  %10558 = vmatmul.bf16.gmra.mxu2 %v10474_v61  ;;  %v10296_v48 = vmul.f32 %v23467_v1, %v10295_v24  ;;  %v9565_v62 = vadd.f32 %v9540_v28, %v23319_v58  ;;  %v9706_v33 = vpop.f32.mrf.mxu1 }
 0x7fe   :  { %v9857_v11 = vpop.f32.mrf.mxu3 }
 0x7ff   :  { %v16410_v30 = vpop.eup %16409  ;;  %v15133_v42 = vmul.f32 -1.442695, %v10160_v16  ;;  %v9885_v27 = vadd.f32 %v9857_v11, %v9727_v4  ;;  %v10297_v32 = vadd.f32 %v23467_v1, %v10296_v48  ;;  %v9086_v4 = vadd.f32 %v23250_v19, %v8922_v7 }
 0x800   :  { %v16412_v45 = vpop.eup %16411  ;;  %v23484_v39 = vadd.f32 1.0, %v16410_v30  ;;  %v10121_v30 = vpop.permute.xlu0 %10120 }
 0x801   :  { %16413 = vpow2.f32 %v15133_v42  ;;  %v10309_v9 = vmul.f32 %v16412_v45, %v23469_v29  ;;  %vm10314_vm12 = vweird.f32 %v16412_v45  ;;  %v9542_v34 = vpop.f32.mrf.mxu2  ;;  %v10301_v31 = vsel %vm23497_vm13, %v23467_v1, %v10297_v32 }
 0x802   :  { %16415 = vrcp.f32 %v23484_v39  ;;  %v10021_v10 = vpop.f32.mrf.mxu0  ;;  %vm10315_vm4 = vmor %vm10313_vm15, %vm10314_vm12  ;;  %v10306_v29 = vsel %vm23501_vm3, %v10305_v54, %v10301_v31  ;;  %v9244_v48 = vadd.f32 %v23322_v15, %v9086_v4  ;;  %v10334_v5 = vand.u32 2147483648, %v23484_v39 }
 0x803   :  { %v10049_v22 = vadd.f32 %v10021_v10, %v9885_v27  ;;  %v10310_v0 = vsub.f32 1.0, %v10309_v9  ;;  %v9729_v27 = vadd.f32 %v9704_v3, %v9565_v62  ;;  %vm10328_vm14 = vweird.f32 %v23484_v39 }
 0x804   :  { %v9408_v58 = vadd.f32 %v23327_v2, %v9244_v48  ;;  %v10126_v2 = vpop.permute.xlu1 %10125  ;;  %v10335_v54 = vor.u32 1.1754944e-38, %v10334_v5 }
 0x805   :  { %v10161_v44 = vadd.f32 %v10116_v21, %v10049_v22  ;;  %v10311_v14 = vmul.f32 %v16412_v45, %v10310_v0  ;;  %v10332_v0 = vand.u32 2147483647, %v23484_v39 }
 0x806   :  { %v9859_v47 = vpop.f32.mrf.mxu3  ;;  %v9566_v32 = vadd.f32 %v9542_v34, %v9408_v58 }
 0x807   :  { %v16414_v13 = vpop.eup %16413  ;;  %v15134_v35 = vmul.f32 -1.442695, %v10161_v44  ;;  %v10312_v36 = vadd.f32 %v16412_v45, %v10311_v14  ;;  %v9886_v26 = vadd.f32 %v9859_v47, %v9728_v51  ;;  %v9709_v14 = vpop.f32.mrf.mxu1  ;;  %v8924_v47 = vadd.f32 %v23285_v17, %v23165_v12 }
 0x808   :  { %v23509_v20 = vpop.eup %16415  ;;  %v23511_v38 = vadd.f32 1.0, %v16414_v13  ;;  %v9730_v25 = vadd.f32 %v9706_v33, %v9566_v32  ;;  %vm23541_vm7 = vcmp.eq.f32.partialorder %v10332_v0, 8.507059e+37  ;;  %v10136_v0 = vpop.permute.xlu0 %10135 }
 0x809   :  { %16417 = vpow2.f32 %v15134_v35  ;;  %v10316_v52 = vsel %vm10315_vm4, %v16412_v45, %v10312_v36  ;;  %v10324_v61 = vmul.f32 %v23509_v20, %v23484_v39  ;;  %v9545_v18 = vpop.f32.mrf.mxu2  ;;  %vm10329_vm5 = vweird.f32 %v23509_v20 }
 0x80a   :  { %16419 = vrcp.f32 %v23511_v38  ;;  %v10023_v1 = vpop.f32.mrf.mxu0  ;;  %v10321_v24 = vsel %vm10318_vm1, %v10320_v59, %v10316_v52  ;;  %v10347_v50 = vand.u32 2147483647, %v23511_v38  ;;  %v10349_v44 = vand.u32 2147483648, %v23511_v38  ;;  %vm23537_vm6 = vmor %vm10328_vm14, %vm10329_vm5 }
 0x80b   :  { %v10050_v16 = vadd.f32 %v10023_v1, %v9886_v26  ;;  %v10475_v46 = vpack.c.bf16 %v10321_v24, %v10306_v29  ;;  %v10325_v11 = vsub.f32 1.0, %v10324_v61  ;;  %vm10343_vm8 = vweird.f32 %v23511_v38 }
 0x80c   :  { %vm10348_vm10 = vcmp.eq.f32.partialorder %v10347_v50, 8.507059e+37  ;;  %v10350_v59 = vor.u32 1.1754944e-38, %v10349_v44  ;;  %v9567_v29 = vadd.f32 %v9545_v18, %v23333_v60  ;;  %v8926_v50 = vadd.f32 %v23312_v53, %v23193_v57 }
 0x80d   :  { %v10162_v42 = vadd.f32 %v10121_v30, %v10050_v16  ;;  %10563 = vmatmul.bf16.gmra.mxu2 %v10475_v46  ;;  %v10326_v6 = vmul.f32 %v23509_v20, %v10325_v11  ;;  %v10131_v46 = vpop.permute.xlu2 %10130  ;;  %v9088_v11 = vadd.f32 %v23280_v40, %v8924_v47 }
 0x80e   :  { %v9862_v45 = vpop.f32.mrf.mxu3 }
 0x80f   :  { %v16418_v49 = vpop.eup %16417  ;;  %v15135_v9 = vmul.f32 -1.442695, %v10162_v42  ;;  %v9887_v22 = vadd.f32 %v9862_v45, %v9729_v27  ;;  %v10327_v21 = vadd.f32 %v23509_v20, %v10326_v6  ;;  %v9246_v4 = vadd.f32 %v23336_v41, %v9088_v11 }
 0x810   :  { %v16420_v10 = vpop.eup %16419  ;;  %v23524_v28 = vadd.f32 1.0, %v16418_v49  ;;  %v9731_v45 = vadd.f32 %v9709_v14, %v9567_v29  ;;  %v9711_v49 = vpop.f32.mrf.mxu1 }
 0x811   :  { %16421 = vpow2.f32 %v15135_v9  ;;  %v10339_v19 = vmul.f32 %v16420_v10, %v23511_v38  ;;  %vm10344_vm2 = vweird.f32 %v16420_v10  ;;  %v10331_v39 = vsel %vm23537_vm6, %v23509_v20, %v10327_v21  ;;  %v9547_v24 = vpop.f32.mrf.mxu2 }
 0x812   :  { %16423 = vrcp.f32 %v23524_v28  ;;  %v10026_v15 = vpop.f32.mrf.mxu0  ;;  %vm10345_vm9 = vmor %vm10343_vm8, %vm10344_vm2  ;;  %v10336_v38 = vsel %vm23541_vm7, %v10335_v54, %v10331_v39  ;;  %v9410_v60 = vadd.f32 %v23341_v43, %v9246_v4  ;;  %v10364_v43 = vand.u32 2147483648, %v23524_v28 }
 0x813   :  { %v10051_v3 = vadd.f32 %v10026_v15, %v9887_v22  ;;  %v10340_v37 = vsub.f32 1.0, %v10339_v19  ;;  %v10362_v22 = vand.u32 2147483647, %v23524_v28  ;;  %vm10358_vm12 = vweird.f32 %v23524_v28 }
 0x814   :  { %v9568_v18 = vadd.f32 %v9547_v24, %v9410_v60  ;;  %v10365_v13 = vor.u32 1.1754944e-38, %v10364_v43 }
 0x815   :  { %v10163_v7 = vadd.f32 %v10126_v2, %v10051_v3  ;;  %v10341_v51 = vmul.f32 %v16420_v10, %v10340_v37  ;;  %vm23580_vm15 = vcmp.eq.f32.partialorder %v10362_v22, 8.507059e+37 }
 0x816   :  { %v9864_v63 = vpop.f32.mrf.mxu3  ;;  %v9732_v44 = vadd.f32 %v9711_v49, %v9568_v18 }
 0x817   :  { %v16422_v35 = vpop.eup %16421  ;;  %v15136_v31 = vmul.f32 -1.442695, %v10163_v7  ;;  %v10342_v36 = vadd.f32 %v16420_v10, %v10341_v51  ;;  %v9888_v26 = vadd.f32 %v9864_v63, %v9730_v25 }
 0x818   :  { %v23549_v12 = vpop.eup %16423  ;;  %v23551_v17 = vadd.f32 1.0, %v16422_v35  ;;  %v9714_v35 = vpop.f32.mrf.mxu1 }
 0x819   :  { %16425 = vpow2.f32 %v15136_v31  ;;  %v10346_v52 = vsel %vm10345_vm9, %v16420_v10, %v10342_v36  ;;  %v10354_v61 = vmul.f32 %v23549_v12, %v23524_v28  ;;  %vm10359_vm11 = vweird.f32 %v23549_v12  ;;  %v9550_v37 = vpop.f32.mrf.mxu2 }
 0x81a   :  { %16427 = vrcp.f32 %v23551_v17  ;;  %v10028_v20 = vpop.f32.mrf.mxu0  ;;  %v10351_v1 = vsel %vm10348_vm10, %v10350_v59, %v10346_v52  ;;  %v10377_v3 = vand.u32 2147483647, %v23551_v17  ;;  %v10379_v21 = vand.u32 2147483648, %v23551_v17  ;;  %vm23576_vm3 = vmor %vm10358_vm12, %vm10359_vm11 }
 0x81b   :  { %v10052_v62 = vadd.f32 %v10028_v20, %v9888_v26  ;;  %v10476_v33 = vpack.c.bf16 %v10351_v1, %v10336_v38  ;;  %v10355_v16 = vsub.f32 1.0, %v10354_v61  ;;  %vm10373_vm4 = vweird.f32 %v23551_v17  ;;  %v10141_v20 = vpop.permute.xlu1 %10140 }
 0x81c   :  { %vm10378_vm5 = vcmp.eq.f32.partialorder %v10377_v3, 8.507059e+37  ;;  %v10380_v34 = vor.u32 1.1754944e-38, %v10379_v21  ;;  %v9569_v59 = vadd.f32 %v9550_v37, %v23347_v56  ;;  %v9090_v38 = vadd.f32 %v23317_v55, %v8926_v50 }
 0x81d   :  { %v10164_v30 = vadd.f32 %v10131_v46, %v10052_v62  ;;  %10568 = vmatmul.bf16.gmra.mxu2 %v10476_v33  ;;  %v10356_v9 = vmul.f32 %v23549_v12, %v10355_v16 }
 0x81e   :  { %v9867_v42 = vpop.f32.mrf.mxu3  ;;  %v9248_v29 = vadd.f32 %v23350_v23, %v9090_v38  ;;  %v9733_v33 = vadd.f32 %v9714_v35, %v9569_v59 }
 0x81f   :  { %v16426_v48 = vpop.eup %16425  ;;  %v15137_v27 = vmul.f32 -1.442695, %v10164_v30  ;;  %v9889_v58 = vadd.f32 %v9867_v42, %v9731_v45  ;;  %v10357_v32 = vadd.f32 %v23549_v12, %v10356_v9 }
 0x820   :  { %v16428_v6 = vpop.eup %16427  ;;  %v23563_v10 = vadd.f32 1.0, %v16426_v48  ;;  %v9412_v56 = vadd.f32 %v23352_v8, %v9248_v29  ;;  %v9716_v49 = vpop.f32.mrf.mxu1 }
 0x821   :  { %16429 = vpow2.f32 %v15137_v27  ;;  %v10369_v40 = vmul.f32 %v16428_v6, %v23551_v17  ;;  %vm10374_vm13 = vweird.f32 %v16428_v6  ;;  %v10361_v28 = vsel %vm23576_vm3, %v23549_v12, %v10357_v32  ;;  %v9552_v16 = vpop.f32.mrf.mxu2  ;;  %v10146_v8 = vpop.permute.xlu2 %10145 }
 0x822   :  { %16431 = vrcp.f32 %v23563_v10  ;;  %v10031_v41 = vpop.f32.mrf.mxu0  ;;  %vm10375_vm1 = vmor %vm10373_vm4, %vm10374_vm13  ;;  %v10366_v17 = vsel %vm23580_vm15, %v10365_v13, %v10361_v28  ;;  %v9570_v48 = vadd.f32 %v9552_v16, %v9412_v56  ;;  %v10392_v45 = vand.u32 2147483647, %v23563_v10 }
 0x823   :  { %v10053_v19 = vadd.f32 %v10031_v41, %v9889_v58  ;;  %v10370_v15 = vsub.f32 1.0, %v10369_v40  ;;  %v10394_v60 = vand.u32 2147483648, %v23563_v10  ;;  %vm10388_vm2 = vweird.f32 %v23563_v10 }
 0x824   :  { %v9734_v22 = vadd.f32 %v9716_v49, %v9570_v48  ;;  %vm23617_vm8 = vcmp.eq.f32.partialorder %v10392_v45, 8.507059e+37 }
 0x825   :  { %v10165_v2 = vadd.f32 %v10136_v0, %v10053_v19  ;;  %v10371_v5 = vmul.f32 %v16428_v6, %v10370_v15 }
 0x826   :  { %v9869_v14 = vpop.f32.mrf.mxu3 }
 0x827   :  { %v16430_v47 = vpop.eup %16429  ;;  %v15138_v25 = vmul.f32 -1.442695, %v10165_v2  ;;  %v10372_v63 = vadd.f32 %v16428_v6, %v10371_v5  ;;  %v9890_v31 = vadd.f32 %v9869_v14, %v9732_v44  ;;  %v10395_v2 = vor.u32 1.1754944e-38, %v10394_v60 }
 0x828   :  { %v23588_v57 = vpop.eup %16431  ;;  %v23590_v53 = vadd.f32 1.0, %v16430_v47 }
 0x829   :  { %16433 = vpow2.f32 %v15138_v25  ;;  %v10376_v39 = vsel %vm10375_vm1, %v16428_v6, %v10372_v63  ;;  %v10384_v36 = vmul.f32 %v23588_v57, %v23563_v10  ;;  %vm10389_vm14 = vweird.f32 %v23588_v57 }
 0x82a   :  { %16435 = vrcp.f32 %v23590_v53  ;;  %v10033_v12 = vpop.f32.mrf.mxu0  ;;  %v10381_v54 = vsel %vm10378_vm5, %v10380_v34, %v10376_v39  ;;  %v10407_v58 = vand.u32 2147483647, %v23590_v53  ;;  %v10409_v40 = vand.u32 2147483648, %v23590_v53  ;;  %vm23613_vm7 = vmor %vm10388_vm2, %vm10389_vm14 }
 0x82b   :  { %v10054_v26 = vadd.f32 %v10033_v12, %v9890_v31  ;;  %v10477_v52 = vpack.c.bf16 %v10381_v54, %v10366_v17  ;;  %v10385_v61 = vsub.f32 1.0, %v10384_v36  ;;  %vm10403_vm9 = vweird.f32 %v23590_v53 }
 0x82c   :  { %vm10408_vm11 = vcmp.eq.f32.partialorder %v10407_v58, 8.507059e+37  ;;  %v10410_v5 = vor.u32 1.1754944e-38, %v10409_v40 }
 0x82d   :  { %v10166_v1 = vadd.f32 %v10141_v20, %v10054_v26  ;;  %10573 = vmatmul.bf16.gmra.mxu2 %v10477_v52  ;;  %v10386_v11 = vmul.f32 %v23588_v57, %v10385_v61  ;;  %v15174_v20 = vld [vmem:[%s24081_s8 + $0x4] sm:$0xf] }
 0x82e   :  { %v9872_v24 = vpop.f32.mrf.mxu3 }
 0x82f   :  { %v16434_v62 = vpop.eup %16433  ;;  %v15139_v46 = vmul.f32 -1.442695, %v10166_v1  ;;  %v9891_v42 = vadd.f32 %v9872_v24, %v9733_v33  ;;  %v10387_v9 = vadd.f32 %v23588_v57, %v10386_v11 }
 0x830   :  { %v16436_v30 = vpop.eup %16435  ;;  %v23602_v4 = vadd.f32 1.0, %v16434_v62 }
 0x831   :  { %16437 = vpow2.f32 %v15139_v46  ;;  %v10399_v55 = vmul.f32 %v16436_v30, %v23590_v53  ;;  %vm10404_vm6 = vweird.f32 %v16436_v30  ;;  %v10391_v3 = vsel %vm23613_vm7, %v23588_v57, %v10387_v9  ;;  %v10151_v57 = vpop.permute.xlu0 %10150 }
 0x832   :  { %16439 = vrcp.f32 %v23602_v4  ;;  %v10036_v23 = vpop.f32.mrf.mxu0  ;;  %vm10405_vm10 = vmor %vm10403_vm9, %vm10404_vm6  ;;  %v10396_v51 = vsel %vm23617_vm8, %v10395_v2, %v10391_v3  ;;  %vm10418_vm13 = vweird.f32 %v23602_v4  ;;  %v10424_v54 = vand.u32 2147483648, %v23602_v4 }
 0x833   :  { %v10055_v27 = vadd.f32 %v10036_v23, %v9891_v42  ;;  %v10400_v6 = vsub.f32 1.0, %v10399_v55  ;;  %v10422_v26 = vand.u32 2147483647, %v23602_v4 }
 0x834   :  { %v10425_v33 = vor.u32 1.1754944e-38, %v10424_v54 }
 0x835   :  { %v10167_v18 = vadd.f32 %v10146_v8, %v10055_v27  ;;  %v10401_v41 = vmul.f32 %v16436_v30, %v10400_v6  ;;  %vm10423_vm5 = vcmp.eq.f32.partialorder %v10422_v26, 8.507059e+37 }
 0x836   :  { %v9874_v19 = vpop.f32.mrf.mxu3 }
 0x837   :  { %v16438_v0 = vpop.eup %16437  ;;  %v15140_v43 = vmul.f32 -1.442695, %v10167_v18  ;;  %v10402_v21 = vadd.f32 %v16436_v30, %v10401_v41  ;;  %v9892_v50 = vadd.f32 %v9874_v19, %v9734_v22 }
 0x838   :  { %v16440_v10 = vpop.eup %16439  ;;  %v10230_v37 = vadd.f32 1.0, %v16438_v0 }
 0x839   :  { %16441 = vpow2.f32 %v15140_v43  ;;  %v10406_v44 = vsel %vm10405_vm10, %v16436_v30, %v10402_v21  ;;  %v10414_v14 = vmul.f32 %v16440_v10, %v23602_v4  ;;  %vm10419_vm12 = vweird.f32 %v16440_v10 }
 0x83a   :  { %16443 = vrcp.f32 %v10230_v37  ;;  %v10038_v7 = vpop.f32.mrf.mxu0  ;;  %v10411_v47 = vsel %vm10408_vm11, %v10410_v5, %v10406_v44  ;;  %v10439_v59 = vand.u32 2147483648, %v10230_v37  ;;  %v10437_v61 = vand.u32 2147483647, %v10230_v37  ;;  %vm23631_vm15 = vmor %vm10418_vm13, %vm10419_vm12 }
 0x83b   :  { %v10056_v25 = vadd.f32 %v10038_v7, %v9892_v50  ;;  %v10478_v28 = vpack.c.bf16 %v10411_v47, %v10396_v51  ;;  %v10415_v63 = vsub.f32 1.0, %v10414_v14  ;;  %vm10433_vm4 = vweird.f32 %v10230_v37 }
 0x83c   :  { %v10440_v16 = vor.u32 1.1754944e-38, %v10439_v59  ;;  %vm10438_vm14 = vcmp.eq.f32.partialorder %v10437_v61, 8.507059e+37  ;;  %vm10657_vm13 = vcmask 1044480   ;;  %v10602_v61 = vld [vmem:[%s24081_s8] sm:$0xf] }
 0x83d   :  { %v10168_v53 = vadd.f32 %v10151_v57, %v10056_v25  ;;  %10578 = vmatmul.bf16.gmra.mxu2 %v10478_v28  ;;  %v10416_v35 = vmul.f32 %v16440_v10, %v10415_v63 }
 0x83f   :  { %v16442_v13 = vpop.eup %16441  ;;  %v15141_v34 = vmul.f32 -1.442695, %v10168_v53  ;;  %v10417_v12 = vadd.f32 %v16440_v10, %v10416_v35 }
 0x840   :  { %v16444_v31 = vpop.eup %16443  ;;  %v10231_v39 = vadd.f32 1.0, %v16442_v13 }
 0x841   :  { %16445 = vpow2.f32 %v15141_v34  ;;  %v10429_v36 = vmul.f32 %v16444_v31, %v10230_v37  ;;  %vm10434_vm3 = vweird.f32 %v16444_v31  ;;  %v10421_v1 = vsel %vm23631_vm15, %v16440_v10, %v10417_v12 }
 0x842   :  { %16447 = vrcp.f32 %v10231_v39  ;;  %vm10435_vm1 = vmor %vm10433_vm4, %vm10434_vm3  ;;  %v10426_v30 = vsel %vm10423_vm5, %v10425_v33, %v10421_v1  ;;  %vm10448_vm6 = vweird.f32 %v10231_v39  ;;  %v10454_v27 = vand.u32 2147483648, %v10231_v39  ;;  %v16157_v1 = vld [vmem:[%s24080_s9 + $0x10] sm:$0xff] }
 0x843   :  { %v10430_v17 = vsub.f32 1.0, %v10429_v36  ;;  %v10452_v6 = vand.u32 2147483647, %v10231_v39  ;;  %v16460_v36 = vmov 65535  }
 0x844   :  { %v10455_v18 = vor.u32 1.1754944e-38, %v10454_v27  ;;  %v10658_v12 = vsel %vm680_vm0, 4294967295, %v16460_v36  ;;  %v15239_v27 = vld [vmem:[%s24081_s8 + $0x14] sm:$0xf]  ;;  %vm10653_vm0 = vcmask 203776  }
 0x845   :  { %v10431_v52 = vmul.f32 %v16444_v31, %v10430_v17  ;;  %vm10453_vm11 = vcmp.eq.f32.partialorder %v10452_v6, 8.507059e+37  ;;  %v23682_v59 = vsel %vm10657_vm13, %v10658_v12, 0  ;;  %v16170_v6 = vld [vmem:[%s24080_s9 + $0x78] sm:$0x10] }
 0x847   :  { %v16446_v38 = vpop.eup %16445  ;;  %v10432_v29 = vadd.f32 %v16444_v31, %v10431_v52 }
 0x848   :  { %v16448_v24 = vpop.eup %16447  ;;  %v10232_v62 = vadd.f32 1.0, %v16446_v38  ;;  %v15225_v38 = vld [vmem:[%s24081_s8 + $0x10] sm:$0xf] }
 0x849   :  { %v10436_v46 = vsel %vm10435_vm1, %v16444_v31, %v10432_v29  ;;  %v10444_v11 = vmul.f32 %v16448_v24, %v10231_v39  ;;  %vm10449_vm2 = vweird.f32 %v16448_v24  ;;  %v15185_v31 = vld [vmem:[%s24080_s9 + $0x18] sm:$0xf]  ;;  %v16158_v39 = vld [vmem:[%s24080_s9 + $0x18] sm:$0x10] }
 0x84a   :  { %16449 = vrcp.f32 %v10232_v62  ;;  %v10441_v56 = vsel %vm10438_vm14, %v10440_v16, %v10436_v46  ;;  %v10469_v9 = vand.u32 2147483648, %v10232_v62  ;;  %v10467_v60 = vand.u32 2147483647, %v10232_v62  ;;  %vm10450_vm8 = vmor %vm10448_vm6, %vm10449_vm2  ;;  %v15306_v29 = vld [vmem:[%s24080_s9 + $0x98] sm:$0xf]  ;;  %v16173_v46 = vld [vmem:[%s24080_s9 + $0x90] sm:$0xff] }
 0x84b   :  { %v10479_v4 = vpack.c.bf16 %v10441_v56, %v10426_v30  ;;  %v10445_v42 = vsub.f32 1.0, %v10444_v11  ;;  %vm10463_vm9 = vweird.f32 %v10232_v62  ;;  %v15186_v54 = vor.u32 %v16158_v39, %v15185_v31  ;;  %v15267_v16 = vld [vmem:[%s24081_s8 + $0x1c] sm:$0xf]  ;;  %v15194_v11 = vld [vmem:[%s24080_s9 + $0x8] sm:$0xf] }
 0x84c   :  { %v10470_v41 = vor.u32 1.1754944e-38, %v10469_v9  ;;  %vm10468_vm12 = vcmp.eq.f32.partialorder %v10467_v60, 8.507059e+37  ;;  %v16156_v30 = vld [vmem:[%s24080_s9 + $0x8] sm:$0x10]  ;;  %v15278_v9 = vld [vmem:[%s24080_s9 + $0x78] sm:$0xf] }
 0x84d   :  { %10583 = vmatmul.bf16.gmra.mxu2 %v10479_v4  ;;  %v10446_v55 = vmul.f32 %v16448_v24, %v10445_v42  ;;  %v10661_v52 = vand.u32 %v15186_v54, %v23682_v59  ;;  %v15195_v56 = vor.u32 %v16156_v30, %v15194_v11  ;;  %v15208_v4 = vld [vmem:[%s24080_s9 + $0x28] sm:$0xf]  ;;  %v16160_v42 = vld [vmem:[%s24080_s9 + $0x28] sm:$0x10]  ;;  %v15250_v31 = vld [vmem:[%s24080_s9 + $0x58] sm:$0xf] }
 0x84e   :  { %v16166_v39 = vld [vmem:[%s24080_s9 + $0x58] sm:$0x10]  ;;  %v15222_v11 = vld [vmem:[%s24080_s9 + $0x38] sm:$0xf] }
 0x84f   :  { %v10447_v45 = vadd.f32 %v16448_v24, %v10446_v55  ;;  %v15209_v55 = vor.u32 %v16160_v42, %v15208_v4  ;;  %v15251_v36 = vor.u32 %v16166_v39, %v15250_v31  ;;  %v16162_v30 = vld [vmem:[%s24080_s9 + $0x38] sm:$0x10]  ;;  %v15236_v4 = vld [vmem:[%s24080_s9 + $0x48] sm:$0xf]  ;;  %v16164_v42 = vld [vmem:[%s24080_s9 + $0x48] sm:$0x10] }
 0x850   :  { %v16450_v48 = vpop.eup %16449  ;;  %v16175_v31 = vld [vmem:[%s24080_s9 + $0xa0] sm:$0xff] }
 0x851   :  { %v10459_v23 = vmul.f32 %v16450_v48, %v10232_v62  ;;  %vm10464_vm7 = vweird.f32 %v16450_v48  ;;  %v10451_v58 = vsel %vm10450_vm8, %v16448_v24, %v10447_v45  ;;  %v16174_v24 = vld [vmem:[%s24080_s9 + $0x98] sm:$0x10]  ;;  %v10742_v45 = vand.u32 %v15209_v55, %v23682_v59 }
 0x852   :  { %vm10465_vm10 = vmor %vm10463_vm9, %vm10464_vm7  ;;  %v10456_v19 = vsel %vm10453_vm11, %v10455_v18, %v10451_v58  ;;  %v15307_v62 = vor.u32 %v16174_v24, %v15306_v29  ;;  %v16169_v58 = vld [vmem:[%s24080_s9 + $0x70] sm:$0xff]  ;;  %v16172_v18 = vld [vmem:[%s24080_s9 + $0x88] sm:$0x10]  ;;  %v15237_v55 = vor.u32 %v16164_v42, %v15236_v4 }
 0x853   :  { %v10460_v49 = vsub.f32 1.0, %v10459_v23  ;;  %v16155_v23 = vld [vmem:[%s24080_s9] sm:$0xff]  ;;  %v16168_v29 = vld [vmem:[%s24080_s9 + $0x68] sm:$0x10] }
 0x854   :  { %v11106_v33 = vand.u32 %v15307_v62, %v23682_v59  ;;  %v15211_v62 = vld [vmem:[%s24081_s8 + $0xc] sm:$0xf] }
 0x855   :  { %v10461_v8 = vmul.f32 %v16450_v48, %v10460_v49  ;;  %v16159_v49 = vld [vmem:[%s24080_s9 + $0x20] sm:$0xff]  ;;  %v16180_v4 = vld [vmem:[%s24080_s9 + $0xc8] sm:$0x10] }
 0x857   :  { %v10462_v40 = vadd.f32 %v16450_v48, %v10461_v8  ;;  %v15279_v8 = vor.u32 %v16170_v6, %v15278_v9 }
 0x859   :  { %v10466_v22 = vsel %vm10465_vm10, %v16450_v48, %v10462_v40  ;;  %v10691_v48 = vand.u32 %v15195_v56, %v23682_v59  ;;  %v11002_v60 = vand.u32 %v15279_v8, %v23682_v59  ;;  %v15292_v40 = vld [vmem:[%s24080_s9 + $0x88] sm:$0xf]  ;;  %v15223_v56 = vor.u32 %v16162_v30, %v15222_v11 }
 0x85a   :  { %v10471_v32 = vsel %vm10468_vm12, %v10470_v41, %v10466_v22  ;;  %v15293_v41 = vor.u32 %v16172_v18, %v15292_v40  ;;  %v15253_v18 = vld [vmem:[%s24081_s8 + $0x18] sm:$0xf] }
 0x85b   :  { %v10480_v15 = vpack.c.bf16 %v10471_v32, %v10456_v19 }
 0x85c   :  { %v11054_v22 = vand.u32 %v15293_v41, %v23682_v59  ;;  %v15334_v41 = vld [vmem:[%s24080_s9 + $0xb8] sm:$0xf] }
 0x85d   :  { %10588 = vmatmul.bf16.gmra.mxu2 %v10480_v15 }
 0x870   :  { %v10554_v0 = vpop.f32.mrf.mxu2 }
 0x878   :  { %v10556_v43 = vpop.f32.mrf.mxu2 }
 0x879   :  { %v23688_v26 = vpack.c.bf16 %v10556_v43, %v10554_v0  ;;  %v16171_v0 = vld [vmem:[%s24080_s9 + $0x80] sm:$0xff] }
 0x880   :  { %v10559_v3 = vpop.f32.mrf.mxu2 }
 0x888   :  { %v10561_v21 = vpop.f32.mrf.mxu2 }
 0x889   :  { %v23680_v17 = vpack.c.bf16 %v10561_v21, %v10559_v3 }
 0x890   :  { %v10564_v10 = vpop.f32.mrf.mxu2 }
 0x898   :  { %v10566_v37 = vpop.f32.mrf.mxu2 }
 0x899   :  { %v23667_v35 = vpack.c.bf16 %v10566_v37, %v10564_v10 }
 0x8a0   :  { %v10569_v2 = vpop.f32.mrf.mxu2 }
 0x8a8   :  { %v10571_v5 = vpop.f32.mrf.mxu2 }
 0x8a9   :  { %v23637_v50 = vpack.c.bf16 %v10571_v5, %v10569_v2  ;;  %v15197_v2 = vld [vmem:[%s24081_s8 + $0x8] sm:$0xf] }
 0x8b0   :  { %v10574_v44 = vpop.f32.mrf.mxu2 }
 0x8b8   :  { %v10576_v14 = vpop.f32.mrf.mxu2 }
 0x8b9   :  { %v23657_v34 = vpack.c.bf16 %v10576_v14, %v10574_v44 }
 0x8c0   :  { %v10579_v7 = vpop.f32.mrf.mxu2 }
 0x8c8   :  { %v10581_v51 = vpop.f32.mrf.mxu2 }
 0x8c9   :  { %v23651_v13 = vpack.c.bf16 %v10581_v51, %v10579_v7 }
 0x8d0   :  { %v10584_v47 = vpop.f32.mrf.mxu2 }
 0x8d8   :  { %v10586_v25 = vpop.f32.mrf.mxu2 }
 0x8d9   :  { %v23645_v53 = vpack.c.bf16 %v10586_v25, %v10584_v47 }
 0x8e0   :  { %v10589_v28 = vpop.f32.mrf.mxu2 }
 0x8e8   :  { %v10591_v63 = vpop.f32.mrf.mxu2 }
 0x8e9   :  { %v23639_v57 = vpack.c.bf16 %v10591_v63, %v10589_v28 }
 0x8eb   :  { %10603 = vmatpush.bf16.msrb.mxu1 %v23639_v57  ;;  %10623 = vmatpush.bf16.msra.mxu3 %v23639_v57 }
 0x8ec   :  { %10812 = vmatpush.bf16.msra.mxu0 %v23639_v57  ;;  %10864 = vmatpush.bf16.msra.mxu2 %v23639_v57 }
 0x8ef   :  { %10604 = vmatpush.bf16.msrb.mxu1 %v23645_v53  ;;  %10624 = vmatpush.bf16.msra.mxu3 %v23645_v53 }
 0x8f0   :  { %10813 = vmatpush.bf16.msra.mxu0 %v23645_v53  ;;  %10865 = vmatpush.bf16.msra.mxu2 %v23645_v53 }
 0x8f3   :  { %10605 = vmatpush.bf16.msrb.mxu1 %v23651_v13  ;;  %10625 = vmatpush.bf16.msra.mxu3 %v23651_v13 }
 0x8f4   :  { %10814 = vmatpush.bf16.msra.mxu0 %v23651_v13  ;;  %10866 = vmatpush.bf16.msra.mxu2 %v23651_v13 }
 0x8f7   :  { %10606 = vmatpush.bf16.msrb.mxu1 %v23657_v34  ;;  %10626 = vmatpush.bf16.msra.mxu3 %v23657_v34 }
 0x8f8   :  { %10815 = vmatpush.bf16.msra.mxu0 %v23657_v34  ;;  %10867 = vmatpush.bf16.msra.mxu2 %v23657_v34 }
 0x8fb   :  { %10607 = vmatpush.bf16.msrb.mxu1 %v23637_v50  ;;  %10627 = vmatpush.bf16.msra.mxu3 %v23637_v50 }
 0x8fc   :  { %10816 = vmatpush.bf16.msra.mxu0 %v23637_v50  ;;  %10868 = vmatpush.bf16.msra.mxu2 %v23637_v50 }
 0x8ff   :  { %10608 = vmatpush.bf16.msrb.mxu1 %v23667_v35  ;;  %10628 = vmatpush.bf16.msra.mxu3 %v23667_v35 }
 0x900   :  { %10817 = vmatpush.bf16.msra.mxu0 %v23667_v35  ;;  %10869 = vmatpush.bf16.msra.mxu2 %v23667_v35 }
 0x903   :  { %10609 = vmatpush.bf16.msrb.mxu1 %v23680_v17  ;;  %10629 = vmatpush.bf16.msra.mxu3 %v23680_v17 }
 0x904   :  { %10818 = vmatpush.bf16.msra.mxu0 %v23680_v17  ;;  %10870 = vmatpush.bf16.msra.mxu2 %v23680_v17 }
 0x907   :  { %10610 = vmatpush.bf16.msrb.mxu1 %v23688_v26  ;;  %10630 = vmatpush.bf16.msra.mxu3 %v23688_v26 }
 0x908   :  { %10819 = vmatpush.bf16.msra.mxu0 %v23688_v26  ;;  %10871 = vmatpush.bf16.msra.mxu2 %v23688_v26 }
 0x90a   :  { %10611 = vmatmul.bf16.vlgmr.msrb.gmra.mxu1 %v10602_v61  ;;  %10631 = vmatmul.bf16.vlgmr.msra.gmra.mxu3 %v15174_v20  ;;  %v16165_v20 = vld [vmem:[%s24080_s9 + $0x50] sm:$0xff] }
 0x90b   :  { %10669 = vmatpush.bf16.msra.mxu1 %v10661_v52  ;;  %10820 = vmatmul.bf16.vlgmr.msra.gmra.mxu0 %v15225_v38  ;;  %v10898_v52 = vand.u32 %v15251_v36, %v23682_v59  ;;  %v15281_v36 = vld [vmem:[%s24081_s8 + $0x20] sm:$0xf] }
 0x90c   :  { %10968 = vmatpush.bf16.msrb.mxu0 %v23639_v57  ;;  %10699 = vmatpush.bf16.msrb.mxu3 %v10691_v48  ;;  %v10794_v48 = vand.u32 %v15223_v56, %v23682_v59  ;;  %v15348_v56 = vld [vmem:[%s24080_s9 + $0xc8] sm:$0xf] }
 0x90d   :  { %10872 = vmatmul.bf16.vlgmr.msra.gmra.mxu2 %v15239_v27  ;;  %v15349_v42 = vor.u32 %v16180_v4, %v15348_v56 }
 0x90e   :  { %11010 = vmatpush.bf16.msrb.mxu2 %v11002_v60 }
 0x90f   :  { %10670 = vmatpush.bf16.msra.mxu1 %v16157_v1  ;;  %v15264_v1 = vld [vmem:[%s24080_s9 + $0x68] sm:$0xf] }
 0x910   :  { %10969 = vmatpush.bf16.msrb.mxu0 %v23645_v53  ;;  %10700 = vmatpush.bf16.msrb.mxu3 %v16155_v23  ;;  %v15265_v24 = vor.u32 %v16168_v29, %v15264_v1  ;;  %v16161_v23 = vld [vmem:[%s24080_s9 + $0x30] sm:$0xff] }
 0x911   :  { %v16181_v1 = vld [vmem:[%s24080_s9 + $0xd0] sm:$0xff] }
 0x912   :  { %11011 = vmatpush.bf16.msrb.mxu2 %v16169_v58 }
 0x913   :  { %10708 = vmatpush.bf16.msrb.mxu1 %v23639_v57 }
 0x914   :  { %10970 = vmatpush.bf16.msrb.mxu0 %v23651_v13  ;;  %10750 = vmatpush.bf16.msra.mxu3 %v10742_v45  ;;  %v10846_v45 = vand.u32 %v15237_v55, %v23682_v59 }
 0x916   :  { %11062 = vmatpush.bf16.msra.mxu2 %v11054_v22  ;;  %v16178_v22 = vld [vmem:[%s24080_s9 + $0xb8] sm:$0x10] }
 0x917   :  { %10709 = vmatpush.bf16.msrb.mxu1 %v23645_v53 }
 0x918   :  { %10971 = vmatpush.bf16.msrb.mxu0 %v23657_v34  ;;  %10751 = vmatpush.bf16.msra.mxu3 %v16159_v49  ;;  %v16163_v49 = vld [vmem:[%s24080_s9 + $0x40] sm:$0xff] }
 0x91a   :  { %11063 = vmatpush.bf16.msra.mxu2 %v16171_v0  ;;  %v16177_v0 = vld [vmem:[%s24080_s9 + $0xb0] sm:$0xff] }
 0x91b   :  { %10710 = vmatpush.bf16.msrb.mxu1 %v23651_v13 }
 0x91c   :  { %10972 = vmatpush.bf16.msrb.mxu0 %v23637_v50 }
 0x91f   :  { %10711 = vmatpush.bf16.msrb.mxu1 %v23657_v34 }
 0x920   :  { %10973 = vmatpush.bf16.msrb.mxu0 %v23667_v35 }
 0x923   :  { %10712 = vmatpush.bf16.msrb.mxu1 %v23637_v50 }
 0x924   :  { %10974 = vmatpush.bf16.msrb.mxu0 %v23680_v17 }
 0x927   :  { %10713 = vmatpush.bf16.msrb.mxu1 %v23667_v35 }
 0x928   :  { %10975 = vmatpush.bf16.msrb.mxu0 %v23688_v26 }
 0x92b   :  { %10714 = vmatpush.bf16.msrb.mxu1 %v23680_v17  ;;  %10976 = vmatmul.bf16.vlgmr.msrb.gmra.mxu0 %v15267_v16  ;;  %v16167_v16 = vld [vmem:[%s24080_s9 + $0x60] sm:$0xff] }
 0x92c   :  { %11114 = vmatpush.bf16.msra.mxu0 %v11106_v33  ;;  %v10950_v33 = vand.u32 %v15265_v24, %v23682_v59  ;;  %v15323_v24 = vld [vmem:[%s24081_s8 + $0x2c] sm:$0xf] }
 0x92f   :  { %10715 = vmatpush.bf16.msrb.mxu1 %v23688_v26 }
 0x930   :  { %11115 = vmatpush.bf16.msra.mxu0 %v16173_v46 }
 0x934   :  { %11176 = vmatpush.bf16.msrb.mxu0 %v23639_v57 }
 0x938   :  { %11177 = vmatpush.bf16.msrb.mxu0 %v23645_v53 }
 0x93c   :  { %11178 = vmatpush.bf16.msrb.mxu0 %v23651_v13 }
 0x940   :  { %11179 = vmatpush.bf16.msrb.mxu0 %v23657_v34 }
 0x944   :  { %11180 = vmatpush.bf16.msrb.mxu0 %v23637_v50 }
 0x948   :  { %11181 = vmatpush.bf16.msrb.mxu0 %v23667_v35 }
 0x94c   :  { %11182 = vmatpush.bf16.msrb.mxu0 %v23680_v17 }
 0x950   :  { %11183 = vmatpush.bf16.msrb.mxu0 %v23688_v26 }
 0x987   :  { %v10612_v19 = vpop.f32.mrf.mxu1 }
 0x988   :  { %v10616_v32 = vpack.c.bf16 %v10612_v19, %v10612_v19  ;;  %v23784_v15 = vpop.f32.mrf.mxu0  ;;  %v15335_v19 = vor.u32 %v16178_v22, %v15334_v41 }
 0x989   :  { %v10825_v40 = vpack.c.bf16 %v23784_v15, %v23784_v15  ;;  %v15295_v15 = vld [vmem:[%s24081_s8 + $0x24] sm:$0xf] }
 0x98a   :  { %15196 = vmatmul.msk.bf16.vlgmr.msrb.gmra.mxu3 %vm10653_vm0, %v10616_v32  ;;  %v11210_v32 = vand.u32 %v15335_v19, %v23682_v59 }
 0x98b   :  { %10760 = vmatpush.bf16.msrb.mxu3 %v23639_v57 }
 0x98d   :  { %v10632_v43 = vpop.f32.mrf.mxu3 }
 0x98e   :  { %v10636_v3 = vpack.c.bf16 %v10632_v43, %v10632_v43 }
 0x98f   :  { %10761 = vmatpush.bf16.msrb.mxu3 %v23645_v53  ;;  %v10614_v21 = vpop.f32.mrf.mxu1 }
 0x990   :  { %15187 = vmatmul.msk.bf16.vlgmr.msra.gmra.mxu1 %vm10653_vm0, %v10636_v3  ;;  %v10823_v10 = vpop.f32.mrf.mxu0  ;;  %v10873_v25 = vpop.f32.mrf.mxu2 }
 0x991   :  { %v10877_v46 = vpack.c.bf16 %v10873_v25, %v10873_v25  ;;  %10802 = vmatpush.bf16.msra.mxu1 %v10794_v48  ;;  %v11262_v48 = vand.u32 %v15349_v42, %v23682_v59  ;;  %v16216_v42 = vld [vmem:[%s24082_s10] ss:$0 sm:$0xff] }
 0x993   :  { %10762 = vmatpush.bf16.msrb.mxu3 %v23651_v13 }
 0x995   :  { %v10634_v37 = vpop.f32.mrf.mxu3  ;;  %10803 = vmatpush.bf16.msra.mxu1 %v16161_v23 }
 0x997   :  { %10763 = vmatpush.bf16.msrb.mxu3 %v23657_v34 }
 0x998   :  { %v10875_v12 = vpop.f32.mrf.mxu2 }
 0x999   :  { %v15362_v12 = vld [vmem:[%s24080_s9 + $0xd8] sm:$0xf] }
 0x99b   :  { %10764 = vmatpush.bf16.msrb.mxu3 %v23637_v50 }
 0x99f   :  { %10765 = vmatpush.bf16.msrb.mxu3 %v23667_v35 }
 0x9a0   :  { %10716 = vmatmul.bf16.vlgmr.msrb.gmra.mxu1 %v15197_v2 }
 0x9a1   :  { %10854 = vmatpush.bf16.msrb.mxu1 %v10846_v45  ;;  %v16179_v45 = vld [vmem:[%s24080_s9 + $0xc0] sm:$0xff] }
 0x9a3   :  { %10766 = vmatpush.bf16.msrb.mxu3 %v23680_v17 }
 0x9a5   :  { %10855 = vmatpush.bf16.msrb.mxu1 %v16163_v49 }
 0x9a7   :  { %10767 = vmatpush.bf16.msrb.mxu3 %v23688_v26 }
 0x9a8   :  { %v10977_v5 = vpop.f32.mrf.mxu0 }
 0x9a9   :  { %v10981_v44 = vpack.c.bf16 %v10977_v5, %v10977_v5 }
 0x9ab   :  { %15280 = vmatmul.msk.bf16.vlgmr.msrb.gmra.mxu2 %vm10653_vm0, %v10981_v44 }
 0x9ac   :  { %11124 = vmatpush.bf16.msrb.mxu2 %v23639_v57 }
 0x9b0   :  { %11125 = vmatpush.bf16.msrb.mxu2 %v23645_v53  ;;  %v10979_v14 = vpop.f32.mrf.mxu0 }
 0x9b4   :  { %11126 = vmatpush.bf16.msrb.mxu2 %v23651_v13 }
 0x9b8   :  { %11127 = vmatpush.bf16.msrb.mxu2 %v23657_v34 }
 0x9bc   :  { %11128 = vmatpush.bf16.msrb.mxu2 %v23637_v50 }
 0x9c0   :  { %11129 = vmatpush.bf16.msrb.mxu2 %v23667_v35 }
 0x9c4   :  { %11130 = vmatpush.bf16.msrb.mxu2 %v23680_v17 }
 0x9c8   :  { %11131 = vmatpush.bf16.msrb.mxu2 %v23688_v26 }
 0xa0d   :  { %v10672_v7 = vpop.f32.mrf.mxu1  ;;  %v10702_v51 = vpop.f32.mrf.mxu3 }
 0xa0e   :  { %v10703_v47 = vadd.f32 %v10702_v51, %v10672_v7  ;;  %v15320_v7 = vld [vmem:[%s24080_s9 + $0xa8] sm:$0xf]  ;;  %v16176_v51 = vld [vmem:[%s24080_s9 + $0xa8] sm:$0x10] }
 0xa15   :  { %v10674_v28 = vpop.f32.mrf.mxu1  ;;  %v10704_v63 = vpop.f32.mrf.mxu3 }
 0xa1d   :  { %v10717_v54 = vpop.f32.mrf.mxu1 }
 0xa1e   :  { %v10721_v61 = vpack.c.bf16 %v10717_v54, %v10717_v54  ;;  %v16182_v54 = vld [vmem:[%s24080_s9 + $0xd8] sm:$0x10] }
 0xa20   :  { %15210 = vmatmul.msk.bf16.vlgmr.msra.gmra.mxu3 %vm10653_vm0, %v10721_v61 }
 0xa21   :  { %10906 = vmatpush.bf16.msra.mxu3 %v10898_v52  ;;  %v15363_v52 = vor.u32 %v16182_v54, %v15362_v12  ;;  %v16185_v54 = vld [vmem:[%s24080_s9 + $0xf0] sm:$0xff] }
 0xa25   :  { %10907 = vmatpush.bf16.msra.mxu3 %v16165_v20  ;;  %v10719_v38 = vpop.f32.mrf.mxu1  ;;  %v11314_v20 = vand.u32 %v15363_v52, %v23682_v59 }
 0xa30   :  { %10768 = vmatmul.bf16.vlgmr.msrb.gmra.mxu3 %v15211_v62  ;;  %v11013_v62 = vpop.f32.mrf.mxu2 }
 0xa31   :  { %10958 = vmatpush.bf16.msrb.mxu3 %v10950_v33 }
 0xa35   :  { %10959 = vmatpush.bf16.msrb.mxu3 %v16167_v16 }
 0xa38   :  { %v11015_v33 = vpop.f32.mrf.mxu2 }
 0xa40   :  { %15252 = vmatmul.msk.bf16.vlgmr.msra.gmra.mxu3 %vm10653_vm0, %v10877_v46 }
 0xa41   :  { %11020 = vmatpush.bf16.msra.mxu3 %v23639_v57 }
 0xa45   :  { %11021 = vmatpush.bf16.msra.mxu3 %v23645_v53 }
 0xa49   :  { %11022 = vmatpush.bf16.msra.mxu3 %v23651_v13 }
 0xa4d   :  { %11023 = vmatpush.bf16.msra.mxu3 %v23657_v34 }
 0xa51   :  { %11024 = vmatpush.bf16.msra.mxu3 %v23637_v50 }
 0xa55   :  { %11025 = vmatpush.bf16.msra.mxu3 %v23667_v35 }
 0xa59   :  { %11026 = vmatpush.bf16.msra.mxu3 %v23680_v17 }
 0xa5d   :  { %11027 = vmatpush.bf16.msra.mxu3 %v23688_v26 }
 0xaa3   :  { %v10753_v27 = vpop.f32.mrf.mxu3 }
 0xaa4   :  { %v10757_v9 = vadd.f32 %v10753_v27, %v10703_v47  ;;  %v15321_v47 = vor.u32 %v16176_v51, %v15320_v7  ;;  %v15309_v27 = vld [vmem:[%s24081_s8 + $0x28] sm:$0xf]  ;;  %v16184_v7 = vld [vmem:[%s24080_s9 + $0xe8] sm:$0x10] }
 0xaa6   :  { %v11158_v28 = vand.u32 %v15321_v47, %v23682_v59 }
 0xaab   :  { %v10755_v6 = vpop.f32.mrf.mxu3 }
 0xab3   :  { %v10769_v8 = vpop.f32.mrf.mxu3 }
 0xab4   :  { %v10773_v60 = vpack.c.bf16 %v10769_v8, %v10769_v8 }
 0xab6   :  { %15224 = vmatmul.msk.bf16.vlgmr.msra.gmra.mxu1 %vm10653_vm0, %v10773_v60 }
 0xab7   :  { %10916 = vmatpush.bf16.msra.mxu1 %v23639_v57 }
 0xabb   :  { %10917 = vmatpush.bf16.msra.mxu1 %v23645_v53  ;;  %v10771_v58 = vpop.f32.mrf.mxu3 }
 0xabf   :  { %10918 = vmatpush.bf16.msra.mxu1 %v23651_v13 }
 0xac3   :  { %10919 = vmatpush.bf16.msra.mxu1 %v23657_v34  ;;  %v10909_v43 = vpop.f32.mrf.mxu3 }
 0xac6   :  { %15238 = vmatmul.msk.bf16.vlgmr.msrb.gmra.mxu1 %vm10653_vm0, %v10825_v40  ;;  %v15337_v40 = vld [vmem:[%s24081_s8 + $0x30] sm:$0xf] }
 0xac7   :  { %10920 = vmatpush.bf16.msra.mxu1 %v23637_v50 }
 0xacb   :  { %10921 = vmatpush.bf16.msra.mxu1 %v23667_v35  ;;  %v10911_v3 = vpop.f32.mrf.mxu3 }
 0xacc   :  { %v15379_v3 = vld [vmem:[%s24081_s8 + $0x3c] sm:$0xf] }
 0xacf   :  { %10922 = vmatpush.bf16.msra.mxu1 %v23680_v17 }
 0xad3   :  { %10923 = vmatpush.bf16.msra.mxu1 %v23688_v26 }
 0xad6   :  { %10924 = vmatmul.bf16.vlgmr.msra.gmra.mxu1 %v15253_v18 }
 0xad7   :  { %11072 = vmatpush.bf16.msrb.mxu1 %v23639_v57 }
 0xadb   :  { %11073 = vmatpush.bf16.msrb.mxu1 %v23645_v53 }
 0xadf   :  { %11074 = vmatpush.bf16.msrb.mxu1 %v23651_v13 }
 0xae3   :  { %11075 = vmatpush.bf16.msrb.mxu1 %v23657_v34 }
 0xae7   :  { %11076 = vmatpush.bf16.msrb.mxu1 %v23637_v50 }
 0xaeb   :  { %11077 = vmatpush.bf16.msrb.mxu1 %v23667_v35 }
 0xaef   :  { %11078 = vmatpush.bf16.msrb.mxu1 %v23680_v17 }
 0xaf3   :  { %11079 = vmatpush.bf16.msrb.mxu1 %v23688_v26 }
 0xaf6   :  { %11080 = vmatmul.bf16.vlgmr.msrb.gmra.mxu1 %v15295_v15 }
 0xaf7   :  { %11218 = vmatpush.bf16.msra.mxu1 %v11210_v32 }
 0xafb   :  { %11219 = vmatpush.bf16.msra.mxu1 %v16177_v0 }
 0xaff   :  { %11280 = vmatpush.bf16.msrb.mxu1 %v23639_v57 }
 0xb03   :  { %11281 = vmatpush.bf16.msrb.mxu1 %v23645_v53 }
 0xb07   :  { %11282 = vmatpush.bf16.msrb.mxu1 %v23651_v13 }
 0xb0b   :  { %11283 = vmatpush.bf16.msrb.mxu1 %v23657_v34 }
 0xb0f   :  { %11284 = vmatpush.bf16.msrb.mxu1 %v23637_v50 }
 0xb13   :  { %11285 = vmatpush.bf16.msrb.mxu1 %v23667_v35 }
 0xb17   :  { %11286 = vmatpush.bf16.msrb.mxu1 %v23680_v17 }
 0xb1b   :  { %11287 = vmatpush.bf16.msrb.mxu1 %v23688_v26 }
 0xb33   :  { %v10805_v21 = vpop.f32.mrf.mxu1 }
 0xb34   :  { %v10809_v10 = vadd.f32 %v10805_v21, %v10757_v9 }
 0xb3b   :  { %v10807_v37 = vpop.f32.mrf.mxu1 }
 0xb43   :  { %v10857_v2 = vpop.f32.mrf.mxu1 }
 0xb44   :  { %v10861_v5 = vadd.f32 %v10857_v2, %v10809_v10 }
 0xb46   :  { %v10913_v44 = vadd.f32 %v10909_v43, %v10861_v5  ;;  %v15365_v5 = vld [vmem:[%s24081_s8 + $0x38] sm:$0xf] }
 0xb4b   :  { %v10859_v14 = vpop.f32.mrf.mxu1 }
 0xb4c   :  { %v15376_v14 = vld [vmem:[%s24080_s9 + $0xe8] sm:$0xf] }
 0xb4d   :  { %v15377_v51 = vor.u32 %v16184_v7, %v15376_v14  ;;  %v16195_v7 = vld [vmem:[%s24086_s13] sm:$0xff] }
 0xb53   :  { %v10925_v25 = vpop.f32.mrf.mxu1 }
 0xb54   :  { %v10929_v63 = vpack.c.bf16 %v10925_v25, %v10925_v25  ;;  %v11366_v25 = vand.u32 %v15377_v51, %v23682_v59 }
 0xb56   :  { %15266 = vmatmul.msk.bf16.vlgmr.msrb.gmra.mxu3 %vm10653_vm0, %v10929_v63  ;;  %v15390_v63 = vld [vmem:[%s24080_s9 + $0xf8] sm:$0xf] }
 0xb57   :  { %11166 = vmatpush.bf16.msrb.mxu3 %v11158_v28  ;;  %v16183_v28 = vld [vmem:[%s24080_s9 + $0xe0] sm:$0xff] }
 0xb5b   :  { %11167 = vmatpush.bf16.msrb.mxu3 %v16175_v31  ;;  %v10927_v39 = vpop.f32.mrf.mxu1  ;;  %v16186_v31 = vld [vmem:[%s24080_s9 + $0xf8] sm:$0x10] }
 0xb66   :  { %11028 = vmatmul.bf16.vlgmr.msra.gmra.mxu3 %v15281_v36  ;;  %v15391_v36 = vor.u32 %v16186_v31, %v15390_v63 }
 0xb67   :  { %11228 = vmatpush.bf16.msra.mxu3 %v23639_v57 }
 0xb68   :  { %v11418_v12 = vand.u32 %v15391_v36, %v23682_v59 }
 0xb6b   :  { %11229 = vmatpush.bf16.msra.mxu3 %v23645_v53 }
 0xb6f   :  { %11230 = vmatpush.bf16.msra.mxu3 %v23651_v13 }
 0xb73   :  { %v11081_v61 = vpop.f32.mrf.mxu1  ;;  %11231 = vmatpush.bf16.msra.mxu3 %v23657_v34 }
 0xb74   :  { %v11085_v38 = vpack.c.bf16 %v11081_v61, %v11081_v61 }
 0xb76   :  { %15308 = vmatmul.msk.bf16.vlgmr.msra.gmra.mxu0 %vm10653_vm0, %v11085_v38 }
 0xb77   :  { %11322 = vmatpush.bf16.msra.mxu0 %v11314_v20  ;;  %11232 = vmatpush.bf16.msra.mxu3 %v23637_v50 }
 0xb7b   :  { %11323 = vmatpush.bf16.msra.mxu0 %v16181_v1  ;;  %v11083_v29 = vpop.f32.mrf.mxu1  ;;  %11233 = vmatpush.bf16.msra.mxu3 %v23667_v35 }
 0xb7f   :  { %11234 = vmatpush.bf16.msra.mxu3 %v23680_v17 }
 0xb83   :  { %11235 = vmatpush.bf16.msra.mxu3 %v23688_v26 }
 0xb86   :  { %11184 = vmatmul.bf16.vlgmr.msrb.gmra.mxu0 %v15323_v24 }
 0xb87   :  { %11384 = vmatpush.bf16.msrb.mxu0 %v23639_v57 }
 0xb8b   :  { %11385 = vmatpush.bf16.msrb.mxu0 %v23645_v53 }
 0xb8f   :  { %11386 = vmatpush.bf16.msrb.mxu0 %v23651_v13 }
 0xb93   :  { %11387 = vmatpush.bf16.msrb.mxu0 %v23657_v34 }
 0xb97   :  { %11388 = vmatpush.bf16.msrb.mxu0 %v23637_v50 }
 0xb9b   :  { %11389 = vmatpush.bf16.msrb.mxu0 %v23667_v35 }
 0xb9f   :  { %11390 = vmatpush.bf16.msrb.mxu0 %v23680_v17 }
 0xba3   :  { %11391 = vmatpush.bf16.msrb.mxu0 %v23688_v26 }
 0xbd9   :  { %v10961_v16 = vpop.f32.mrf.mxu3 }
 0xbda   :  { %v10965_v46 = vadd.f32 %v10961_v16, %v10913_v44 }
 0xbdc   :  { %v11017_v11 = vadd.f32 %v11013_v62, %v10965_v46  ;;  %v16194_v46 = vld [vmem:[%s24084_s11 + $0x38] sm:$0xff] }
 0xbe1   :  { %v10963_v30 = vpop.f32.mrf.mxu3 }
 0xbe2   :  { %v16192_v30 = vld [vmem:[%s24084_s11 + $0x28] sm:$0xff] }
 0xbe9   :  { %v11029_v55 = vpop.f32.mrf.mxu3 }
 0xbea   :  { %v11033_v23 = vpack.c.bf16 %v11029_v55, %v11029_v55 }
 0xbec   :  { %15294 = vmatmul.msk.bf16.vlgmr.msra.gmra.mxu2 %vm10653_vm0, %v11033_v23 }
 0xbed   :  { %11270 = vmatpush.bf16.msra.mxu2 %v11262_v48  ;;  %v16191_v48 = vld [vmem:[%s24084_s11 + $0x20] sm:$0xff] }
 0xbf1   :  { %11271 = vmatpush.bf16.msra.mxu2 %v16179_v45  ;;  %v11031_v49 = vpop.f32.mrf.mxu3 }
 0xbf2   :  { %v16190_v49 = vld [vmem:[%s24084_s11 + $0x18] sm:$0xff] }
 0xbf3   :  { %v11117_v9 = vpop.f32.mrf.mxu0 }
 0xbfb   :  { %v11119_v6 = vpop.f32.mrf.mxu0 }
 0xbfc   :  { %11132 = vmatmul.bf16.vlgmr.msrb.gmra.mxu2 %v15309_v27 }
 0xbfd   :  { %11332 = vmatpush.bf16.msrb.mxu2 %v23639_v57 }
 0xc01   :  { %11333 = vmatpush.bf16.msrb.mxu2 %v23645_v53 }
 0xc03   :  { %v11185_v8 = vpop.f32.mrf.mxu0 }
 0xc04   :  { %v11189_v60 = vpack.c.bf16 %v11185_v8, %v11185_v8  ;;  %v16188_v8 = vld [vmem:[%s24084_s11 + $0x8] sm:$0xff] }
 0xc05   :  { %11334 = vmatpush.bf16.msrb.mxu2 %v23651_v13 }
 0xc06   :  { %15336 = vmatmul.msk.bf16.vlgmr.msra.gmra.mxu1 %vm10653_vm0, %v11189_v60 }
 0xc07   :  { %11426 = vmatpush.bf16.msra.mxu1 %v11418_v12 }
 0xc09   :  { %11335 = vmatpush.bf16.msrb.mxu2 %v23657_v34 }
 0xc0b   :  { %v11187_v57 = vpop.f32.mrf.mxu0  ;;  %11427 = vmatpush.bf16.msra.mxu1 %v16185_v54 }
 0xc0c   :  { %v16187_v57 = vld [vmem:[%s24084_s11] sm:$0xff] }
 0xc0d   :  { %11336 = vmatpush.bf16.msrb.mxu2 %v23637_v50  ;;  %v15351_v50 = vld [vmem:[%s24081_s8 + $0x34] sm:$0xf] }
 0xc11   :  { %11337 = vmatpush.bf16.msrb.mxu2 %v23667_v35 }
 0xc15   :  { %11338 = vmatpush.bf16.msrb.mxu2 %v23680_v17 }
 0xc16   :  { %11288 = vmatmul.bf16.vlgmr.msrb.gmra.mxu1 %v15351_v50 }
 0xc19   :  { %11339 = vmatpush.bf16.msrb.mxu2 %v23688_v26 }
 0xc6f   :  { %v11065_v53 = vpop.f32.mrf.mxu2 }
 0xc70   :  { %v11069_v58 = vadd.f32 %v11065_v53, %v11017_v11  ;;  %v16193_v11 = vld [vmem:[%s24084_s11 + $0x30] sm:$0xff] }
 0xc72   :  { %v11121_v13 = vadd.f32 %v11117_v9, %v11069_v58  ;;  %v16189_v9 = vld [vmem:[%s24084_s11 + $0x10] sm:$0xff] }
 0xc77   :  { %v11067_v34 = vpop.f32.mrf.mxu2 }
 0xc7f   :  { %v11133_v35 = vpop.f32.mrf.mxu2 }
 0xc80   :  { %v11137_v17 = vpack.c.bf16 %v11133_v35, %v11133_v35 }
 0xc82   :  { %15322 = vmatmul.msk.bf16.vlgmr.msrb.gmra.mxu3 %vm10653_vm0, %v11137_v17 }
 0xc83   :  { %v11221_v18 = vpop.f32.mrf.mxu1  ;;  %11374 = vmatpush.bf16.msrb.mxu3 %v11366_v25 }
 0xc87   :  { %v11135_v26 = vpop.f32.mrf.mxu2  ;;  %11375 = vmatpush.bf16.msrb.mxu3 %v16183_v28 }
 0xc8b   :  { %v11223_v41 = vpop.f32.mrf.mxu1 }
 0xc92   :  { %11236 = vmatmul.bf16.vlgmr.msra.gmra.mxu3 %v15337_v40 }
 0xc93   :  { %v11289_v22 = vpop.f32.mrf.mxu1  ;;  %11527 = vmatpush.bf16.msra.mxu3 %v16194_v46 }
 0xc94   :  { %v11293_v19 = vpack.c.bf16 %v11289_v22, %v11289_v22  ;;  %v16202_v22 = vld [vmem:[%s24086_s13 + $0x38] sm:$0xff] }
 0xc96   :  { %15364 = vmatmul.msk.bf16.vlgmr.msra.gmra.mxu0 %vm10653_vm0, %v11293_v19  ;;  %v16201_v19 = vld [vmem:[%s24086_s13 + $0x30] sm:$0xff] }
 0xc97   :  { %11528 = vmatpush.bf16.msra.mxu3 %v16193_v11 }
 0xc9b   :  { %v11291_v32 = vpop.f32.mrf.mxu1  ;;  %11529 = vmatpush.bf16.msra.mxu3 %v16192_v30 }
 0xc9c   :  { %v16200_v32 = vld [vmem:[%s24086_s13 + $0x28] sm:$0xff] }
 0xc9f   :  { %11530 = vmatpush.bf16.msra.mxu3 %v16191_v48 }
 0xca3   :  { %11531 = vmatpush.bf16.msra.mxu3 %v16190_v49 }
 0xca6   :  { %11392 = vmatmul.bf16.vlgmr.msrb.gmra.mxu0 %v15379_v3 }
 0xca7   :  { %11532 = vmatpush.bf16.msra.mxu3 %v16189_v9 }
 0xcab   :  { %11533 = vmatpush.bf16.msra.mxu3 %v16188_v8 }
 0xcaf   :  { %11534 = vmatpush.bf16.msra.mxu3 %v16187_v57 }
 0xd05   :  { %v11169_v15 = vpop.f32.mrf.mxu3 }
 0xd06   :  { %v11173_v0 = vadd.f32 %v11169_v15, %v11121_v13  ;;  %v16217_v15 = vld [vmem:[%s24083_s12] ss:$0 sm:$0xff] }
 0xd08   :  { %v11225_v43 = vadd.f32 %v11221_v18, %v11173_v0  ;;  %v16199_v0 = vld [vmem:[%s24086_s13 + $0x20] sm:$0xff] }
 0xd0d   :  { %v11171_v21 = vpop.f32.mrf.mxu3 }
 0xd13   :  { %v11325_v44 = vpop.f32.mrf.mxu0 }
 0xd15   :  { %v11237_v10 = vpop.f32.mrf.mxu3 }
 0xd16   :  { %v11241_v37 = vpack.c.bf16 %v11237_v10, %v11237_v10  ;;  %v16198_v10 = vld [vmem:[%s24086_s13 + $0x18] sm:$0xff] }
 0xd18   :  { %15350 = vmatmul.msk.bf16.vlgmr.msra.gmra.mxu2 %vm10653_vm0, %v11241_v37  ;;  %v16197_v37 = vld [vmem:[%s24086_s13 + $0x10] sm:$0xff] }
 0xd19   :  { %11628 = vmatpush.bf16.msra.mxu2 %v16202_v22 }
 0xd1b   :  { %v11327_v47 = vpop.f32.mrf.mxu0 }
 0xd1d   :  { %v11239_v2 = vpop.f32.mrf.mxu3  ;;  %11629 = vmatpush.bf16.msra.mxu2 %v16201_v19 }
 0xd21   :  { %11630 = vmatpush.bf16.msra.mxu2 %v16200_v32 }
 0xd23   :  { %v11393_v39 = vpop.f32.mrf.mxu0 }
 0xd24   :  { %v11397_v52 = vpack.c.bf16 %v11393_v39, %v11393_v39 }
 0xd25   :  { %11631 = vmatpush.bf16.msra.mxu2 %v16199_v0 }
 0xd26   :  { %15392 = vmatmul.msk.bf16.vlgmr.msra.gmra.mxu1 %vm10653_vm0, %v11397_v52 }
 0xd28   :  { %11340 = vmatmul.bf16.vlgmr.msrb.gmra.mxu2 %v15365_v5 }
 0xd29   :  { %11632 = vmatpush.bf16.msra.mxu2 %v16198_v10 }
 0xd2b   :  { %v11395_v61 = vpop.f32.mrf.mxu0 }
 0xd2c   :  { %v16218_v61 = vld [vmem:[%s24085_s14] ss:$0 sm:$0xff] }
 0xd2d   :  { %11633 = vmatpush.bf16.msra.mxu2 %v16197_v37 }
 0xd9b   :  { %v11273_v20 = vpop.f32.mrf.mxu2 }
 0xd9c   :  { %v11277_v38 = vadd.f32 %v11273_v20, %v11225_v43 }
 0xd9e   :  { %v11329_v1 = vadd.f32 %v11325_v44, %v11277_v38  ;;  %v16196_v44 = vld [vmem:[%s24086_s13 + $0x8] sm:$0xff] }
 0xd9f   :  { %11634 = vmatpush.bf16.msra.mxu2 %v16196_v44 }
 0xda3   :  { %v11275_v29 = vpop.f32.mrf.mxu2  ;;  %v11429_v59 = vpop.f32.mrf.mxu1  ;;  %11635 = vmatpush.bf16.msra.mxu2 %v16195_v7 }
 0xdab   :  { %v11341_v24 = vpop.f32.mrf.mxu2  ;;  %v11431_v16 = vpop.f32.mrf.mxu1 }
 0xdac   :  { %v11345_v62 = vpack.c.bf16 %v11341_v24, %v11341_v24 }
 0xdae   :  { %15378 = vmatmul.msk.bf16.vlgmr.msrb.gmra.mxu3 %vm10653_vm0, %v11345_v62 }
 0xdb3   :  { %v11343_v33 = vpop.f32.mrf.mxu2 }
 0xe31   :  { %v11377_v56 = vpop.f32.mrf.mxu3 }
 0xe32   :  { %v11381_v4 = vadd.f32 %v11377_v56, %v11329_v1 }
 0xe34   :  { %v11433_v55 = vadd.f32 %v11429_v59, %v11381_v4 }
 0xe36   :  { %v11438_v23 = vadd.f32 %v16216_v42, %v11433_v55 }
 0xe38   :  { %v15393_v45 = vmul.f32 -1.442695, %v11438_v23 }
 0xe39   :  { %v11379_v27 = vpop.f32.mrf.mxu3 }
 0xe3a   :  { %16451 = vpow2.f32 %v15393_v45 }
 0xe40   :  { %v16452_v6 = vpop.eup %16451 }
 0xe41   :  { %v11442_v60 = vadd.f32 1.0, %v16452_v6 }
 0xe43   :  { %16453 = vrcp.f32 %v11442_v60  ;;  %v11454_v50 = vand.u32 2147483648, %v11442_v60  ;;  %v11452_v35 = vand.u32 2147483647, %v11442_v60  ;;  %vm11448_vm15 = vweird.f32 %v11442_v60 }
 0xe45   :  { %v11455_v26 = vor.u32 1.1754944e-38, %v11454_v50  ;;  %vm11453_vm1 = vcmp.eq.f32.partialorder %v11452_v35, 8.507059e+37 }
 0xe49   :  { %v16454_v53 = vpop.eup %16453 }
 0xe4a   :  { %v11444_v58 = vmul.f32 %v16454_v53, %v11442_v60  ;;  %vm11449_vm3 = vweird.f32 %v16454_v53 }
 0xe4b   :  { %vm11450_vm4 = vmor %vm11448_vm15, %vm11449_vm3 }
 0xe4c   :  { %v11445_v13 = vsub.f32 1.0, %v11444_v58 }
 0xe4e   :  { %v11446_v34 = vmul.f32 %v16454_v53, %v11445_v13 }
 0xe50   :  { %v11447_v17 = vadd.f32 %v16454_v53, %v11446_v34 }
 0xe52   :  { %v11451_v40 = vsel %vm11450_vm4, %v16454_v53, %v11447_v17 }
 0xe53   :  { %v11456_v18 = vsel %vm11453_vm1, %v11455_v26, %v11451_v40 }
 0xe54   :  { %v11458_v41 = vpack.c.bf16 %v11456_v18, %v11456_v18 }
 0xe56   :  { %11535 = vmatmul.bf16.vlgmr.msra.gmra.mxu3 %v11458_v41 }
 0xed9   :  { %v11536_v43 = vpop.f32.mrf.mxu3 }
 0xeda   :  { %v11537_v3 = vadd.f32 %v16217_v15, %v11536_v43 }
 0xedc   :  { %v15426_v21 = vmul.f32 -1.442695, %v11537_v3 }
 0xede   :  { %16455 = vpow2.f32 %v15426_v21 }
 0xee1   :  { %v11538_v2 = vpop.f32.mrf.mxu3 }
 0xee4   :  { %v16456_v5 = vpop.eup %16455 }
 0xee5   :  { %v11543_v14 = vadd.f32 1.0, %v16456_v5 }
 0xee7   :  { %16457 = vrcp.f32 %v11543_v14  ;;  %v11555_v28 = vand.u32 2147483648, %v11543_v14  ;;  %v11553_v31 = vand.u32 2147483647, %v11543_v14  ;;  %vm11549_vm14 = vweird.f32 %v11543_v14 }
 0xee9   :  { %v11556_v36 = vor.u32 1.1754944e-38, %v11555_v28  ;;  %vm11554_vm6 = vcmp.eq.f32.partialorder %v11553_v31, 8.507059e+37 }
 0xeed   :  { %v16458_v51 = vpop.eup %16457 }
 0xeee   :  { %v11545_v47 = vmul.f32 %v16458_v51, %v11543_v14  ;;  %vm11550_vm5 = vweird.f32 %v16458_v51 }
 0xeef   :  { %vm11551_vm2 = vmor %vm11549_vm14, %vm11550_vm5 }
 0xef0   :  { %v11546_v25 = vsub.f32 1.0, %v11545_v47 }
 0xef2   :  { %v11547_v63 = vmul.f32 %v16458_v51, %v11546_v25 }
 0xef4   :  { %v11548_v39 = vadd.f32 %v16458_v51, %v11547_v63 }
 0xef6   :  { %v11552_v12 = vsel %vm11551_vm2, %v16458_v51, %v11548_v39 }
 0xef7   :  { %v11557_v54 = vsel %vm11554_vm6, %v11556_v36, %v11552_v12 }
 0xef8   :  { %v11559_v52 = vpack.c.bf16 %v11557_v54, %v11557_v54 }
 0xefa   :  { %11636 = vmatmul.bf16.vlgmr.msra.gmra.mxu2 %v11559_v52 }
 0xf7d   :  { %v11637_v20 = vpop.f32.mrf.mxu2 }
 0xf7e   :  { %v11638_v38 = vadd.f32 %v16218_v61, %v11637_v20 }
 0xf80   :  { %11641 = vst [vmem:[%s24087_s15] sm:$0xff] %v11638_v38 }
 0xf85   :  { %v11639_v1 = vpop.f32.mrf.mxu2 }

</bundles_post_ra>
